<compile_context>
chip_gen: v7x
topology: tpu7x:2x2x1
jax: 0.10.0
libtpu: 0.0.40
codegen_flags: <defaults>
</compile_context>

<pallas_src>
import math
from functools import partial

import jax
import jax.numpy as jnp
from jax import lax
from jax.experimental import pallas as pl
from jax.experimental.pallas import tpu as pltpu


# ----------------------------------------------------------------------------
# helpers
# ----------------------------------------------------------------------------
def _pick_tile(dim, target, align):
    """Largest tile <= target that is a multiple of `align` and divides `dim`;
    falls back to the full dimension (always a legal block size)."""
    t = min(target, dim)
    t -= t % align
    while t >= align:
        if dim % t == 0:
            return t
        t -= align
    return dim


# ----------------------------------------------------------------------------
# Tiled linear:  y = x @ w + b        (used only for the embedding projection;
# sqrt(d_model) is already folded into w/b, output is stored bf16)
# ----------------------------------------------------------------------------
def _linear_kernel(x_ref, w_ref, b_ref, o_ref, acc_ref):
    k = pl.program_id(2)

    @pl.when(k == 0)
    def _():
        acc_ref[...] = jnp.zeros_like(acc_ref)

    x = x_ref[...]
    if x.dtype != jnp.bfloat16:          # only the raw network input is f32
        x = x.astype(jnp.bfloat16)
    acc_ref[...] += jnp.dot(x, w_ref[...], preferred_element_type=jnp.float32)

    @pl.when(k == pl.num_programs(2) - 1)
    def _():
        o_ref[...] = (acc_ref[...] + b_ref[...]).astype(o_ref.dtype)


def linear(x, w, b, *, out_dtype=jnp.bfloat16,
           tm_target=256, tn_target=512, tk_target=512):
    """x: (M, K), w: (K, N) bf16, b: (1, N) f32 -> (M, N) out_dtype."""
    M, K = x.shape
    Kw, N = w.shape
    assert K == Kw
    tm = _pick_tile(M, tm_target, 8)
    tn = _pick_tile(N, tn_target, 128)
    tk = _pick_tile(K, tk_target, 128)
    grid = (M // tm, N // tn, K // tk)
    return pl.pallas_call(
        _linear_kernel,
        out_shape=jax.ShapeDtypeStruct((M, N), out_dtype),
        grid=grid,
        in_specs=[
            pl.BlockSpec((tm, tk), lambda i, j, k: (i, k)),
            pl.BlockSpec((tk, tn), lambda i, j, k: (k, j)),
            pl.BlockSpec((1, tn), lambda i, j, k: (0, j)),
        ],
        out_specs=pl.BlockSpec((tm, tn), lambda i, j, k: (i, j)),
        scratch_shapes=[pltpu.VMEM((tm, tn), jnp.float32)],
        compiler_params=pltpu.CompilerParams(
            dimension_semantics=("parallel", "parallel", "arbitrary"),
            vmem_limit_bytes=64 * 1024 * 1024),
    )(x, w, b)


# ----------------------------------------------------------------------------
# Fused encoder layer (optionally with the classifier head), grid = (B,):
#   y  = LN1(x + OutProj(MHA(x)))
#   out= LN2(y + W2 @ relu(W1 @ y + b1) + b2)
#   [logits = out[-1] @ fc_w + fc_b   if with_head]
# ----------------------------------------------------------------------------
def _encoder_layer_kernel(*refs, nhead, eps, with_head):
    if with_head:
        (x_ref, wqkv_ref, bqkv_ref, wo_ref, bo_ref, g1_ref, be1_ref,
         w1_ref, b1_ref, w2_ref, b2_ref, g2_ref, be2_ref,
         fcw_ref, fcb_ref,
         o_ref, log_ref, qkv_sc, attn_sc) = refs
    else:
        (x_ref, wqkv_ref, bqkv_ref, wo_ref, bo_ref, g1_ref, be1_ref,
         w1_ref, b1_ref, w2_ref, b2_ref, g2_ref, be2_ref,
         o_ref, qkv_sc, attn_sc) = refs

    xb = x_ref[0]                                   # (S, D) bf16
    x = xb.astype(jnp.float32)
    S, D = x.shape
    Dh = D // nhead
    scale = 1.0 / math.sqrt(Dh)

    # ---- fused QKV projection: ONE wide (S,D)@(D,3D) MXU matmul -------------
    qkv = jnp.dot(xb, wqkv_ref[...], preferred_element_type=jnp.float32)
    qkv_sc[...] = (qkv + bqkv_ref[...]).astype(jnp.bfloat16)

    # ---- per-head scaled-dot-product attention -------------------------------
    # Heads are static lane slices of the qkv scratch; head outputs are written
    # back into lane slices of attn_sc so the out-projection is one wide matmul.
    # nhead is small & static; (S,S)/(S,Dh) f32 intermediates are tiny here.
    for h in range(nhead):
        lo = h * Dh
        q = qkv_sc[:, lo:lo + Dh]                   # (S, Dh) bf16
        k = qkv_sc[:, D + lo:D + lo + Dh]
        v = qkv_sc[:, 2 * D + lo:2 * D + lo + Dh]
        s = lax.dot_general(q, k, (((1,), (1,)), ((), ())),
                            preferred_element_type=jnp.float32) * scale
        s = s - jnp.max(s, axis=-1, keepdims=True)
        p = jnp.exp(s)
        p = p * pl.reciprocal(jnp.sum(p, axis=-1, keepdims=True), approx=True)
        o = jnp.dot(p.astype(jnp.bfloat16), v,
                    preferred_element_type=jnp.float32)          # (S, Dh)
        attn_sc[:, lo:lo + Dh] = o.astype(jnp.bfloat16)

    # ---- wide out-projection + residual + LayerNorm1 -------------------------
    attn = jnp.dot(attn_sc[...], wo_ref[...], preferred_element_type=jnp.float32)
    z1 = x + attn + bo_ref[...]
    mu1 = jnp.mean(z1, axis=-1, keepdims=True)
    d1 = z1 - mu1
    var1 = jnp.mean(d1 * d1, axis=-1, keepdims=True)
    y = d1 * lax.rsqrt(var1 + eps) * g1_ref[...] + be1_ref[...]

    # ---- FFN (hidden (S,dff) never leaves the chip) + residual + LayerNorm2 --
    yb = y.astype(jnp.bfloat16)
    hid = jnp.dot(yb, w1_ref[...], preferred_element_type=jnp.float32) + b1_ref[...]
    hid = jnp.maximum(hid, 0.0)
    ffn = jnp.dot(hid.astype(jnp.bfloat16), w2_ref[...],
                  preferred_element_type=jnp.float32) + b2_ref[...]
    z2 = y + ffn
    mu2 = jnp.mean(z2, axis=-1, keepdims=True)
    d2 = z2 - mu2
    var2 = jnp.mean(d2 * d2, axis=-1, keepdims=True)
    out = d2 * lax.rsqrt(var2 + eps) * g2_ref[...] + be2_ref[...]

    o_ref[0] = out.astype(o_ref.dtype)

    if with_head:
        # classifier fused into the last layer: logits for memory[-1] (seq row S-1)
        last = out[S - 1:S, :].astype(jnp.bfloat16)               # (1, D)
        logits = jnp.dot(last, fcw_ref[...],
                         preferred_element_type=jnp.float32) + fcb_ref[...]
        log_ref[0] = logits


def encoder_layer(x3, lp, *, nhead, eps=1e-5, head=None):
    """x3: (B, S, D) bf16 -> (B, S, D) bf16 [, (B, 1, Cp) f32 logits]."""
    B, S, D = x3.shape
    dff = lp["ff1_w"].shape[1]

    x_spec = pl.BlockSpec((1, S, D), lambda b: (b, 0, 0))

    def full(shape):
        return pl.BlockSpec(shape, lambda b: tuple(0 for _ in shape))

    in_specs = [
        x_spec,
        full((D, 3 * D)), full((1, 3 * D)),        # Wqkv, bqkv
        full((D, D)), full((1, D)),                # Wo, bo
        full((1, D)), full((1, D)),                # ln1 gamma/beta
        full((D, dff)), full((1, dff)),            # W1, b1
        full((dff, D)), full((1, D)),              # W2, b2
        full((1, D)), full((1, D)),                # ln2 gamma/beta
    ]
    args = [x3, lp["wqkv"], lp["bqkv"], lp["wo"], lp["bo"],
            lp["ln1_g"], lp["ln1_b"], lp["ff1_w"], lp["ff1_b"],
            lp["ff2_w"], lp["ff2_b"], lp["ln2_g"], lp["ln2_b"]]

    with_head = head is not None
    if with_head:
        fc_w, fc_b = head
        Cp = fc_w.shape[1]
        in_specs += [full((D, Cp)), full((1, Cp))]
        args += [fc_w, fc_b]
        out_shape = (jax.ShapeDtypeStruct((B, S, D), jnp.bfloat16),
                     jax.ShapeDtypeStruct((B, 1, Cp), jnp.float32))
        out_specs = (x_spec, pl.BlockSpec((1, 1, Cp), lambda b: (b, 0, 0)))
    else:
        out_shape = jax.ShapeDtypeStruct((B, S, D), jnp.bfloat16)
        out_specs = x_spec

    return pl.pallas_call(
        partial(_encoder_layer_kernel, nhead=nhead, eps=eps, with_head=with_head),
        out_shape=out_shape,
        grid=(B,),
        in_specs=in_specs,
        out_specs=out_specs,
        scratch_shapes=[pltpu.VMEM((S, 3 * D), jnp.bfloat16),   # qkv concat
                        pltpu.VMEM((S, D), jnp.bfloat16)],      # head-concat
        compiler_params=pltpu.CompilerParams(
            dimension_semantics=("parallel",),
            vmem_limit_bytes=64 * 1024 * 1024),
    )(*args)


# ----------------------------------------------------------------------------
# Full forward pass (glue is only free reshapes + final slice)
# ----------------------------------------------------------------------------
def transformer_forward(src, params, *, d_model, nhead, num_classes):
    """src: (B, S, input_size) f32 -> logits (B, num_classes) f32."""
    B, S, In = src.shape
    D = d_model
    # embedding(src) * sqrt(d_model)  -- scale already folded into emb_w/emb_b
    x = linear(src.reshape(B * S, In), params["emb_w"], params["emb_b"])
    x = x.reshape(B, S, D)                                       # bf16
    n_layers = len(params["layers"])
    logits = None
    for i, lp in enumerate(params["layers"]):
        if i == n_layers - 1:
            # classifier on memory[-1] fused into the last layer's kernel
            x, logits = encoder_layer(x, lp, nhead=nhead,
                                      head=(params["fc_w"], params["fc_b"]))
        else:
            x = encoder_layer(x, lp, nhead=nhead)
    logits = logits.reshape(B, -1)                               # (B, Cp)
    return logits[:, :num_classes]


# ----------------------------------------------------------------------------
# Deterministic synthetic parameters (shapes match the nn.Module; weights bf16)
# ----------------------------------------------------------------------------
def init_params(key, *, input_size, num_classes, d_model, nhead, num_layers, dff):
    D = d_model
    Cp = ((num_classes + 127) // 128) * 128          # lane-dense classifier width
    keys = jax.random.split(key, 2 + num_layers)

    def dense(k, din, dout, scale=1.0):
        w = (jax.random.normal(k, (din, dout), jnp.float32) * 0.02 * scale)
        b = jnp.zeros((1, dout), jnp.float32)
        return w.astype(jnp.bfloat16), b

    p = {}
    # sqrt(d_model) folded into the embedding weights/bias (one-time transform)
    emb_scale = math.sqrt(D)
    ew, eb = dense(keys[0], input_size, D, scale=emb_scale)
    p["emb_w"], p["emb_b"] = ew, eb * emb_scale
    fw, fb = dense(keys[1], D, num_classes)
    p["fc_w"] = jnp.zeros((D, Cp), jnp.bfloat16).at[:, :num_classes].set(fw)
    p["fc_b"] = jnp.zeros((1, Cp), jnp.float32).at[:, :num_classes].set(fb)

    layers = []
    for i in range(num_layers):
        lk = jax.random.split(keys[2 + i], 4)
        lp = {}
        # fused QKV weight: columns [0:D]=Q, [D:2D]=K, [2D:3D]=V, heads are
        # contiguous Dh-wide column groups inside each section.
        lp["wqkv"], lp["bqkv"] = dense(lk[0], D, 3 * D)
        lp["wo"], lp["bo"] = dense(lk[1], D, D)
        lp["ff1_w"], lp["ff1_b"] = dense(lk[2], D, dff)
        lp["ff2_w"], lp["ff2_b"] = dense(lk[3], dff, D)
        lp["ln1_g"] = jnp.ones((1, D), jnp.float32)
        lp["ln1_b"] = jnp.zeros((1, D), jnp.float32)
        lp["ln2_g"] = jnp.ones((1, D), jnp.float32)
        lp["ln2_b"] = jnp.zeros((1, D), jnp.float32)
        layers.append(lp)
    p["layers"] = layers
    return p


# ----------------------------------------------------------------------------
if __name__ == "__main__":
    # Small shapes consistent with the module's forward: src is (batch, seq, input_size).
    # d_model=128 keeps every activation/weight tile lane-dense (128 lanes).
    B, S, input_size, num_classes = 2, 8, 16, 10
    d_model, nhead, num_layers = 128, 4, 2
    dff = 2048  # nn.TransformerEncoderLayer default dim_feedforward

    key = jax.random.PRNGKey(0)
    k_param, k_data = jax.random.split(key)
    params = init_params(k_param, input_size=input_size, num_classes=num_classes,
                         d_model=d_model, nhead=nhead, num_layers=num_layers, dff=dff)
    src = jax.random.normal(k_data, (B, S, input_size), jnp.float32)

    fwd = jax.jit(partial(transformer_forward, d_model=d_model, nhead=nhead,
                          num_classes=num_classes))
    out = jax.block_until_ready(fwd(src, params))
    assert out.shape == (B, num_classes) and out.dtype == jnp.float32
    print("KERNEL_OK")
</pallas_src>

<mosaic_0001>
module attributes {stable_mosaic.version = 11 : i64} {
  func.func @_encoder_layer_kernel(%arg0: i32, %arg1: memref<1x8x128xbf16, #tpu.memory_space<vmem>>, %arg2: memref<128x384xbf16, #tpu.memory_space<vmem>>, %arg3: memref<1x384xf32, #tpu.memory_space<vmem>>, %arg4: memref<128x128xbf16, #tpu.memory_space<vmem>>, %arg5: memref<1x128xf32, #tpu.memory_space<vmem>>, %arg6: memref<1x128xf32, #tpu.memory_space<vmem>>, %arg7: memref<1x128xf32, #tpu.memory_space<vmem>>, %arg8: memref<128x2048xbf16, #tpu.memory_space<vmem>>, %arg9: memref<1x2048xf32, #tpu.memory_space<vmem>>, %arg10: memref<2048x128xbf16, #tpu.memory_space<vmem>>, %arg11: memref<1x128xf32, #tpu.memory_space<vmem>>, %arg12: memref<1x128xf32, #tpu.memory_space<vmem>>, %arg13: memref<1x128xf32, #tpu.memory_space<vmem>>, %arg14: memref<1x8x128xbf16, #tpu.memory_space<vmem>>, %arg15: memref<8x384xbf16, #tpu.memory_space<vmem>>, %arg16: memref<8x128xbf16, #tpu.memory_space<vmem>>) attributes {dimension_semantics = [#tpu.dimension_semantics<parallel>], iteration_bounds = array<i64: 2>, scalar_prefetch = 0 : i64, scratch_operands = 2 : i64, tpu.core_type = #tpu.core_type<tc>, window_params = [{transform_indices = @transform_0, window_bounds = array<i64: 1, 8, 128>}, {pipeline_mode = #tpu.pipeline_mode<synchronous>, transform_indices = @transform_1, window_bounds = array<i64: 128, 384>}, {pipeline_mode = #tpu.pipeline_mode<synchronous>, transform_indices = @transform_2, window_bounds = array<i64: 1, 384>}, {pipeline_mode = #tpu.pipeline_mode<synchronous>, transform_indices = @transform_3, window_bounds = array<i64: 128, 128>}, {pipeline_mode = #tpu.pipeline_mode<synchronous>, transform_indices = @transform_4, window_bounds = array<i64: 1, 128>}, {pipeline_mode = #tpu.pipeline_mode<synchronous>, transform_indices = @transform_5, window_bounds = array<i64: 1, 128>}, {pipeline_mode = #tpu.pipeline_mode<synchronous>, transform_indices = @transform_6, window_bounds = array<i64: 1, 128>}, {pipeline_mode = #tpu.pipeline_mode<synchronous>, transform_indices = @transform_7, window_bounds = array<i64: 128, 2048>}, {pipeline_mode = #tpu.pipeline_mode<synchronous>, transform_indices = @transform_8, window_bounds = array<i64: 1, 2048>}, {pipeline_mode = #tpu.pipeline_mode<synchronous>, transform_indices = @transform_9, window_bounds = array<i64: 2048, 128>}, {pipeline_mode = #tpu.pipeline_mode<synchronous>, transform_indices = @transform_10, window_bounds = array<i64: 1, 128>}, {pipeline_mode = #tpu.pipeline_mode<synchronous>, transform_indices = @transform_11, window_bounds = array<i64: 1, 128>}, {pipeline_mode = #tpu.pipeline_mode<synchronous>, transform_indices = @transform_12, window_bounds = array<i64: 1, 128>}, {transform_indices = @transform_13, window_bounds = array<i64: 1, 8, 128>}]} {
    %c0 = arith.constant 0 : index
    %c0_0 = arith.constant 0 : index
    %c0_1 = arith.constant 0 : index
    %0 = vector.load %arg1[%c0, %c0_0, %c0_1] : memref<1x8x128xbf16, #tpu.memory_space<vmem>>, vector<1x8x128xbf16>
    %1 = vector.shape_cast %0 : vector<1x8x128xbf16> to vector<8x128xbf16>
    %2 = arith.extf %1 : vector<8x128xbf16> to vector<8x128xf32>
    %c0_2 = arith.constant 0 : index
    %c0_3 = arith.constant 0 : index
    %3 = vector.load %arg2[%c0_2, %c0_3] : memref<128x384xbf16, #tpu.memory_space<vmem>>, vector<128x384xbf16>
    %cst = arith.constant dense<0.000000e+00> : vector<8x384xf32>
    %4 = tpu.matmul %1, %3, %cst {dimension_numbers = #tpu.dot_dimension_numbers<[1], [0], [0], [1], [0, 0, 1, 1], [], []>} : vector<8x128xbf16>, vector<128x384xbf16>, vector<8x384xf32> -> vector<8x384xf32>
    %c0_4 = arith.constant 0 : index
    %c0_5 = arith.constant 0 : index
    %5 = vector.load %arg3[%c0_4, %c0_5] : memref<1x384xf32, #tpu.memory_space<vmem>>, vector<1x384xf32>
    %6 = vector.broadcast %5 : vector<1x384xf32> to vector<8x384xf32>
    %7 = arith.addf %4, %6 : vector<8x384xf32>
    %8 = arith.truncf %7 : vector<8x384xf32> to vector<8x384xbf16>
    %c0_6 = arith.constant 0 : index
    %c0_7 = arith.constant 0 : index
    %9 = vector.load %arg15[%c0_6, %c0_7] : memref<8x384xbf16, #tpu.memory_space<vmem>>, vector<8x384xbf16>
    tpu.vector_store %arg15[%c0_6, %c0_7], %8 {strides = array<i32>} : memref<8x384xbf16, #tpu.memory_space<vmem>>, vector<8x384xbf16>,
    %c0_8 = arith.constant 0 : index
    %c0_9 = arith.constant 0 : index
    %10 = vector.load %arg15[%c0_8, %c0_9] : memref<8x384xbf16, #tpu.memory_space<vmem>>, vector<8x32xbf16>
    %c0_10 = arith.constant 0 : index
    %c128 = arith.constant 128 : index
    %11 = vector.load %arg15[%c0_10, %c128] : memref<8x384xbf16, #tpu.memory_space<vmem>>, vector<8x32xbf16>
    %c0_11 = arith.constant 0 : index
    %c256 = arith.constant 256 : index
    %12 = vector.load %arg15[%c0_11, %c256] : memref<8x384xbf16, #tpu.memory_space<vmem>>, vector<8x32xbf16>
    %cst_12 = arith.constant dense<0.000000e+00> : vector<8x8xf32>
    %13 = tpu.matmul %10, %11, %cst_12 {dimension_numbers = #tpu.dot_dimension_numbers<[1], [1], [0], [0], [0, 0, 1, 0], [], []>} : vector<8x32xbf16>, vector<8x32xbf16>, vector<8x8xf32> -> vector<8x8xf32>
    %cst_13 = arith.constant 0.176776692 : f32
    %14 = vector.broadcast %cst_13 : f32 to vector<8x8xf32>
    %15 = arith.mulf %13, %14 : vector<8x8xf32>
    %cst_14 = arith.constant dense<0xFF800000> : vector<8xf32>
    %16 = vector.multi_reduction <maximumf>, %15, %cst_14 [1] : vector<8x8xf32> to vector<8xf32>
    %17 = vector.shape_cast %16 : vector<8xf32> to vector<8x1xf32>
    %18 = vector.broadcast %17 : vector<8x1xf32> to vector<8x8xf32>
    %19 = arith.subf %15, %18 : vector<8x8xf32>
    %20 = math.exp %19 : vector<8x8xf32>
    %cst_15 = arith.constant dense<0.000000e+00> : vector<8xf32>
    %21 = vector.multi_reduction <add>, %20, %cst_15 [1] : vector<8x8xf32> to vector<8xf32>
    %22 = vector.shape_cast %21 : vector<8xf32> to vector<8x1xf32>
    %23 = tpu.reciprocal %22 {approx = true} : vector<8x1xf32> -> vector<8x1xf32>
    %24 = vector.broadcast %23 : vector<8x1xf32> to vector<8x8xf32>
    %25 = arith.mulf %20, %24 : vector<8x8xf32>
    %26 = arith.truncf %25 : vector<8x8xf32> to vector<8x8xbf16>
    %cst_16 = arith.constant dense<0.000000e+00> : vector<8x32xf32>
    %27 = tpu.matmul %26, %12, %cst_16 {dimension_numbers = #tpu.dot_dimension_numbers<[1], [0], [0], [1], [0, 0, 1, 1], [], []>} : vector<8x8xbf16>, vector<8x32xbf16>, vector<8x32xf32> -> vector<8x32xf32>
    %28 = arith.truncf %27 : vector<8x32xf32> to vector<8x32xbf16>
    %c0_17 = arith.constant 0 : index
    %c0_18 = arith.constant 0 : index
    %29 = vector.load %arg16[%c0_17, %c0_18] : memref<8x128xbf16, #tpu.memory_space<vmem>>, vector<8x32xbf16>
    tpu.vector_store %arg16[%c0_17, %c0_18], %28 {strides = array<i32>} : memref<8x128xbf16, #tpu.memory_space<vmem>>, vector<8x32xbf16>,
    %c0_19 = arith.constant 0 : index
    %c32 = arith.constant 32 : index
    %30 = vector.load %arg15[%c0_19, %c32] : memref<8x384xbf16, #tpu.memory_space<vmem>>, vector<8x32xbf16>
    %c0_20 = arith.constant 0 : index
    %c160 = arith.constant 160 : index
    %31 = vector.load %arg15[%c0_20, %c160] : memref<8x384xbf16, #tpu.memory_space<vmem>>, vector<8x32xbf16>
    %c0_21 = arith.constant 0 : index
    %c288 = arith.constant 288 : index
    %32 = vector.load %arg15[%c0_21, %c288] : memref<8x384xbf16, #tpu.memory_space<vmem>>, vector<8x32xbf16>
    %cst_22 = arith.constant dense<0.000000e+00> : vector<8x8xf32>
    %33 = tpu.matmul %30, %31, %cst_22 {dimension_numbers = #tpu.dot_dimension_numbers<[1], [1], [0], [0], [0, 0, 1, 0], [], []>} : vector<8x32xbf16>, vector<8x32xbf16>, vector<8x8xf32> -> vector<8x8xf32>
    %cst_23 = arith.constant 0.176776692 : f32
    %34 = vector.broadcast %cst_23 : f32 to vector<8x8xf32>
    %35 = arith.mulf %33, %34 : vector<8x8xf32>
    %cst_24 = arith.constant dense<0xFF800000> : vector<8xf32>
    %36 = vector.multi_reduction <maximumf>, %35, %cst_24 [1] : vector<8x8xf32> to vector<8xf32>
    %37 = vector.shape_cast %36 : vector<8xf32> to vector<8x1xf32>
    %38 = vector.broadcast %37 : vector<8x1xf32> to vector<8x8xf32>
    %39 = arith.subf %35, %38 : vector<8x8xf32>
    %40 = math.exp %39 : vector<8x8xf32>
    %cst_25 = arith.constant dense<0.000000e+00> : vector<8xf32>
    %41 = vector.multi_reduction <add>, %40, %cst_25 [1] : vector<8x8xf32> to vector<8xf32>
    %42 = vector.shape_cast %41 : vector<8xf32> to vector<8x1xf32>
    %43 = tpu.reciprocal %42 {approx = true} : vector<8x1xf32> -> vector<8x1xf32>
    %44 = vector.broadcast %43 : vector<8x1xf32> to vector<8x8xf32>
    %45 = arith.mulf %40, %44 : vector<8x8xf32>
    %46 = arith.truncf %45 : vector<8x8xf32> to vector<8x8xbf16>
    %cst_26 = arith.constant dense<0.000000e+00> : vector<8x32xf32>
    %47 = tpu.matmul %46, %32, %cst_26 {dimension_numbers = #tpu.dot_dimension_numbers<[1], [0], [0], [1], [0, 0, 1, 1], [], []>} : vector<8x8xbf16>, vector<8x32xbf16>, vector<8x32xf32> -> vector<8x32xf32>
    %48 = arith.truncf %47 : vector<8x32xf32> to vector<8x32xbf16>
    %c0_27 = arith.constant 0 : index
    %c32_28 = arith.constant 32 : index
    %49 = vector.load %arg16[%c0_27, %c32_28] : memref<8x128xbf16, #tpu.memory_space<vmem>>, vector<8x32xbf16>
    tpu.vector_store %arg16[%c0_27, %c32_28], %48 {strides = array<i32>} : memref<8x128xbf16, #tpu.memory_space<vmem>>, vector<8x32xbf16>,
    %c0_29 = arith.constant 0 : index
    %c64 = arith.constant 64 : index
    %50 = vector.load %arg15[%c0_29, %c64] : memref<8x384xbf16, #tpu.memory_space<vmem>>, vector<8x32xbf16>
    %c0_30 = arith.constant 0 : index
    %c192 = arith.constant 192 : index
    %51 = vector.load %arg15[%c0_30, %c192] : memref<8x384xbf16, #tpu.memory_space<vmem>>, vector<8x32xbf16>
    %c0_31 = arith.constant 0 : index
    %c320 = arith.constant 320 : index
    %52 = vector.load %arg15[%c0_31, %c320] : memref<8x384xbf16, #tpu.memory_space<vmem>>, vector<8x32xbf16>
    %cst_32 = arith.constant dense<0.000000e+00> : vector<8x8xf32>
    %53 = tpu.matmul %50, %51, %cst_32 {dimension_numbers = #tpu.dot_dimension_numbers<[1], [1], [0], [0], [0, 0, 1, 0], [], []>} : vector<8x32xbf16>, vector<8x32xbf16>, vector<8x8xf32> -> vector<8x8xf32>
    %cst_33 = arith.constant 0.176776692 : f32
    %54 = vector.broadcast %cst_33 : f32 to vector<8x8xf32>
    %55 = arith.mulf %53, %54 : vector<8x8xf32>
    %cst_34 = arith.constant dense<0xFF800000> : vector<8xf32>
    %56 = vector.multi_reduction <maximumf>, %55, %cst_34 [1] : vector<8x8xf32> to vector<8xf32>
    %57 = vector.shape_cast %56 : vector<8xf32> to vector<8x1xf32>
    %58 = vector.broadcast %57 : vector<8x1xf32> to vector<8x8xf32>
    %59 = arith.subf %55, %58 : vector<8x8xf32>
    %60 = math.exp %59 : vector<8x8xf32>
    %cst_35 = arith.constant dense<0.000000e+00> : vector<8xf32>
    %61 = vector.multi_reduction <add>, %60, %cst_35 [1] : vector<8x8xf32> to vector<8xf32>
    %62 = vector.shape_cast %61 : vector<8xf32> to vector<8x1xf32>
    %63 = tpu.reciprocal %62 {approx = true} : vector<8x1xf32> -> vector<8x1xf32>
    %64 = vector.broadcast %63 : vector<8x1xf32> to vector<8x8xf32>
    %65 = arith.mulf %60, %64 : vector<8x8xf32>
    %66 = arith.truncf %65 : vector<8x8xf32> to vector<8x8xbf16>
    %cst_36 = arith.constant dense<0.000000e+00> : vector<8x32xf32>
    %67 = tpu.matmul %66, %52, %cst_36 {dimension_numbers = #tpu.dot_dimension_numbers<[1], [0], [0], [1], [0, 0, 1, 1], [], []>} : vector<8x8xbf16>, vector<8x32xbf16>, vector<8x32xf32> -> vector<8x32xf32>
    %68 = arith.truncf %67 : vector<8x32xf32> to vector<8x32xbf16>
    %c0_37 = arith.constant 0 : index
    %c64_38 = arith.constant 64 : index
    %69 = vector.load %arg16[%c0_37, %c64_38] : memref<8x128xbf16, #tpu.memory_space<vmem>>, vector<8x32xbf16>
    tpu.vector_store %arg16[%c0_37, %c64_38], %68 {strides = array<i32>} : memref<8x128xbf16, #tpu.memory_space<vmem>>, vector<8x32xbf16>,
    %c0_39 = arith.constant 0 : index
    %c96 = arith.constant 96 : index
    %70 = vector.load %arg15[%c0_39, %c96] : memref<8x384xbf16, #tpu.memory_space<vmem>>, vector<8x32xbf16>
    %c0_40 = arith.constant 0 : index
    %c224 = arith.constant 224 : index
    %71 = vector.load %arg15[%c0_40, %c224] : memref<8x384xbf16, #tpu.memory_space<vmem>>, vector<8x32xbf16>
    %c0_41 = arith.constant 0 : index
    %c352 = arith.constant 352 : index
    %72 = vector.load %arg15[%c0_41, %c352] : memref<8x384xbf16, #tpu.memory_space<vmem>>, vector<8x32xbf16>
    %cst_42 = arith.constant dense<0.000000e+00> : vector<8x8xf32>
    %73 = tpu.matmul %70, %71, %cst_42 {dimension_numbers = #tpu.dot_dimension_numbers<[1], [1], [0], [0], [0, 0, 1, 0], [], []>} : vector<8x32xbf16>, vector<8x32xbf16>, vector<8x8xf32> -> vector<8x8xf32>
    %cst_43 = arith.constant 0.176776692 : f32
    %74 = vector.broadcast %cst_43 : f32 to vector<8x8xf32>
    %75 = arith.mulf %73, %74 : vector<8x8xf32>
    %cst_44 = arith.constant dense<0xFF800000> : vector<8xf32>
    %76 = vector.multi_reduction <maximumf>, %75, %cst_44 [1] : vector<8x8xf32> to vector<8xf32>
    %77 = vector.shape_cast %76 : vector<8xf32> to vector<8x1xf32>
    %78 = vector.broadcast %77 : vector<8x1xf32> to vector<8x8xf32>
    %79 = arith.subf %75, %78 : vector<8x8xf32>
    %80 = math.exp %79 : vector<8x8xf32>
    %cst_45 = arith.constant dense<0.000000e+00> : vector<8xf32>
    %81 = vector.multi_reduction <add>, %80, %cst_45 [1] : vector<8x8xf32> to vector<8xf32>
    %82 = vector.shape_cast %81 : vector<8xf32> to vector<8x1xf32>
    %83 = tpu.reciprocal %82 {approx = true} : vector<8x1xf32> -> vector<8x1xf32>
    %84 = vector.broadcast %83 : vector<8x1xf32> to vector<8x8xf32>
    %85 = arith.mulf %80, %84 : vector<8x8xf32>
    %86 = arith.truncf %85 : vector<8x8xf32> to vector<8x8xbf16>
    %cst_46 = arith.constant dense<0.000000e+00> : vector<8x32xf32>
    %87 = tpu.matmul %86, %72, %cst_46 {dimension_numbers = #tpu.dot_dimension_numbers<[1], [0], [0], [1], [0, 0, 1, 1], [], []>} : vector<8x8xbf16>, vector<8x32xbf16>, vector<8x32xf32> -> vector<8x32xf32>
    %88 = arith.truncf %87 : vector<8x32xf32> to vector<8x32xbf16>
    %c0_47 = arith.constant 0 : index
    %c96_48 = arith.constant 96 : index
    %89 = vector.load %arg16[%c0_47, %c96_48] : memref<8x128xbf16, #tpu.memory_space<vmem>>, vector<8x32xbf16>
    tpu.vector_store %arg16[%c0_47, %c96_48], %88 {strides = array<i32>} : memref<8x128xbf16, #tpu.memory_space<vmem>>, vector<8x32xbf16>,
    %c0_49 = arith.constant 0 : index
    %c0_50 = arith.constant 0 : index
    %90 = vector.load %arg16[%c0_49, %c0_50] : memref<8x128xbf16, #tpu.memory_space<vmem>>, vector<8x128xbf16>
    %c0_51 = arith.constant 0 : index
    %c0_52 = arith.constant 0 : index
    %91 = vector.load %arg4[%c0_51, %c0_52] : memref<128x128xbf16, #tpu.memory_space<vmem>>, vector<128x128xbf16>
    %cst_53 = arith.constant dense<0.000000e+00> : vector<8x128xf32>
    %92 = tpu.matmul %90, %91, %cst_53 {dimension_numbers = #tpu.dot_dimension_numbers<[1], [0], [0], [1], [0, 0, 1, 1], [], []>} : vector<8x128xbf16>, vector<128x128xbf16>, vector<8x128xf32> -> vector<8x128xf32>
    %93 = arith.addf %2, %92 : vector<8x128xf32>
    %c0_54 = arith.constant 0 : index
    %c0_55 = arith.constant 0 : index
    %94 = vector.load %arg5[%c0_54, %c0_55] : memref<1x128xf32, #tpu.memory_space<vmem>>, vector<1x128xf32>
    %95 = vector.broadcast %94 : vector<1x128xf32> to vector<8x128xf32>
    %96 = arith.addf %93, %95 : vector<8x128xf32>
    %cst_56 = arith.constant dense<0.000000e+00> : vector<8xf32>
    %97 = vector.multi_reduction <add>, %96, %cst_56 [1] : vector<8x128xf32> to vector<8xf32>
    %98 = vector.shape_cast %97 : vector<8xf32> to vector<8x1xf32>
    %cst_57 = arith.constant 1.280000e+02 : f32
    %99 = vector.broadcast %cst_57 : f32 to vector<8x1xf32>
    %100 = arith.divf %98, %99 : vector<8x1xf32>
    %101 = vector.broadcast %100 : vector<8x1xf32> to vector<8x128xf32>
    %102 = arith.subf %96, %101 : vector<8x128xf32>
    %103 = arith.mulf %102, %102 : vector<8x128xf32>
    %cst_58 = arith.constant dense<0.000000e+00> : vector<8xf32>
    %104 = vector.multi_reduction <add>, %103, %cst_58 [1] : vector<8x128xf32> to vector<8xf32>
    %105 = vector.shape_cast %104 : vector<8xf32> to vector<8x1xf32>
    %cst_59 = arith.constant 1.280000e+02 : f32
    %106 = vector.broadcast %cst_59 : f32 to vector<8x1xf32>
    %107 = arith.divf %105, %106 : vector<8x1xf32>
    %cst_60 = arith.constant 9.99999974E-6 : f32
    %108 = vector.broadcast %cst_60 : f32 to vector<8x1xf32>
    %109 = arith.addf %107, %108 : vector<8x1xf32>
    %110 = math.rsqrt %109 : vector<8x1xf32>
    %111 = vector.broadcast %110 : vector<8x1xf32> to vector<8x128xf32>
    %112 = arith.mulf %102, %111 : vector<8x128xf32>
    %c0_61 = arith.constant 0 : index
    %c0_62 = arith.constant 0 : index
    %113 = vector.load %arg6[%c0_61, %c0_62] : memref<1x128xf32, #tpu.memory_space<vmem>>, vector<1x128xf32>
    %114 = vector.broadcast %113 : vector<1x128xf32> to vector<8x128xf32>
    %115 = arith.mulf %112, %114 : vector<8x128xf32>
    %c0_63 = arith.constant 0 : index
    %c0_64 = arith.constant 0 : index
    %116 = vector.load %arg7[%c0_63, %c0_64] : memref<1x128xf32, #tpu.memory_space<vmem>>, vector<1x128xf32>
    %117 = vector.broadcast %116 : vector<1x128xf32> to vector<8x128xf32>
    %118 = arith.addf %115, %117 : vector<8x128xf32>
    %119 = arith.truncf %118 : vector<8x128xf32> to vector<8x128xbf16>
    %c0_65 = arith.constant 0 : index
    %c0_66 = arith.constant 0 : index
    %120 = vector.load %arg8[%c0_65, %c0_66] : memref<128x2048xbf16, #tpu.memory_space<vmem>>, vector<128x2048xbf16>
    %cst_67 = arith.constant dense<0.000000e+00> : vector<8x2048xf32>
    %121 = tpu.matmul %119, %120, %cst_67 {dimension_numbers = #tpu.dot_dimension_numbers<[1], [0], [0], [1], [0, 0, 1, 1], [], []>} : vector<8x128xbf16>, vector<128x2048xbf16>, vector<8x2048xf32> -> vector<8x2048xf32>
    %c0_68 = arith.constant 0 : index
    %c0_69 = arith.constant 0 : index
    %122 = vector.load %arg9[%c0_68, %c0_69] : memref<1x2048xf32, #tpu.memory_space<vmem>>, vector<1x2048xf32>
    %123 = vector.broadcast %122 : vector<1x2048xf32> to vector<8x2048xf32>
    %124 = arith.addf %121, %123 : vector<8x2048xf32>
    %cst_70 = arith.constant 0.000000e+00 : f32
    %125 = vector.broadcast %cst_70 : f32 to vector<8x2048xf32>
    %126 = arith.maximumf %124, %125 : vector<8x2048xf32>
    %127 = arith.truncf %126 : vector<8x2048xf32> to vector<8x2048xbf16>
    %c0_71 = arith.constant 0 : index
    %c0_72 = arith.constant 0 : index
    %128 = vector.load %arg10[%c0_71, %c0_72] : memref<2048x128xbf16, #tpu.memory_space<vmem>>, vector<2048x128xbf16>
    %cst_73 = arith.constant dense<0.000000e+00> : vector<8x128xf32>
    %129 = tpu.matmul %127, %128, %cst_73 {dimension_numbers = #tpu.dot_dimension_numbers<[1], [0], [0], [1], [0, 0, 1, 1], [], []>} : vector<8x2048xbf16>, vector<2048x128xbf16>, vector<8x128xf32> -> vector<8x128xf32>
    %c0_74 = arith.constant 0 : index
    %c0_75 = arith.constant 0 : index
    %130 = vector.load %arg11[%c0_74, %c0_75] : memref<1x128xf32, #tpu.memory_space<vmem>>, vector<1x128xf32>
    %131 = vector.broadcast %130 : vector<1x128xf32> to vector<8x128xf32>
    %132 = arith.addf %129, %131 : vector<8x128xf32>
    %133 = arith.addf %118, %132 : vector<8x128xf32>
    %cst_76 = arith.constant dense<0.000000e+00> : vector<8xf32>
    %134 = vector.multi_reduction <add>, %133, %cst_76 [1] : vector<8x128xf32> to vector<8xf32>
    %135 = vector.shape_cast %134 : vector<8xf32> to vector<8x1xf32>
    %cst_77 = arith.constant 1.280000e+02 : f32
    %136 = vector.broadcast %cst_77 : f32 to vector<8x1xf32>
    %137 = arith.divf %135, %136 : vector<8x1xf32>
    %138 = vector.broadcast %137 : vector<8x1xf32> to vector<8x128xf32>
    %139 = arith.subf %133, %138 : vector<8x128xf32>
    %140 = arith.mulf %139, %139 : vector<8x128xf32>
    %cst_78 = arith.constant dense<0.000000e+00> : vector<8xf32>
    %141 = vector.multi_reduction <add>, %140, %cst_78 [1] : vector<8x128xf32> to vector<8xf32>
    %142 = vector.shape_cast %141 : vector<8xf32> to vector<8x1xf32>
    %cst_79 = arith.constant 1.280000e+02 : f32
    %143 = vector.broadcast %cst_79 : f32 to vector<8x1xf32>
    %144 = arith.divf %142, %143 : vector<8x1xf32>
    %cst_80 = arith.constant 9.99999974E-6 : f32
    %145 = vector.broadcast %cst_80 : f32 to vector<8x1xf32>
    %146 = arith.addf %144, %145 : vector<8x1xf32>
    %147 = math.rsqrt %146 : vector<8x1xf32>
    %148 = vector.broadcast %147 : vector<8x1xf32> to vector<8x128xf32>
    %149 = arith.mulf %139, %148 : vector<8x128xf32>
    %c0_81 = arith.constant 0 : index
    %c0_82 = arith.constant 0 : index
    %150 = vector.load %arg12[%c0_81, %c0_82] : memref<1x128xf32, #tpu.memory_space<vmem>>, vector<1x128xf32>
    %151 = vector.broadcast %150 : vector<1x128xf32> to vector<8x128xf32>
    %152 = arith.mulf %149, %151 : vector<8x128xf32>
    %c0_83 = arith.constant 0 : index
    %c0_84 = arith.constant 0 : index
    %153 = vector.load %arg13[%c0_83, %c0_84] : memref<1x128xf32, #tpu.memory_space<vmem>>, vector<1x128xf32>
    %154 = vector.broadcast %153 : vector<1x128xf32> to vector<8x128xf32>
    %155 = arith.addf %152, %154 : vector<8x128xf32>
    %156 = arith.truncf %155 : vector<8x128xf32> to vector<8x128xbf16>
    %c0_85 = arith.constant 0 : index
    %c0_86 = arith.constant 0 : index
    %c0_87 = arith.constant 0 : index
    %157 = vector.load %arg14[%c0_85, %c0_86, %c0_87] : memref<1x8x128xbf16, #tpu.memory_space<vmem>>, vector<1x8x128xbf16>
    %158 = vector.shape_cast %157 : vector<1x8x128xbf16> to vector<8x128xbf16>
    %159 = vector.shape_cast %156 : vector<8x128xbf16> to vector<1x8x128xbf16>
    tpu.vector_store %arg14[%c0_85, %c0_86, %c0_87], %159 {strides = array<i32>} : memref<1x8x128xbf16, #tpu.memory_space<vmem>>, vector<1x8x128xbf16>,
    return
  }
  func.func @transform_0(%arg0: i32) -> (i32, i32, i32) {
    %c0_i32 = arith.constant 0 : i32
    %c0_i32_0 = arith.constant 0 : i32
    %c0_i32_1 = arith.constant 0 : i32
    return %arg0, %c0_i32, %c0_i32_0 : i32, i32, i32
  }
  func.func @transform_1(%arg0: i32) -> (i32, i32) {
    %c0_i32 = arith.constant 0 : i32
    %c0_i32_0 = arith.constant 0 : i32
    %c0_i32_1 = arith.constant 0 : i32
    return %c0_i32, %c0_i32_0 : i32, i32
  }
  func.func @transform_2(%arg0: i32) -> (i32, i32) {
    %c0_i32 = arith.constant 0 : i32
    %c0_i32_0 = arith.constant 0 : i32
    %c0_i32_1 = arith.constant 0 : i32
    return %c0_i32, %c0_i32_0 : i32, i32
  }
  func.func @transform_3(%arg0: i32) -> (i32, i32) {
    %c0_i32 = arith.constant 0 : i32
    %c0_i32_0 = arith.constant 0 : i32
    %c0_i32_1 = arith.constant 0 : i32
    return %c0_i32, %c0_i32_0 : i32, i32
  }
  func.func @transform_4(%arg0: i32) -> (i32, i32) {
    %c0_i32 = arith.constant 0 : i32
    %c0_i32_0 = arith.constant 0 : i32
    %c0_i32_1 = arith.constant 0 : i32
    return %c0_i32, %c0_i32_0 : i32, i32
  }
  func.func @transform_5(%arg0: i32) -> (i32, i32) {
    %c0_i32 = arith.constant 0 : i32
    %c0_i32_0 = arith.constant 0 : i32
    %c0_i32_1 = arith.constant 0 : i32
    return %c0_i32, %c0_i32_0 : i32, i32
  }
  func.func @transform_6(%arg0: i32) -> (i32, i32) {
    %c0_i32 = arith.constant 0 : i32
    %c0_i32_0 = arith.constant 0 : i32
    %c0_i32_1 = arith.constant 0 : i32
    return %c0_i32, %c0_i32_0 : i32, i32
  }
  func.func @transform_7(%arg0: i32) -> (i32, i32) {
    %c0_i32 = arith.constant 0 : i32
    %c0_i32_0 = arith.constant 0 : i32
    %c0_i32_1 = arith.constant 0 : i32
    return %c0_i32, %c0_i32_0 : i32, i32
  }
  func.func @transform_8(%arg0: i32) -> (i32, i32) {
    %c0_i32 = arith.constant 0 : i32
    %c0_i32_0 = arith.constant 0 : i32
    %c0_i32_1 = arith.constant 0 : i32
    return %c0_i32, %c0_i32_0 : i32, i32
  }
  func.func @transform_9(%arg0: i32) -> (i32, i32) {
    %c0_i32 = arith.constant 0 : i32
    %c0_i32_0 = arith.constant 0 : i32
    %c0_i32_1 = arith.constant 0 : i32
    return %c0_i32, %c0_i32_0 : i32, i32
  }
  func.func @transform_10(%arg0: i32) -> (i32, i32) {
    %c0_i32 = arith.constant 0 : i32
    %c0_i32_0 = arith.constant 0 : i32
    %c0_i32_1 = arith.constant 0 : i32
    return %c0_i32, %c0_i32_0 : i32, i32
  }
  func.func @transform_11(%arg0: i32) -> (i32, i32) {
    %c0_i32 = arith.constant 0 : i32
    %c0_i32_0 = arith.constant 0 : i32
    %c0_i32_1 = arith.constant 0 : i32
    return %c0_i32, %c0_i32_0 : i32, i32
  }
  func.func @transform_12(%arg0: i32) -> (i32, i32) {
    %c0_i32 = arith.constant 0 : i32
    %c0_i32_0 = arith.constant 0 : i32
    %c0_i32_1 = arith.constant 0 : i32
    return %c0_i32, %c0_i32_0 : i32, i32
  }
  func.func @transform_13(%arg0: i32) -> (i32, i32, i32) {
    %c0_i32 = arith.constant 0 : i32
    %c0_i32_0 = arith.constant 0 : i32
    %c0_i32_1 = arith.constant 0 : i32
    return %arg0, %c0_i32, %c0_i32_0 : i32, i32, i32
  }
}

module attributes {stable_mosaic.version = 11 : i64} {
  func.func @_linear_kernel(%arg0: i32, %arg1: i32, %arg2: i32, %arg3: memref<16x16xf32, #tpu.memory_space<vmem>>, %arg4: memref<16x128xbf16, #tpu.memory_space<vmem>>, %arg5: memref<1x128xf32, #tpu.memory_space<vmem>>, %arg6: memref<16x128xbf16, #tpu.memory_space<vmem>>, %arg7: memref<16x128xf32, #tpu.memory_space<vmem>>) attributes {dimension_semantics = [#tpu.dimension_semantics<parallel>, #tpu.dimension_semantics<parallel>, #tpu.dimension_semantics<arbitrary>], iteration_bounds = array<i64: 1, 1, 1>, scalar_prefetch = 0 : i64, scratch_operands = 1 : i64, tpu.core_type = #tpu.core_type<tc>, window_params = [{transform_indices = @transform_0, window_bounds = array<i64: 16, 16>}, {transform_indices = @transform_1, window_bounds = array<i64: 16, 128>}, {transform_indices = @transform_2, window_bounds = array<i64: 1, 128>}, {transform_indices = @transform_3, window_bounds = array<i64: 16, 128>}]} {
    %c0_i32 = arith.constant 0 : i32
    %0 = arith.cmpi eq, %arg2, %c0_i32 : i32
    %1 = arith.extui %0 : i1 to i32
    %c0_i32_0 = arith.constant 0 : i32
    %2 = arith.cmpi ne, %1, %c0_i32_0 : i32
    scf.if %2 {
      %cst_10 = arith.constant 0.000000e+00 : f32
      %13 = vector.broadcast %cst_10 : f32 to vector<16x128xf32>
      %c0_11 = arith.constant 0 : index
      %c0_12 = arith.constant 0 : index
      %14 = vector.load %arg7[%c0_11, %c0_12] : memref<16x128xf32, #tpu.memory_space<vmem>>, vector<16x128xf32>
      tpu.vector_store %arg7[%c0_11, %c0_12], %13 {strides = array<i32>} : memref<16x128xf32, #tpu.memory_space<vmem>>, vector<16x128xf32>,
    } else {
    }
    %c0 = arith.constant 0 : index
    %c0_1 = arith.constant 0 : index
    %3 = vector.load %arg3[%c0, %c0_1] : memref<16x16xf32, #tpu.memory_space<vmem>>, vector<16x16xf32>
    %4 = arith.truncf %3 : vector<16x16xf32> to vector<16x16xbf16>
    %c0_2 = arith.constant 0 : index
    %c0_3 = arith.constant 0 : index
    %5 = vector.load %arg7[%c0_2, %c0_3] : memref<16x128xf32, #tpu.memory_space<vmem>>, vector<16x128xf32>
    %c0_4 = arith.constant 0 : index
    %c0_5 = arith.constant 0 : index
    %6 = vector.load %arg4[%c0_4, %c0_5] : memref<16x128xbf16, #tpu.memory_space<vmem>>, vector<16x128xbf16>
    %cst = arith.constant dense<0.000000e+00> : vector<16x128xf32>
    %7 = tpu.matmul %4, %6, %cst {dimension_numbers = #tpu.dot_dimension_numbers<[1], [0], [0], [1], [0, 0, 1, 1], [], []>} : vector<16x16xbf16>, vector<16x128xbf16>, vector<16x128xf32> -> vector<16x128xf32>
    %8 = arith.addf %5, %7 : vector<16x128xf32>
    %c0_6 = arith.constant 0 : index
    %c0_7 = arith.constant 0 : index
    %9 = vector.load %arg7[%c0_6, %c0_7] : memref<16x128xf32, #tpu.memory_space<vmem>>, vector<16x128xf32>
    tpu.vector_store %arg7[%c0_6, %c0_7], %8 {strides = array<i32>} : memref<16x128xf32, #tpu.memory_space<vmem>>, vector<16x128xf32>,
    %c0_i32_8 = arith.constant 0 : i32
    %10 = arith.cmpi eq, %arg2, %c0_i32_8 : i32
    %11 = arith.extui %10 : i1 to i32
    %c0_i32_9 = arith.constant 0 : i32
    %12 = arith.cmpi ne, %11, %c0_i32_9 : i32
    scf.if %12 {
      %c0_10 = arith.constant 0 : index
      %c0_11 = arith.constant 0 : index
      %13 = vector.load %arg7[%c0_10, %c0_11] : memref<16x128xf32, #tpu.memory_space<vmem>>, vector<16x128xf32>
      %c0_12 = arith.constant 0 : index
      %c0_13 = arith.constant 0 : index
      %14 = vector.load %arg5[%c0_12, %c0_13] : memref<1x128xf32, #tpu.memory_space<vmem>>, vector<1x128xf32>
      %15 = vector.broadcast %14 : vector<1x128xf32> to vector<16x128xf32>
      %16 = arith.addf %13, %15 : vector<16x128xf32>
      %17 = arith.truncf %16 : vector<16x128xf32> to vector<16x128xbf16>
      %c0_14 = arith.constant 0 : index
      %c0_15 = arith.constant 0 : index
      %18 = vector.load %arg6[%c0_14, %c0_15] : memref<16x128xbf16, #tpu.memory_space<vmem>>, vector<16x128xbf16>
      tpu.vector_store %arg6[%c0_14, %c0_15], %17 {strides = array<i32>} : memref<16x128xbf16, #tpu.memory_space<vmem>>, vector<16x128xbf16>,
    } else {
    }
    return
  }
  func.func @transform_0(%arg0: i32, %arg1: i32, %arg2: i32) -> (i32, i32) {
    %c0_i32 = arith.constant 0 : i32
    return %arg0, %arg2 : i32, i32
  }
  func.func @transform_1(%arg0: i32, %arg1: i32, %arg2: i32) -> (i32, i32) {
    %c0_i32 = arith.constant 0 : i32
    return %arg2, %arg1 : i32, i32
  }
  func.func @transform_2(%arg0: i32, %arg1: i32, %arg2: i32) -> (i32, i32) {
    %c0_i32 = arith.constant 0 : i32
    %c0_i32_0 = arith.constant 0 : i32
    return %c0_i32, %arg1 : i32, i32
  }
  func.func @transform_3(%arg0: i32, %arg1: i32, %arg2: i32) -> (i32, i32) {
    %c0_i32 = arith.constant 0 : i32
    return %arg0, %arg1 : i32, i32
  }
}

module attributes {stable_mosaic.version = 11 : i64} {
  func.func @_encoder_layer_kernel(%arg0: i32, %arg1: memref<1x8x128xbf16, #tpu.memory_space<vmem>>, %arg2: memref<128x384xbf16, #tpu.memory_space<vmem>>, %arg3: memref<1x384xf32, #tpu.memory_space<vmem>>, %arg4: memref<128x128xbf16, #tpu.memory_space<vmem>>, %arg5: memref<1x128xf32, #tpu.memory_space<vmem>>, %arg6: memref<1x128xf32, #tpu.memory_space<vmem>>, %arg7: memref<1x128xf32, #tpu.memory_space<vmem>>, %arg8: memref<128x2048xbf16, #tpu.memory_space<vmem>>, %arg9: memref<1x2048xf32, #tpu.memory_space<vmem>>, %arg10: memref<2048x128xbf16, #tpu.memory_space<vmem>>, %arg11: memref<1x128xf32, #tpu.memory_space<vmem>>, %arg12: memref<1x128xf32, #tpu.memory_space<vmem>>, %arg13: memref<1x128xf32, #tpu.memory_space<vmem>>, %arg14: memref<128x128xbf16, #tpu.memory_space<vmem>>, %arg15: memref<1x128xf32, #tpu.memory_space<vmem>>, %arg16: memref<1x8x128xbf16, #tpu.memory_space<vmem>>, %arg17: memref<1x1x128xf32, #tpu.memory_space<vmem>>, %arg18: memref<8x384xbf16, #tpu.memory_space<vmem>>, %arg19: memref<8x128xbf16, #tpu.memory_space<vmem>>) attributes {dimension_semantics = [#tpu.dimension_semantics<parallel>], iteration_bounds = array<i64: 2>, scalar_prefetch = 0 : i64, scratch_operands = 2 : i64, tpu.core_type = #tpu.core_type<tc>, window_params = [{transform_indices = @transform_0, window_bounds = array<i64: 1, 8, 128>}, {pipeline_mode = #tpu.pipeline_mode<synchronous>, transform_indices = @transform_1, window_bounds = array<i64: 128, 384>}, {pipeline_mode = #tpu.pipeline_mode<synchronous>, transform_indices = @transform_2, window_bounds = array<i64: 1, 384>}, {pipeline_mode = #tpu.pipeline_mode<synchronous>, transform_indices = @transform_3, window_bounds = array<i64: 128, 128>}, {pipeline_mode = #tpu.pipeline_mode<synchronous>, transform_indices = @transform_4, window_bounds = array<i64: 1, 128>}, {pipeline_mode = #tpu.pipeline_mode<synchronous>, transform_indices = @transform_5, window_bounds = array<i64: 1, 128>}, {pipeline_mode = #tpu.pipeline_mode<synchronous>, transform_indices = @transform_6, window_bounds = array<i64: 1, 128>}, {pipeline_mode = #tpu.pipeline_mode<synchronous>, transform_indices = @transform_7, window_bounds = array<i64: 128, 2048>}, {pipeline_mode = #tpu.pipeline_mode<synchronous>, transform_indices = @transform_8, window_bounds = array<i64: 1, 2048>}, {pipeline_mode = #tpu.pipeline_mode<synchronous>, transform_indices = @transform_9, window_bounds = array<i64: 2048, 128>}, {pipeline_mode = #tpu.pipeline_mode<synchronous>, transform_indices = @transform_10, window_bounds = array<i64: 1, 128>}, {pipeline_mode = #tpu.pipeline_mode<synchronous>, transform_indices = @transform_11, window_bounds = array<i64: 1, 128>}, {pipeline_mode = #tpu.pipeline_mode<synchronous>, transform_indices = @transform_12, window_bounds = array<i64: 1, 128>}, {pipeline_mode = #tpu.pipeline_mode<synchronous>, transform_indices = @transform_13, window_bounds = array<i64: 128, 128>}, {pipeline_mode = #tpu.pipeline_mode<synchronous>, transform_indices = @transform_14, window_bounds = array<i64: 1, 128>}, {transform_indices = @transform_15, window_bounds = array<i64: 1, 8, 128>}, {transform_indices = @transform_16, window_bounds = array<i64: 1, 1, 128>}]} {
    %c0 = arith.constant 0 : index
    %c0_0 = arith.constant 0 : index
    %c0_1 = arith.constant 0 : index
    %0 = vector.load %arg1[%c0, %c0_0, %c0_1] : memref<1x8x128xbf16, #tpu.memory_space<vmem>>, vector<1x8x128xbf16>
    %1 = vector.shape_cast %0 : vector<1x8x128xbf16> to vector<8x128xbf16>
    %2 = arith.extf %1 : vector<8x128xbf16> to vector<8x128xf32>
    %c0_2 = arith.constant 0 : index
    %c0_3 = arith.constant 0 : index
    %3 = vector.load %arg2[%c0_2, %c0_3] : memref<128x384xbf16, #tpu.memory_space<vmem>>, vector<128x384xbf16>
    %cst = arith.constant dense<0.000000e+00> : vector<8x384xf32>
    %4 = tpu.matmul %1, %3, %cst {dimension_numbers = #tpu.dot_dimension_numbers<[1], [0], [0], [1], [0, 0, 1, 1], [], []>} : vector<8x128xbf16>, vector<128x384xbf16>, vector<8x384xf32> -> vector<8x384xf32>
    %c0_4 = arith.constant 0 : index
    %c0_5 = arith.constant 0 : index
    %5 = vector.load %arg3[%c0_4, %c0_5] : memref<1x384xf32, #tpu.memory_space<vmem>>, vector<1x384xf32>
    %6 = vector.broadcast %5 : vector<1x384xf32> to vector<8x384xf32>
    %7 = arith.addf %4, %6 : vector<8x384xf32>
    %8 = arith.truncf %7 : vector<8x384xf32> to vector<8x384xbf16>
    %c0_6 = arith.constant 0 : index
    %c0_7 = arith.constant 0 : index
    %9 = vector.load %arg18[%c0_6, %c0_7] : memref<8x384xbf16, #tpu.memory_space<vmem>>, vector<8x384xbf16>
    tpu.vector_store %arg18[%c0_6, %c0_7], %8 {strides = array<i32>} : memref<8x384xbf16, #tpu.memory_space<vmem>>, vector<8x384xbf16>,
    %c0_8 = arith.constant 0 : index
    %c0_9 = arith.constant 0 : index
    %10 = vector.load %arg18[%c0_8, %c0_9] : memref<8x384xbf16, #tpu.memory_space<vmem>>, vector<8x32xbf16>
    %c0_10 = arith.constant 0 : index
    %c128 = arith.constant 128 : index
    %11 = vector.load %arg18[%c0_10, %c128] : memref<8x384xbf16, #tpu.memory_space<vmem>>, vector<8x32xbf16>
    %c0_11 = arith.constant 0 : index
    %c256 = arith.constant 256 : index
    %12 = vector.load %arg18[%c0_11, %c256] : memref<8x384xbf16, #tpu.memory_space<vmem>>, vector<8x32xbf16>
    %cst_12 = arith.constant dense<0.000000e+00> : vector<8x8xf32>
    %13 = tpu.matmul %10, %11, %cst_12 {dimension_numbers = #tpu.dot_dimension_numbers<[1], [1], [0], [0], [0, 0, 1, 0], [], []>} : vector<8x32xbf16>, vector<8x32xbf16>, vector<8x8xf32> -> vector<8x8xf32>
    %cst_13 = arith.constant 0.176776692 : f32
    %14 = vector.broadcast %cst_13 : f32 to vector<8x8xf32>
    %15 = arith.mulf %13, %14 : vector<8x8xf32>
    %cst_14 = arith.constant dense<0xFF800000> : vector<8xf32>
    %16 = vector.multi_reduction <maximumf>, %15, %cst_14 [1] : vector<8x8xf32> to vector<8xf32>
    %17 = vector.shape_cast %16 : vector<8xf32> to vector<8x1xf32>
    %18 = vector.broadcast %17 : vector<8x1xf32> to vector<8x8xf32>
    %19 = arith.subf %15, %18 : vector<8x8xf32>
    %20 = math.exp %19 : vector<8x8xf32>
    %cst_15 = arith.constant dense<0.000000e+00> : vector<8xf32>
    %21 = vector.multi_reduction <add>, %20, %cst_15 [1] : vector<8x8xf32> to vector<8xf32>
    %22 = vector.shape_cast %21 : vector<8xf32> to vector<8x1xf32>
    %23 = tpu.reciprocal %22 {approx = true} : vector<8x1xf32> -> vector<8x1xf32>
    %24 = vector.broadcast %23 : vector<8x1xf32> to vector<8x8xf32>
    %25 = arith.mulf %20, %24 : vector<8x8xf32>
    %26 = arith.truncf %25 : vector<8x8xf32> to vector<8x8xbf16>
    %cst_16 = arith.constant dense<0.000000e+00> : vector<8x32xf32>
    %27 = tpu.matmul %26, %12, %cst_16 {dimension_numbers = #tpu.dot_dimension_numbers<[1], [0], [0], [1], [0, 0, 1, 1], [], []>} : vector<8x8xbf16>, vector<8x32xbf16>, vector<8x32xf32> -> vector<8x32xf32>
    %28 = arith.truncf %27 : vector<8x32xf32> to vector<8x32xbf16>
    %c0_17 = arith.constant 0 : index
    %c0_18 = arith.constant 0 : index
    %29 = vector.load %arg19[%c0_17, %c0_18] : memref<8x128xbf16, #tpu.memory_space<vmem>>, vector<8x32xbf16>
    tpu.vector_store %arg19[%c0_17, %c0_18], %28 {strides = array<i32>} : memref<8x128xbf16, #tpu.memory_space<vmem>>, vector<8x32xbf16>,
    %c0_19 = arith.constant 0 : index
    %c32 = arith.constant 32 : index
    %30 = vector.load %arg18[%c0_19, %c32] : memref<8x384xbf16, #tpu.memory_space<vmem>>, vector<8x32xbf16>
    %c0_20 = arith.constant 0 : index
    %c160 = arith.constant 160 : index
    %31 = vector.load %arg18[%c0_20, %c160] : memref<8x384xbf16, #tpu.memory_space<vmem>>, vector<8x32xbf16>
    %c0_21 = arith.constant 0 : index
    %c288 = arith.constant 288 : index
    %32 = vector.load %arg18[%c0_21, %c288] : memref<8x384xbf16, #tpu.memory_space<vmem>>, vector<8x32xbf16>
    %cst_22 = arith.constant dense<0.000000e+00> : vector<8x8xf32>
    %33 = tpu.matmul %30, %31, %cst_22 {dimension_numbers = #tpu.dot_dimension_numbers<[1], [1], [0], [0], [0, 0, 1, 0], [], []>} : vector<8x32xbf16>, vector<8x32xbf16>, vector<8x8xf32> -> vector<8x8xf32>
    %cst_23 = arith.constant 0.176776692 : f32
    %34 = vector.broadcast %cst_23 : f32 to vector<8x8xf32>
    %35 = arith.mulf %33, %34 : vector<8x8xf32>
    %cst_24 = arith.constant dense<0xFF800000> : vector<8xf32>
    %36 = vector.multi_reduction <maximumf>, %35, %cst_24 [1] : vector<8x8xf32> to vector<8xf32>
    %37 = vector.shape_cast %36 : vector<8xf32> to vector<8x1xf32>
    %38 = vector.broadcast %37 : vector<8x1xf32> to vector<8x8xf32>
    %39 = arith.subf %35, %38 : vector<8x8xf32>
    %40 = math.exp %39 : vector<8x8xf32>
    %cst_25 = arith.constant dense<0.000000e+00> : vector<8xf32>
    %41 = vector.multi_reduction <add>, %40, %cst_25 [1] : vector<8x8xf32> to vector<8xf32>
    %42 = vector.shape_cast %41 : vector<8xf32> to vector<8x1xf32>
    %43 = tpu.reciprocal %42 {approx = true} : vector<8x1xf32> -> vector<8x1xf32>
    %44 = vector.broadcast %43 : vector<8x1xf32> to vector<8x8xf32>
    %45 = arith.mulf %40, %44 : vector<8x8xf32>
    %46 = arith.truncf %45 : vector<8x8xf32> to vector<8x8xbf16>
    %cst_26 = arith.constant dense<0.000000e+00> : vector<8x32xf32>
    %47 = tpu.matmul %46, %32, %cst_26 {dimension_numbers = #tpu.dot_dimension_numbers<[1], [0], [0], [1], [0, 0, 1, 1], [], []>} : vector<8x8xbf16>, vector<8x32xbf16>, vector<8x32xf32> -> vector<8x32xf32>
    %48 = arith.truncf %47 : vector<8x32xf32> to vector<8x32xbf16>
    %c0_27 = arith.constant 0 : index
    %c32_28 = arith.constant 32 : index
    %49 = vector.load %arg19[%c0_27, %c32_28] : memref<8x128xbf16, #tpu.memory_space<vmem>>, vector<8x32xbf16>
    tpu.vector_store %arg19[%c0_27, %c32_28], %48 {strides = array<i32>} : memref<8x128xbf16, #tpu.memory_space<vmem>>, vector<8x32xbf16>,
    %c0_29 = arith.constant 0 : index
    %c64 = arith.constant 64 : index
    %50 = vector.load %arg18[%c0_29, %c64] : memref<8x384xbf16, #tpu.memory_space<vmem>>, vector<8x32xbf16>
    %c0_30 = arith.constant 0 : index
    %c192 = arith.constant 192 : index
    %51 = vector.load %arg18[%c0_30, %c192] : memref<8x384xbf16, #tpu.memory_space<vmem>>, vector<8x32xbf16>
    %c0_31 = arith.constant 0 : index
    %c320 = arith.constant 320 : index
    %52 = vector.load %arg18[%c0_31, %c320] : memref<8x384xbf16, #tpu.memory_space<vmem>>, vector<8x32xbf16>
    %cst_32 = arith.constant dense<0.000000e+00> : vector<8x8xf32>
    %53 = tpu.matmul %50, %51, %cst_32 {dimension_numbers = #tpu.dot_dimension_numbers<[1], [1], [0], [0], [0, 0, 1, 0], [], []>} : vector<8x32xbf16>, vector<8x32xbf16>, vector<8x8xf32> -> vector<8x8xf32>
    %cst_33 = arith.constant 0.176776692 : f32
    %54 = vector.broadcast %cst_33 : f32 to vector<8x8xf32>
    %55 = arith.mulf %53, %54 : vector<8x8xf32>
    %cst_34 = arith.constant dense<0xFF800000> : vector<8xf32>
    %56 = vector.multi_reduction <maximumf>, %55, %cst_34 [1] : vector<8x8xf32> to vector<8xf32>
    %57 = vector.shape_cast %56 : vector<8xf32> to vector<8x1xf32>
    %58 = vector.broadcast %57 : vector<8x1xf32> to vector<8x8xf32>
    %59 = arith.subf %55, %58 : vector<8x8xf32>
    %60 = math.exp %59 : vector<8x8xf32>
    %cst_35 = arith.constant dense<0.000000e+00> : vector<8xf32>
    %61 = vector.multi_reduction <add>, %60, %cst_35 [1] : vector<8x8xf32> to vector<8xf32>
    %62 = vector.shape_cast %61 : vector<8xf32> to vector<8x1xf32>
    %63 = tpu.reciprocal %62 {approx = true} : vector<8x1xf32> -> vector<8x1xf32>
    %64 = vector.broadcast %63 : vector<8x1xf32> to vector<8x8xf32>
    %65 = arith.mulf %60, %64 : vector<8x8xf32>
    %66 = arith.truncf %65 : vector<8x8xf32> to vector<8x8xbf16>
    %cst_36 = arith.constant dense<0.000000e+00> : vector<8x32xf32>
    %67 = tpu.matmul %66, %52, %cst_36 {dimension_numbers = #tpu.dot_dimension_numbers<[1], [0], [0], [1], [0, 0, 1, 1], [], []>} : vector<8x8xbf16>, vector<8x32xbf16>, vector<8x32xf32> -> vector<8x32xf32>
    %68 = arith.truncf %67 : vector<8x32xf32> to vector<8x32xbf16>
    %c0_37 = arith.constant 0 : index
    %c64_38 = arith.constant 64 : index
    %69 = vector.load %arg19[%c0_37, %c64_38] : memref<8x128xbf16, #tpu.memory_space<vmem>>, vector<8x32xbf16>
    tpu.vector_store %arg19[%c0_37, %c64_38], %68 {strides = array<i32>} : memref<8x128xbf16, #tpu.memory_space<vmem>>, vector<8x32xbf16>,
    %c0_39 = arith.constant 0 : index
    %c96 = arith.constant 96 : index
    %70 = vector.load %arg18[%c0_39, %c96] : memref<8x384xbf16, #tpu.memory_space<vmem>>, vector<8x32xbf16>
    %c0_40 = arith.constant 0 : index
    %c224 = arith.constant 224 : index
    %71 = vector.load %arg18[%c0_40, %c224] : memref<8x384xbf16, #tpu.memory_space<vmem>>, vector<8x32xbf16>
    %c0_41 = arith.constant 0 : index
    %c352 = arith.constant 352 : index
    %72 = vector.load %arg18[%c0_41, %c352] : memref<8x384xbf16, #tpu.memory_space<vmem>>, vector<8x32xbf16>
    %cst_42 = arith.constant dense<0.000000e+00> : vector<8x8xf32>
    %73 = tpu.matmul %70, %71, %cst_42 {dimension_numbers = #tpu.dot_dimension_numbers<[1], [1], [0], [0], [0, 0, 1, 0], [], []>} : vector<8x32xbf16>, vector<8x32xbf16>, vector<8x8xf32> -> vector<8x8xf32>
    %cst_43 = arith.constant 0.176776692 : f32
    %74 = vector.broadcast %cst_43 : f32 to vector<8x8xf32>
    %75 = arith.mulf %73, %74 : vector<8x8xf32>
    %cst_44 = arith.constant dense<0xFF800000> : vector<8xf32>
    %76 = vector.multi_reduction <maximumf>, %75, %cst_44 [1] : vector<8x8xf32> to vector<8xf32>
    %77 = vector.shape_cast %76 : vector<8xf32> to vector<8x1xf32>
    %78 = vector.broadcast %77 : vector<8x1xf32> to vector<8x8xf32>
    %79 = arith.subf %75, %78 : vector<8x8xf32>
    %80 = math.exp %79 : vector<8x8xf32>
    %cst_45 = arith.constant dense<0.000000e+00> : vector<8xf32>
    %81 = vector.multi_reduction <add>, %80, %cst_45 [1] : vector<8x8xf32> to vector<8xf32>
    %82 = vector.shape_cast %81 : vector<8xf32> to vector<8x1xf32>
    %83 = tpu.reciprocal %82 {approx = true} : vector<8x1xf32> -> vector<8x1xf32>
    %84 = vector.broadcast %83 : vector<8x1xf32> to vector<8x8xf32>
    %85 = arith.mulf %80, %84 : vector<8x8xf32>
    %86 = arith.truncf %85 : vector<8x8xf32> to vector<8x8xbf16>
    %cst_46 = arith.constant dense<0.000000e+00> : vector<8x32xf32>
    %87 = tpu.matmul %86, %72, %cst_46 {dimension_numbers = #tpu.dot_dimension_numbers<[1], [0], [0], [1], [0, 0, 1, 1], [], []>} : vector<8x8xbf16>, vector<8x32xbf16>, vector<8x32xf32> -> vector<8x32xf32>
    %88 = arith.truncf %87 : vector<8x32xf32> to vector<8x32xbf16>
    %c0_47 = arith.constant 0 : index
    %c96_48 = arith.constant 96 : index
    %89 = vector.load %arg19[%c0_47, %c96_48] : memref<8x128xbf16, #tpu.memory_space<vmem>>, vector<8x32xbf16>
    tpu.vector_store %arg19[%c0_47, %c96_48], %88 {strides = array<i32>} : memref<8x128xbf16, #tpu.memory_space<vmem>>, vector<8x32xbf16>,
    %c0_49 = arith.constant 0 : index
    %c0_50 = arith.constant 0 : index
    %90 = vector.load %arg19[%c0_49, %c0_50] : memref<8x128xbf16, #tpu.memory_space<vmem>>, vector<8x128xbf16>
    %c0_51 = arith.constant 0 : index
    %c0_52 = arith.constant 0 : index
    %91 = vector.load %arg4[%c0_51, %c0_52] : memref<128x128xbf16, #tpu.memory_space<vmem>>, vector<128x128xbf16>
    %cst_53 = arith.constant dense<0.000000e+00> : vector<8x128xf32>
    %92 = tpu.matmul %90, %91, %cst_53 {dimension_numbers = #tpu.dot_dimension_numbers<[1], [0], [0], [1], [0, 0, 1, 1], [], []>} : vector<8x128xbf16>, vector<128x128xbf16>, vector<8x128xf32> -> vector<8x128xf32>
    %93 = arith.addf %2, %92 : vector<8x128xf32>
    %c0_54 = arith.constant 0 : index
    %c0_55 = arith.constant 0 : index
    %94 = vector.load %arg5[%c0_54, %c0_55] : memref<1x128xf32, #tpu.memory_space<vmem>>, vector<1x128xf32>
    %95 = vector.broadcast %94 : vector<1x128xf32> to vector<8x128xf32>
    %96 = arith.addf %93, %95 : vector<8x128xf32>
    %cst_56 = arith.constant dense<0.000000e+00> : vector<8xf32>
    %97 = vector.multi_reduction <add>, %96, %cst_56 [1] : vector<8x128xf32> to vector<8xf32>
    %98 = vector.shape_cast %97 : vector<8xf32> to vector<8x1xf32>
    %cst_57 = arith.constant 1.280000e+02 : f32
    %99 = vector.broadcast %cst_57 : f32 to vector<8x1xf32>
    %100 = arith.divf %98, %99 : vector<8x1xf32>
    %101 = vector.broadcast %100 : vector<8x1xf32> to vector<8x128xf32>
    %102 = arith.subf %96, %101 : vector<8x128xf32>
    %103 = arith.mulf %102, %102 : vector<8x128xf32>
    %cst_58 = arith.constant dense<0.000000e+00> : vector<8xf32>
    %104 = vector.multi_reduction <add>, %103, %cst_58 [1] : vector<8x128xf32> to vector<8xf32>
    %105 = vector.shape_cast %104 : vector<8xf32> to vector<8x1xf32>
    %cst_59 = arith.constant 1.280000e+02 : f32
    %106 = vector.broadcast %cst_59 : f32 to vector<8x1xf32>
    %107 = arith.divf %105, %106 : vector<8x1xf32>
    %cst_60 = arith.constant 9.99999974E-6 : f32
    %108 = vector.broadcast %cst_60 : f32 to vector<8x1xf32>
    %109 = arith.addf %107, %108 : vector<8x1xf32>
    %110 = math.rsqrt %109 : vector<8x1xf32>
    %111 = vector.broadcast %110 : vector<8x1xf32> to vector<8x128xf32>
    %112 = arith.mulf %102, %111 : vector<8x128xf32>
    %c0_61 = arith.constant 0 : index
    %c0_62 = arith.constant 0 : index
    %113 = vector.load %arg6[%c0_61, %c0_62] : memref<1x128xf32, #tpu.memory_space<vmem>>, vector<1x128xf32>
    %114 = vector.broadcast %113 : vector<1x128xf32> to vector<8x128xf32>
    %115 = arith.mulf %112, %114 : vector<8x128xf32>
    %c0_63 = arith.constant 0 : index
    %c0_64 = arith.constant 0 : index
    %116 = vector.load %arg7[%c0_63, %c0_64] : memref<1x128xf32, #tpu.memory_space<vmem>>, vector<1x128xf32>
    %117 = vector.broadcast %116 : vector<1x128xf32> to vector<8x128xf32>
    %118 = arith.addf %115, %117 : vector<8x128xf32>
    %119 = arith.truncf %118 : vector<8x128xf32> to vector<8x128xbf16>
    %c0_65 = arith.constant 0 : index
    %c0_66 = arith.constant 0 : index
    %120 = vector.load %arg8[%c0_65, %c0_66] : memref<128x2048xbf16, #tpu.memory_space<vmem>>, vector<128x2048xbf16>
    %cst_67 = arith.constant dense<0.000000e+00> : vector<8x2048xf32>
    %121 = tpu.matmul %119, %120, %cst_67 {dimension_numbers = #tpu.dot_dimension_numbers<[1], [0], [0], [1], [0, 0, 1, 1], [], []>} : vector<8x128xbf16>, vector<128x2048xbf16>, vector<8x2048xf32> -> vector<8x2048xf32>
    %c0_68 = arith.constant 0 : index
    %c0_69 = arith.constant 0 : index
    %122 = vector.load %arg9[%c0_68, %c0_69] : memref<1x2048xf32, #tpu.memory_space<vmem>>, vector<1x2048xf32>
    %123 = vector.broadcast %122 : vector<1x2048xf32> to vector<8x2048xf32>
    %124 = arith.addf %121, %123 : vector<8x2048xf32>
    %cst_70 = arith.constant 0.000000e+00 : f32
    %125 = vector.broadcast %cst_70 : f32 to vector<8x2048xf32>
    %126 = arith.maximumf %124, %125 : vector<8x2048xf32>
    %127 = arith.truncf %126 : vector<8x2048xf32> to vector<8x2048xbf16>
    %c0_71 = arith.constant 0 : index
    %c0_72 = arith.constant 0 : index
    %128 = vector.load %arg10[%c0_71, %c0_72] : memref<2048x128xbf16, #tpu.memory_space<vmem>>, vector<2048x128xbf16>
    %cst_73 = arith.constant dense<0.000000e+00> : vector<8x128xf32>
    %129 = tpu.matmul %127, %128, %cst_73 {dimension_numbers = #tpu.dot_dimension_numbers<[1], [0], [0], [1], [0, 0, 1, 1], [], []>} : vector<8x2048xbf16>, vector<2048x128xbf16>, vector<8x128xf32> -> vector<8x128xf32>
    %c0_74 = arith.constant 0 : index
    %c0_75 = arith.constant 0 : index
    %130 = vector.load %arg11[%c0_74, %c0_75] : memref<1x128xf32, #tpu.memory_space<vmem>>, vector<1x128xf32>
    %131 = vector.broadcast %130 : vector<1x128xf32> to vector<8x128xf32>
    %132 = arith.addf %129, %131 : vector<8x128xf32>
    %133 = arith.addf %118, %132 : vector<8x128xf32>
    %cst_76 = arith.constant dense<0.000000e+00> : vector<8xf32>
    %134 = vector.multi_reduction <add>, %133, %cst_76 [1] : vector<8x128xf32> to vector<8xf32>
    %135 = vector.shape_cast %134 : vector<8xf32> to vector<8x1xf32>
    %cst_77 = arith.constant 1.280000e+02 : f32
    %136 = vector.broadcast %cst_77 : f32 to vector<8x1xf32>
    %137 = arith.divf %135, %136 : vector<8x1xf32>
    %138 = vector.broadcast %137 : vector<8x1xf32> to vector<8x128xf32>
    %139 = arith.subf %133, %138 : vector<8x128xf32>
    %140 = arith.mulf %139, %139 : vector<8x128xf32>
    %cst_78 = arith.constant dense<0.000000e+00> : vector<8xf32>
    %141 = vector.multi_reduction <add>, %140, %cst_78 [1] : vector<8x128xf32> to vector<8xf32>
    %142 = vector.shape_cast %141 : vector<8xf32> to vector<8x1xf32>
    %cst_79 = arith.constant 1.280000e+02 : f32
    %143 = vector.broadcast %cst_79 : f32 to vector<8x1xf32>
    %144 = arith.divf %142, %143 : vector<8x1xf32>
    %cst_80 = arith.constant 9.99999974E-6 : f32
    %145 = vector.broadcast %cst_80 : f32 to vector<8x1xf32>
    %146 = arith.addf %144, %145 : vector<8x1xf32>
    %147 = math.rsqrt %146 : vector<8x1xf32>
    %148 = vector.broadcast %147 : vector<8x1xf32> to vector<8x128xf32>
    %149 = arith.mulf %139, %148 : vector<8x128xf32>
    %c0_81 = arith.constant 0 : index
    %c0_82 = arith.constant 0 : index
    %150 = vector.load %arg12[%c0_81, %c0_82] : memref<1x128xf32, #tpu.memory_space<vmem>>, vector<1x128xf32>
    %151 = vector.broadcast %150 : vector<1x128xf32> to vector<8x128xf32>
    %152 = arith.mulf %149, %151 : vector<8x128xf32>
    %c0_83 = arith.constant 0 : index
    %c0_84 = arith.constant 0 : index
    %153 = vector.load %arg13[%c0_83, %c0_84] : memref<1x128xf32, #tpu.memory_space<vmem>>, vector<1x128xf32>
    %154 = vector.broadcast %153 : vector<1x128xf32> to vector<8x128xf32>
    %155 = arith.addf %152, %154 : vector<8x128xf32>
    %156 = arith.truncf %155 : vector<8x128xf32> to vector<8x128xbf16>
    %c0_85 = arith.constant 0 : index
    %c0_86 = arith.constant 0 : index
    %c0_87 = arith.constant 0 : index
    %157 = vector.load %arg16[%c0_85, %c0_86, %c0_87] : memref<1x8x128xbf16, #tpu.memory_space<vmem>>, vector<1x8x128xbf16>
    %158 = vector.shape_cast %157 : vector<1x8x128xbf16> to vector<8x128xbf16>
    %159 = vector.shape_cast %156 : vector<8x128xbf16> to vector<1x8x128xbf16>
    tpu.vector_store %arg16[%c0_85, %c0_86, %c0_87], %159 {strides = array<i32>} : memref<1x8x128xbf16, #tpu.memory_space<vmem>>, vector<1x8x128xbf16>,
    %160 = vector.extract_strided_slice %155 {offsets = [7, 0], sizes = [1, 128], strides = [1, 1]} : vector<8x128xf32> to vector<1x128xf32>
    %161 = arith.truncf %160 : vector<1x128xf32> to vector<1x128xbf16>
    %c0_88 = arith.constant 0 : index
    %c0_89 = arith.constant 0 : index
    %162 = vector.load %arg14[%c0_88, %c0_89] : memref<128x128xbf16, #tpu.memory_space<vmem>>, vector<128x128xbf16>
    %cst_90 = arith.constant dense<0.000000e+00> : vector<1x128xf32>
    %163 = tpu.matmul %161, %162, %cst_90 {dimension_numbers = #tpu.dot_dimension_numbers<[1], [0], [0], [1], [0, 0, 1, 1], [], []>} : vector<1x128xbf16>, vector<128x128xbf16>, vector<1x128xf32> -> vector<1x128xf32>
    %c0_91 = arith.constant 0 : index
    %c0_92 = arith.constant 0 : index
    %164 = vector.load %arg15[%c0_91, %c0_92] : memref<1x128xf32, #tpu.memory_space<vmem>>, vector<1x128xf32>
    %165 = arith.addf %163, %164 : vector<1x128xf32>
    %c0_93 = arith.constant 0 : index
    %c0_94 = arith.constant 0 : index
    %c0_95 = arith.constant 0 : index
    %166 = vector.load %arg17[%c0_93, %c0_94, %c0_95] : memref<1x1x128xf32, #tpu.memory_space<vmem>>, vector<1x1x128xf32>
    %167 = vector.shape_cast %166 : vector<1x1x128xf32> to vector<1x128xf32>
    %168 = vector.shape_cast %165 : vector<1x128xf32> to vector<1x1x128xf32>
    tpu.vector_store %arg17[%c0_93, %c0_94, %c0_95], %168 {strides = array<i32>} : memref<1x1x128xf32, #tpu.memory_space<vmem>>, vector<1x1x128xf32>,
    return
  }
  func.func @transform_0(%arg0: i32) -> (i32, i32, i32) {
    %c0_i32 = arith.constant 0 : i32
    %c0_i32_0 = arith.constant 0 : i32
    %c0_i32_1 = arith.constant 0 : i32
    return %arg0, %c0_i32, %c0_i32_0 : i32, i32, i32
  }
  func.func @transform_1(%arg0: i32) -> (i32, i32) {
    %c0_i32 = arith.constant 0 : i32
    %c0_i32_0 = arith.constant 0 : i32
    %c0_i32_1 = arith.constant 0 : i32
    return %c0_i32, %c0_i32_0 : i32, i32
  }
  func.func @transform_2(%arg0: i32) -> (i32, i32) {
    %c0_i32 = arith.constant 0 : i32
    %c0_i32_0 = arith.constant 0 : i32
    %c0_i32_1 = arith.constant 0 : i32
    return %c0_i32, %c0_i32_0 : i32, i32
  }
  func.func @transform_3(%arg0: i32) -> (i32, i32) {
    %c0_i32 = arith.constant 0 : i32
    %c0_i32_0 = arith.constant 0 : i32
    %c0_i32_1 = arith.constant 0 : i32
    return %c0_i32, %c0_i32_0 : i32, i32
  }
  func.func @transform_4(%arg0: i32) -> (i32, i32) {
    %c0_i32 = arith.constant 0 : i32
    %c0_i32_0 = arith.constant 0 : i32
    %c0_i32_1 = arith.constant 0 : i32
    return %c0_i32, %c0_i32_0 : i32, i32
  }
  func.func @transform_5(%arg0: i32) -> (i32, i32) {
    %c0_i32 = arith.constant 0 : i32
    %c0_i32_0 = arith.constant 0 : i32
    %c0_i32_1 = arith.constant 0 : i32
    return %c0_i32, %c0_i32_0 : i32, i32
  }
  func.func @transform_6(%arg0: i32) -> (i32, i32) {
    %c0_i32 = arith.constant 0 : i32
    %c0_i32_0 = arith.constant 0 : i32
    %c0_i32_1 = arith.constant 0 : i32
    return %c0_i32, %c0_i32_0 : i32, i32
  }
  func.func @transform_7(%arg0: i32) -> (i32, i32) {
    %c0_i32 = arith.constant 0 : i32
    %c0_i32_0 = arith.constant 0 : i32
    %c0_i32_1 = arith.constant 0 : i32
    return %c0_i32, %c0_i32_0 : i32, i32
  }
  func.func @transform_8(%arg0: i32) -> (i32, i32) {
    %c0_i32 = arith.constant 0 : i32
    %c0_i32_0 = arith.constant 0 : i32
    %c0_i32_1 = arith.constant 0 : i32
    return %c0_i32, %c0_i32_0 : i32, i32
  }
  func.func @transform_9(%arg0: i32) -> (i32, i32) {
    %c0_i32 = arith.constant 0 : i32
    %c0_i32_0 = arith.constant 0 : i32
    %c0_i32_1 = arith.constant 0 : i32
    return %c0_i32, %c0_i32_0 : i32, i32
  }
  func.func @transform_10(%arg0: i32) -> (i32, i32) {
    %c0_i32 = arith.constant 0 : i32
    %c0_i32_0 = arith.constant 0 : i32
    %c0_i32_1 = arith.constant 0 : i32
    return %c0_i32, %c0_i32_0 : i32, i32
  }
  func.func @transform_11(%arg0: i32) -> (i32, i32) {
    %c0_i32 = arith.constant 0 : i32
    %c0_i32_0 = arith.constant 0 : i32
    %c0_i32_1 = arith.constant 0 : i32
    return %c0_i32, %c0_i32_0 : i32, i32
  }
  func.func @transform_12(%arg0: i32) -> (i32, i32) {
    %c0_i32 = arith.constant 0 : i32
    %c0_i32_0 = arith.constant 0 : i32
    %c0_i32_1 = arith.constant 0 : i32
    return %c0_i32, %c0_i32_0 : i32, i32
  }
  func.func @transform_13(%arg0: i32) -> (i32, i32) {
    %c0_i32 = arith.constant 0 : i32
    %c0_i32_0 = arith.constant 0 : i32
    %c0_i32_1 = arith.constant 0 : i32
    return %c0_i32, %c0_i32_0 : i32, i32
  }
  func.func @transform_14(%arg0: i32) -> (i32, i32) {
    %c0_i32 = arith.constant 0 : i32
    %c0_i32_0 = arith.constant 0 : i32
    %c0_i32_1 = arith.constant 0 : i32
    return %c0_i32, %c0_i32_0 : i32, i32
  }
  func.func @transform_15(%arg0: i32) -> (i32, i32, i32) {
    %c0_i32 = arith.constant 0 : i32
    %c0_i32_0 = arith.constant 0 : i32
    %c0_i32_1 = arith.constant 0 : i32
    return %arg0, %c0_i32, %c0_i32_0 : i32, i32, i32
  }
  func.func @transform_16(%arg0: i32) -> (i32, i32, i32) {
    %c0_i32 = arith.constant 0 : i32
    %c0_i32_0 = arith.constant 0 : i32
    %c0_i32_1 = arith.constant 0 : i32
    return %arg0, %c0_i32, %c0_i32_0 : i32, i32, i32
  }
}

</mosaic_0001>

<bundles_post_ra>
// kernel: transformer_forward.3
= control target key start
LH: loop header
LB: loop body
LE: loop exit
PB: predicated region body
PF: predicated region fallthrough
CT: control target
= control target key end

     0   :  { %8 = vsyncpa [#allocation4], 0  ;;  %s374_s0 = inlined_call_operand.hbm [shape: f32[16,16], index: 0, kind: input, shape index: {}]   ;;  %s375_s1 = inlined_call_operand.hbm [shape: bf16[16,128], index: 1, kind: input, shape index: {}]   ;;  %s376_s2 = inlined_call_operand.hbm [shape: f32[1,128], index: 2, kind: input, shape index: {}]   ;;  %s377_s3 = inlined_call_operand.hbm [shape: bf16[16,128], index: 3, kind: output, shape index: {}]  }
   0x1   :  { %9 = vsyncpa [#allocation7], 0 }
   0x2   :  { %10 = vsyncpa [#allocation5], 0  ;;  %s290_s12 = smov [#allocation6]   ;;  %s196_s16 = scalar_lea.hbm %s375_s1, 128 }
   0x3   :  { %s28_s13 = sshll.u32 %s290_s12, 4  ;;  %p197_p0 = scmp.ne.s32.totalorder %s375_s1, %s196_s16  ;;  %s29_s13 = int_to_ptr.vmem [resolvable:$true] %s28_s13 }
   0x4   :  { %p200_p1 = scmp.lt.u32.totalorder %s196_s16, %s375_s1 }
   0x6   :  { %p202_p2 = pnand %p200_p1, %p197_p0 }
   0x8   :  { %205 = shalt.err (!%p202_p2)
}
   0x9   :  { %s206_s21 = scalar_lea.vmem %s29_s13, 128  ;;  %p211_p4 = scmp.lt.s32.totalorder %s29_s13, %s29_s13 }
   0xa   :  { %p207_p3 = scmp.ne.s32.totalorder %s29_s13, %s206_s21  ;;  %p212_p5 = scmp.lt.s32.totalorder %s206_s21, %s206_s21 }
   0xc   :  { %p213_p6 = por %p212_p5, %p211_p4 }
   0xe   :  { %p214_p7 = pnand %p213_p6, %p207_p3 }
  0x10   :  { %217 = shalt.err (!%p214_p7)
}
  0x11   :  { %s291_s22 = smov 64   ;;  %s292_s23 = smov 4  }
  0x12   :  { %34 = dma.hbm_to_vmem [thread:$0]  %s375_s1, 128, %s29_s13, [#allocation7], %s291_s22, %s291_s22, %s292_s23  }
  0x13   :  { %s293_s26 = smov [#allocation3]   ;;  %s218_s30 = scalar_lea.hbm %s374_s0, 256 }
  0x14   :  { %s16_s27 = sshll.u32 %s293_s26, 4  ;;  %p219_p8 = scmp.ne.s32.totalorder %s374_s0, %s218_s30  ;;  %s17_s27 = int_to_ptr.vmem [resolvable:$true] %s16_s27 }
  0x15   :  { %p222_p9 = scmp.lt.u32.totalorder %s218_s30, %s374_s0 }
  0x17   :  { %p224_p10 = pnand %p222_p9, %p219_p8 }
  0x19   :  { %227 = shalt.err (!%p224_p10)
}
  0x1a   :  { %s228_s8 = scalar_lea.vmem %s17_s27, 256  ;;  %p233_p12 = scmp.lt.s32.totalorder %s17_s27, %s17_s27 }
  0x1b   :  { %p229_p11 = scmp.ne.s32.totalorder %s17_s27, %s228_s8  ;;  %p234_p13 = scmp.lt.s32.totalorder %s228_s8, %s228_s8 }
  0x1d   :  { %p235_p0 = por %p234_p13, %p233_p12 }
  0x1f   :  { %p236_p1 = pnand %p235_p0, %p229_p11 }
  0x21   :  { %239 = shalt.err (!%p236_p1)
}
  0x22   :  { %s294_s1 = smov 128   ;;  %s295_s9 = smov 8  }
  0x23   :  { %22 = dma.hbm_to_vmem [thread:$0]  %s374_s0, 256, %s17_s27, [#allocation4], %s294_s1, %s294_s1, %s295_s9  }
  0x24   :  { %s296_s12 = smov [#allocation8]   ;;  %s240_s16 = scalar_lea.hbm %s376_s2, 16 }
  0x25   :  { %s41_s13 = sshll.u32 %s296_s12, 4  ;;  %p241_p2 = scmp.ne.s32.totalorder %s376_s2, %s240_s16  ;;  %s42_s13 = int_to_ptr.vmem [resolvable:$true] %s41_s13 }
  0x26   :  { %p244_p3 = scmp.lt.u32.totalorder %s240_s16, %s376_s2 }
  0x28   :  { %p246_p4 = pnand %p244_p3, %p241_p2 }
  0x2a   :  { %249 = shalt.err (!%p246_p4)
}
  0x2b   :  { %s250_s21 = scalar_lea.vmem %s42_s13, 16  ;;  %s254_s0 = scalar_lea.vmem %s42_s13, 32 }
  0x2c   :  { %p251_p5 = scmp.ne.s32.totalorder %s42_s13, %s250_s21  ;;  %p255_p6 = scmp.lt.s32.totalorder %s42_s13, %s42_s13 }
  0x2d   :  { %p256_p7 = scmp.lt.s32.totalorder %s254_s0, %s250_s21 }
  0x2f   :  { %p257_p8 = por %p256_p7, %p255_p6 }
  0x31   :  { %p258_p9 = pnand %p257_p8, %p251_p5 }
  0x33   :  { %261 = shalt.err (!%p258_p9)
}
  0x34   :  { %44 = dma.hbm_to_vmem [thread:$0]  %s376_s2, 16, %s42_s13, [#allocation7]  }
  0x35   :  { %284 = dma.done.wait [#allocation4], 256  }
  0x36   :  { %285 = vsyncadd [#allocation4], 4294967040 }
  0x37   :  { %286 = dma.done.wait [#allocation7], 144  }
  0x38   :  { %287 = vsyncadd [#allocation7], 4294967152  ;;  %v297_v0 = vmov 0.0   ;;  %vm298_vm0 = vmmov 0   ;;  %v195_v1 = vld [vmem:[#allocation6] sm:$0xff]   ;;  %v61_v2 = vld [vmem:[#allocation3] sm:$0xff] }
  0x39   :  { %179 = vmatprep.subr.bf16.mxu0 %v297_v0  ;;  %181 = vmatprep.mubr.msk.bf16.mxu0 %vm298_vm0, %v297_v0  ;;  %v62_v3 = vld [vmem:[#allocation3 + $0x8] sm:$0xff]  ;;  %vm74_vm1 = vcmask 130048   ;;  %v167_v6 = vld [vmem:[#allocation8] ss:$0 sm:$0xff]  ;;  %s299_s2 = smov [#allocation9]  }
  0x3a   :  { %180 = vmatpush3.bf16.msra.mxu0 %v195_v1  ;;  %v63_v4 = vpack.c.bf16 %v62_v3, %v61_v2  ;;  %s152_s26 = sshll.u32 %s299_s2, 4  ;;  %s153_s26 = int_to_ptr.vmem [resolvable:$true] %s152_s26 }
  0x3b   :  { %s262_s27 = scalar_lea.vmem %s153_s26, 128  ;;  %p267_p11 = scmp.lt.s32.totalorder %s153_s26, %s153_s26 }
  0x3c   :  { %p263_p10 = scmp.ne.s32.totalorder %s153_s26, %s262_s27  ;;  %p268_p12 = scmp.lt.s32.totalorder %s262_s27, %s262_s27 }
  0x3d   :  { %182 = vmatmul.mubr.msk.bf16.vlgmr.msra.gmra.mrb[0].mxu0 %vm74_vm1, %v63_v4 }
  0x3e   :  { %p269_p13 = por %p268_p12, %p267_p11 }
  0x40   :  { %p270_p0 = pnand %p269_p13, %p263_p10 }
 0x110   :  { %v112_v5 = vpop.f32.mrb[0].mxu0 }
 0x111   :  { %v183_v7 = vpop.f32.mrb[1].mxu0  ;;  %v135_v9 = vadd.f32 %v167_v6, %v112_v5 }
 0x112   :  { %v115_v8 = vpop.f32.mrb[2].mxu0 }
 0x113   :  { %v136_v10 = vadd.f32 %v167_v6, %v115_v8  ;;  %v184_v11 = vpop.f32.mrb[3].mxu0 }
 0x115   :  { %v175_v12 = vpack.c.bf16 %v136_v10, %v135_v9 }
 0x117   :  { %176 = vst [vmem:[#allocation9] sm:$0xff] %v175_v12  }
 0x118   :  { %273 = shalt.err (!%p270_p0)
}
 0x119   :  { %s274_s30 = scalar_lea.hbm %s377_s3, 128 }
 0x11a   :  { %p275_p1 = scmp.ne.s32.totalorder %s377_s3, %s274_s30  ;;  %p278_p2 = scmp.lt.u32.totalorder %s274_s30, %s377_s3 }
 0x11c   :  { %p280_p3 = pnand %p278_p2, %p275_p1 }
 0x11e   :  { %283 = shalt.err (!%p280_p3)
}
 0x11f   :  { %158 = dma.vmem_to_hbm [thread:$0]  %s153_s26, 128, %s377_s3, [#allocation5], %s291_s22, %s291_s22, %s292_s23  }
 0x120   :  { %288 = dma.done.wait [#allocation5], 128  }
 0x121   :  { %289 = vsyncadd [#allocation5], 4294967168 }
 0x122   :  { %162 = vsyncpa [#allocation4], 1 }
 0x123   :  { %163 = vsyncpa [#allocation7], 1 }
 0x124   :  { %164 = vsyncpa [#allocation5], 1 }

// kernel: transformer_forward.4
= control target key start
LH: loop header
LB: loop body
LE: loop exit
PB: predicated region body
PF: predicated region fallthrough
CT: control target
= control target key end

     0   :  { %s6540_s0 = inlined_call_operand.hbm [shape: bf16[2,8,128], index: 0, kind: input, shape index: {}]   ;;  %s6541_s1 = inlined_call_operand.hbm [shape: bf16[128,384], index: 1, kind: input, shape index: {}]   ;;  %s6542_s2 = inlined_call_operand.hbm [shape: f32[1,384], index: 2, kind: input, shape index: {}]   ;;  %s6543_s3 = inlined_call_operand.hbm [shape: bf16[128,128], index: 3, kind: input, shape index: {}]   ;;  %s6544_s4 = inlined_call_operand.hbm [shape: f32[1,128], index: 4, kind: input, shape index: {}]   ;;  %s6545_s5 = inlined_call_operand.hbm [shape: f32[1,128], index: 5, kind: input, shape index: {}]   ;;  %s6546_s6 = inlined_call_operand.hbm [shape: f32[1,128], index: 6, kind: input, shape index: {}]   ;;  %s6547_s7 = inlined_call_operand.hbm [shape: bf16[128,2048], index: 7, kind: input, shape index: {}]   ;;  %s6548_s8 = inlined_call_operand.hbm [shape: f32[1,2048], index: 8, kind: input, shape index: {}]   ;;  %s6549_s9 = inlined_call_operand.hbm [shape: bf16[2048,128], index: 9, kind: input, shape index: {}]   ;;  %s6550_s10 = inlined_call_operand.hbm [shape: f32[1,128], index: 10, kind: input, shape index: {}]   ;;  %s6551_s11 = inlined_call_operand.hbm [shape: f32[1,128], index: 11, kind: input, shape index: {}]   ;;  %s6552_s12 = inlined_call_operand.hbm [shape: f32[1,128], index: 12, kind: input, shape index: {}]   ;;  %s6553_s13 = inlined_call_operand.hbm [shape: bf16[2,8,128], index: 13, kind: output, shape index: {}]  }
   0x1   :  { %6564 = sst [smem:[#allocation37_spill]] %s6540_s0 }
   0x2   :  { %6565 = sst [smem:[#allocation38_spill]] %s6541_s1 }
   0x3   :  { %6566 = sst [smem:[#allocation39_spill]] %s6542_s2 }
   0x4   :  { %6567 = sst [smem:[#allocation40_spill]] %s6553_s13 }
   0x5   :  { %18 = vsyncpa [#allocation5], 0 }
   0x6   :  { %20 = vsyncpa [#allocation5 + $0x1], 0 }
   0x7   :  { %21 = vsyncpa [#allocation8], 0 }
   0x8   :  { %22 = vsyncpa [#allocation11], 0 }
   0x9   :  { %23 = vsyncpa [#allocation14], 0 }
   0xa   :  { %24 = vsyncpa [#allocation17], 0 }
   0xb   :  { %25 = vsyncpa [#allocation20], 0 }
   0xc   :  { %26 = vsyncpa [#allocation23], 0 }
   0xd   :  { %27 = vsyncpa [#allocation6], 0 }
   0xe   :  { %29 = vsyncpa [#allocation6 + $0x1], 0  ;;  %s5917_s25 = smov 0   ;;  %s5919_s26 = smov 0  }
   0xf   :  { %s5921_s27 = smov 0   ;;  %s5923_s28 = smov 0  }
  0x10 LB: > { %6568 = sst [smem:[#allocation34_spill]] %s5808_s25  ;;  %s5822_s29 = smov [#allocation7]   ;;  %s5820_s28 = sphi %s5923_s28, %s6608_s28   ;;  %s5816_s27 = sphi %s5921_s27, %s6607_s27   ;;  %s5812_s26 = sphi %s5919_s26, %s6606_s26   ;;  %s5808_s25 = sphi %s5917_s25, %s6605_s25  }
  0x11   : > { %s356_s30 = sshll.u32 %s5822_s29, 4  ;;  %s5938_s14 = sadd.s32 4294967295, %s5820_s28   ;;  %s5943_s30 = int_to_ptr.vmem [resolvable:$true] %s356_s30 }
  0x12   : > { %6569 = sst [smem:[#allocation35_spill]] %s5938_s14  ;;  %p4335_p0 = scmp.ge.s32.totalorder %s5820_s28, 1 }
  0x13   : > { %p6560_p1 = scmp.eq.s32.totalorder %s5938_s14, 0  ;;  %p344_p2 = scmp.lt.s32.totalorder %s5820_s28, 3 }
  0x14   : > { %s5823_s16 = smov [#allocation10]   ;;  %s5824_s19 = smov [#allocation13]  }
  0x15   : > { %p5945_p3 = pnand %p4335_p0, %p344_p2  ;;  %s380_s17 = sshll.u32 %s5823_s16, 4  ;;  %s5958_s17 = int_to_ptr.vmem [resolvable:$true] %s380_s17 }
  0x16   : > { %s5960_s20 = sshll.u32 %s5824_s19, 4  ;;  %s6573_s1 = sld [smem:[#allocation38_spill]]  ;;  %s406_s20 = int_to_ptr.vmem [resolvable:$true] %s5960_s20 }
  0x17   : > { %s6570_s15 = scalar_select %p5945_p3, 1, 0 }
  0x18   : > { %p5041_p5 = pneg %p5945_p3 }
  0x19   : > { %6571 = sst [smem:[#allocation36_spill]] %s6570_s15 }
  0x1a   : > { %p5954_p6 = pnand %p5041_p5, %p6560_p1 }
  0x1c   : > { %s5364_s23 = scalar_lea.hbm %s6573_s1, 3072  ;;  %p5970_p8 = pneg %p5954_p6 }
  0x1d   : > { %p5365_p7 = scmp.ne.s32.totalorder %s6573_s1, %s5364_s23  ;;  %p5371_p11 = scmp.lt.u32.totalorder %s5364_s23, %s6573_s1 }
  0x1f   : > { %p5367_p9 = pnand %p5970_p8, %p5365_p7 }
  0x21   : > { %p5368_p10 = pneg %p5367_p9 }
  0x23   : > { %p5373_p12 = pnand %p5371_p11, %p5368_p10 }
  0x25   : > { %5376 = shalt.err (!%p5373_p12)
}
  0x26   : > { %s5377_s21 = scalar_lea.vmem %s5943_s30, 3072  ;;  %p5385_p5 = scmp.lt.s32.totalorder %s5943_s30, %s5943_s30 }
  0x27   : > { %p5378_p13 = scmp.ne.s32.totalorder %s5943_s30, %s5377_s21  ;;  %p5386_p4 = scmp.lt.s32.totalorder %s5377_s21, %s5377_s21 }
  0x29   : > { %p5380_p0 = pnand %p5378_p13, %p5970_p8  ;;  %p5387_p7 = por %p5386_p4, %p5385_p5 }
  0x2b   : > { %p5381_p2 = pneg %p5380_p0 }
  0x2d   : > { %p5388_p9 = pnand %p5387_p7, %p5381_p2 }
  0x2f   : > { %5391 = shalt.err (!%p5388_p9)
}
  0x30   : > { %s5825_s22 = smov 192   ;;  %s5826_s13 = smov 12  }
  0x31   : > { %5044 = dma.hbm_to_vmem [thread:$0]  (!%p5954_p6), %s6573_s1, 3072, %s5943_s30, [#allocation8], %s5825_s22, %s5825_s22, %s5826_s13  }
  0x32   : > { %s5392_s15 = scalar_lea.hbm %s6543_s3, 1024 }
  0x33   : > { %p5393_p4 = scmp.ne.s32.totalorder %s6543_s3, %s5392_s15  ;;  %p5399_p12 = scmp.lt.u32.totalorder %s5392_s15, %s6543_s3 }
  0x35   : > { %p5395_p10 = pnand %p5393_p4, %p5970_p8 }
  0x37   : > { %p5396_p11 = pneg %p5395_p10 }
  0x39   : > { %p5401_p13 = pnand %p5399_p12, %p5396_p11 }
  0x3b   : > { %5404 = shalt.err (!%p5401_p13)
}
  0x3c   : > { %s5405_s30 = scalar_lea.vmem %s5958_s17, 1024  ;;  %p5413_p7 = scmp.lt.s32.totalorder %s5958_s17, %s5958_s17 }
  0x3d   : > { %p5406_p0 = scmp.ne.s32.totalorder %s5958_s17, %s5405_s30  ;;  %p5414_p9 = scmp.lt.s32.totalorder %s5405_s30, %s5405_s30 }
  0x3f   : > { %p5408_p2 = pnand %p5406_p0, %p5970_p8  ;;  %p5415_p4 = por %p5414_p9, %p5413_p7 }
  0x41   : > { %p5409_p5 = pneg %p5408_p2 }
  0x43   : > { %p5416_p10 = pnand %p5415_p4, %p5409_p5 }
  0x45   : > { %5419 = shalt.err (!%p5416_p10)
}
  0x46   : > { %s5827_s0 = smov 64   ;;  %s6562_s25 = smov 4  }
  0x47   : > { %5050 = dma.hbm_to_vmem [thread:$0]  (!%p5954_p6), %s6543_s3, 1024, %s5958_s17, [#allocation11], %s5827_s0, %s5827_s0, %s6562_s25  }
  0x48   : > { %s5420_s23 = scalar_lea.hbm %s6545_s5, 16 }
  0x49   : > { %p5421_p11 = scmp.ne.s32.totalorder %s6545_s5, %s5420_s23  ;;  %p5427_p0 = scmp.lt.u32.totalorder %s5420_s23, %s6545_s5 }
  0x4b   : > { %p5423_p12 = pnand %p5421_p11, %p5970_p8 }
  0x4d   : > { %p5424_p13 = pneg %p5423_p12 }
  0x4f   : > { %p5429_p2 = pnand %p5427_p0, %p5424_p13 }
  0x51   : > { %5432 = shalt.err (!%p5429_p2)
}
  0x52   : > { %s5433_s30 = scalar_lea.vmem %s406_s20, 16  ;;  %s5440_s17 = scalar_lea.vmem %s406_s20, 32 }
  0x53   : > { %p5434_p5 = scmp.ne.s32.totalorder %s406_s20, %s5433_s30  ;;  %p5441_p4 = scmp.lt.s32.totalorder %s406_s20, %s406_s20 }
  0x54   : > { %p5442_p10 = scmp.lt.s32.totalorder %s5440_s17, %s5433_s30 }
  0x55   : > { %p5436_p7 = pnand %p5434_p5, %p5970_p8 }
  0x56   : > { %p5443_p1 = por %p5442_p10, %p5441_p4 }
  0x57   : > { %p5437_p9 = pneg %p5436_p7 }
  0x59   : > { %p5444_p3 = pnand %p5443_p1, %p5437_p9 }
  0x5b   : > { %5447 = shalt.err (!%p5444_p3)
}
  0x5c   : > { %5056 = dma.hbm_to_vmem [thread:$0]  (!%p5954_p6), %s6545_s5, 16, %s406_s20, [#allocation14]  }
  0x5d   : > { %s5829_s22 = smov [#allocation16]   ;;  %s5448_s29 = scalar_lea.hbm %s6547_s7, 16384 }
  0x5e   : > { %s426_s13 = sshll.u32 %s5829_s22, 4  ;;  %p5449_p11 = scmp.ne.s32.totalorder %s6547_s7, %s5448_s29  ;;  %s427_s13 = int_to_ptr.vmem [resolvable:$true] %s426_s13 }
  0x5f   : > { %p5455_p12 = scmp.lt.u32.totalorder %s5448_s29, %s6547_s7 }
  0x60   : > { %p5451_p1 = pnand %p5449_p11, %p5970_p8 }
  0x62   : > { %p5452_p3 = pneg %p5451_p1 }
  0x64   : > { %p5457_p13 = pnand %p5455_p12, %p5452_p3 }
  0x66   : > { %5460 = shalt.err (!%p5457_p13)
}
  0x67   : > { %s5461_s20 = scalar_lea.vmem %s427_s13, 16384  ;;  %p5469_p7 = scmp.lt.s32.totalorder %s427_s13, %s427_s13 }
  0x68   : > { %p5462_p0 = scmp.ne.s32.totalorder %s427_s13, %s5461_s20  ;;  %p5470_p9 = scmp.lt.s32.totalorder %s5461_s20, %s5461_s20 }
  0x6a   : > { %p5464_p2 = pnand %p5462_p0, %p5970_p8  ;;  %p5471_p4 = por %p5470_p9, %p5469_p7 }
  0x6c   : > { %p5465_p5 = pneg %p5464_p2 }
  0x6e   : > { %p5472_p10 = pnand %p5471_p4, %p5465_p5 }
  0x70   : > { %5475 = shalt.err (!%p5472_p10)
}
  0x71   : > { %s5830_s14 = smov 1024   ;;  %s5831_s23 = smov [#allocation19]  }
  0x72   : > { %5062 = dma.hbm_to_vmem [thread:$0]  (!%p5954_p6), %s6547_s7, 16384, %s427_s13, [#allocation17], %s5830_s14, %s5830_s14, %s5827_s0  }
  0x73   : > { %s450_s24 = sshll.u32 %s5831_s23, 4  ;;  %s5832_s29 = smov [#allocation22]   ;;  %s451_s24 = int_to_ptr.vmem [resolvable:$true] %s450_s24 }
  0x74   : > { %s475_s19 = sshll.u32 %s5832_s29, 4  ;;  %s5476_s17 = scalar_lea.hbm %s6549_s9, 16384  ;;  %s476_s19 = int_to_ptr.vmem [resolvable:$true] %s475_s19 }
  0x75   : > { %p5477_p11 = scmp.ne.s32.totalorder %s6549_s9, %s5476_s17  ;;  %p5483_p12 = scmp.lt.u32.totalorder %s5476_s17, %s6549_s9 }
  0x77   : > { %p5479_p1 = pnand %p5477_p11, %p5970_p8 }
  0x79   : > { %p5480_p3 = pneg %p5479_p1 }
  0x7b   : > { %p5485_p13 = pnand %p5483_p12, %p5480_p3 }
  0x7d   : > { %5488 = shalt.err (!%p5485_p13)
}
  0x7e   : > { %s5489_s13 = scalar_lea.vmem %s451_s24, 16384  ;;  %p5497_p7 = scmp.lt.s32.totalorder %s451_s24, %s451_s24 }
  0x7f   : > { %p5490_p0 = scmp.ne.s32.totalorder %s451_s24, %s5489_s13  ;;  %p5498_p9 = scmp.lt.s32.totalorder %s5489_s13, %s5489_s13 }
  0x81   : > { %p5492_p2 = pnand %p5490_p0, %p5970_p8  ;;  %p5499_p4 = por %p5498_p9, %p5497_p7 }
  0x83   : > { %p5493_p5 = pneg %p5492_p2 }
  0x85   : > { %p5500_p10 = pnand %p5499_p4, %p5493_p5 }
  0x87   : > { %5503 = shalt.err (!%p5500_p10)
}
  0x88   : > { %s6575_s25 = smov 4   ;;  %s5504_s29 = scalar_lea.hbm %s6551_s11, 16 }
  0x89   : > { %5068 = dma.hbm_to_vmem [thread:$0]  (!%p5954_p6), %s6549_s9, 16384, %s451_s24, [#allocation20], %s5827_s0, %s5827_s0, %s6575_s25  }
  0x8a   : > { %p5505_p11 = scmp.ne.s32.totalorder %s6551_s11, %s5504_s29  ;;  %p5511_p12 = scmp.lt.u32.totalorder %s5504_s29, %s6551_s11 }
  0x8c   : > { %p5507_p1 = pnand %p5505_p11, %p5970_p8 }
  0x8e   : > { %p5508_p3 = pneg %p5507_p1 }
  0x90   : > { %p5513_p13 = pnand %p5511_p12, %p5508_p3 }
  0x92   : > { %5516 = shalt.err (!%p5513_p13)
}
  0x93   : > { %s5517_s15 = scalar_lea.vmem %s476_s19, 16  ;;  %s5524_s0 = scalar_lea.vmem %s476_s19, 32 }
  0x94   : > { %p5518_p0 = scmp.ne.s32.totalorder %s476_s19, %s5517_s15  ;;  %p5525_p7 = scmp.lt.s32.totalorder %s476_s19, %s476_s19 }
  0x95   : > { %p5526_p9 = scmp.lt.s32.totalorder %s5524_s0, %s5517_s15 }
  0x96   : > { %p5520_p2 = pnand %p5518_p0, %p5970_p8 }
  0x97   : > { %p5527_p4 = por %p5526_p9, %p5525_p7 }
  0x98   : > { %p5521_p5 = pneg %p5520_p2 }
  0x9a   : > { %p5528_p10 = pnand %p5527_p4, %p5521_p5 }
  0x9c   : > { %5531 = shalt.err (!%p5528_p10)
}
  0x9d   : > { %5074 = dma.hbm_to_vmem [thread:$0]  (!%p5954_p6), %s6551_s11, 16, %s476_s19, [#allocation23]  }
  0x9e   : > { %s5833_s25 = smov [#allocation9]   ;;  %s5834_s14 = smov [#allocation12]  }
  0x9f   : > { %s370_s1 = sshll.u32 %s5833_s25, 4  ;;  %s394_s22 = sshll.u32 %s5834_s14, 4  ;;  %s371_s1 = int_to_ptr.vmem [resolvable:$true] %s370_s1  ;;  %s395_s22 = int_to_ptr.vmem [resolvable:$true] %s394_s22 }
  0xa0   : > { %s6576_s2 = sld [smem:[#allocation39_spill]] }
  0xa6   : > { %s5532_s21 = scalar_lea.hbm %s6576_s2, 48 }
  0xa7   : > { %p5533_p11 = scmp.ne.s32.totalorder %s6576_s2, %s5532_s21  ;;  %p5539_p12 = scmp.lt.u32.totalorder %s5532_s21, %s6576_s2 }
  0xa9   : > { %p5535_p1 = pnand %p5533_p11, %p5970_p8 }
  0xab   : > { %p5536_p3 = pneg %p5535_p1 }
  0xad   : > { %p5541_p13 = pnand %p5539_p12, %p5536_p3 }
  0xaf   : > { %5544 = shalt.err (!%p5541_p13)
}
  0xb0   : > { %s5545_s19 = scalar_lea.vmem %s371_s1, 48  ;;  %s5552_s0 = scalar_lea.vmem %s371_s1, 64 }
  0xb1   : > { %p5546_p0 = scmp.ne.s32.totalorder %s371_s1, %s5545_s19  ;;  %p5553_p7 = scmp.lt.s32.totalorder %s371_s1, %s371_s1 }
  0xb2   : > { %p5554_p9 = scmp.lt.s32.totalorder %s5552_s0, %s5545_s19 }
  0xb3   : > { %p5548_p2 = pnand %p5546_p0, %p5970_p8 }
  0xb4   : > { %p5555_p4 = por %p5554_p9, %p5553_p7 }
  0xb5   : > { %p5549_p5 = pneg %p5548_p2 }
  0xb7   : > { %p5556_p10 = pnand %p5555_p4, %p5549_p5 }
  0xb9   : > { %5559 = shalt.err (!%p5556_p10)
}
  0xba   : > { %5047 = dma.hbm_to_vmem [thread:$0]  (!%p5954_p6), %s6576_s2, 48, %s371_s1, [#allocation8]  }
  0xbb   : > { %s5560_s23 = scalar_lea.hbm %s6544_s4, 16 }
  0xbc   : > { %p5561_p11 = scmp.ne.s32.totalorder %s6544_s4, %s5560_s23  ;;  %p5567_p12 = scmp.lt.u32.totalorder %s5560_s23, %s6544_s4 }
  0xbe   : > { %p5563_p1 = pnand %p5561_p11, %p5970_p8 }
  0xc0   : > { %p5564_p3 = pneg %p5563_p1 }
  0xc2   : > { %p5569_p13 = pnand %p5567_p12, %p5564_p3 }
  0xc4   : > { %5572 = shalt.err (!%p5569_p13)
}
  0xc5   : > { %s5573_s20 = scalar_lea.vmem %s395_s22, 16  ;;  %s5580_s1 = scalar_lea.vmem %s395_s22, 32 }
  0xc6   : > { %p5574_p0 = scmp.ne.s32.totalorder %s395_s22, %s5573_s20  ;;  %p5581_p7 = scmp.lt.s32.totalorder %s395_s22, %s395_s22 }
  0xc7   : > { %p5582_p9 = scmp.lt.s32.totalorder %s5580_s1, %s5573_s20 }
  0xc8   : > { %p5576_p2 = pnand %p5574_p0, %p5970_p8 }
  0xc9   : > { %p5583_p4 = por %p5582_p9, %p5581_p7 }
  0xca   : > { %p5577_p5 = pneg %p5576_p2 }
  0xcc   : > { %p5584_p10 = pnand %p5583_p4, %p5577_p5 }
  0xce   : > { %5587 = shalt.err (!%p5584_p10)
}
  0xcf   : > { %5053 = dma.hbm_to_vmem [thread:$0]  (!%p5954_p6), %s6544_s4, 16, %s395_s22, [#allocation11]  }
  0xd0   : > { %s5835_s0 = smov [#allocation15]   ;;  %s5836_s13 = smov [#allocation18]  }
  0xd1   : > { %s416_s24 = sshll.u32 %s5835_s0, 4  ;;  %s440_s25 = sshll.u32 %s5836_s13, 4  ;;  %s417_s24 = int_to_ptr.vmem [resolvable:$true] %s416_s24  ;;  %s441_s25 = int_to_ptr.vmem [resolvable:$true] %s440_s25 }
  0xd2   : > { %s5588_s29 = scalar_lea.hbm %s6546_s6, 16 }
  0xd3   : > { %p5589_p11 = scmp.ne.s32.totalorder %s6546_s6, %s5588_s29  ;;  %p5595_p12 = scmp.lt.u32.totalorder %s5588_s29, %s6546_s6 }
  0xd5   : > { %p5591_p1 = pnand %p5589_p11, %p5970_p8 }
  0xd7   : > { %p5592_p3 = pneg %p5591_p1 }
  0xd9   : > { %p5597_p13 = pnand %p5595_p12, %p5592_p3 }
  0xdb   : > { %5600 = shalt.err (!%p5597_p13)
}
  0xdc   : > { %s5601_s22 = scalar_lea.vmem %s417_s24, 16  ;;  %s5608_s1 = scalar_lea.vmem %s417_s24, 32 }
  0xdd   : > { %p5602_p0 = scmp.ne.s32.totalorder %s417_s24, %s5601_s22  ;;  %p5609_p7 = scmp.lt.s32.totalorder %s417_s24, %s417_s24 }
  0xde   : > { %p5610_p9 = scmp.lt.s32.totalorder %s5608_s1, %s5601_s22 }
  0xdf   : > { %p5604_p2 = pnand %p5602_p0, %p5970_p8 }
  0xe0   : > { %p5611_p4 = por %p5610_p9, %p5609_p7 }
  0xe1   : > { %p5605_p5 = pneg %p5604_p2 }
  0xe3   : > { %p5612_p10 = pnand %p5611_p4, %p5605_p5 }
  0xe5   : > { %5615 = shalt.err (!%p5612_p10)
}
  0xe6   : > { %5059 = dma.hbm_to_vmem [thread:$0]  (!%p5954_p6), %s6546_s6, 16, %s417_s24, [#allocation14]  }
  0xe7   : > { %s5616_s14 = scalar_lea.hbm %s6548_s8, 256 }
  0xe8   : > { %p5617_p11 = scmp.ne.s32.totalorder %s6548_s8, %s5616_s14  ;;  %p5623_p12 = scmp.lt.u32.totalorder %s5616_s14, %s6548_s8 }
  0xea   : > { %p5619_p1 = pnand %p5617_p11, %p5970_p8 }
  0xec   : > { %p5620_p3 = pneg %p5619_p1 }
  0xee   : > { %p5625_p13 = pnand %p5623_p12, %p5620_p3 }
  0xf0   : > { %5628 = shalt.err (!%p5625_p13)
}
  0xf1   : > { %s5629_s17 = scalar_lea.vmem %s441_s25, 256  ;;  %p5637_p7 = scmp.lt.s32.totalorder %s441_s25, %s441_s25 }
  0xf2   : > { %p5630_p0 = scmp.ne.s32.totalorder %s441_s25, %s5629_s17  ;;  %p5638_p9 = scmp.lt.s32.totalorder %s5629_s17, %s5629_s17 }
  0xf4   : > { %p5632_p2 = pnand %p5630_p0, %p5970_p8  ;;  %p5639_p4 = por %p5638_p9, %p5637_p7 }
  0xf6   : > { %p5633_p5 = pneg %p5632_p2 }
  0xf8   : > { %p5640_p10 = pnand %p5639_p4, %p5633_p5 }
  0xfa   : > { %5643 = shalt.err (!%p5640_p10)
}
  0xfb   : > { %5065 = dma.hbm_to_vmem [thread:$0]  (!%p5954_p6), %s6548_s8, 256, %s441_s25, [#allocation17]  }
  0xfc   : > { %s5837_s22 = smov [#allocation21]   ;;  %s5838_s15 = smov [#allocation24]  }
  0xfd   : > { %s464_s1 = sshll.u32 %s5837_s22, 4  ;;  %s486_s19 = sshll.u32 %s5838_s15, 4  ;;  %s465_s1 = int_to_ptr.vmem [resolvable:$true] %s464_s1  ;;  %s487_s19 = int_to_ptr.vmem [resolvable:$true] %s486_s19 }
  0xfe   : > { %s5644_s14 = scalar_lea.hbm %s6550_s10, 16 }
  0xff   : > { %p5645_p11 = scmp.ne.s32.totalorder %s6550_s10, %s5644_s14  ;;  %p5651_p12 = scmp.lt.u32.totalorder %s5644_s14, %s6550_s10 }
 0x101   : > { %p5647_p1 = pnand %p5645_p11, %p5970_p8 }
 0x103   : > { %p5648_p3 = pneg %p5647_p1 }
 0x105   : > { %p5653_p13 = pnand %p5651_p12, %p5648_p3 }
 0x107   : > { %5656 = shalt.err (!%p5653_p13)
}
 0x108   : > { %s5657_s25 = scalar_lea.vmem %s465_s1, 16  ;;  %s5664_s17 = scalar_lea.vmem %s465_s1, 32 }
 0x109   : > { %p5658_p0 = scmp.ne.s32.totalorder %s465_s1, %s5657_s25  ;;  %p5665_p7 = scmp.lt.s32.totalorder %s465_s1, %s465_s1 }
 0x10a   : > { %p5666_p9 = scmp.lt.s32.totalorder %s5664_s17, %s5657_s25 }
 0x10b   : > { %p5660_p2 = pnand %p5658_p0, %p5970_p8 }
 0x10c   : > { %p5667_p4 = por %p5666_p9, %p5665_p7 }
 0x10d   : > { %p5661_p5 = pneg %p5660_p2 }
 0x10f   : > { %p5668_p10 = pnand %p5667_p4, %p5661_p5 }
 0x111   : > { %5671 = shalt.err (!%p5668_p10)
}
 0x112   : > { %5071 = dma.hbm_to_vmem [thread:$0]  (!%p5954_p6), %s6550_s10, 16, %s465_s1, [#allocation20]  }
 0x113   : > { %s5672_s0 = scalar_lea.hbm %s6552_s12, 16 }
 0x114   : > { %p5673_p11 = scmp.ne.s32.totalorder %s6552_s12, %s5672_s0  ;;  %p5679_p12 = scmp.lt.u32.totalorder %s5672_s0, %s6552_s12 }
 0x116   : > { %p5675_p1 = pnand %p5673_p11, %p5970_p8 }
 0x118   : > { %p5676_p3 = pneg %p5675_p1 }
 0x11a   : > { %p5681_p13 = pnand %p5679_p12, %p5676_p3 }
 0x11c   : > { %5684 = shalt.err (!%p5681_p13)
}
 0x11d   : > { %s5685_s21 = scalar_lea.vmem %s487_s19, 16  ;;  %s5692_s1 = scalar_lea.vmem %s487_s19, 32 }
 0x11e   : > { %p5686_p0 = scmp.ne.s32.totalorder %s487_s19, %s5685_s21  ;;  %p5693_p7 = scmp.lt.s32.totalorder %s487_s19, %s487_s19 }
 0x11f   : > { %p5694_p9 = scmp.lt.s32.totalorder %s5692_s1, %s5685_s21 }
 0x120   : > { %p5688_p2 = pnand %p5686_p0, %p5970_p8 }
 0x121   : > { %p5695_p4 = por %p5694_p9, %p5693_p7 }
 0x122   : > { %p5689_p5 = pneg %p5688_p2 }
 0x124   : > { %p5696_p10 = pnand %p5695_p4, %p5689_p5 }
 0x126   : > { %5699 = shalt.err (!%p5696_p10)
}
 0x127   : > { %s6577_s16 = sld [smem:[#allocation34_spill]]  ;;  %s6578_s17 = sld [smem:[#allocation35_spill]] }
 0x128   : > { %5077 = dma.hbm_to_vmem [thread:$0]  (!%p5954_p6), %s6552_s12, 16, %s487_s19, [#allocation23]  }
 0x129   : > { %s4334_s24 = sadd.s32 4294967294, %s5820_s28   ;;  %s6204_s18 = sadd.s32 1, %s5820_s28  }
 0x12a   : > { %s42_s20 = sadd.s32 1, %s5816_s27  ;;  %s39_s22 = ssub.s32 %s5820_s28, %s6204_s18 }
 0x12b   : > { %p49_p8 = scmp.ne.s32.totalorder %s5816_s27, %s5812_s26  ;;  %p40_p11 = scmp.eq.s32.totalorder %s39_s22, 0 }
 0x12c   : > { %p50_p1 = scmp.eq.s32.totalorder %s5820_s28, 0  ;;  %p337_p5 = scmp.eq.s32.totalorder %s4334_s24, 1 }
 0x12d   : > { %p55_p3 = scmp.ne.s32.totalorder %s5812_s26, %s6577_s16  ;;  %p331_p12 = scmp.eq.s32.totalorder %s6578_s17, 1 }
 0x12e   : > { %s6216_s15 = scalar_select %p40_p11, %s5816_s27, %s42_s20  }
 0x12f   : > { %p51_p13 = por %p50_p1, %p49_p8  ;;  %p6579_p0 = scmp.eq.s32.totalorder %s6578_s17, 0 }
 0x130   : > { %p6224_p6 = por %p331_p12, %p49_p8  ;;  %p5098_p7 = scmp.lt.s32.totalorder %s5820_s28, 2 }
 0x131   : > { %p6220_p2 = por %p6579_p0, %p55_p3  ;;  %s497_s13 = sand.u32 1, %s5816_s27  }
 0x132   : > { %s6581_s19 = scalar_select %p6224_p6, 1, 0 }
 0x133   : > { %p6230_p9 = por %p337_p5, %p55_p3  ;;  %s4349_s23 = sshll.u32 %s497_s13, 2 }
 0x134   : > { %s4350_s29 = sshll.u32 %s5820_s28, 6  ;;  %s6583_s30 = sld [smem:[#allocation37_spill]] }
 0x135   : > { %s6582_s14 = scalar_select %p6230_p9, 1, 0 }
 0x136   : > { %s501_s16 = scalar_lea.vmem [#allocation4], %s4349_s23  ;;  %p6240_p4 = pnand %p5098_p7, %p51_p13 }
 0x137   : > { %s508_s17 = sshll.u32 %s501_s16, 4  ;;  %s498_s20 = scalar_lea.sflag [#allocation5], %s497_s13  ;;  %s6244_s17 = int_to_ptr.vmem [resolvable:$true] %s508_s17 }
 0x138   : > { %p5702_p8 = pneg %p6240_p4 }
 0x13a   : > { %s6238_s25 = scalar_lea.hbm %s6583_s30, %s4350_s29  ;;  %s5705_s21 = scalar_lea.hbm %s6583_s30, 128 }
 0x13b   : > { %s5700_s22 = scalar_lea.hbm %s6238_s25, 64  ;;  %p5706_p3 = scmp.lt.u32.totalorder %s6238_s25, %s6583_s30 }
 0x13c   : > { %p5701_p10 = scmp.ne.s32.totalorder %s6238_s25, %s5700_s22  ;;  %p5707_p12 = scmp.lt.u32.totalorder %s5705_s21, %s5700_s22 }
 0x13d   : > { %p5709_p0 = scmp.lt.u32.totalorder %s5700_s22, %s6238_s25 }
 0x13e   : > { %p5703_p11 = pnand %p5702_p8, %p5701_p10  ;;  %p5708_p13 = por %p5707_p12, %p5706_p3 }
 0x140   : > { %p5704_p1 = pneg %p5703_p11  ;;  %p5710_p5 = por %p5709_p0, %p5708_p13 }
 0x142   : > { %p5711_p7 = pnand %p5710_p5, %p5704_p1 }
 0x144   : > { %5714 = shalt.err (!%p5711_p7)
}
 0x145   : > { %s5715_s13 = scalar_lea.vmem %s6244_s17, 64  ;;  %s5839_s29 = smov [#allocation4]  }
 0x146   : > { %p5716_p10 = scmp.ne.s32.totalorder %s6244_s17, %s5715_s13  ;;  %s5720_s23 = sshll.u32 %s5839_s29, 4  ;;  %s5721_s23 = int_to_ptr.vmem [resolvable:$false] %s5720_s23 }
 0x147   : > { %s5722_s1 = scalar_lea.vmem %s5721_s23, 128  ;;  %p5723_p6 = scmp.lt.s32.totalorder %s6244_s17, %s5721_s23 }
 0x148   : > { %p5718_p11 = pnand %p5716_p10, %p5702_p8  ;;  %p5724_p3 = scmp.lt.s32.totalorder %s5722_s1, %s5715_s13 }
 0x14a   : > { %p5719_p9 = pneg %p5718_p11  ;;  %p5725_p12 = por %p5724_p3, %p5723_p6 }
 0x14c   : > { %p5726_p13 = pnand %p5725_p12, %p5719_p9 }
 0x14e   : > { %5729 = shalt.err (!%p5726_p13)
}
 0x14f   : > { %5081 = dma.hbm_to_vmem [thread:$0]  (!%p6240_p4), %s6238_s25, 64, %s6244_s17, %s498_s20  }
 0x150   : > { %s6585_s22 = sld [smem:[#allocation36_spill]] }
 0x156   : > { %p6586_p1 = scmp.ne.s32.totalorder %s6585_s22, 0 }
 0x157   : > { %s6274_s21 = sand.u32 (!%p6586_p1), 1, %s5812_s26  }
 0x158   : > { %517 = sbr.rel (%p6586_p1) target bundleno = 3465 (0xd89), region = 72  ;;  %s4352_s16 = sshll.u32 (!%p6586_p1), %s6274_s21, 2 }
 0x159   : > { %s520_s13 = scalar_lea.sflag (!%p6586_p1), [#allocation5], %s6274_s21  ;;  %s6280_s29 = scalar_lea.vmem (!%p6586_p1), [#allocation4], %s4352_s16 }
 0x15f   : > { %5775 = dma.done.wait (%p6220_p2), %s520_s13, 64  }
 0x160   : > { %5777 = vsyncadd (%p6220_p2), %s520_s13, 4294967232  ;;  %s6587_s25 = sld [smem:[#allocation35_spill]] }
 0x166   : > { %p6588_p6 = scmp.eq.s32.totalorder %s6587_s25, 0 }
 0x168   : > { %5779 = dma.done.wait (%p6588_p6), [#allocation8], 3120   ;;  %p6589_p9 = pmov %p6588_p6 }
 0x169   : > { %p6590_p4 = pmov %p6588_p6 }
 0x16a   : > { %5781 = vsyncadd (%p6589_p9), [#allocation8], 4294964176 }
 0x16b   : > { %5783 = dma.done.wait (%p6590_p4), [#allocation11], 1040   ;;  %p6591_p8 = pmov %p6590_p4 }
 0x16c   : > { %p6592_p0 = pmov %p6590_p4 }
 0x16d   : > { %5785 = vsyncadd (%p6591_p8), [#allocation11], 4294966256 }
 0x16e   : > { %5787 = dma.done.wait (%p6592_p0), [#allocation14], 32   ;;  %p6593_p5 = pmov %p6592_p0 }
 0x16f   : > { %p6594_p2 = pmov %p6592_p0 }
 0x170   : > { %5789 = vsyncadd (%p6593_p5), [#allocation14], 4294967264 }
 0x171   : > { %5791 = dma.done.wait (%p6594_p2), [#allocation17], 16640   ;;  %p6595_p7 = pmov %p6592_p0 }
 0x172   : > { %p6596_p10 = pmov %p6592_p0 }
 0x173   : > { %5793 = vsyncadd (%p6595_p7), [#allocation17], 4294950656 }
 0x174   : > { %5795 = dma.done.wait (%p6596_p10), [#allocation20], 16400   ;;  %p6597_p11 = pmov %p6592_p0 }
 0x175   : > { %p6598_p3 = pmov %p6592_p0 }
 0x176   : > { %5797 = vsyncadd (%p6597_p11), [#allocation20], 4294950896 }
 0x177   : > { %5799 = dma.done.wait (%p6598_p3), [#allocation23], 32   ;;  %p6599_p12 = pmov %p6592_p0 }
 0x178   : > { %v5840_v0 = vmov 0   ;;  %v5841_v1 = vmov 0.0   ;;  %v5167_v2 = vld [vmem:[#allocation7 + $0x4] ss:$12 sps:$4 sm:$0xff]   ;;  %v5169_v3 = vld [vmem:[#allocation7] ss:$12 sps:$4 sm:$0xff]   ;;  %v651_v27 = vlaneseq }
 0x179   : > { %5801 = vsyncadd (%p6599_p12), [#allocation23], 4294967264  ;;  %826 = vmatprep.mubr.bf16.mxu0 %v5840_v0  ;;  %4901 = vmatprep.subr.bf16.mxu1 %v5841_v1  ;;  %v5170_v4 = vld [vmem:[#allocation7 + $0x1c] ss:$12 sps:$4 sm:$0xff]   ;;  %v5172_v5 = vld [vmem:[#allocation7 + $0x18] ss:$12 sps:$4 sm:$0xff]  }
 0x17a   : > { %794 = vmatprep.subr.bf16.mxu0 %v5167_v2  ;;  %v5173_v6 = vld [vmem:[#allocation7 + $0x34] ss:$12 sps:$4 sm:$0xff]   ;;  %v5175_v7 = vld [vmem:[#allocation7 + $0x30] ss:$12 sps:$4 sm:$0xff]   ;;  %v5176_v8 = vld [vmem:[#allocation7 + $0x4c] ss:$12 sps:$4 sm:$0xff]  }
 0x17b   : > { %795 = vmatpush1.bf16.msra.mxu0 %v5169_v3  ;;  %v5178_v9 = vld [vmem:[#allocation7 + $0x48] ss:$12 sps:$4 sm:$0xff]   ;;  %v5179_v11 = vld [vmem:[#allocation7 + $0x64] ss:$12 sps:$4 sm:$0xff]   ;;  %v5192_v12 = vld [vmem:[#allocation7 + $0x20] ss:$12 sps:$4 sm:$0xff]  }
 0x17c   : > { %796 = vmatprep.subr.bf16.mxu0 %v5170_v4  ;;  %v5191_v10 = vld [vmem:[#allocation7 + $0x8] ss:$12 sps:$4 sm:$0xff]   ;;  %v5181_v13 = vld [vmem:[#allocation7 + $0x60] ss:$12 sps:$4 sm:$0xff]   ;;  %v5184_v15 = vld [vmem:[#allocation7 + $0x78] ss:$12 sps:$4 sm:$0xff]  }
 0x17d   : > { %4902 = vmatpush3.bf16.msra.mxu1 %v5191_v10  ;;  %v5182_v14 = vld [vmem:[#allocation7 + $0x7c] ss:$12 sps:$4 sm:$0xff]   ;;  %v5193_v16 = vld [vmem:[#allocation7 + $0x38] ss:$12 sps:$4 sm:$0xff]   ;;  %v5185_v17 = vld [vmem:[#allocation7 + $0x94] ss:$12 sps:$4 sm:$0xff]  }
 0x17e   : > { %4903 = vmatprep.subr.bf16.mxu1 %v5841_v1  ;;  %v5194_v18 = vld [vmem:[#allocation7 + $0x50] ss:$12 sps:$4 sm:$0xff]   ;;  %v5188_v20 = vld [vmem:[#allocation7 + $0xac] ss:$12 sps:$4 sm:$0xff]   ;;  %v5195_v21 = vld [vmem:[#allocation7 + $0x68] ss:$12 sps:$4 sm:$0xff]  }
 0x17f   : > { %797 = vmatpush1.bf16.msra.mxu0 %v5172_v5  ;;  %v5187_v19 = vld [vmem:[#allocation7 + $0x90] ss:$12 sps:$4 sm:$0xff]   ;;  %v5190_v22 = vld [vmem:[#allocation7 + $0xa8] ss:$12 sps:$4 sm:$0xff]   ;;  %v5196_v23 = vld [vmem:[#allocation7 + $0x80] ss:$12 sps:$4 sm:$0xff]  }
 0x180   : > { %798 = vmatprep.subr.bf16.mxu0 %v5173_v6  ;;  %v6317_v24 = vld [vmem:[%s6280_s29] sm:$0xf]  ;;  %vm5842_vm0 = vmmov 0   ;;  %v6332_v28 = vshrl.u32 %v651_v27, 7  ;;  %v649_v30 = vld [vmem:[#allocation9] sm:$0x7] }
 0x181   : > { %4904 = vmatpush3.bf16.msra.mxu1 %v5192_v12  ;;  %v5197_v25 = vld [vmem:[#allocation7 + $0x98] ss:$12 sps:$4 sm:$0xff]   ;;  %v5198_v26 = vld [vmem:[#allocation7 + $0xb0] ss:$12 sps:$4 sm:$0xff]   ;;  %4917 = vmatprep.mubr.msk.bf16.mxu1 %vm5842_vm0, %v5841_v1  ;;  %vm893_vm1 = vcmask 261120   ;;  %s5843_s0 = smov 96  }
 0x182   : > { %4905 = vmatprep.subr.bf16.mxu1 %v5841_v1  ;;  %v6335_v29 = vsub.s32 0, %v6332_v28  ;;  %v6338_v31 = vsub.s32 1, %v6332_v28  ;;  %s5844_s17 = smov 64   ;;  %s5845_s24 = smov 32   ;;  %v6353_v49 = vsub.s32 2, %v6332_v28  ;;  %vm957_vm2 = vcmask 1043456  }
 0x183   : > { %799 = vmatpush1.bf16.msra.mxu0 %v5175_v7  ;;  %vm941_vm3 = vcmask 64512   ;;  %vm1002_vm4 = vcmask 257024   ;;  %vm1134_vm5 = vcmask 519424   ;;  %vm1266_vm6 = vcmask 781824   ;;  %s4683_s20 = sshll.u32 %s6587_s25, 6  ;;  %s613_s23 = scalar_lea.vmem [#allocation25], %s4352_s16 }
 0x184   : > { %800 = vmatprep.subr.bf16.mxu0 %v5176_v8  ;;  %v654_v32 = vrot.slane %v649_v30, %v6335_v29  ;;  %v658_v33 = vrot.slane %v649_v30, %v6338_v31  ;;  %v662_v50 = vrot.slane %v649_v30, %v6353_v49  ;;  %vm1398_vm7 = vcmask 1044224   ;;  %s4150_s1 = sshll.u32 %s613_s23, 4  ;;  %s6600_s29 = sld [smem:[#allocation40_spill]]  ;;  %s6498_s1 = int_to_ptr.vmem [resolvable:$true] %s4150_s1 }
 0x185   : > { %4906 = vmatpush3.bf16.msra.mxu1 %v5193_v16  ;;  %p6601_p1 = scmp.ne.s32.totalorder %s6581_s19, 0  ;;  %s5846_s16 = smov [#allocation25]  }
 0x186   : > { %4907 = vmatprep.subr.bf16.mxu1 %v5841_v1  ;;  %s5734_s25 = sshll.u32 %s5846_s16, 4  ;;  %s5735_s25 = int_to_ptr.vmem [resolvable:$false] %s5734_s25 }
 0x187   : > { %801 = vmatpush1.bf16.msra.mxu0 %v5178_v9  ;;  %s5736_s2 = scalar_lea.vmem %s5735_s25, 128  ;;  %p5737_p4 = scmp.lt.s32.totalorder %s6498_s1, %s5735_s25 }
 0x188   : > { %802 = vmatprep.subr.bf16.mxu0 %v5179_v11 }
 0x189   : > { %4908 = vmatpush3.bf16.msra.mxu1 %v5194_v18 }
 0x18a   : > { %4909 = vmatprep.subr.bf16.mxu1 %v5841_v1 }
 0x18b   : > { %803 = vmatpush1.bf16.msra.mxu0 %v5181_v13 }
 0x18c   : > { %804 = vmatprep.subr.bf16.mxu0 %v5182_v14 }
 0x18d   : > { %4910 = vmatpush3.bf16.msra.mxu1 %v5195_v21 }
 0x18e   : > { %4911 = vmatprep.subr.bf16.mxu1 %v5841_v1 }
 0x18f   : > { %805 = vmatpush1.bf16.msra.mxu0 %v5184_v15 }
 0x190   : > { %806 = vmatprep.subr.bf16.mxu0 %v5185_v17 }
 0x191   : > { %4912 = vmatpush3.bf16.msra.mxu1 %v5196_v23 }
 0x192   : > { %4913 = vmatprep.subr.bf16.mxu1 %v5841_v1 }
 0x193   : > { %807 = vmatpush1.bf16.msra.mxu0 %v5187_v19 }
 0x194   : > { %808 = vmatprep.subr.bf16.mxu0 %v5188_v20 }
 0x195   : > { %4914 = vmatpush3.bf16.msra.mxu1 %v5197_v25 }
 0x196   : > { %4915 = vmatprep.subr.bf16.mxu1 %v5841_v1 }
 0x197   : > { %809 = vmatpush1.bf16.msra.mxu0 %v5190_v22 }
 0x198   : > { %4945 = vmatprep.subr.bf16.mxu0 %v5841_v1 }
 0x199   : > { %4916 = vmatpush3.bf16.msra.mxu1 %v5198_v26 }
 0x19a   : > { %827 = vmatmul.mubr.bf16.vlgmr.msra.gmra.mrb[0].mxu0 %v6317_v24  ;;  %4921 = vmatprep.subr.bf16.mxu1 %v5841_v1 }
 0x19b   : > { %4947 = vmatprep.mubr.msk.bf16.mxu0 %vm5842_vm0, %v5841_v1 }
 0x19c   : > { %4918 = vmatmul.mubr.bf16.vlgmr.msra.gmra.mrb[0].mxu1 %v6317_v24 }
 0x19d   : > { %4923 = vmatprep.mubr.msk.bf16.mxu1 %vm5842_vm0, %v5841_v1 }
 0x26d   : > { %v828_v34 = vpop.f32.mrb[0].mxu0 }
 0x26e   : > { %v829_v35 = vadd.f32 %v828_v34, %v654_v32  ;;  %v830_v36 = vpop.f32.mrb[1].mxu0 }
 0x26f   : > { %v831_v37 = vadd.f32 %v830_v36, %v658_v33  ;;  %v832_v38 = vpop.f32.mrb[2].mxu0  ;;  %v869_v51 = vpop.f32.mrb[0].mxu1 }
 0x270   : > { %v833_v39 = vpop.f32.mrb[3].mxu0  ;;  %v870_v52 = vadd.f32 %v869_v51, %v662_v50  ;;  %v4919_v53 = vpop.f32.mrb[1].mxu1 }
 0x271   : > { %v4686_v40 = vpack.c.bf16 %v831_v37, %v829_v35  ;;  %v872_v54 = vpop.f32.mrb[2].mxu1 }
 0x272   : > { %v4687_v55 = vpack.c.bf16 %v870_v52, %v870_v52  ;;  %v4920_v56 = vpop.f32.mrb[3].mxu1 }
 0x273   : > { %888 = vst [vmem:[#allocation2] sm:$0xff] %v4686_v40 }
 0x274   : > { %889 = vst [vmem:[#allocation2 + $0x8] sm:$0xf] %v4687_v55 }
 0x27a   : > { %v891_v41 = vld [vmem:[#allocation2 + $0x4] sm:$0xf]  ;;  %v5200_v44 = vld [vmem:[#allocation2] ss:$0 sps:$4 sm:$0xff]  }
 0x27b   : > { %v5199_v42 = vld [vmem:[#allocation2 + $0x4] ss:$0 sps:$4 sm:$0xff]   ;;  %v898_v43 = vsel %vm893_vm1, %v891_v41, 0  ;;  %v890_v45 = vld [vmem:[#allocation2] sm:$0xf] }
 0x27c   : > { %4922 = vmatpush3.bf16.xpose.msra.mxu1 %v898_v43  ;;  %1015 = vrot.lane.b32.xlu1 %v5199_v42, %s5843_s0  ;;  %v5201_v46 = vld [vmem:[#allocation2] ss:$0 sps:$4 sm:$0xff]   ;;  %v5202_v47 = vld [vmem:[#allocation2 + $0x4] ss:$0 sps:$4 sm:$0xff]   ;;  %v892_v57 = vld [vmem:[#allocation2 + $0x8] sm:$0xf] }
 0x27d   : > { %4927 = vmatprep.subr.bf16.mxu1 %v5841_v1  ;;  %v5203_v48 = vld [vmem:[#allocation2] ss:$0 sps:$4 sm:$0xff]   ;;  %v959_v58 = vsel %vm957_vm2, %v892_v57, 0  ;;  %v5204_v8 = vld [vmem:[#allocation2 + $0x4] ss:$0 sps:$4 sm:$0xff]  }
 0x280   : > { %1010 = vrot.lane.b32.xlu1 %v5200_v44, %s5843_s0 }
 0x283   : > { %4924 = vmatmul.mubr.msk.bf16.vlgmr.msra.gmra.mrb[4].mxu1 %vm893_vm1, %v890_v45 }
 0x284   : > { %1142 = vrot.lane.b32.xlu1 %v5201_v46, %s5844_s17  ;;  %4929 = vmatprep.mubr.msk.bf16.mxu1 %vm5842_vm0, %v5841_v1 }
 0x285   : > { %4928 = vmatpush3.bf16.msra.mxu1 %v959_v58 }
 0x286   : > { %4933 = vmatprep.subr.bf16.mxu1 %v5841_v1 }
 0x288   : > { %1279 = vrot.lane.b32.xlu1 %v5202_v47, %s5845_s24 }
 0x28c   : > { %1274 = vrot.lane.b32.xlu1 %v5203_v48, %s5845_s24 }
 0x2ee   : > { %v1016_v9 = vpop.permute.xlu1 %1015 }
 0x2ef   : > { %v1021_v20 = vsel %vm893_vm1, %v1016_v9, 0 }
 0x2f2   : > { %v1011_v10 = vpop.permute.xlu1 %1010 }
 0x2f6   : > { %v1143_v12 = vpop.permute.xlu1 %1142 }
 0x2fa   : > { %v1280_v15 = vpop.permute.xlu1 %1279 }
 0x2fb   : > { %v1285_v18 = vsel %vm893_vm1, %v1280_v15, 0 }
 0x2fe   : > { %v1275_v21 = vpop.permute.xlu1 %1274 }
 0x356   : > { %v934_v59 = vpop.f32.mrb[4].mxu1 }
 0x357   : > { %v940_v60 = vmul.f32 0.17677669, %v934_v59  ;;  %v4925_v61 = vpop.f32.mrb[5].mxu1 }
 0x358   : > { %v937_v62 = vpop.f32.mrb[6].mxu1 }
 0x359   : > { %v4926_v63 = vpop.f32.mrb[7].mxu1  ;;  %v942_v2 = vsel %vm941_vm3, %v940_v60, -inf }
 0x35a   : > { %943 = vmax.xlane.f32.xlu0 %v942_v2 }
 0x3e7   : > { %v944_v3 = vpop.xlane.xlu0 %943 }
 0x3e8   : > { %v945_v4 = vsub.f32 %v940_v60, %v944_v3  ;;  %v5205_v3 = vld [vmem:[#allocation2 + $0x8] ss:$0 sps:$4 sm:$0xff]  }
 0x3ea   : > { %v946_v5 = vmul.f32 1.442695, %v945_v4  ;;  %v5206_v4 = vld [vmem:[#allocation2 + $0x8] ss:$0 sps:$4 sm:$0xff]  }
 0x3ec   : > { %5344 = vpow2.f32 %v946_v5  ;;  %v5207_v5 = vld [vmem:[#allocation2 + $0x8] ss:$0 sps:$4 sm:$0xff]  }
 0x3f6   : > { %v5345_v6 = vpop.eup %5344 }
 0x3f7   : > { %v948_v7 = vsel %vm941_vm3, %v5345_v6, 0.0 }
 0x3f8   : > { %949 = vadd.xlane.f32.xlu0 %v948_v7 }
 0x40e   : > { %1147 = vrot.lane.b32.xlu0 %v5204_v8, %s5844_s17 }
 0x485   : > { %v950_v11 = vpop.xlane.xlu0 %949 }
 0x486   : > { %5346 = vrcp.f32 %v950_v11 }
 0x489   : > { %v1148_v13 = vpop.permute.xlu0 %1147 }
 0x48a   : > { %v1153_v14 = vsel %vm893_vm1, %v1148_v13, 0 }
 0x48b   : > { %4946 = vmatpush3.bf16.xpose.msra.mxu0 %v1153_v14 }
 0x48c   : > { %4957 = vmatprep.subr.bf16.mxu0 %v5841_v1 }
 0x490   : > { %v5347_v16 = vpop.eup %5346 }
 0x491   : > { %v952_v17 = vmul.f32 %v5347_v16, %v5345_v6 }
 0x492   : > { %4948 = vmatmul.mubr.msk.bf16.vlgmr.msra.gmra.mrb[4].mxu0 %vm893_vm1, %v1143_v12 }
 0x493   : > { %4958 = vmatpush3.bf16.xpose.msra.mxu0 %v1285_v18  ;;  %v953_v19 = vpack.c.bf16 %v952_v17, %v952_v17  ;;  %4959 = vmatprep.mubr.msk.bf16.mxu0 %vm5842_vm0, %v5841_v1 }
 0x494   : > { %4969 = vmatprep.subr.bf16.mxu0 %v5841_v1 }
 0x495   : > { %4930 = vmatmul.mubr.msk.bf16.vlgmr.msra.gmra.mrb[8].mxu1 %vm941_vm3, %v953_v19 }
 0x496   : > { %4934 = vmatpush3.bf16.xpose.msra.mxu1 %v1021_v20  ;;  %4935 = vmatprep.mubr.msk.bf16.mxu1 %vm5842_vm0, %v5841_v1 }
 0x497   : > { %4939 = vmatprep.subr.bf16.mxu1 %v5841_v1 }
 0x49a   : > { %4960 = vmatmul.mubr.msk.bf16.vlgmr.msra.gmra.mrb[8].mxu0 %vm893_vm1, %v1275_v21 }
 0x49b   : > { %4985 = vmatprep.mubr.msk.bf16.mxu0 %vm5842_vm0, %v5841_v1 }
 0x49d   : > { %4936 = vmatmul.mubr.msk.bf16.vlgmr.msra.gmra.mrb[12].mxu1 %vm893_vm1, %v1011_v10 }
 0x49e   : > { %4941 = vmatprep.mubr.msk.bf16.mxu1 %vm5842_vm0, %v5841_v1 }
 0x565   : > { %v1189_v22 = vpop.f32.mrb[4].mxu0 }
 0x566   : > { %v1195_v23 = vmul.f32 0.17677669, %v1189_v22  ;;  %v4949_v25 = vpop.f32.mrb[5].mxu0 }
 0x567   : > { %v1192_v26 = vpop.f32.mrb[6].mxu0  ;;  %v5208_v25 = vld [vmem:[#allocation10] sm:$0xff]  }
 0x568   : > { %v995_v27 = vpop.f32.mrb[8].mxu1  ;;  %v4950_v30 = vpop.f32.mrb[7].mxu0  ;;  %v1196_v32 = vsel %vm941_vm3, %v1195_v23, -inf  ;;  %4970 = vmatpush3.bf16.msra.mxu0 %v5208_v25  ;;  %v5209_v26 = vld [vmem:[#allocation10 + $0x8] sm:$0xff]  }
 0x569   : > { %v1001_v33 = vpack.c.bf16 %v995_v27, %v995_v27  ;;  %1197 = vmax.xlane.f32.xlu0 %v1196_v32  ;;  %v4931_v34 = vpop.f32.mrb[9].mxu1  ;;  %4971 = vmatprep.subr.bf16.mxu0 %v5841_v1  ;;  %v5210_v27 = vld [vmem:[#allocation10 + $0x10] sm:$0xff]   ;;  %v5211_v30 = vld [vmem:[#allocation10 + $0x18] sm:$0xff]   ;;  %v5212_v32 = vld [vmem:[#allocation10 + $0x20] sm:$0xff]  }
 0x56a   : > { %v998_v35 = vpop.f32.mrb[10].mxu1  ;;  %v5213_v34 = vld [vmem:[#allocation10 + $0x28] sm:$0xff]  }
 0x56b   : > { %1003 = vst.msk [vmem:[#allocation3] sm:$0xf] %vm1002_vm4, %v1001_v33  ;;  %v4932_v36 = vpop.f32.mrb[11].mxu1 }
 0x56c   : > { %4972 = vmatpush3.bf16.msra.mxu0 %v5209_v26 }
 0x56d   : > { %v1321_v37 = vpop.f32.mrb[8].mxu0  ;;  %4973 = vmatprep.subr.bf16.mxu0 %v5841_v1 }
 0x56e   : > { %v4961_v38 = vpop.f32.mrb[9].mxu0  ;;  %v1327_v45 = vmul.f32 0.17677669, %v1321_v37 }
 0x56f   : > { %v1324_v39 = vpop.f32.mrb[10].mxu0 }
 0x570   : > { %v1057_v40 = vpop.f32.mrb[12].mxu1  ;;  %v4962_v41 = vpop.f32.mrb[11].mxu0  ;;  %v1328_v48 = vsel %vm941_vm3, %v1327_v45, -inf  ;;  %4974 = vmatpush3.bf16.msra.mxu0 %v5210_v27  ;;  %v5214_v39 = vld [vmem:[#allocation10 + $0x30] sm:$0xff]  }
 0x571   : > { %v1063_v42 = vmul.f32 0.17677669, %v1057_v40  ;;  %v4937_v43 = vpop.f32.mrb[13].mxu1  ;;  %4975 = vmatprep.subr.bf16.mxu0 %v5841_v1  ;;  %v5215_v41 = vld [vmem:[#allocation10 + $0x38] sm:$0xff]  }
 0x572   : > { %v1060_v44 = vpop.f32.mrb[14].mxu1 }
 0x573   : > { %v4938_v46 = vpop.f32.mrb[15].mxu1  ;;  %v1064_v47 = vsel %vm941_vm3, %v1063_v42, -inf }
 0x574   : > { %1065 = vmax.xlane.f32.xlu1 %v1064_v47  ;;  %4976 = vmatpush3.bf16.msra.mxu0 %v5211_v30 }
 0x575   : > { %4977 = vmatprep.subr.bf16.mxu0 %v5841_v1 }
 0x578   : > { %1329 = vmax.xlane.f32.xlu1 %v1328_v48  ;;  %4978 = vmatpush3.bf16.msra.mxu0 %v5212_v32  ;;  %v1591_v32 = vld [vmem:[#allocation16 + $0x180] sm:$0xff] }
 0x579   : > { %4979 = vmatprep.subr.bf16.mxu0 %v5841_v1 }
 0x57c   : > { %4980 = vmatpush3.bf16.msra.mxu0 %v5213_v34  ;;  %v1592_v34 = vld [vmem:[#allocation16 + $0x188] sm:$0xff] }
 0x57d   : > { %4981 = vmatprep.subr.bf16.mxu0 %v5841_v1 }
 0x580   : > { %4982 = vmatpush3.bf16.msra.mxu0 %v5214_v39 }
 0x581   : > { %4983 = vmatprep.subr.bf16.mxu0 %v5841_v1 }
 0x584   : > { %4984 = vmatpush3.bf16.msra.mxu0 %v5215_v41  ;;  %v1615_v41 = vld [vmem:[#allocation16 + $0x240] sm:$0xff] }
 0x5f6   : > { %v1198_v50 = vpop.xlane.xlu0 %1197 }
 0x5f7   : > { %v1199_v51 = vsub.f32 %v1195_v23, %v1198_v50 }
 0x5f9   : > { %v1200_v52 = vmul.f32 1.442695, %v1199_v51 }
 0x5fb   : > { %5348 = vpow2.f32 %v1200_v52 }
 0x601   : > { %v1066_v53 = vpop.xlane.xlu1 %1065 }
 0x602   : > { %v1067_v54 = vsub.f32 %v1063_v42, %v1066_v53 }
 0x604   : > { %v1068_v59 = vmul.f32 1.442695, %v1067_v54 }
 0x605   : > { %v5349_v55 = vpop.eup %5348  ;;  %v1330_v56 = vpop.xlane.xlu1 %1329 }
 0x606   : > { %v1331_v57 = vsub.f32 %v1327_v45, %v1330_v56  ;;  %v1202_v58 = vsel %vm941_vm3, %v5349_v55, 0.0 }
 0x607   : > { %1203 = vadd.xlane.f32.xlu0 %v1202_v58 }
 0x608   : > { %v1332_v60 = vmul.f32 1.442695, %v1331_v57  ;;  %v4420_v57 = vld [vmem:[#allocation12] ss:$0 sm:$0xff] }
 0x60a   : > { %5350 = vpow2.f32 %v1332_v60 }
 0x60b   : > { %5352 = vpow2.f32 %v1068_v59 }
 0x614   : > { %v5351_v61 = vpop.eup %5350 }
 0x615   : > { %v1334_v62 = vsel %vm941_vm3, %v5351_v61, 0.0  ;;  %v5353_v63 = vpop.eup %5352 }
 0x616   : > { %1335 = vadd.xlane.f32.xlu1 %v1334_v62  ;;  %v1070_v2 = vsel %vm941_vm3, %v5353_v63, 0.0 }
 0x61a   : > { %1071 = vadd.xlane.f32.xlu1 %v1070_v2  ;;  %v1551_v2 = vld [vmem:[#allocation16 + $0x40] sm:$0xff] }
 0x61d   : > { %1079 = vrot.lane.b32.xlu0 %v5205_v3, %s5843_s0  ;;  %v1544_v3 = vld [vmem:[#allocation16 + $0x8] sm:$0xff] }
 0x62b   : > { %1211 = vrot.lane.b32.xlu1 %v5206_v4, %s5844_s17 }
 0x62f   : > { %1343 = vrot.lane.b32.xlu1 %v5207_v5, %s5845_s24 }
 0x694   : > { %v1204_v6 = vpop.xlane.xlu0 %1203 }
 0x698   : > { %v1080_v7 = vpop.permute.xlu0 %1079 }
 0x699   : > { %v1085_v8 = vsel %vm957_vm2, %v1080_v7, 0  ;;  %v1559_v7 = vld [vmem:[#allocation16 + $0x80] sm:$0xff] }
 0x69a   : > { %4940 = vmatpush3.bf16.msra.mxu1 %v1085_v8  ;;  %v1567_v8 = vld [vmem:[#allocation16 + $0xc0] sm:$0xff] }
 0x69b   : > { %4951 = vmatprep.subr.bf16.mxu1 %v5841_v1 }
 0x6a3   : > { %v1336_v9 = vpop.xlane.xlu1 %1335 }
 0x6a7   : > { %v1072_v10 = vpop.xlane.xlu1 %1071 }
 0x6a8   : > { %5354 = vrcp.f32 %v1072_v10 }
 0x6a9   : > { %5356 = vrcp.f32 %v1204_v6  ;;  %v1552_v6 = vld [vmem:[#allocation16 + $0x48] sm:$0xff] }
 0x6aa   : > { %5358 = vrcp.f32 %v1336_v9  ;;  %v4425_v9 = vcombine.low %v1544_v3, %v1552_v6  ;;  %v4426_v10 = vcombine.high %v1544_v3, %v1552_v6  ;;  %v1663_v3 = vld [vmem:[#allocation16 + $0x3c0] sm:$0xff] }
 0x6ab   : > { %v1212_v13 = vpop.permute.xlu1 %1211 }
 0x6ac   : > { %v1217_v16 = vsel %vm957_vm2, %v1212_v13, 0  ;;  %v1575_v13 = vld [vmem:[#allocation16 + $0x100] sm:$0xff]  ;;  %2436 = vmatprep.subr.bf16.mxu0 %v4426_v10 }
 0x6af   : > { %v1344_v18 = vpop.permute.xlu1 %1343 }
 0x6b0   : > { %v1349_v21 = vsel %vm957_vm2, %v1344_v18, 0  ;;  %v4439_v18 = vcombine.low %v1559_v7, %v1567_v8 }
 0x6b2   : > { %v5355_v11 = vpop.eup %5354 }
 0x6b3   : > { %v1074_v12 = vmul.f32 %v5355_v11, %v5353_v63  ;;  %v5357_v15 = vpop.eup %5356  ;;  %v1543_v63 = vld [vmem:[#allocation16] sm:$0xff]  ;;  %v4440_v11 = vcombine.high %v1559_v7, %v1567_v8  ;;  %v1664_v7 = vld [vmem:[#allocation16 + $0x3c8] sm:$0xff]  ;;  %v1545_v8 = vld [vmem:[#allocation16 + $0x10] sm:$0xff] }
 0x6b4   : > { %v1206_v17 = vmul.f32 %v5357_v15, %v5349_v55  ;;  %v5359_v20 = vpop.eup %5358  ;;  %v616_v55 = vunpack.c.l.bf16 %v6317_v24  ;;  %v4423_v4 = vcombine.low %v1543_v63, %v1551_v2  ;;  %v4424_v5 = vcombine.high %v1543_v63, %v1551_v2  ;;  %v1560_v24 = vld [vmem:[#allocation16 + $0x88] sm:$0xff]  ;;  %v1583_v15 = vld [vmem:[#allocation16 + $0x140] sm:$0xff] }
 0x6b5   : > { %v1075_v14 = vpack.c.bf16 %v1074_v12, %v1074_v12  ;;  %v1338_v22 = vmul.f32 %v5359_v20, %v5351_v61  ;;  %v1568_v12 = vld [vmem:[#allocation16 + $0xc8] sm:$0xff]  ;;  %v4456_v20 = vcombine.high %v1575_v13, %v1583_v15  ;;  %v1655_v2 = vld [vmem:[#allocation16 + $0x380] sm:$0xff] }
 0x6b6   : > { %v1207_v19 = vpack.c.bf16 %v1206_v17, %v1206_v17  ;;  %v1584_v17 = vld [vmem:[#allocation16 + $0x148] sm:$0xff]  ;;  %v4536_v6 = vcombine.high %v1655_v2, %v1663_v3 }
 0x6b7   : > { %4942 = vmatmul.mubr.msk.bf16.vlgmr.msra.gmra.mrb[16].mxu1 %vm941_vm3, %v1075_v14  ;;  %v1339_v23 = vpack.c.bf16 %v1338_v22, %v1338_v22  ;;  %v4442_v14 = vcombine.high %v1560_v24, %v1568_v12  ;;  %v4455_v22 = vcombine.low %v1575_v13, %v1583_v15  ;;  %v1546_v13 = vld [vmem:[#allocation16 + $0x18] sm:$0xff] }
 0x6b8   : > { %4952 = vmatpush3.bf16.msra.mxu1 %v1217_v16  ;;  %4953 = vmatprep.mubr.msk.bf16.mxu1 %vm5842_vm0, %v5841_v1  ;;  %v1576_v16 = vld [vmem:[#allocation16 + $0x108] sm:$0xff] }
 0x6b9   : > { %4963 = vmatprep.subr.bf16.mxu1 %v5841_v1 }
 0x6bf   : > { %4954 = vmatmul.mubr.msk.bf16.vlgmr.msra.gmra.mrb[20].mxu1 %vm941_vm3, %v1207_v19  ;;  %v4441_v19 = vcombine.low %v1560_v24, %v1568_v12 }
 0x6c0   : > { %4964 = vmatpush3.bf16.msra.mxu1 %v1349_v21  ;;  %4965 = vmatprep.mubr.msk.bf16.mxu1 %vm5842_vm0, %v5841_v1  ;;  %v4458_v21 = vcombine.high %v1576_v16, %v1584_v17 }
 0x6c1   : > { %2395 = vmatprep.subr.bf16.mxu1 %v4424_v5  ;;  %v4535_v5 = vcombine.low %v1655_v2, %v1663_v3  ;;  %v1634_v2 = vld [vmem:[#allocation16 + $0x2d8] sm:$0xff] }
 0x6c7   : > { %4966 = vmatmul.mubr.msk.bf16.vlgmr.msra.gmra.mrb[24].mxu1 %vm941_vm3, %v1339_v23  ;;  %v4457_v23 = vcombine.low %v1576_v16, %v1584_v17 }
 0x6c8   : > { %2427 = vmatprep.mubr.bf16.mxu1 %v5840_v0  ;;  %2396 = vmatpush1.bf16.msra.mxu1 %v4423_v4  ;;  %v1656_v4 = vld [vmem:[#allocation16 + $0x388] sm:$0xff] }
 0x6c9   : > { %2397 = vmatprep.subr.bf16.mxu1 %v4440_v11  ;;  %v4537_v10 = vcombine.low %v1656_v4, %v1664_v7  ;;  %v4538_v11 = vcombine.high %v1656_v4, %v1664_v7  ;;  %v1641_v7 = vld [vmem:[#allocation16 + $0x310] sm:$0xff] }
 0x6cc   : > { %2398 = vmatpush1.bf16.msra.mxu1 %v4439_v18 }
 0x6cd   : > { %2399 = vmatprep.subr.bf16.mxu1 %v4456_v20 }
 0x6d0   : > { %2400 = vmatpush1.bf16.msra.mxu1 %v4455_v22 }
 0x78a   : > { %v1121_v33 = vpop.f32.mrb[16].mxu1 }
 0x78b   : > { %v4688_v35 = vpack.c.bf16 %v1121_v33, %v1121_v33  ;;  %v4943_v36 = vpop.f32.mrb[17].mxu1  ;;  %v1599_v33 = vld [vmem:[#allocation16 + $0x1c0] sm:$0xff] }
 0x78c   : > { %v1124_v37 = vpop.f32.mrb[18].mxu1  ;;  %v1600_v36 = vld [vmem:[#allocation16 + $0x1c8] sm:$0xff] }
 0x78d   : > { %1131 = vrot.lane.b32.xlu0 %v4688_v35, %s5845_s24  ;;  %v4944_v38 = vpop.f32.mrb[19].mxu1  ;;  %v4472_v35 = vcombine.high %v1591_v32, %v1599_v33  ;;  %v4471_v37 = vcombine.low %v1591_v32, %v1599_v33  ;;  %v4474_v39 = vcombine.high %v1592_v34, %v1600_v36  ;;  %v1562_v32 = vld [vmem:[#allocation16 + $0x98] sm:$0xff]  ;;  %s5730_s24 = scalar_lea.vmem %s6498_s1, 64 }
 0x78e   : > { %v4473_v38 = vcombine.low %v1592_v34, %v1600_v36  ;;  %v1570_v33 = vld [vmem:[#allocation16 + $0xd8] sm:$0xff]  ;;  %p5731_p13 = scmp.ne.s32.totalorder %s6498_s1, %s5730_s24  ;;  %p5738_p8 = scmp.lt.s32.totalorder %s5736_s2, %s5730_s24 }
 0x78f   : > { %2401 = vmatprep.subr.bf16.mxu1 %v4472_v35 }
 0x790   : > { %2402 = vmatpush1.bf16.msra.mxu1 %v4471_v37  ;;  %v4446_v37 = vcombine.high %v1562_v32, %v1570_v33  ;;  %p5732_p6 = pnand %p5731_p13, %p6601_p1  ;;  %p5739_p0 = por %p5738_p8, %p5737_p4 }
 0x792   : > { %v1253_v40 = vpop.f32.mrb[20].mxu1  ;;  %p5733_p9 = pneg %p5732_p6 }
 0x793   : > { %v4689_v42 = vpack.c.bf16 %v1253_v40, %v1253_v40  ;;  %v4955_v43 = vpop.f32.mrb[21].mxu1  ;;  %v1607_v40 = vld [vmem:[#allocation16 + $0x200] sm:$0xff] }
 0x794   : > { %v1256_v44 = vpop.f32.mrb[22].mxu1  ;;  %v4488_v43 = vcombine.high %v1607_v40, %v1615_v41  ;;  %p5740_p5 = pnand %p5739_p0, %p5733_p9 }
 0x795   : > { %1263 = vrot.lane.b32.xlu1 %v4689_v42, %s5844_s17  ;;  %v4956_v45 = vpop.f32.mrb[23].mxu1  ;;  %v1608_v42 = vld [vmem:[#allocation16 + $0x208] sm:$0xff]  ;;  %s4137_s17 = scalar_lea.sflag [#allocation6], %s6274_s21 }
 0x796   : > { %v1616_v44 = vld [vmem:[#allocation16 + $0x248] sm:$0xff]  ;;  %v4487_v45 = vcombine.low %v1607_v40, %v1615_v41  ;;  %2403 = vmatprep.subr.bf16.mxu1 %v4488_v43  ;;  %v1578_v40 = vld [vmem:[#allocation16 + $0x118] sm:$0xff] }
 0x797   : > { %v1586_v41 = vld [vmem:[#allocation16 + $0x158] sm:$0xff] }
 0x798   : > { %2404 = vmatpush1.bf16.msra.mxu1 %v4487_v45  ;;  %v1593_v45 = vld [vmem:[#allocation16 + $0x190] sm:$0xff] }
 0x79a   : > { %v1385_v46 = vpop.f32.mrb[24].mxu1 }
 0x79b   : > { %v4690_v47 = vpack.c.bf16 %v1385_v46, %v1385_v46  ;;  %v4967_v48 = vpop.f32.mrb[25].mxu1  ;;  %v4489_v46 = vcombine.low %v1608_v42, %v1616_v44 }
 0x79c   : > { %v1388_v50 = vpop.f32.mrb[26].mxu1  ;;  %v1623_v48 = vld [vmem:[#allocation16 + $0x280] sm:$0xff] }
 0x79d   : > { %1395 = vrot.lane.b32.xlu0 %v4690_v47, %s5843_s0  ;;  %v4968_v51 = vpop.f32.mrb[27].mxu1  ;;  %v4490_v47 = vcombine.high %v1608_v42, %v1616_v44  ;;  %v1631_v50 = vld [vmem:[#allocation16 + $0x2c0] sm:$0xff]  ;;  %v4445_v42 = vcombine.low %v1562_v32, %v1570_v33  ;;  %v4462_v44 = vcombine.high %v1578_v40, %v1586_v41  ;;  %s6496_s0 = scalar_lea.hbm %s6600_s29, %s4683_s20 }
 0x79e   : > { %v1624_v51 = vld [vmem:[#allocation16 + $0x288] sm:$0xff] }
 0x7ff   : > { %v1132_v52 = vpop.permute.xlu0 %1131 }
 0x800   : > { %1135 = vst.msk [vmem:[#allocation3] sm:$0xf] %vm1134_vm5, %v1132_v52  ;;  %v4504_v52 = vcombine.high %v1623_v48, %v1631_v50 }
 0x802   : > { %2405 = vmatprep.subr.bf16.mxu1 %v4504_v52 }
 0x807   : > { %v1264_v53 = vpop.permute.xlu1 %1263 }
 0x808   : > { %1267 = vst.msk [vmem:[#allocation3] sm:$0xf] %vm1266_vm6, %v1264_v53  ;;  %v1632_v53 = vld [vmem:[#allocation16 + $0x2c8] sm:$0xff] }
 0x80f   : > { %v1396_v1 = vpop.permute.xlu0 %1395 }
 0x810   : > { %1399 = vst.msk [vmem:[#allocation3] sm:$0xf] %vm1398_vm7, %v1396_v1  ;;  %v4503_v1 = vcombine.low %v1623_v48, %v1631_v50  ;;  %v1602_v48 = vld [vmem:[#allocation16 + $0x1d8] sm:$0xff] }
 0x812   : > { %2406 = vmatpush1.bf16.msra.mxu1 %v4503_v1  ;;  %v1609_v1 = vld [vmem:[#allocation16 + $0x210] sm:$0xff] }
 0x817   : > { %v1400_v54 = vld [vmem:[#allocation3] sm:$0xf] }
 0x818   : > { %4986 = vmatmul.mubr.bf16.vlgmr.msra.gmra.mrb[12].mxu0 %v1400_v54  ;;  %v4505_v54 = vcombine.low %v1624_v51, %v1632_v53 }
 0x819   : > { %2468 = vmatprep.mubr.bf16.mxu0 %v5840_v0  ;;  %2437 = vmatpush1.bf16.msra.mxu0 %v4425_v9  ;;  %v1553_v9 = vld [vmem:[#allocation16 + $0x50] sm:$0xff] }
 0x81a   : > { %2438 = vmatprep.subr.bf16.mxu0 %v4442_v14  ;;  %v4427_v24 = vcombine.low %v1545_v8, %v1553_v9  ;;  %v4428_v12 = vcombine.high %v1545_v8, %v1553_v9  ;;  %v1554_v14 = vld [vmem:[#allocation16 + $0x58] sm:$0xff]  ;;  %v1649_v8 = vld [vmem:[#allocation16 + $0x350] sm:$0xff] }
 0x81b   : > { %v4429_v15 = vcombine.low %v1546_v13, %v1554_v14  ;;  %v4430_v16 = vcombine.high %v1546_v13, %v1554_v14  ;;  %v1642_v9 = vld [vmem:[#allocation16 + $0x318] sm:$0xff]  ;;  %v1657_v14 = vld [vmem:[#allocation16 + $0x390] sm:$0xff] }
 0x81d   : > { %2439 = vmatpush1.bf16.msra.mxu0 %v4441_v19 }
 0x81e   : > { %2440 = vmatprep.subr.bf16.mxu0 %v4458_v21  ;;  %v4421_v21 = vld [vmem:[#allocation13] ss:$0 sm:$0xff] }
 0x821   : > { %2441 = vmatpush1.bf16.msra.mxu0 %v4457_v23  ;;  %v4422_v23 = vld [vmem:[#allocation15] ss:$0 sm:$0xff] }
 0x822   : > { %2442 = vmatprep.subr.bf16.mxu0 %v4474_v39  ;;  %v1585_v39 = vld [vmem:[#allocation16 + $0x150] sm:$0xff] }
 0x825   : > { %2443 = vmatpush1.bf16.msra.mxu0 %v4473_v38  ;;  %v1577_v38 = vld [vmem:[#allocation16 + $0x110] sm:$0xff] }
 0x826   : > { %2444 = vmatprep.subr.bf16.mxu0 %v4490_v47  ;;  %v4460_v43 = vcombine.high %v1577_v38, %v1585_v39  ;;  %v1594_v47 = vld [vmem:[#allocation16 + $0x198] sm:$0xff]  ;;  %v4459_v50 = vcombine.low %v1577_v38, %v1585_v39  ;;  %v1571_v38 = vld [vmem:[#allocation16 + $0xe0] sm:$0xff]  ;;  %v1564_v39 = vld [vmem:[#allocation16 + $0xa8] sm:$0xff] }
 0x829   : > { %2445 = vmatpush1.bf16.msra.mxu0 %v4489_v46  ;;  %v1601_v46 = vld [vmem:[#allocation16 + $0x1d0] sm:$0xff] }
 0x82a   : > { %v4476_v52 = vcombine.high %v1593_v45, %v1601_v46 }
 0x8eb   : > { %v1499_v56 = vpop.f32.mrb[12].mxu0 }
 0x8ec   : > { %v1505_v58 = vadd.f32 %v1499_v56, %v616_v55  ;;  %v4987_v59 = vpop.f32.mrb[13].mxu0  ;;  %v4506_v55 = vcombine.high %v1624_v51, %v1632_v53  ;;  %v1639_v56 = vld [vmem:[#allocation16 + $0x300] sm:$0xff]  ;;  %v4461_v51 = vcombine.low %v1578_v40, %v1586_v41  ;;  %v4478_v53 = vcombine.high %v1594_v47, %v1602_v48  ;;  %v1572_v40 = vld [vmem:[#allocation16 + $0xe8] sm:$0xff] }
 0x8ed   : > { %v1502_v60 = vpop.f32.mrb[14].mxu0 }
 0x8ee   : > { %v4988_v61 = vpop.f32.mrb[15].mxu0  ;;  %v1513_v62 = vadd.f32 %v4420_v57, %v1505_v58  ;;  %2446 = vmatprep.subr.bf16.mxu0 %v4506_v55  ;;  %v1647_v57 = vld [vmem:[#allocation16 + $0x340] sm:$0xff]  ;;  %v1640_v58 = vld [vmem:[#allocation16 + $0x308] sm:$0xff]  ;;  %v1610_v55 = vld [vmem:[#allocation16 + $0x218] sm:$0xff] }
 0x8ef   : > { %2447 = vmatpush1.bf16.msra.mxu0 %v4505_v54  ;;  %v4520_v59 = vcombine.high %v1639_v56, %v1647_v57  ;;  %v1648_v60 = vld [vmem:[#allocation16 + $0x348] sm:$0xff]  ;;  %v4519_v61 = vcombine.low %v1639_v56, %v1647_v57  ;;  %v1617_v54 = vld [vmem:[#allocation16 + $0x250] sm:$0xff]  ;;  %v1618_v56 = vld [vmem:[#allocation16 + $0x258] sm:$0xff]  ;;  %v4475_v57 = vcombine.low %v1593_v45, %v1601_v46 }
 0x8f0   : > { %1514 = vadd.xlane.f32.xlu1 %v1513_v62  ;;  %v4522_v63 = vcombine.high %v1640_v58, %v1648_v60  ;;  %v4491_v3 = vcombine.low %v1609_v1, %v1617_v54  ;;  %v4493_v4 = vcombine.low %v1610_v55, %v1618_v56  ;;  %v1587_v45 = vld [vmem:[#allocation16 + $0x160] sm:$0xff]  ;;  %v1580_v46 = vld [vmem:[#allocation16 + $0x128] sm:$0xff] }
 0x8f1   : > { %2407 = vmatprep.subr.bf16.mxu1 %v4520_v59  ;;  %v4492_v59 = vcombine.high %v1609_v1, %v1617_v54  ;;  %v1603_v1 = vld [vmem:[#allocation16 + $0x1e0] sm:$0xff]  ;;  %v1596_v54 = vld [vmem:[#allocation16 + $0x1a8] sm:$0xff] }
 0x8f2   : > { %2448 = vmatprep.subr.bf16.mxu0 %v4522_v63  ;;  %2408 = vmatpush1.bf16.msra.mxu1 %v4519_v61  ;;  %v1625_v61 = vld [vmem:[#allocation16 + $0x290] sm:$0xff]  ;;  %v1626_v63 = vld [vmem:[#allocation16 + $0x298] sm:$0xff] }
 0x8f3   : > { %2409 = vmatprep.subr.bf16.mxu1 %v4536_v6  ;;  %v4510_v6 = vcombine.high %v1626_v63, %v1634_v2 }
 0x8f6   : > { %2410 = vmatpush1.bf16.msra.mxu1 %v4535_v5 }
 0x8f7   : > { %2477 = vmatprep.subr.bf16.mxu1 %v4428_v12  ;;  %v4524_v12 = vcombine.high %v1641_v7, %v1649_v8 }
 0x97d   : > { %v1515_v25 = vpop.xlane.xlu1 %1514 }
 0x97e   : > { %v1517_v26 = vmul.f32 0.0078125, %v1515_v25 }
 0x980   : > { %v6413_v27 = vsub.f32 %v1513_v62, %v1517_v26  ;;  %v4521_v62 = vcombine.low %v1640_v58, %v1648_v60  ;;  %v1561_v26 = vld [vmem:[#allocation16 + $0x90] sm:$0xff]  ;;  %v4477_v58 = vcombine.low %v1594_v47, %v1602_v48  ;;  %v4494_v60 = vcombine.high %v1610_v55, %v1618_v56  ;;  %v1588_v47 = vld [vmem:[#allocation16 + $0x168] sm:$0xff] }
 0x981   : > { %v1604_v55 = vld [vmem:[#allocation16 + $0x1e8] sm:$0xff] }
 0x982   : > { %v1519_v30 = vmul.f32 %v6413_v27, %v6413_v27  ;;  %2449 = vmatpush1.bf16.msra.mxu0 %v4521_v62  ;;  %v1633_v62 = vld [vmem:[#allocation16 + $0x2d0] sm:$0xff] }
 0x983   : > { %2450 = vmatprep.subr.bf16.mxu0 %v4538_v11  ;;  %v4508_v5 = vcombine.high %v1625_v61, %v1633_v62  ;;  %v4507_v11 = vcombine.low %v1625_v61, %v1633_v62  ;;  %v1619_v61 = vld [vmem:[#allocation16 + $0x260] sm:$0xff]  ;;  %v1612_v62 = vld [vmem:[#allocation16 + $0x228] sm:$0xff] }
 0x984   : > { %1520 = vadd.xlane.f32.xlu0 %v1519_v30  ;;  %v1569_v30 = vld [vmem:[#allocation16 + $0xd0] sm:$0xff] }
 0x985   : > { %v4444_v36 = vcombine.high %v1561_v26, %v1569_v30 }
 0x986   : > { %2451 = vmatpush1.bf16.msra.mxu0 %v4537_v10  ;;  %v1650_v10 = vld [vmem:[#allocation16 + $0x358] sm:$0xff] }
 0x987   : > { %2518 = vmatprep.subr.bf16.mxu0 %v4430_v16  ;;  %v4526_v13 = vcombine.high %v1642_v9, %v1650_v10  ;;  %v1658_v16 = vld [vmem:[#allocation16 + $0x398] sm:$0xff] }
 0xa11   : > { %v1521_v17 = vpop.xlane.xlu0 %1520 }
 0xa12   : > { %v1522_v18 = vmul.f32 0.0078125, %v1521_v17  ;;  %v1666_v17 = vld [vmem:[#allocation16 + $0x3d8] sm:$0xff] }
 0xa13   : > { %v4541_v32 = vcombine.low %v1658_v16, %v1666_v17 }
 0xa14   : > { %v1523_v19 = vadd.f32 1e-05, %v1522_v18  ;;  %v4523_v18 = vcombine.low %v1641_v7, %v1649_v8  ;;  %v1635_v7 = vld [vmem:[#allocation16 + $0x2e0] sm:$0xff]  ;;  %v1628_v8 = vld [vmem:[#allocation16 + $0x2a8] sm:$0xff] }
 0xa16   : > { %5360 = vrsqrt.f32 %v1523_v19  ;;  %v4525_v19 = vcombine.low %v1642_v9, %v1650_v10  ;;  %v1636_v9 = vld [vmem:[#allocation16 + $0x2e8] sm:$0xff] }
 0xa20   : > { %v5361_v20 = vpop.eup %5360 }
 0xa21   : > { %v1525_v22 = vmul.f32 %v5361_v20, %v6413_v27  ;;  %v4443_v27 = vcombine.low %v1561_v26, %v1569_v30  ;;  %v1556_v26 = vld [vmem:[#allocation16 + $0x68] sm:$0xff] }
 0xa23   : > { %v1533_v25 = vmul.f32 %v4421_v21, %v1525_v22  ;;  %v4542_v21 = vcombine.high %v1658_v16, %v1666_v17  ;;  %v1547_v22 = vld [vmem:[#allocation16 + $0x20] sm:$0xff]  ;;  %v1652_v16 = vld [vmem:[#allocation16 + $0x368] sm:$0xff] }
 0xa25   : > { %v6418_v34 = vadd.f32 %v4422_v23, %v1533_v25  ;;  %v1555_v23 = vld [vmem:[#allocation16 + $0x60] sm:$0xff]  ;;  %v1548_v25 = vld [vmem:[#allocation16 + $0x28] sm:$0xff] }
 0xa26   : > { %v4432_v33 = vcombine.high %v1547_v22, %v1555_v23  ;;  %v4431_v41 = vcombine.low %v1547_v22, %v1555_v23  ;;  %v1667_v22 = vld [vmem:[#allocation16 + $0x3e0] sm:$0xff]  ;;  %v1660_v23 = vld [vmem:[#allocation16 + $0x3a8] sm:$0xff] }
 0xa27   : > { %v6422_v35 = vpack.c.bf16 %v6418_v34, %v6418_v34 }
 0xa29   : > { %2428 = vmatmul.mubr.bf16.vlgmr.msra.gmra.mrb[28].mxu1 %v6422_v35  ;;  %2469 = vmatmul.mubr.bf16.vlgmr.msra.gmra.mrb[16].mxu0 %v6422_v35 }
 0xa2a   : > { %2478 = vmatpush1.bf16.msra.mxu1 %v4427_v24  ;;  %2519 = vmatpush1.bf16.msra.mxu0 %v4429_v15  ;;  %v4509_v24 = vcombine.low %v1626_v63, %v1634_v2  ;;  %v1665_v15 = vld [vmem:[#allocation16 + $0x3d0] sm:$0xff]  ;;  %v1620_v63 = vld [vmem:[#allocation16 + $0x268] sm:$0xff] }
 0xa2b   : > { %2479 = vmatprep.subr.bf16.mxu1 %v4444_v36  ;;  %2520 = vmatprep.subr.bf16.mxu0 %v4446_v37  ;;  %v4540_v20 = vcombine.high %v1657_v14, %v1665_v15  ;;  %v4539_v30 = vcombine.low %v1657_v14, %v1665_v15  ;;  %v4434_v36 = vcombine.high %v1548_v25, %v1556_v26  ;;  %v1563_v37 = vld [vmem:[#allocation16 + $0xa0] sm:$0xff]  ;;  %v1644_v15 = vld [vmem:[#allocation16 + $0x328] sm:$0xff] }
 0xa2c   : > { %2509 = vmatprep.mubr.bf16.mxu1 %v5840_v0  ;;  %2550 = vmatprep.mubr.bf16.mxu0 %v5840_v0  ;;  %v4447_v48 = vcombine.low %v1563_v37, %v1571_v38  ;;  %v1651_v14 = vld [vmem:[#allocation16 + $0x360] sm:$0xff] }
 0xa2e   : > { %2480 = vmatpush1.bf16.msra.mxu1 %v4443_v27  ;;  %2521 = vmatpush1.bf16.msra.mxu0 %v4445_v42  ;;  %v4433_v27 = vcombine.low %v1548_v25, %v1556_v26  ;;  %v4448_v42 = vcombine.high %v1563_v37, %v1571_v38  ;;  %v1668_v25 = vld [vmem:[#allocation16 + $0x3e8] sm:$0xff]  ;;  %v1557_v37 = vld [vmem:[#allocation16 + $0x70] sm:$0xff]  ;;  %v1550_v38 = vld [vmem:[#allocation16 + $0x38] sm:$0xff] }
 0xa2f   : > { %2481 = vmatprep.subr.bf16.mxu1 %v4460_v43  ;;  %2522 = vmatprep.subr.bf16.mxu0 %v4462_v44  ;;  %v4450_v43 = vcombine.high %v1564_v39, %v1572_v40  ;;  %v1579_v44 = vld [vmem:[#allocation16 + $0x120] sm:$0xff] }
 0xa30   : > { %v4463_v56 = vcombine.low %v1579_v44, %v1587_v45 }
 0xa32   : > { %2482 = vmatpush1.bf16.msra.mxu1 %v4459_v50  ;;  %2523 = vmatpush1.bf16.msra.mxu0 %v4461_v51  ;;  %v4449_v50 = vcombine.low %v1564_v39, %v1572_v40  ;;  %v4464_v51 = vcombine.high %v1579_v44, %v1587_v45  ;;  %v1558_v39 = vld [vmem:[#allocation16 + $0x78] sm:$0xff]  ;;  %v1573_v44 = vld [vmem:[#allocation16 + $0xf0] sm:$0xff] }
 0xa33   : > { %2483 = vmatprep.subr.bf16.mxu1 %v4476_v52  ;;  %2524 = vmatprep.subr.bf16.mxu0 %v4478_v53  ;;  %v4466_v52 = vcombine.high %v1580_v46, %v1588_v47  ;;  %v1595_v53 = vld [vmem:[#allocation16 + $0x1a0] sm:$0xff]  ;;  %v1566_v45 = vld [vmem:[#allocation16 + $0xb8] sm:$0xff] }
 0xa34   : > { %v4479_v2 = vcombine.low %v1595_v53, %v1603_v1 }
 0xa36   : > { %2484 = vmatpush1.bf16.msra.mxu1 %v4475_v57  ;;  %2525 = vmatpush1.bf16.msra.mxu0 %v4477_v58  ;;  %v4465_v57 = vcombine.low %v1580_v46, %v1588_v47  ;;  %v4480_v58 = vcombine.high %v1595_v53, %v1603_v1  ;;  %v1574_v46 = vld [vmem:[#allocation16 + $0xf8] sm:$0xff]  ;;  %v1589_v53 = vld [vmem:[#allocation16 + $0x170] sm:$0xff] }
 0xa37   : > { %2485 = vmatprep.subr.bf16.mxu1 %v4492_v59  ;;  %2526 = vmatprep.subr.bf16.mxu0 %v4494_v60  ;;  %v4482_v59 = vcombine.high %v1596_v54, %v1604_v55  ;;  %v1611_v60 = vld [vmem:[#allocation16 + $0x220] sm:$0xff]  ;;  %v1582_v1 = vld [vmem:[#allocation16 + $0x138] sm:$0xff] }
 0xa38   : > { %v4495_v10 = vcombine.low %v1611_v60, %v1619_v61 }
 0xa3a   : > { %2486 = vmatpush1.bf16.msra.mxu1 %v4491_v3  ;;  %2527 = vmatpush1.bf16.msra.mxu0 %v4493_v4  ;;  %v4481_v3 = vcombine.low %v1596_v54, %v1604_v55  ;;  %v4496_v4 = vcombine.high %v1611_v60, %v1619_v61  ;;  %v1590_v54 = vld [vmem:[#allocation16 + $0x178] sm:$0xff]  ;;  %v1605_v60 = vld [vmem:[#allocation16 + $0x1f0] sm:$0xff] }
 0xa3b   : > { %2487 = vmatprep.subr.bf16.mxu1 %v4508_v5  ;;  %2528 = vmatprep.subr.bf16.mxu0 %v4510_v6  ;;  %v4498_v5 = vcombine.high %v1612_v62, %v1620_v63  ;;  %v1627_v6 = vld [vmem:[#allocation16 + $0x2a0] sm:$0xff]  ;;  %v1598_v61 = vld [vmem:[#allocation16 + $0x1b8] sm:$0xff] }
 0xa3c   : > { %v4511_v17 = vcombine.low %v1627_v6, %v1635_v7 }
 0xa3e   : > { %2488 = vmatpush1.bf16.msra.mxu1 %v4507_v11  ;;  %2529 = vmatpush1.bf16.msra.mxu0 %v4509_v24  ;;  %v4497_v11 = vcombine.low %v1612_v62, %v1620_v63  ;;  %v4512_v24 = vcombine.high %v1627_v6, %v1635_v7  ;;  %v1606_v62 = vld [vmem:[#allocation16 + $0x1f8] sm:$0xff]  ;;  %v1621_v6 = vld [vmem:[#allocation16 + $0x270] sm:$0xff] }
 0xa3f   : > { %2489 = vmatprep.subr.bf16.mxu1 %v4524_v12  ;;  %2530 = vmatprep.subr.bf16.mxu0 %v4526_v13  ;;  %v4514_v12 = vcombine.high %v1628_v8, %v1636_v9  ;;  %v1643_v13 = vld [vmem:[#allocation16 + $0x320] sm:$0xff]  ;;  %v1614_v7 = vld [vmem:[#allocation16 + $0x238] sm:$0xff] }
 0xa40   : > { %v4527_v26 = vcombine.low %v1643_v13, %v1651_v14 }
 0xa42   : > { %2490 = vmatpush1.bf16.msra.mxu1 %v4523_v18  ;;  %2531 = vmatpush1.bf16.msra.mxu0 %v4525_v19  ;;  %v4513_v18 = vcombine.low %v1628_v8, %v1636_v9  ;;  %v4528_v19 = vcombine.high %v1643_v13, %v1651_v14  ;;  %v1622_v8 = vld [vmem:[#allocation16 + $0x278] sm:$0xff] }
 0xa43   : > { %2491 = vmatprep.subr.bf16.mxu1 %v4540_v20  ;;  %2532 = vmatprep.subr.bf16.mxu0 %v4542_v21  ;;  %v4530_v20 = vcombine.high %v1644_v15, %v1652_v16  ;;  %v1659_v21 = vld [vmem:[#allocation16 + $0x3a0] sm:$0xff]  ;;  %v1630_v13 = vld [vmem:[#allocation16 + $0x2b8] sm:$0xff] }
 0xa44   : > { %v4543_v40 = vcombine.low %v1659_v21, %v1667_v22  ;;  %v1638_v14 = vld [vmem:[#allocation16 + $0x2f8] sm:$0xff] }
 0xa46   : > { %2492 = vmatpush1.bf16.msra.mxu1 %v4539_v30  ;;  %2533 = vmatpush1.bf16.msra.mxu0 %v4541_v32  ;;  %v4529_v30 = vcombine.low %v1644_v15, %v1652_v16  ;;  %v4544_v32 = vcombine.high %v1659_v21, %v1667_v22  ;;  %v4501_v16 = vcombine.low %v1614_v7, %v1622_v8  ;;  %v1646_v21 = vld [vmem:[#allocation16 + $0x338] sm:$0xff] }
 0xa47   : > { %2559 = vmatprep.subr.bf16.mxu1 %v4432_v33  ;;  %2600 = vmatprep.subr.bf16.mxu0 %v4434_v36  ;;  %v4546_v33 = vcombine.high %v1660_v23, %v1668_v25  ;;  %v1549_v36 = vld [vmem:[#allocation16 + $0x30] sm:$0xff]  ;;  %v1654_v22 = vld [vmem:[#allocation16 + $0x378] sm:$0xff] }
 0xa48   : > { %v4435_v47 = vcombine.low %v1549_v36, %v1557_v37 }
 0xa49   : > { %2510 = vmatmul.mubr.bf16.vlgmr.msra.gmra.mrb[32].mxu1 %v6422_v35  ;;  %2551 = vmatmul.mubr.bf16.vlgmr.msra.gmra.mrb[20].mxu0 %v6422_v35 }
 0xa4a   : > { %2560 = vmatpush1.bf16.msra.mxu1 %v4431_v41  ;;  %2601 = vmatpush1.bf16.msra.mxu0 %v4433_v27  ;;  %v4545_v41 = vcombine.low %v1660_v23, %v1668_v25  ;;  %v4436_v27 = vcombine.high %v1549_v36, %v1557_v37  ;;  %v4517_v25 = vcombine.low %v1630_v13, %v1638_v14  ;;  %v1662_v36 = vld [vmem:[#allocation16 + $0x3b8] sm:$0xff] }
 0xa4b   : > { %2561 = vmatprep.subr.bf16.mxu1 %v4448_v42  ;;  %2602 = vmatprep.subr.bf16.mxu0 %v4450_v43  ;;  %v4438_v42 = vcombine.high %v1550_v38, %v1558_v39  ;;  %v1565_v43 = vld [vmem:[#allocation16 + $0xb0] sm:$0xff]  ;;  %v1670_v37 = vld [vmem:[#allocation16 + $0x3f8] sm:$0xff] }
 0xa4c   : > { %2591 = vmatprep.mubr.bf16.mxu1 %v5840_v0  ;;  %2632 = vmatprep.mubr.bf16.mxu0 %v5840_v0  ;;  %v4451_v55 = vcombine.low %v1565_v43, %v1573_v44 }
 0xa4e   : > { %2562 = vmatpush1.bf16.msra.mxu1 %v4447_v48  ;;  %2603 = vmatpush1.bf16.msra.mxu0 %v4449_v50  ;;  %v4437_v48 = vcombine.low %v1550_v38, %v1558_v39  ;;  %v4452_v50 = vcombine.high %v1565_v43, %v1573_v44  ;;  %v4533_v39 = vcombine.low %v1646_v21, %v1654_v22  ;;  %v5216_v43 = vld [vmem:[#allocation19 + $0x40] sm:$0xff]  }
 0xa4f   : > { %2563 = vmatprep.subr.bf16.mxu1 %v4464_v51  ;;  %2604 = vmatprep.subr.bf16.mxu0 %v4466_v52  ;;  %v4454_v51 = vcombine.high %v1566_v45, %v1574_v46  ;;  %v1581_v52 = vld [vmem:[#allocation16 + $0x130] sm:$0xff] }
 0xa50   : > { %v4467_v63 = vcombine.low %v1581_v52, %v1589_v53  ;;  %v5217_v44 = vld [vmem:[#allocation19 + $0xc0] sm:$0xff]  }
 0xa52   : > { %2564 = vmatpush1.bf16.msra.mxu1 %v4463_v56  ;;  %2605 = vmatpush1.bf16.msra.mxu0 %v4465_v57  ;;  %v4453_v56 = vcombine.low %v1566_v45, %v1574_v46  ;;  %v4468_v57 = vcombine.high %v1581_v52, %v1589_v53  ;;  %v5218_v45 = vld [vmem:[#allocation19] sm:$0xff]   ;;  %v5224_v52 = vld [vmem:[#allocation19 + $0x50] sm:$0xff]  }
 0xa53   : > { %2565 = vmatprep.subr.bf16.mxu1 %v4480_v58  ;;  %2606 = vmatprep.subr.bf16.mxu0 %v4482_v59  ;;  %v4470_v58 = vcombine.high %v1582_v1, %v1590_v54  ;;  %v1597_v59 = vld [vmem:[#allocation16 + $0x1b0] sm:$0xff]  ;;  %v5225_v53 = vld [vmem:[#allocation19 + $0xd0] sm:$0xff]  }
 0xa54   : > { %v4483_v9 = vcombine.low %v1597_v59, %v1605_v60  ;;  %v5219_v46 = vld [vmem:[#allocation19 + $0x80] sm:$0xff]  }
 0xa56   : > { %2566 = vmatpush1.bf16.msra.mxu1 %v4479_v2  ;;  %2607 = vmatpush1.bf16.msra.mxu0 %v4481_v3  ;;  %v4469_v2 = vcombine.low %v1582_v1, %v1590_v54  ;;  %v4484_v3 = vcombine.high %v1597_v59, %v1605_v60  ;;  %v5226_v1 = vld [vmem:[#allocation19 + $0x10] sm:$0xff]   ;;  %v5233_v59 = vld [vmem:[#allocation19 + $0xe0] sm:$0xff]  }
 0xa57   : > { %2567 = vmatprep.subr.bf16.mxu1 %v4496_v4  ;;  %2608 = vmatprep.subr.bf16.mxu0 %v4498_v5  ;;  %v4486_v4 = vcombine.high %v1598_v61, %v1606_v62  ;;  %v1613_v5 = vld [vmem:[#allocation16 + $0x230] sm:$0xff]  ;;  %v5227_v54 = vld [vmem:[#allocation19 + $0x90] sm:$0xff]  }
 0xa58   : > { %v4499_v15 = vcombine.low %v1613_v5, %v1621_v6  ;;  %v5234_v60 = vld [vmem:[#allocation19 + $0x20] sm:$0xff]  }
 0xa5a   : > { %2568 = vmatpush1.bf16.msra.mxu1 %v4495_v10  ;;  %2609 = vmatpush1.bf16.msra.mxu0 %v4497_v11  ;;  %v4485_v10 = vcombine.low %v1598_v61, %v1606_v62  ;;  %v4500_v11 = vcombine.high %v1613_v5, %v1621_v6  ;;  %v5235_v61 = vld [vmem:[#allocation19 + $0xa0] sm:$0xff]   ;;  %v5236_v62 = vld [vmem:[#allocation19 + $0x68] sm:$0xff]   ;;  %v5241_v5 = vld [vmem:[#allocation19 + $0xf0] sm:$0xff]  }
 0xa5b   : > { %2569 = vmatprep.subr.bf16.mxu1 %v4512_v24  ;;  %2610 = vmatprep.subr.bf16.mxu0 %v4514_v12  ;;  %v1629_v24 = vld [vmem:[#allocation16 + $0x2b0] sm:$0xff]  ;;  %v5242_v6 = vld [vmem:[#allocation19 + $0x30] sm:$0xff]  }
 0xa5c   : > { %v1637_v12 = vld [vmem:[#allocation16 + $0x2f0] sm:$0xff] }
 0xa5d   : > { %v4515_v23 = vcombine.low %v1629_v24, %v1637_v12 }
 0xa5e   : > { %2570 = vmatpush1.bf16.msra.mxu1 %v4511_v17  ;;  %2611 = vmatpush1.bf16.msra.mxu0 %v4513_v18  ;;  %v4516_v17 = vcombine.high %v1629_v24, %v1637_v12  ;;  %v4518_v18 = vcombine.high %v1630_v13, %v1638_v14  ;;  %v5249_v24 = vld [vmem:[#allocation19 + $0x1c0] sm:$0xff]   ;;  %v6438_v12 = vld [vmem:[#allocation18] sm:$0xff]  ;;  %v1689_v13 = vsub.s32 3, %v6332_v28 }
 0xa5f   : > { %2571 = vmatprep.subr.bf16.mxu1 %v4528_v19  ;;  %2612 = vmatprep.subr.bf16.mxu0 %v4530_v20  ;;  %v1645_v19 = vld [vmem:[#allocation16 + $0x330] sm:$0xff]  ;;  %v1678_v14 = vrot.slane %v6438_v12, %v6335_v29 }
 0xa60   : > { %v1653_v20 = vld [vmem:[#allocation16 + $0x370] sm:$0xff] }
 0xa61   : > { %v4531_v38 = vcombine.low %v1645_v19, %v1653_v20 }
 0xa62   : > { %2572 = vmatpush1.bf16.msra.mxu1 %v4527_v26  ;;  %2613 = vmatpush1.bf16.msra.mxu0 %v4529_v30  ;;  %v4532_v26 = vcombine.high %v1645_v19, %v1653_v20  ;;  %v4534_v30 = vcombine.high %v1646_v21, %v1654_v22 }
 0xa63   : > { %2573 = vmatprep.subr.bf16.mxu1 %v4544_v32  ;;  %2614 = vmatprep.subr.bf16.mxu0 %v4546_v33  ;;  %v1661_v32 = vld [vmem:[#allocation16 + $0x3b0] sm:$0xff] }
 0xa64   : > { %v1669_v33 = vld [vmem:[#allocation16 + $0x3f0] sm:$0xff] }
 0xa66   : > { %2574 = vmatpush1.bf16.msra.mxu1 %v4543_v40  ;;  %2615 = vmatpush1.bf16.msra.mxu0 %v4545_v41  ;;  %v4548_v40 = vcombine.high %v1661_v32, %v1669_v33  ;;  %v4550_v41 = vcombine.high %v1662_v36, %v1670_v37 }
 0xa67   : > { %2641 = vmatprep.subr.bf16.mxu1 %v4436_v27  ;;  %2682 = vmatprep.subr.bf16.mxu0 %v4438_v42  ;;  %v4547_v27 = vcombine.low %v1661_v32, %v1669_v33  ;;  %v4549_v42 = vcombine.low %v1662_v36, %v1670_v37 }
 0xa69   : > { %2592 = vmatmul.mubr.bf16.vlgmr.msra.gmra.mrb[36].mxu1 %v6422_v35  ;;  %2633 = vmatmul.mubr.bf16.vlgmr.msra.gmra.mrb[24].mxu0 %v6422_v35 }
 0xa6a   : > { %2642 = vmatpush1.bf16.msra.mxu1 %v4435_v47  ;;  %2683 = vmatpush1.bf16.msra.mxu0 %v4437_v48  ;;  %v5220_v47 = vld [vmem:[#allocation19 + $0x48] sm:$0xff]  }
 0xa6b   : > { %2643 = vmatprep.subr.bf16.mxu1 %v4452_v50  ;;  %2684 = vmatprep.subr.bf16.mxu0 %v4454_v51  ;;  %v5221_v48 = vld [vmem:[#allocation19 + $0xc8] sm:$0xff]  }
 0xa6c   : > { %2673 = vmatprep.mubr.bf16.mxu1 %v5840_v0  ;;  %2714 = vmatprep.mubr.bf16.mxu0 %v5840_v0  ;;  %v4502_v0 = vcombine.high %v1614_v7, %v1622_v8  ;;  %v5222_v50 = vld [vmem:[#allocation19 + $0x8] sm:$0xff]   ;;  %v5243_v7 = vld [vmem:[#allocation19 + $0xb0] sm:$0xff]   ;;  %v5244_v8 = vld [vmem:[#allocation19 + $0x78] sm:$0xff]  }
 0xa6d   : > { %v5223_v51 = vld [vmem:[#allocation19 + $0x88] sm:$0xff]  }
 0xa6e   : > { %2644 = vmatpush1.bf16.msra.mxu1 %v4451_v55  ;;  %2685 = vmatpush1.bf16.msra.mxu0 %v4453_v56  ;;  %v5228_v55 = vld [vmem:[#allocation19 + $0x58] sm:$0xff]  }
 0xa6f   : > { %2645 = vmatprep.subr.bf16.mxu1 %v4468_v57  ;;  %2686 = vmatprep.subr.bf16.mxu0 %v4470_v58  ;;  %v5229_v56 = vld [vmem:[#allocation19 + $0xd8] sm:$0xff]   ;;  %v5232_v58 = vld [vmem:[#allocation19 + $0x60] sm:$0xff]  }
 0xa70   : > { %v5230_v57 = vld [vmem:[#allocation19 + $0x18] sm:$0xff]  }
 0xa72   : > { %2646 = vmatpush1.bf16.msra.mxu1 %v4467_v63  ;;  %2687 = vmatpush1.bf16.msra.mxu0 %v4469_v2  ;;  %v5237_v63 = vld [vmem:[#allocation19 + $0xe8] sm:$0xff]  }
 0xa73   : > { %2647 = vmatprep.subr.bf16.mxu1 %v4484_v3  ;;  %2688 = vmatprep.subr.bf16.mxu0 %v4486_v4  ;;  %v5238_v2 = vld [vmem:[#allocation19 + $0x28] sm:$0xff]   ;;  %v5240_v4 = vld [vmem:[#allocation19 + $0x70] sm:$0xff]  }
 0xa74   : > { %v5239_v3 = vld [vmem:[#allocation19 + $0xa8] sm:$0xff]  }
 0xa76   : > { %2648 = vmatpush1.bf16.msra.mxu1 %v4483_v9  ;;  %2689 = vmatpush1.bf16.msra.mxu0 %v4485_v10  ;;  %v5245_v9 = vld [vmem:[#allocation19 + $0xf8] sm:$0xff]  }
 0xa77   : > { %2649 = vmatprep.subr.bf16.mxu1 %v4500_v11  ;;  %2690 = vmatprep.subr.bf16.mxu0 %v4502_v0  ;;  %v5246_v10 = vld [vmem:[#allocation19 + $0x38] sm:$0xff]   ;;  %v5248_v0 = vld [vmem:[#allocation19 + $0x140] sm:$0xff]  }
 0xa78   : > { %v5247_v11 = vld [vmem:[#allocation19 + $0xb8] sm:$0xff]  }
 0xa7a   : > { %2650 = vmatpush1.bf16.msra.mxu1 %v4499_v15  ;;  %2691 = vmatpush1.bf16.msra.mxu0 %v4501_v16  ;;  %v1686_v15 = vrot.slane %v6438_v12, %v6353_v49  ;;  %v1682_v16 = vrot.slane %v6438_v12, %v6338_v31 }
 0xa7b   : > { %2651 = vmatprep.subr.bf16.mxu1 %v4516_v17  ;;  %2692 = vmatprep.subr.bf16.mxu0 %v4518_v18  ;;  %v1690_v17 = vrot.slane %v6438_v12, %v1689_v13 }
 0xa7e   : > { %2652 = vmatpush1.bf16.msra.mxu1 %v4515_v23  ;;  %2693 = vmatpush1.bf16.msra.mxu0 %v4517_v25 }
 0xa7f   : > { %2653 = vmatprep.subr.bf16.mxu1 %v4532_v26  ;;  %2694 = vmatprep.subr.bf16.mxu0 %v4534_v30 }
 0xa82   : > { %2654 = vmatpush1.bf16.msra.mxu1 %v4531_v38  ;;  %2695 = vmatpush1.bf16.msra.mxu0 %v4533_v39 }
 0xa83   : > { %2655 = vmatprep.subr.bf16.mxu1 %v4548_v40  ;;  %2696 = vmatprep.subr.bf16.mxu0 %v4550_v41 }
 0xa86   : > { %2656 = vmatpush1.bf16.msra.mxu1 %v4547_v27  ;;  %2697 = vmatpush1.bf16.msra.mxu0 %v4549_v42  ;;  %v5250_v42 = vld [vmem:[#allocation19 + $0x100] sm:$0xff]  }
 0xa87   : > { %4725 = vmatprep.subr.bf16.mxu1 %v5216_v43  ;;  %4747 = vmatprep.subr.bf16.mxu0 %v5217_v44  ;;  %v5251_v43 = vld [vmem:[#allocation19 + $0x180] sm:$0xff]  }
 0xa89   : > { %2674 = vmatmul.mubr.bf16.vlgmr.msra.gmra.mrb[40].mxu1 %v6422_v35  ;;  %2715 = vmatmul.mubr.bf16.vlgmr.msra.gmra.mrb[28].mxu0 %v6422_v35  ;;  %v5231_v35 = vld [vmem:[#allocation19 + $0x98] sm:$0xff]  }
 0xa8a   : > { %4726 = vmatpush3.bf16.msra.mxu1 %v5218_v45  ;;  %4748 = vmatpush3.bf16.msra.mxu0 %v5219_v46  ;;  %v5252_v46 = vld [vmem:[#allocation19 + $0x148] sm:$0xff]  }
 0xa8b   : > { %4727 = vmatprep.subr.bf16.mxu1 %v5220_v47  ;;  %4749 = vmatprep.subr.bf16.mxu0 %v5221_v48  ;;  %v5253_v47 = vld [vmem:[#allocation19 + $0x1c8] sm:$0xff]  }
 0xa8c   : > { %v5254_v48 = vld [vmem:[#allocation19 + $0x108] sm:$0xff]  }
 0xa8e   : > { %4728 = vmatpush3.bf16.msra.mxu1 %v5222_v50  ;;  %4750 = vmatpush3.bf16.msra.mxu0 %v5223_v51  ;;  %v5255_v50 = vld [vmem:[#allocation19 + $0x188] sm:$0xff]   ;;  %v5256_v51 = vld [vmem:[#allocation19 + $0x150] sm:$0xff]  }
 0xa8f   : > { %4729 = vmatprep.subr.bf16.mxu1 %v5224_v52  ;;  %4751 = vmatprep.subr.bf16.mxu0 %v5225_v53  ;;  %v5257_v52 = vld [vmem:[#allocation19 + $0x1d0] sm:$0xff]  }
 0xa90   : > { %v5258_v53 = vld [vmem:[#allocation19 + $0x110] sm:$0xff]  }
 0xa92   : > { %4730 = vmatpush3.bf16.msra.mxu1 %v5226_v1  ;;  %4752 = vmatpush3.bf16.msra.mxu0 %v5227_v54  ;;  %v5259_v1 = vld [vmem:[#allocation19 + $0x190] sm:$0xff]   ;;  %v5260_v54 = vld [vmem:[#allocation19 + $0x158] sm:$0xff]  }
 0xa93   : > { %4731 = vmatprep.subr.bf16.mxu1 %v5228_v55  ;;  %4753 = vmatprep.subr.bf16.mxu0 %v5229_v56  ;;  %v5261_v55 = vld [vmem:[#allocation19 + $0x1d8] sm:$0xff]  }
 0xa94   : > { %v5262_v56 = vld [vmem:[#allocation19 + $0x118] sm:$0xff]  }
 0xa96   : > { %4732 = vmatpush3.bf16.msra.mxu1 %v5230_v57  ;;  %4754 = vmatpush3.bf16.msra.mxu0 %v5231_v35  ;;  %v5263_v57 = vld [vmem:[#allocation19 + $0x198] sm:$0xff]   ;;  %v5264_v35 = vld [vmem:[#allocation19 + $0x160] sm:$0xff]  }
 0xa97   : > { %4733 = vmatprep.subr.bf16.mxu1 %v5232_v58  ;;  %4755 = vmatprep.subr.bf16.mxu0 %v5233_v59  ;;  %v5265_v58 = vld [vmem:[#allocation19 + $0x1e0] sm:$0xff]  }
 0xa98   : > { %v5266_v59 = vld [vmem:[#allocation19 + $0x120] sm:$0xff]  }
 0xa9a   : > { %4734 = vmatpush3.bf16.msra.mxu1 %v5234_v60  ;;  %4756 = vmatpush3.bf16.msra.mxu0 %v5235_v61  ;;  %v5267_v60 = vld [vmem:[#allocation19 + $0x1a0] sm:$0xff]   ;;  %v5268_v61 = vld [vmem:[#allocation19 + $0x168] sm:$0xff]  }
 0xa9b   : > { %4735 = vmatprep.subr.bf16.mxu1 %v5236_v62  ;;  %4757 = vmatprep.subr.bf16.mxu0 %v5237_v63  ;;  %v5269_v62 = vld [vmem:[#allocation19 + $0x1e8] sm:$0xff]   ;;  %v1693_v63 = vsub.s32 4, %v6332_v28 }
 0xa9e   : > { %4736 = vmatpush3.bf16.msra.mxu1 %v5238_v2  ;;  %4758 = vmatpush3.bf16.msra.mxu0 %v5239_v3  ;;  %v1701_v2 = vsub.s32 6, %v6332_v28  ;;  %v5270_v3 = vld [vmem:[#allocation19 + $0x128] sm:$0xff]  }
 0xa9f   : > { %4737 = vmatprep.subr.bf16.mxu1 %v5240_v4  ;;  %4759 = vmatprep.subr.bf16.mxu0 %v5241_v5  ;;  %v5271_v4 = vld [vmem:[#allocation19 + $0x1a8] sm:$0xff]   ;;  %v1697_v5 = vsub.s32 5, %v6332_v28 }
 0xaa2   : > { %4738 = vmatpush3.bf16.msra.mxu1 %v5242_v6  ;;  %4760 = vmatpush3.bf16.msra.mxu0 %v5243_v7  ;;  %v1705_v6 = vsub.s32 7, %v6332_v28  ;;  %v5272_v7 = vld [vmem:[#allocation19 + $0x170] sm:$0xff]   ;;  %v5342_v28 = vld [vmem:[#allocation19 + $0x338] sm:$0xff]  }
 0xaa3   : > { %4739 = vmatprep.subr.bf16.mxu1 %v5244_v8  ;;  %4761 = vmatprep.subr.bf16.mxu0 %v5245_v9  ;;  %v5273_v8 = vld [vmem:[#allocation19 + $0x1f0] sm:$0xff]   ;;  %v1694_v9 = vrot.slane %v6438_v12, %v1693_v63 }
 0xaa6   : > { %4740 = vmatpush3.bf16.msra.mxu1 %v5246_v10  ;;  %4762 = vmatpush3.bf16.msra.mxu0 %v5247_v11  ;;  %v1702_v10 = vrot.slane %v6438_v12, %v1701_v2  ;;  %v1698_v11 = vrot.slane %v6438_v12, %v1697_v5 }
 0xaa7   : > { %4769 = vmatprep.subr.bf16.mxu1 %v5248_v0  ;;  %4791 = vmatprep.subr.bf16.mxu0 %v5249_v24  ;;  %v1706_v0 = vrot.slane %v6438_v12, %v1705_v6  ;;  %v5274_v24 = vld [vmem:[#allocation19 + $0x130] sm:$0xff]   ;;  %v5279_v12 = vld [vmem:[#allocation19 + $0x1b8] sm:$0xff]  }
 0xafc   : > { %v2429_v18 = vpop.f32.mrb[28].mxu1  ;;  %v2470_v19 = vpop.f32.mrb[16].mxu0 }
 0xafd   : > { %v2430_v20 = vadd.f32 %v2429_v18, %v1678_v14  ;;  %v2471_v21 = vadd.f32 %v2470_v19, %v1686_v15  ;;  %v2431_v22 = vpop.f32.mrb[29].mxu1  ;;  %v2472_v23 = vpop.f32.mrb[17].mxu0  ;;  %v5275_v14 = vld [vmem:[#allocation19 + $0x1b0] sm:$0xff]   ;;  %v5276_v15 = vld [vmem:[#allocation19 + $0x178] sm:$0xff]  }
 0xafe   : > { %v2432_v25 = vadd.f32 %v2431_v22, %v1682_v16  ;;  %v2473_v26 = vadd.f32 %v2472_v23, %v1690_v17  ;;  %v2433_v30 = vpop.f32.mrb[30].mxu1  ;;  %v2474_v32 = vpop.f32.mrb[18].mxu0  ;;  %v5277_v16 = vld [vmem:[#allocation19 + $0x1f8] sm:$0xff]  }
 0xaff   : > { %v2723_v33 = vmax.f32 %v2430_v20, 0.0  ;;  %v2725_v36 = vmax.f32 %v2471_v21, 0.0  ;;  %v2434_v37 = vpop.f32.mrb[31].mxu1  ;;  %v2475_v38 = vpop.f32.mrb[19].mxu0  ;;  %v5278_v32 = vld [vmem:[#allocation19 + $0x138] sm:$0xff]  }
 0xb00   : > { %v2724_v39 = vmax.f32 %v2432_v25, 0.0  ;;  %v2726_v40 = vmax.f32 %v2473_v26, 0.0 }
 0xb01   : > { %v2739_v44 = vpack.c.bf16 %v2723_v33, %v2723_v33  ;;  %v2741_v45 = vpack.c.bf16 %v2725_v36, %v2725_v36 }
 0xb02   : > { %v2740_v41 = vpack.c.bf16 %v2724_v39, %v2724_v39  ;;  %v2742_v27 = vpack.c.bf16 %v2726_v40, %v2726_v40  ;;  %v5280_v39 = vld [vmem:[#allocation19 + $0x240] sm:$0xff]  }
 0xb03   : > { %v5281_v40 = vld [vmem:[#allocation19 + $0x2c0] sm:$0xff]  }
 0xb04   : > { %3818 = vmatprep.mubr.bf16.mxu1 %v2740_v41  ;;  %3858 = vmatprep.mubr.bf16.mxu0 %v2742_v27 }
 0xb05   : > { %3819 = vmatmul.mubr.bf16.vlgmr.msra.gmra.mrb[44].mxu1 %v2739_v44  ;;  %3859 = vmatmul.mubr.bf16.vlgmr.msra.gmra.mrb[32].mxu0 %v2741_v45  ;;  %v5282_v44 = vld [vmem:[#allocation19 + $0x200] sm:$0xff]  }
 0xb06   : > { %4770 = vmatpush3.bf16.msra.mxu1 %v5250_v42  ;;  %4792 = vmatpush3.bf16.msra.mxu0 %v5251_v43  ;;  %v5283_v45 = vld [vmem:[#allocation19 + $0x280] sm:$0xff]  }
 0xb07   : > { %4771 = vmatprep.subr.bf16.mxu1 %v5252_v46  ;;  %4793 = vmatprep.subr.bf16.mxu0 %v5253_v47 }
 0xb0a   : > { %4772 = vmatpush3.bf16.msra.mxu1 %v5254_v48  ;;  %4794 = vmatpush3.bf16.msra.mxu0 %v5255_v50  ;;  %v5284_v48 = vld [vmem:[#allocation19 + $0x248] sm:$0xff]  }
 0xb0b   : > { %4773 = vmatprep.subr.bf16.mxu1 %v5256_v51  ;;  %4795 = vmatprep.subr.bf16.mxu0 %v5257_v52  ;;  %v5285_v50 = vld [vmem:[#allocation19 + $0x2c8] sm:$0xff]  }
 0xb0c   : > { %v5286_v51 = vld [vmem:[#allocation19 + $0x208] sm:$0xff]  }
 0xb0d   : > { %v5287_v52 = vld [vmem:[#allocation19 + $0x288] sm:$0xff]  }
 0xb0e   : > { %4774 = vmatpush3.bf16.msra.mxu1 %v5258_v53  ;;  %4796 = vmatpush3.bf16.msra.mxu0 %v5259_v1  ;;  %v5288_v53 = vld [vmem:[#allocation19 + $0x250] sm:$0xff]  }
 0xb0f   : > { %4775 = vmatprep.subr.bf16.mxu1 %v5260_v54  ;;  %4797 = vmatprep.subr.bf16.mxu0 %v5261_v55  ;;  %v5289_v1 = vld [vmem:[#allocation19 + $0x2d0] sm:$0xff]  }
 0xb10   : > { %v5290_v54 = vld [vmem:[#allocation19 + $0x210] sm:$0xff]  }
 0xb11   : > { %v5291_v55 = vld [vmem:[#allocation19 + $0x290] sm:$0xff]  }
 0xb12   : > { %4776 = vmatpush3.bf16.msra.mxu1 %v5262_v56  ;;  %4798 = vmatpush3.bf16.msra.mxu0 %v5263_v57  ;;  %v5292_v56 = vld [vmem:[#allocation19 + $0x258] sm:$0xff]  }
 0xb13   : > { %4777 = vmatprep.subr.bf16.mxu1 %v5264_v35  ;;  %4799 = vmatprep.subr.bf16.mxu0 %v5265_v58  ;;  %v5293_v57 = vld [vmem:[#allocation19 + $0x2d8] sm:$0xff]  }
 0xb14   : > { %v5294_v35 = vld [vmem:[#allocation19 + $0x218] sm:$0xff]  }
 0xb15   : > { %v5295_v58 = vld [vmem:[#allocation19 + $0x298] sm:$0xff]  }
 0xb16   : > { %4778 = vmatpush3.bf16.msra.mxu1 %v5266_v59  ;;  %4800 = vmatpush3.bf16.msra.mxu0 %v5267_v60  ;;  %v5296_v59 = vld [vmem:[#allocation19 + $0x260] sm:$0xff]  }
 0xb17   : > { %4779 = vmatprep.subr.bf16.mxu1 %v5268_v61  ;;  %4801 = vmatprep.subr.bf16.mxu0 %v5269_v62  ;;  %v5297_v60 = vld [vmem:[#allocation19 + $0x2e0] sm:$0xff]  }
 0xb18   : > { %v5298_v61 = vld [vmem:[#allocation19 + $0x220] sm:$0xff]  }
 0xb19   : > { %v5299_v62 = vld [vmem:[#allocation19 + $0x2a0] sm:$0xff]  }
 0xb1a   : > { %4780 = vmatpush3.bf16.msra.mxu1 %v5270_v3  ;;  %4802 = vmatpush3.bf16.msra.mxu0 %v5271_v4  ;;  %v5300_v3 = vld [vmem:[#allocation19 + $0x268] sm:$0xff]  }
 0xb1b   : > { %4781 = vmatprep.subr.bf16.mxu1 %v5272_v7  ;;  %4803 = vmatprep.subr.bf16.mxu0 %v5273_v8  ;;  %v5301_v4 = vld [vmem:[#allocation19 + $0x2e8] sm:$0xff]  }
 0xb1c   : > { %v2511_v17 = vpop.f32.mrb[32].mxu1  ;;  %v2552_v18 = vpop.f32.mrb[20].mxu0  ;;  %v5302_v7 = vld [vmem:[#allocation19 + $0x228] sm:$0xff]  }
 0xb1d   : > { %v2512_v19 = vadd.f32 %v2511_v17, %v1694_v9  ;;  %v2553_v20 = vadd.f32 %v2552_v18, %v1702_v10  ;;  %v2513_v21 = vpop.f32.mrb[33].mxu1  ;;  %v2554_v22 = vpop.f32.mrb[21].mxu0  ;;  %v5303_v8 = vld [vmem:[#allocation19 + $0x2a8] sm:$0xff]   ;;  %v6466_v9 = vld [vmem:[#allocation18 + $0x8] sm:$0xff]  ;;  %v5304_v10 = vld [vmem:[#allocation19 + $0x270] sm:$0xff]  }
 0xb1e   : > { %v2514_v23 = vadd.f32 %v2513_v21, %v1698_v11  ;;  %v2555_v25 = vadd.f32 %v2554_v22, %v1706_v0  ;;  %v2515_v26 = vpop.f32.mrb[34].mxu1  ;;  %v2556_v30 = vpop.f32.mrb[22].mxu0  ;;  %4782 = vmatpush3.bf16.msra.mxu1 %v5274_v24  ;;  %4804 = vmatpush3.bf16.msra.mxu0 %v5275_v14  ;;  %v5305_v11 = vld [vmem:[#allocation19 + $0x2f0] sm:$0xff]   ;;  %v1710_v0 = vrot.slane %v6466_v9, %v6335_v29  ;;  %v5308_v18 = vld [vmem:[#allocation19 + $0x278] sm:$0xff]  }
 0xb1f   : > { %v2727_v33 = vmax.f32 %v2512_v19, 0.0  ;;  %v2729_v36 = vmax.f32 %v2553_v20, 0.0  ;;  %v2516_v37 = vpop.f32.mrb[35].mxu1  ;;  %v2557_v38 = vpop.f32.mrb[23].mxu0  ;;  %4783 = vmatprep.subr.bf16.mxu1 %v5276_v15  ;;  %4805 = vmatprep.subr.bf16.mxu0 %v5277_v16  ;;  %v1718_v24 = vrot.slane %v6466_v9, %v6353_v49  ;;  %v1714_v14 = vrot.slane %v6466_v9, %v6338_v31  ;;  %v5306_v16 = vld [vmem:[#allocation19 + $0x230] sm:$0xff]   ;;  %v5309_v19 = vld [vmem:[#allocation19 + $0x2f8] sm:$0xff]  }
 0xb20   : > { %v2728_v41 = vmax.f32 %v2514_v23, 0.0  ;;  %v2730_v27 = vmax.f32 %v2555_v25, 0.0  ;;  %v1722_v15 = vrot.slane %v6466_v9, %v1689_v13  ;;  %v5307_v17 = vld [vmem:[#allocation19 + $0x2b0] sm:$0xff]   ;;  %v5311_v13 = vld [vmem:[#allocation19 + $0x2b8] sm:$0xff]   ;;  %v5312_v38 = vld [vmem:[#allocation19 + $0x340] sm:$0xff]  }
 0xb21   : > { %v2743_v46 = vpack.c.bf16 %v2727_v33, %v2727_v33  ;;  %v2745_v47 = vpack.c.bf16 %v2729_v36, %v2729_v36 }
 0xb22   : > { %v2744_v42 = vpack.c.bf16 %v2728_v41, %v2728_v41  ;;  %v2746_v43 = vpack.c.bf16 %v2730_v27, %v2730_v27  ;;  %4784 = vmatpush3.bf16.msra.mxu1 %v5278_v32  ;;  %4806 = vmatpush3.bf16.msra.mxu0 %v5279_v12  ;;  %v5310_v32 = vld [vmem:[#allocation19 + $0x238] sm:$0xff]  }
 0xb23   : > { %4813 = vmatprep.subr.bf16.mxu1 %v5280_v39  ;;  %4835 = vmatprep.subr.bf16.mxu0 %v5281_v40  ;;  %v5313_v39 = vld [vmem:[#allocation19 + $0x3c0] sm:$0xff]  }
 0xb24   : > { %3898 = vmatprep.mubr.bf16.mxu1 %v2744_v42  ;;  %3938 = vmatprep.mubr.bf16.mxu0 %v2746_v43  ;;  %v5314_v43 = vld [vmem:[#allocation19 + $0x300] sm:$0xff]  }
 0xb25   : > { %3899 = vmatmul.mubr.bf16.vlgmr.msra.gmra.mrb[48].mxu1 %v2743_v46  ;;  %3939 = vmatmul.mubr.bf16.vlgmr.msra.gmra.mrb[36].mxu0 %v2745_v47  ;;  %v5316_v47 = vld [vmem:[#allocation19 + $0x348] sm:$0xff]  }
 0xb26   : > { %4814 = vmatpush3.bf16.msra.mxu1 %v5282_v44  ;;  %4836 = vmatpush3.bf16.msra.mxu0 %v5283_v45  ;;  %v5315_v44 = vld [vmem:[#allocation19 + $0x380] sm:$0xff]  }
 0xb27   : > { %4815 = vmatprep.subr.bf16.mxu1 %v5284_v48  ;;  %4837 = vmatprep.subr.bf16.mxu0 %v5285_v50  ;;  %v5317_v48 = vld [vmem:[#allocation19 + $0x3c8] sm:$0xff]  }
 0xb28   : > { %v5318_v50 = vld [vmem:[#allocation19 + $0x308] sm:$0xff]  }
 0xb2a   : > { %4816 = vmatpush3.bf16.msra.mxu1 %v5286_v51  ;;  %4838 = vmatpush3.bf16.msra.mxu0 %v5287_v52  ;;  %v5319_v51 = vld [vmem:[#allocation19 + $0x388] sm:$0xff]   ;;  %v5320_v52 = vld [vmem:[#allocation19 + $0x350] sm:$0xff]  }
 0xb2b   : > { %4817 = vmatprep.subr.bf16.mxu1 %v5288_v53  ;;  %4839 = vmatprep.subr.bf16.mxu0 %v5289_v1  ;;  %v5321_v53 = vld [vmem:[#allocation19 + $0x3d0] sm:$0xff]  }
 0xb2c   : > { %v5322_v1 = vld [vmem:[#allocation19 + $0x310] sm:$0xff]  }
 0xb2e   : > { %4818 = vmatpush3.bf16.msra.mxu1 %v5290_v54  ;;  %4840 = vmatpush3.bf16.msra.mxu0 %v5291_v55  ;;  %v5323_v54 = vld [vmem:[#allocation19 + $0x390] sm:$0xff]   ;;  %v5324_v55 = vld [vmem:[#allocation19 + $0x358] sm:$0xff]  }
 0xb2f   : > { %4819 = vmatprep.subr.bf16.mxu1 %v5292_v56  ;;  %4841 = vmatprep.subr.bf16.mxu0 %v5293_v57  ;;  %v5325_v56 = vld [vmem:[#allocation19 + $0x3d8] sm:$0xff]  }
 0xb30   : > { %v5326_v57 = vld [vmem:[#allocation19 + $0x318] sm:$0xff]  }
 0xb32   : > { %4820 = vmatpush3.bf16.msra.mxu1 %v5294_v35  ;;  %4842 = vmatpush3.bf16.msra.mxu0 %v5295_v58  ;;  %v5327_v35 = vld [vmem:[#allocation19 + $0x398] sm:$0xff]   ;;  %v5328_v58 = vld [vmem:[#allocation19 + $0x360] sm:$0xff]  }
 0xb33   : > { %4821 = vmatprep.subr.bf16.mxu1 %v5296_v59  ;;  %4843 = vmatprep.subr.bf16.mxu0 %v5297_v60  ;;  %v5329_v59 = vld [vmem:[#allocation19 + $0x3e0] sm:$0xff]  }
 0xb34   : > { %v5330_v60 = vld [vmem:[#allocation19 + $0x320] sm:$0xff]  }
 0xb36   : > { %4822 = vmatpush3.bf16.msra.mxu1 %v5298_v61  ;;  %4844 = vmatpush3.bf16.msra.mxu0 %v5299_v62  ;;  %v5331_v61 = vld [vmem:[#allocation19 + $0x3a0] sm:$0xff]   ;;  %v5332_v62 = vld [vmem:[#allocation19 + $0x368] sm:$0xff]  }
 0xb37   : > { %4823 = vmatprep.subr.bf16.mxu1 %v5300_v3  ;;  %4845 = vmatprep.subr.bf16.mxu0 %v5301_v4  ;;  %v5333_v3 = vld [vmem:[#allocation19 + $0x3e8] sm:$0xff]  }
 0xb38   : > { %v5334_v4 = vld [vmem:[#allocation19 + $0x328] sm:$0xff]  }
 0xb3a   : > { %4824 = vmatpush3.bf16.msra.mxu1 %v5302_v7  ;;  %4846 = vmatpush3.bf16.msra.mxu0 %v5303_v8  ;;  %v5335_v7 = vld [vmem:[#allocation19 + $0x3a8] sm:$0xff]   ;;  %v5336_v8 = vld [vmem:[#allocation19 + $0x370] sm:$0xff]  }
 0xb3b   : > { %4825 = vmatprep.subr.bf16.mxu1 %v5304_v10  ;;  %4847 = vmatprep.subr.bf16.mxu0 %v5305_v11  ;;  %v5337_v10 = vld [vmem:[#allocation19 + $0x3f0] sm:$0xff]   ;;  %v1726_v11 = vrot.slane %v6466_v9, %v1693_v63  ;;  %v5341_v63 = vld [vmem:[#allocation19 + $0x3f8] sm:$0xff]  }
 0xb3c   : > { %v2593_v20 = vpop.f32.mrb[36].mxu1  ;;  %v2634_v29 = vpop.f32.mrb[24].mxu0 }
 0xb3d   : > { %v2594_v21 = vadd.f32 %v2593_v20, %v1710_v0  ;;  %v2635_v22 = vadd.f32 %v2634_v29, %v1718_v24  ;;  %v2595_v49 = vpop.f32.mrb[37].mxu1  ;;  %v2636_v23 = vpop.f32.mrb[25].mxu0  ;;  %v1734_v0 = vrot.slane %v6466_v9, %v1701_v2  ;;  %v1730_v24 = vrot.slane %v6466_v9, %v1697_v5 }
 0xb3e   : > { %v2596_v25 = vadd.f32 %v2595_v49, %v1714_v14  ;;  %v2637_v26 = vadd.f32 %v2636_v23, %v1722_v15  ;;  %v2597_v30 = vpop.f32.mrb[38].mxu1  ;;  %v2638_v31 = vpop.f32.mrb[26].mxu0  ;;  %4826 = vmatpush3.bf16.msra.mxu1 %v5306_v16  ;;  %4848 = vmatpush3.bf16.msra.mxu0 %v5307_v17  ;;  %v1738_v14 = vrot.slane %v6466_v9, %v1705_v6  ;;  %v5338_v15 = vld [vmem:[#allocation19 + $0x330] sm:$0xff]   ;;  %v5340_v17 = vld [vmem:[#allocation19 + $0x378] sm:$0xff]  }
 0xb3f   : > { %v2731_v12 = vmax.f32 %v2594_v21, 0.0  ;;  %v2733_v33 = vmax.f32 %v2635_v22, 0.0  ;;  %v2598_v36 = vpop.f32.mrb[39].mxu1  ;;  %v2639_v37 = vpop.f32.mrb[27].mxu0  ;;  %4827 = vmatprep.subr.bf16.mxu1 %v5308_v18  ;;  %4849 = vmatprep.subr.bf16.mxu0 %v5309_v19  ;;  %v5339_v16 = vld [vmem:[#allocation19 + $0x3b0] sm:$0xff]   ;;  %v5343_v6 = vld [vmem:[#allocation19 + $0x3b8] sm:$0xff]  }
 0xb40   : > { %v2732_v40 = vmax.f32 %v2596_v25, 0.0  ;;  %v2734_v41 = vmax.f32 %v2637_v26, 0.0 }
 0xb41   : > { %v2747_v45 = vpack.c.bf16 %v2731_v12, %v2731_v12  ;;  %v2749_v46 = vpack.c.bf16 %v2733_v33, %v2733_v33 }
 0xb42   : > { %v2748_v27 = vpack.c.bf16 %v2732_v40, %v2732_v40  ;;  %v2750_v42 = vpack.c.bf16 %v2734_v41, %v2734_v41  ;;  %4828 = vmatpush3.bf16.msra.mxu1 %v5310_v32  ;;  %4850 = vmatpush3.bf16.msra.mxu0 %v5311_v13 }
 0xb43   : > { %4857 = vmatprep.subr.bf16.mxu1 %v5312_v38  ;;  %4879 = vmatprep.subr.bf16.mxu0 %v5313_v39  ;;  %v4551_v39 = vld [vmem:[#allocation21] ss:$0 sm:$0xff] }
 0xb44   : > { %3978 = vmatprep.mubr.bf16.mxu1 %v2748_v27  ;;  %4018 = vmatprep.mubr.bf16.mxu0 %v2750_v42 }
 0xb45   : > { %3979 = vmatmul.mubr.bf16.vlgmr.msra.gmra.mrb[52].mxu1 %v2747_v45  ;;  %4019 = vmatmul.mubr.bf16.vlgmr.msra.gmra.mrb[40].mxu0 %v2749_v46 }
 0xb46   : > { %4858 = vmatpush3.bf16.msra.mxu1 %v5314_v43  ;;  %4880 = vmatpush3.bf16.msra.mxu0 %v5315_v44 }
 0xb47   : > { %4859 = vmatprep.subr.bf16.mxu1 %v5316_v47  ;;  %4881 = vmatprep.subr.bf16.mxu0 %v5317_v48 }
 0xb4a   : > { %4860 = vmatpush3.bf16.msra.mxu1 %v5318_v50  ;;  %4882 = vmatpush3.bf16.msra.mxu0 %v5319_v51 }
 0xb4b   : > { %4861 = vmatprep.subr.bf16.mxu1 %v5320_v52  ;;  %4883 = vmatprep.subr.bf16.mxu0 %v5321_v53 }
 0xb4e   : > { %4862 = vmatpush3.bf16.msra.mxu1 %v5322_v1  ;;  %4884 = vmatpush3.bf16.msra.mxu0 %v5323_v54 }
 0xb4f   : > { %4863 = vmatprep.subr.bf16.mxu1 %v5324_v55  ;;  %4885 = vmatprep.subr.bf16.mxu0 %v5325_v56 }
 0xb52   : > { %4864 = vmatpush3.bf16.msra.mxu1 %v5326_v57  ;;  %4886 = vmatpush3.bf16.msra.mxu0 %v5327_v35 }
 0xb53   : > { %4865 = vmatprep.subr.bf16.mxu1 %v5328_v58  ;;  %4887 = vmatprep.subr.bf16.mxu0 %v5329_v59 }
 0xb56   : > { %4866 = vmatpush3.bf16.msra.mxu1 %v5330_v60  ;;  %4888 = vmatpush3.bf16.msra.mxu0 %v5331_v61 }
 0xb57   : > { %4867 = vmatprep.subr.bf16.mxu1 %v5332_v62  ;;  %4889 = vmatprep.subr.bf16.mxu0 %v5333_v3 }
 0xb5a   : > { %4868 = vmatpush3.bf16.msra.mxu1 %v5334_v4  ;;  %4890 = vmatpush3.bf16.msra.mxu0 %v5335_v7 }
 0xb5b   : > { %4869 = vmatprep.subr.bf16.mxu1 %v5336_v8  ;;  %4891 = vmatprep.subr.bf16.mxu0 %v5337_v10 }
 0xb5c   : > { %v2675_v18 = vpop.f32.mrb[40].mxu1  ;;  %v2716_v19 = vpop.f32.mrb[28].mxu0 }
 0xb5d   : > { %v2676_v20 = vadd.f32 %v2675_v18, %v1726_v11  ;;  %v2717_v2 = vadd.f32 %v2716_v19, %v1734_v0  ;;  %v2677_v29 = vpop.f32.mrb[41].mxu1  ;;  %v2718_v21 = vpop.f32.mrb[29].mxu0 }
 0xb5e   : > { %v2678_v22 = vadd.f32 %v2677_v29, %v1730_v24  ;;  %v2719_v49 = vadd.f32 %v2718_v21, %v1738_v14  ;;  %v2679_v23 = vpop.f32.mrb[42].mxu1  ;;  %v2720_v5 = vpop.f32.mrb[30].mxu0  ;;  %4870 = vmatpush3.bf16.msra.mxu1 %v5338_v15  ;;  %4892 = vmatpush3.bf16.msra.mxu0 %v5339_v16 }
 0xb5f   : > { %v2735_v9 = vmax.f32 %v2676_v20, 0.0  ;;  %v2737_v25 = vmax.f32 %v2717_v2, 0.0  ;;  %v2680_v26 = vpop.f32.mrb[43].mxu1  ;;  %v2721_v30 = vpop.f32.mrb[31].mxu0  ;;  %4871 = vmatprep.subr.bf16.mxu1 %v5340_v17  ;;  %4893 = vmatprep.subr.bf16.mxu0 %v5341_v63 }
 0xb60   : > { %v2736_v31 = vmax.f32 %v2678_v22, 0.0  ;;  %v2738_v32 = vmax.f32 %v2719_v49, 0.0 }
 0xb61   : > { %v2751_v33 = vpack.c.bf16 %v2735_v9, %v2735_v9  ;;  %v2753_v36 = vpack.c.bf16 %v2737_v25, %v2737_v25 }
 0xb62   : > { %v2752_v13 = vpack.c.bf16 %v2736_v31, %v2736_v31  ;;  %v2754_v12 = vpack.c.bf16 %v2738_v32, %v2738_v32  ;;  %4872 = vmatpush3.bf16.msra.mxu1 %v5342_v28  ;;  %4894 = vmatpush3.bf16.msra.mxu0 %v5343_v6  ;;  %v4680_v32 = vld [vmem:[#allocation22] ss:$0 sm:$0xff] }
 0xb64   : > { %4058 = vmatprep.mubr.bf16.mxu1 %v2752_v13  ;;  %4098 = vmatprep.mubr.bf16.mxu0 %v2754_v12  ;;  %v4681_v12 = vld [vmem:[#allocation24] ss:$0 sm:$0xff] }
 0xb65   : > { %4059 = vmatmul.mubr.bf16.vlgmr.msra.gmra.mrb[56].mxu1 %v2751_v33  ;;  %4099 = vmatmul.mubr.bf16.vlgmr.msra.gmra.mrb[44].mxu0 %v2753_v36 }
 0xbd8   : > { %v4741_v37 = vpop.f32.mrb[44].mxu1  ;;  %v4763_v38 = vpop.f32.mrb[32].mxu0 }
 0xbd9   : > { %v4742_v40 = vpop.f32.mrb[45].mxu1  ;;  %v4764_v41 = vpop.f32.mrb[33].mxu0 }
 0xbda   : > { %v4743_v27 = vadd.f32 %v4742_v40, %v4741_v37  ;;  %v4765_v42 = vadd.f32 %v4764_v41, %v4763_v38  ;;  %v4744_v43 = vpop.f32.mrb[46].mxu1  ;;  %v4766_v44 = vpop.f32.mrb[34].mxu0 }
 0xbdb   : > { %v4745_v45 = vpop.f32.mrb[47].mxu1  ;;  %v4767_v46 = vpop.f32.mrb[35].mxu0 }
 0xbdc   : > { %v3821_v47 = vadd.f32 %v4743_v27, %v4551_v39 }
 0xbde   : > { %v3861_v48 = vadd.f32 %v4765_v42, %v3821_v47 }
 0xbf8   : > { %v4785_v50 = vpop.f32.mrb[48].mxu1  ;;  %v4807_v51 = vpop.f32.mrb[36].mxu0 }
 0xbf9   : > { %v4786_v52 = vpop.f32.mrb[49].mxu1  ;;  %v4808_v53 = vpop.f32.mrb[37].mxu0 }
 0xbfa   : > { %v4787_v1 = vadd.f32 %v4786_v52, %v4785_v50  ;;  %v4809_v54 = vadd.f32 %v4808_v53, %v4807_v51  ;;  %v4788_v55 = vpop.f32.mrb[50].mxu1  ;;  %v4810_v56 = vpop.f32.mrb[38].mxu0 }
 0xbfb   : > { %v4789_v57 = vpop.f32.mrb[51].mxu1  ;;  %v4811_v35 = vpop.f32.mrb[39].mxu0 }
 0xbfc   : > { %v3901_v58 = vadd.f32 %v4787_v1, %v3861_v48 }
 0xbfe   : > { %v3941_v59 = vadd.f32 %v4809_v54, %v3901_v58 }
 0xc18   : > { %v4829_v60 = vpop.f32.mrb[52].mxu1  ;;  %v4851_v61 = vpop.f32.mrb[40].mxu0 }
 0xc19   : > { %v4830_v62 = vpop.f32.mrb[53].mxu1  ;;  %v4852_v3 = vpop.f32.mrb[41].mxu0 }
 0xc1a   : > { %v4831_v4 = vadd.f32 %v4830_v62, %v4829_v60  ;;  %v4853_v7 = vadd.f32 %v4852_v3, %v4851_v61  ;;  %v4832_v8 = vpop.f32.mrb[54].mxu1  ;;  %v4854_v10 = vpop.f32.mrb[42].mxu0 }
 0xc1b   : > { %v4833_v11 = vpop.f32.mrb[55].mxu1  ;;  %v4855_v0 = vpop.f32.mrb[43].mxu0 }
 0xc1c   : > { %v3981_v24 = vadd.f32 %v4831_v4, %v3941_v59 }
 0xc1e   : > { %v4021_v14 = vadd.f32 %v4853_v7, %v3981_v24 }
 0xc38   : > { %v4873_v15 = vpop.f32.mrb[56].mxu1  ;;  %v4895_v16 = vpop.f32.mrb[44].mxu0 }
 0xc39   : > { %v4874_v17 = vpop.f32.mrb[57].mxu1  ;;  %v4896_v63 = vpop.f32.mrb[45].mxu0 }
 0xc3a   : > { %v4875_v18 = vadd.f32 %v4874_v17, %v4873_v15  ;;  %v4897_v19 = vadd.f32 %v4896_v63, %v4895_v16  ;;  %v4876_v20 = vpop.f32.mrb[58].mxu1  ;;  %v4898_v2 = vpop.f32.mrb[46].mxu0 }
 0xc3b   : > { %v4877_v29 = vpop.f32.mrb[59].mxu1  ;;  %v4899_v21 = vpop.f32.mrb[47].mxu0 }
 0xc3c   : > { %v4061_v22 = vadd.f32 %v4875_v18, %v4021_v14 }
 0xc3e   : > { %v4101_v49 = vadd.f32 %v4897_v19, %v4061_v22 }
 0xc40   : > { %v4106_v23 = vadd.f32 %v4101_v49, %v6418_v34 }
 0xc42   : > { %4107 = vadd.xlane.f32.xlu0 %v4106_v23 }
 0xccf   : > { %v4108_v5 = vpop.xlane.xlu0 %4107 }
 0xcd0   : > { %v4109_v28 = vmul.f32 0.0078125, %v4108_v5 }
 0xcd2   : > { %v4110_v6 = vsub.f32 %v4106_v23, %v4109_v28 }
 0xcd4   : > { %v4111_v9 = vmul.f32 %v4110_v6, %v4110_v6 }
 0xcd6   : > { %4112 = vadd.xlane.f32.xlu1 %v4111_v9 }
 0xd63   : > { %v4113_v25 = vpop.xlane.xlu1 %4112 }
 0xd64   : > { %v4114_v26 = vmul.f32 0.0078125, %v4113_v25 }
 0xd66   : > { %v4115_v30 = vadd.f32 1e-05, %v4114_v26 }
 0xd68   : > { %5362 = vrsqrt.f32 %v4115_v30 }
 0xd72   : > { %v5363_v31 = vpop.eup %5362 }
 0xd73   : > { %v4117_v13 = vmul.f32 %v5363_v31, %v4110_v6 }
 0xd75   : > { %v4125_v33 = vmul.f32 %v4680_v32, %v4117_v13 }
 0xd77   : > { %v4133_v34 = vadd.f32 %v4681_v12, %v4125_v33 }
 0xd79   : > { %v4134_v36 = vpack.c.bf16 %v4133_v34, %v4133_v34 }
 0xd7b   : > { %4135 = vst [vmem:[%s613_s23] sm:$0xf] %v4134_v36 }
 0xd7c   : > { %5743 = shalt.err (!%p5740_p5)
}
 0xd7d   : > { %s5744_s21 = scalar_lea.hbm %s6496_s0, 64  ;;  %s5748_s22 = scalar_lea.hbm %s6600_s29, 128 }
 0xd7e   : > { %p5745_p2 = scmp.ne.s32.totalorder %s6496_s0, %s5744_s21  ;;  %p5749_p11 = scmp.lt.u32.totalorder %s6496_s0, %s6600_s29 }
 0xd7f   : > { %p5750_p3 = scmp.lt.u32.totalorder %s5748_s22, %s5744_s21  ;;  %p5752_p13 = scmp.lt.u32.totalorder %s5744_s21, %s6496_s0 }
 0xd80   : > { %p5746_p7 = pnand %p5745_p2, %p6601_p1 }
 0xd81   : > { %p5751_p12 = por %p5750_p3, %p5749_p11 }
 0xd82   : > { %p5747_p10 = pneg %p5746_p7 }
 0xd83   : > { %p5753_p6 = por %p5752_p13, %p5751_p12 }
 0xd85   : > { %p5754_p9 = pnand %p5753_p6, %p5747_p10 }
 0xd87   : > { %5757 = shalt.err (!%p5754_p9)
}
 0xd88   : > { %5039 = dma.vmem_to_hbm [thread:$0]  (%p6601_p1), %s6498_s1, 64, %s6496_s0, %s4137_s17  }
 0xd89 PF: > { %s6602_s2 = sld [smem:[#allocation34_spill]]  ;;  %p6603_p4 = scmp.ne.s32.totalorder %s6582_s14, 0 }
 0xd8a   : > { %p6604_p8 = scmp.ge.s32.totalorder %s5820_s28, 2 }
 0xd8c   : > { %p5083_p0 = pnand %p6604_p8, %p6603_p4 }
 0xd8f   : > { %s4162_s24 = sand.u32 1, %s6602_s2  }
 0xd90   : > { %s4163_s25 = scalar_lea.sflag [#allocation6], %s4162_s24 }
 0xd91   : > { %5803 = dma.done.wait (!%p5083_p0), %s4163_s25, 64  }
 0xd92   : > { %5805 = vsyncadd (!%p5083_p0), %s4163_s25, 4294967232  ;;  %p32_p5 = scmp.ge.s32.totalorder %s6204_s18, 4   ;;  %s6605_s25 = smov %s5812_s26 }
 0xd93   : > { %s6606_s26 = smov %s5816_s27  ;;  %s6607_s27 = smov %s6216_s15 }
 0xd94   : > { %s6608_s28 = smov %s6204_s18  ;;  %34 = sbr.rel (!%p32_p5) target bundleno = 16 (0x10), region = 165 }
 0xd9b   :  { %4168 = vsyncpa [#allocation5], 1 }
 0xd9c   :  { %4170 = vsyncpa [#allocation5 + $0x1], 1 }
 0xd9d   :  { %4171 = vsyncpa [#allocation8], 1 }
 0xd9e   :  { %4172 = vsyncpa [#allocation11], 1 }
 0xd9f   :  { %4173 = vsyncpa [#allocation14], 1 }
 0xda0   :  { %4174 = vsyncpa [#allocation17], 1 }
 0xda1   :  { %4175 = vsyncpa [#allocation20], 1 }
 0xda2   :  { %4176 = vsyncpa [#allocation23], 1 }
 0xda3   :  { %4177 = vsyncpa [#allocation6], 1 }
 0xda4   :  { %4179 = vsyncpa [#allocation6 + $0x1], 1 }

// kernel: transformer_forward.5
= control target key start
LH: loop header
LB: loop body
LE: loop exit
PB: predicated region body
PF: predicated region fallthrough
CT: control target
= control target key end

     0   :  { %s7102_s0 = inlined_call_operand.hbm [shape: bf16[2,8,128], index: 0, kind: input, shape index: {}]   ;;  %s7103_s1 = inlined_call_operand.hbm [shape: bf16[128,384], index: 1, kind: input, shape index: {}]   ;;  %s7104_s2 = inlined_call_operand.hbm [shape: f32[1,384], index: 2, kind: input, shape index: {}]   ;;  %s7105_s3 = inlined_call_operand.hbm [shape: bf16[128,128], index: 3, kind: input, shape index: {}]   ;;  %s7106_s4 = inlined_call_operand.hbm [shape: f32[1,128], index: 4, kind: input, shape index: {}]   ;;  %s7107_s5 = inlined_call_operand.hbm [shape: f32[1,128], index: 5, kind: input, shape index: {}]   ;;  %s7108_s6 = inlined_call_operand.hbm [shape: f32[1,128], index: 6, kind: input, shape index: {}]   ;;  %s7109_s7 = inlined_call_operand.hbm [shape: bf16[128,2048], index: 7, kind: input, shape index: {}]   ;;  %s7110_s8 = inlined_call_operand.hbm [shape: f32[1,2048], index: 8, kind: input, shape index: {}]   ;;  %s7111_s9 = inlined_call_operand.hbm [shape: bf16[2048,128], index: 9, kind: input, shape index: {}]   ;;  %s7112_s10 = inlined_call_operand.hbm [shape: f32[1,128], index: 10, kind: input, shape index: {}]   ;;  %s7113_s11 = inlined_call_operand.hbm [shape: f32[1,128], index: 11, kind: input, shape index: {}]   ;;  %s7114_s12 = inlined_call_operand.hbm [shape: f32[1,128], index: 12, kind: input, shape index: {}]   ;;  %s7115_s13 = inlined_call_operand.hbm [shape: bf16[128,128], index: 13, kind: input, shape index: {}]   ;;  %s7116_s14 = inlined_call_operand.hbm [shape: f32[1,128], index: 14, kind: input, shape index: {}]   ;;  %s7117_s15 = inlined_call_operand.hbm [shape: bf16[2,8,128], index: 15, kind: output, shape index: {0}]   ;;  %s7118_s16 = inlined_call_operand.hbm [shape: f32[2,1,128], index: 16, kind: output, shape index: {1}]  }
   0x1   :  { %7133 = sst [smem:[#allocation46_spill]] %s7102_s0 }
   0x2   :  { %7134 = sst [smem:[#allocation47_spill]] %s7103_s1 }
   0x3   :  { %7135 = sst [smem:[#allocation48_spill]] %s7104_s2 }
   0x4   :  { %7136 = sst [smem:[#allocation49_spill]] %s7105_s3 }
   0x5   :  { %7137 = sst [smem:[#allocation50_spill]] %s7117_s15 }
   0x6   :  { %7138 = sst [smem:[#allocation51_spill]] %s7118_s16 }
   0x7   :  { %22 = vsyncpa [#allocation5], 0 }
   0x8   :  { %24 = vsyncpa [#allocation5 + $0x1], 0 }
   0x9   :  { %25 = vsyncpa [#allocation8], 0 }
   0xa   :  { %26 = vsyncpa [#allocation11], 0 }
   0xb   :  { %27 = vsyncpa [#allocation14], 0 }
   0xc   :  { %28 = vsyncpa [#allocation17], 0 }
   0xd   :  { %29 = vsyncpa [#allocation20], 0 }
   0xe   :  { %30 = vsyncpa [#allocation23], 0 }
   0xf   :  { %31 = vsyncpa [#allocation26], 0 }
  0x10   :  { %32 = vsyncpa [#allocation6], 0 }
  0x11   :  { %34 = vsyncpa [#allocation6 + $0x1], 0 }
  0x12   :  { %35 = vsyncpa [#allocation30], 0 }
  0x13   :  { %37 = vsyncpa [#allocation30 + $0x1], 0  ;;  %s6396_s21 = smov 0   ;;  %s6398_s22 = smov 0  }
  0x14   :  { %s6400_s23 = smov 0   ;;  %s6402_s24 = smov 0  }
  0x15 LB: > { %7139 = sst [smem:[#allocation41_spill]] %s6269_s21  ;;  %s6283_s25 = smov [#allocation7]   ;;  %s6281_s24 = sphi %s6402_s24, %s7188_s24   ;;  %s6277_s23 = sphi %s6400_s23, %s7187_s23   ;;  %s6273_s22 = sphi %s6398_s22, %s7186_s22   ;;  %s6269_s21 = sphi %s6396_s21, %s7185_s21  }
  0x16   : > { %7140 = sst [smem:[#allocation42_spill]] %s6273_s22  ;;  %s432_s26 = sshll.u32 %s6283_s25, 4  ;;  %s6422_s26 = int_to_ptr.vmem [resolvable:$true] %s432_s26 }
  0x17   : > { %7141 = sst [smem:[#allocation43_spill]] %s6277_s23  ;;  %s6417_s27 = sadd.s32 4294967295, %s6281_s24  }
  0x18   : > { %7142 = sst [smem:[#allocation44_spill]] %s6417_s27  ;;  %p4628_p0 = scmp.ge.s32.totalorder %s6281_s24, 1 }
  0x19   : > { %p7128_p1 = scmp.eq.s32.totalorder %s6417_s27, 0  ;;  %p420_p2 = scmp.lt.s32.totalorder %s6281_s24, 3 }
  0x1a   : > { %s6284_s29 = smov [#allocation10]   ;;  %s6285_s17 = smov [#allocation13]  }
  0x1b   : > { %p6424_p3 = pnand %p4628_p0, %p420_p2  ;;  %s456_s30 = sshll.u32 %s6284_s29, 4  ;;  %s6437_s30 = int_to_ptr.vmem [resolvable:$true] %s456_s30 }
  0x1c   : > { %s6439_s18 = sshll.u32 %s6285_s17, 4  ;;  %s7146_s1 = sld [smem:[#allocation47_spill]]  ;;  %s482_s18 = int_to_ptr.vmem [resolvable:$true] %s6439_s18 }
  0x1d   : > { %s7143_s28 = scalar_select %p6424_p3, 1, 0 }
  0x1e   : > { %p5386_p5 = pneg %p6424_p3 }
  0x1f   : > { %7144 = sst [smem:[#allocation45_spill]] %s7143_s28 }
  0x20   : > { %p6433_p6 = pnand %p5386_p5, %p7128_p1 }
  0x22   : > { %s5733_s25 = scalar_lea.hbm %s7146_s1, 3072  ;;  %p6449_p8 = pneg %p6433_p6 }
  0x23   : > { %p5734_p7 = scmp.ne.s32.totalorder %s7146_s1, %s5733_s25  ;;  %p5740_p11 = scmp.lt.u32.totalorder %s5733_s25, %s7146_s1 }
  0x25   : > { %p5736_p9 = pnand %p6449_p8, %p5734_p7 }
  0x27   : > { %p5737_p10 = pneg %p5736_p9 }
  0x29   : > { %p5742_p12 = pnand %p5740_p11, %p5737_p10 }
  0x2b   : > { %5745 = shalt.err (!%p5742_p12)
}
  0x2c   : > { %s5746_s15 = scalar_lea.vmem %s6422_s26, 3072  ;;  %p5754_p5 = scmp.lt.s32.totalorder %s6422_s26, %s6422_s26 }
  0x2d   : > { %p5747_p13 = scmp.ne.s32.totalorder %s6422_s26, %s5746_s15  ;;  %p5755_p4 = scmp.lt.s32.totalorder %s5746_s15, %s5746_s15 }
  0x2f   : > { %p5749_p0 = pnand %p5747_p13, %p6449_p8  ;;  %p5756_p7 = por %p5755_p4, %p5754_p5 }
  0x31   : > { %p5750_p2 = pneg %p5749_p0 }
  0x33   : > { %p5757_p9 = pnand %p5756_p7, %p5750_p2 }
  0x35   : > { %5760 = shalt.err (!%p5757_p9)
}
  0x36   : > { %s6286_s16 = smov 192   ;;  %s6287_s28 = smov 12  }
  0x37   : > { %5389 = dma.hbm_to_vmem [thread:$0]  (!%p6433_p6), %s7146_s1, 3072, %s6422_s26, [#allocation8], %s6286_s16, %s6286_s16, %s6287_s28  }
  0x38   : > { %s7148_s3 = sld [smem:[#allocation49_spill]] }
  0x3e   : > { %s5761_s27 = scalar_lea.hbm %s7148_s3, 1024 }
  0x3f   : > { %p5762_p4 = scmp.ne.s32.totalorder %s7148_s3, %s5761_s27  ;;  %p5768_p12 = scmp.lt.u32.totalorder %s5761_s27, %s7148_s3 }
  0x41   : > { %p5764_p10 = pnand %p5762_p4, %p6449_p8 }
  0x43   : > { %p5765_p11 = pneg %p5764_p10 }
  0x45   : > { %p5770_p13 = pnand %p5768_p12, %p5765_p11 }
  0x47   : > { %5773 = shalt.err (!%p5770_p13)
}
  0x48   : > { %s5774_s26 = scalar_lea.vmem %s6437_s30, 1024  ;;  %p5782_p7 = scmp.lt.s32.totalorder %s6437_s30, %s6437_s30 }
  0x49   : > { %p5775_p0 = scmp.ne.s32.totalorder %s6437_s30, %s5774_s26  ;;  %p5783_p9 = scmp.lt.s32.totalorder %s5774_s26, %s5774_s26 }
  0x4b   : > { %p5777_p2 = pnand %p5775_p0, %p6449_p8  ;;  %p5784_p4 = por %p5783_p9, %p5782_p7 }
  0x4d   : > { %p5778_p5 = pneg %p5777_p2 }
  0x4f   : > { %p5785_p10 = pnand %p5784_p4, %p5778_p5 }
  0x51   : > { %5788 = shalt.err (!%p5785_p10)
}
  0x52   : > { %s6288_s21 = smov 64   ;;  %s7130_s22 = smov 4  }
  0x53   : > { %5395 = dma.hbm_to_vmem [thread:$0]  (!%p6433_p6), %s7148_s3, 1024, %s6437_s30, [#allocation11], %s6288_s21, %s6288_s21, %s7130_s22  }
  0x54   : > { %s5789_s19 = scalar_lea.hbm %s7107_s5, 16 }
  0x55   : > { %p5790_p11 = scmp.ne.s32.totalorder %s7107_s5, %s5789_s19  ;;  %p5796_p0 = scmp.lt.u32.totalorder %s5789_s19, %s7107_s5 }
  0x57   : > { %p5792_p12 = pnand %p5790_p11, %p6449_p8 }
  0x59   : > { %p5793_p13 = pneg %p5792_p12 }
  0x5b   : > { %p5798_p2 = pnand %p5796_p0, %p5793_p13 }
  0x5d   : > { %5801 = shalt.err (!%p5798_p2)
}
  0x5e   : > { %s5802_s26 = scalar_lea.vmem %s482_s18, 16  ;;  %s5809_s30 = scalar_lea.vmem %s482_s18, 32 }
  0x5f   : > { %p5803_p5 = scmp.ne.s32.totalorder %s482_s18, %s5802_s26  ;;  %p5810_p4 = scmp.lt.s32.totalorder %s482_s18, %s482_s18 }
  0x60   : > { %p5811_p10 = scmp.lt.s32.totalorder %s5809_s30, %s5802_s26 }
  0x61   : > { %p5805_p7 = pnand %p5803_p5, %p6449_p8 }
  0x62   : > { %p5812_p1 = por %p5811_p10, %p5810_p4 }
  0x63   : > { %p5806_p9 = pneg %p5805_p7 }
  0x65   : > { %p5813_p3 = pnand %p5812_p1, %p5806_p9 }
  0x67   : > { %5816 = shalt.err (!%p5813_p3)
}
  0x68   : > { %5401 = dma.hbm_to_vmem [thread:$0]  (!%p6433_p6), %s7107_s5, 16, %s482_s18, [#allocation14]  }
  0x69   : > { %s6290_s16 = smov [#allocation16]   ;;  %s5817_s25 = scalar_lea.hbm %s7109_s7, 16384 }
  0x6a   : > { %s502_s28 = sshll.u32 %s6290_s16, 4  ;;  %p5818_p11 = scmp.ne.s32.totalorder %s7109_s7, %s5817_s25  ;;  %s503_s28 = int_to_ptr.vmem [resolvable:$true] %s502_s28 }
  0x6b   : > { %p5824_p12 = scmp.lt.u32.totalorder %s5817_s25, %s7109_s7 }
  0x6c   : > { %p5820_p1 = pnand %p5818_p11, %p6449_p8 }
  0x6e   : > { %p5821_p3 = pneg %p5820_p1 }
  0x70   : > { %p5826_p13 = pnand %p5824_p12, %p5821_p3 }
  0x72   : > { %5829 = shalt.err (!%p5826_p13)
}
  0x73   : > { %s5830_s18 = scalar_lea.vmem %s503_s28, 16384  ;;  %p5838_p7 = scmp.lt.s32.totalorder %s503_s28, %s503_s28 }
  0x74   : > { %p5831_p0 = scmp.ne.s32.totalorder %s503_s28, %s5830_s18  ;;  %p5839_p9 = scmp.lt.s32.totalorder %s5830_s18, %s5830_s18 }
  0x76   : > { %p5833_p2 = pnand %p5831_p0, %p6449_p8  ;;  %p5840_p4 = por %p5839_p9, %p5838_p7 }
  0x78   : > { %p5834_p5 = pneg %p5833_p2 }
  0x7a   : > { %p5841_p10 = pnand %p5840_p4, %p5834_p5 }
  0x7c   : > { %5844 = shalt.err (!%p5841_p10)
}
  0x7d   : > { %s6291_s23 = smov 1024   ;;  %s6292_s19 = smov [#allocation19]  }
  0x7e   : > { %5407 = dma.hbm_to_vmem [thread:$0]  (!%p6433_p6), %s7109_s7, 16384, %s503_s28, [#allocation17], %s6291_s23, %s6291_s23, %s6288_s21  }
  0x7f   : > { %s526_s20 = sshll.u32 %s6292_s19, 4  ;;  %s6293_s25 = smov [#allocation22]   ;;  %s527_s20 = int_to_ptr.vmem [resolvable:$true] %s526_s20 }
  0x80   : > { %s551_s17 = sshll.u32 %s6293_s25, 4  ;;  %s5845_s30 = scalar_lea.hbm %s7111_s9, 16384  ;;  %s552_s17 = int_to_ptr.vmem [resolvable:$true] %s551_s17 }
  0x81   : > { %p5846_p11 = scmp.ne.s32.totalorder %s7111_s9, %s5845_s30  ;;  %p5852_p12 = scmp.lt.u32.totalorder %s5845_s30, %s7111_s9 }
  0x83   : > { %p5848_p1 = pnand %p5846_p11, %p6449_p8 }
  0x85   : > { %p5849_p3 = pneg %p5848_p1 }
  0x87   : > { %p5854_p13 = pnand %p5852_p12, %p5849_p3 }
  0x89   : > { %5857 = shalt.err (!%p5854_p13)
}
  0x8a   : > { %s5858_s28 = scalar_lea.vmem %s527_s20, 16384  ;;  %p5866_p7 = scmp.lt.s32.totalorder %s527_s20, %s527_s20 }
  0x8b   : > { %p5859_p0 = scmp.ne.s32.totalorder %s527_s20, %s5858_s28  ;;  %p5867_p9 = scmp.lt.s32.totalorder %s5858_s28, %s5858_s28 }
  0x8d   : > { %p5861_p2 = pnand %p5859_p0, %p6449_p8  ;;  %p5868_p4 = por %p5867_p9, %p5866_p7 }
  0x8f   : > { %p5862_p5 = pneg %p5861_p2 }
  0x91   : > { %p5869_p10 = pnand %p5868_p4, %p5862_p5 }
  0x93   : > { %5872 = shalt.err (!%p5869_p10)
}
  0x94   : > { %s7149_s22 = smov 4   ;;  %s5873_s25 = scalar_lea.hbm %s7113_s11, 16 }
  0x95   : > { %5413 = dma.hbm_to_vmem [thread:$0]  (!%p6433_p6), %s7111_s9, 16384, %s527_s20, [#allocation20], %s6288_s21, %s6288_s21, %s7149_s22  }
  0x96   : > { %p5874_p11 = scmp.ne.s32.totalorder %s7113_s11, %s5873_s25  ;;  %p5880_p12 = scmp.lt.u32.totalorder %s5873_s25, %s7113_s11 }
  0x98   : > { %p5876_p1 = pnand %p5874_p11, %p6449_p8 }
  0x9a   : > { %p5877_p3 = pneg %p5876_p1 }
  0x9c   : > { %p5882_p13 = pnand %p5880_p12, %p5877_p3 }
  0x9e   : > { %5885 = shalt.err (!%p5882_p13)
}
  0x9f   : > { %s5886_s27 = scalar_lea.vmem %s552_s17, 16  ;;  %s5893_s20 = scalar_lea.vmem %s552_s17, 32 }
  0xa0   : > { %p5887_p0 = scmp.ne.s32.totalorder %s552_s17, %s5886_s27  ;;  %p5894_p7 = scmp.lt.s32.totalorder %s552_s17, %s552_s17 }
  0xa1   : > { %p5895_p9 = scmp.lt.s32.totalorder %s5893_s20, %s5886_s27 }
  0xa2   : > { %p5889_p2 = pnand %p5887_p0, %p6449_p8 }
  0xa3   : > { %p5896_p4 = por %p5895_p9, %p5894_p7 }
  0xa4   : > { %p5890_p5 = pneg %p5889_p2 }
  0xa6   : > { %p5897_p10 = pnand %p5896_p4, %p5890_p5 }
  0xa8   : > { %5900 = shalt.err (!%p5897_p10)
}
  0xa9   : > { %5419 = dma.hbm_to_vmem [thread:$0]  (!%p6433_p6), %s7113_s11, 16, %s552_s17, [#allocation23]  }
  0xaa   : > { %s6294_s23 = smov [#allocation25]   ;;  %s6295_s19 = smov [#allocation9]  }
  0xab   : > { %s572_s16 = sshll.u32 %s6294_s23, 4  ;;  %s446_s25 = sshll.u32 %s6295_s19, 4  ;;  %s573_s16 = int_to_ptr.vmem [resolvable:$true] %s572_s16  ;;  %s447_s25 = int_to_ptr.vmem [resolvable:$true] %s446_s25 }
  0xac   : > { %s5901_s30 = scalar_lea.hbm %s7115_s13, 1024 }
  0xad   : > { %p5902_p11 = scmp.ne.s32.totalorder %s7115_s13, %s5901_s30  ;;  %p5908_p12 = scmp.lt.u32.totalorder %s5901_s30, %s7115_s13 }
  0xaf   : > { %p5904_p1 = pnand %p5902_p11, %p6449_p8 }
  0xb1   : > { %p5905_p3 = pneg %p5904_p1 }
  0xb3   : > { %p5910_p13 = pnand %p5908_p12, %p5905_p3 }
  0xb5   : > { %5913 = shalt.err (!%p5910_p13)
}
  0xb6   : > { %s5914_s17 = scalar_lea.vmem %s573_s16, 1024  ;;  %p5922_p7 = scmp.lt.s32.totalorder %s573_s16, %s573_s16 }
  0xb7   : > { %p5915_p0 = scmp.ne.s32.totalorder %s573_s16, %s5914_s17  ;;  %p5923_p9 = scmp.lt.s32.totalorder %s5914_s17, %s5914_s17 }
  0xb9   : > { %p5917_p2 = pnand %p5915_p0, %p6449_p8  ;;  %p5924_p4 = por %p5923_p9, %p5922_p7 }
  0xbb   : > { %p5918_p5 = pneg %p5917_p2 }
  0xbd   : > { %p5925_p10 = pnand %p5924_p4, %p5918_p5 }
  0xbf   : > { %5928 = shalt.err (!%p5925_p10)
}
  0xc0   : > { %5425 = dma.hbm_to_vmem [thread:$0]  (!%p6433_p6), %s7115_s13, 1024, %s573_s16, [#allocation26], %s6288_s21, %s6288_s21, %s7149_s22  }
  0xc1   : > { %s7150_s2 = sld [smem:[#allocation48_spill]] }
  0xc7   : > { %s5929_s26 = scalar_lea.hbm %s7150_s2, 48 }
  0xc8   : > { %p5930_p11 = scmp.ne.s32.totalorder %s7150_s2, %s5929_s26  ;;  %p5936_p12 = scmp.lt.u32.totalorder %s5929_s26, %s7150_s2 }
  0xca   : > { %p5932_p1 = pnand %p5930_p11, %p6449_p8 }
  0xcc   : > { %p5933_p3 = pneg %p5932_p1 }
  0xce   : > { %p5938_p13 = pnand %p5936_p12, %p5933_p3 }
  0xd0   : > { %5941 = shalt.err (!%p5938_p13)
}
  0xd1   : > { %s5942_s28 = scalar_lea.vmem %s447_s25, 48  ;;  %s5949_s21 = scalar_lea.vmem %s447_s25, 64 }
  0xd2   : > { %p5943_p0 = scmp.ne.s32.totalorder %s447_s25, %s5942_s28  ;;  %p5950_p7 = scmp.lt.s32.totalorder %s447_s25, %s447_s25 }
  0xd3   : > { %p5951_p9 = scmp.lt.s32.totalorder %s5949_s21, %s5942_s28 }
  0xd4   : > { %p5945_p2 = pnand %p5943_p0, %p6449_p8 }
  0xd5   : > { %p5952_p4 = por %p5951_p9, %p5950_p7 }
  0xd6   : > { %p5946_p5 = pneg %p5945_p2 }
  0xd8   : > { %p5953_p10 = pnand %p5952_p4, %p5946_p5 }
  0xda   : > { %5956 = shalt.err (!%p5953_p10)
}
  0xdb   : > { %5392 = dma.hbm_to_vmem [thread:$0]  (!%p6433_p6), %s7150_s2, 48, %s447_s25, [#allocation8]  }
  0xdc   : > { %s6296_s17 = smov [#allocation12]   ;;  %s6297_s23 = smov [#allocation15]  }
  0xdd   : > { %s470_s1 = sshll.u32 %s6296_s17, 4  ;;  %s492_s19 = sshll.u32 %s6297_s23, 4  ;;  %s471_s1 = int_to_ptr.vmem [resolvable:$true] %s470_s1  ;;  %s493_s19 = int_to_ptr.vmem [resolvable:$true] %s492_s19 }
  0xde   : > { %s5957_s30 = scalar_lea.hbm %s7106_s4, 16 }
  0xdf   : > { %p5958_p11 = scmp.ne.s32.totalorder %s7106_s4, %s5957_s30  ;;  %p5964_p12 = scmp.lt.u32.totalorder %s5957_s30, %s7106_s4 }
  0xe1   : > { %p5960_p1 = pnand %p5958_p11, %p6449_p8 }
  0xe3   : > { %p5961_p3 = pneg %p5960_p1 }
  0xe5   : > { %p5966_p13 = pnand %p5964_p12, %p5961_p3 }
  0xe7   : > { %5969 = shalt.err (!%p5966_p13)
}
  0xe8   : > { %s5970_s25 = scalar_lea.vmem %s471_s1, 16  ;;  %s5977_s21 = scalar_lea.vmem %s471_s1, 32 }
  0xe9   : > { %p5971_p0 = scmp.ne.s32.totalorder %s471_s1, %s5970_s25  ;;  %p5978_p7 = scmp.lt.s32.totalorder %s471_s1, %s471_s1 }
  0xea   : > { %p5979_p9 = scmp.lt.s32.totalorder %s5977_s21, %s5970_s25 }
  0xeb   : > { %p5973_p2 = pnand %p5971_p0, %p6449_p8 }
  0xec   : > { %p5980_p4 = por %p5979_p9, %p5978_p7 }
  0xed   : > { %p5974_p5 = pneg %p5973_p2 }
  0xef   : > { %p5981_p10 = pnand %p5980_p4, %p5974_p5 }
  0xf1   : > { %5984 = shalt.err (!%p5981_p10)
}
  0xf2   : > { %5398 = dma.hbm_to_vmem [thread:$0]  (!%p6433_p6), %s7106_s4, 16, %s471_s1, [#allocation11]  }
  0xf3   : > { %s5985_s15 = scalar_lea.hbm %s7108_s6, 16 }
  0xf4   : > { %p5986_p11 = scmp.ne.s32.totalorder %s7108_s6, %s5985_s15  ;;  %p5992_p12 = scmp.lt.u32.totalorder %s5985_s15, %s7108_s6 }
  0xf6   : > { %p5988_p1 = pnand %p5986_p11, %p6449_p8 }
  0xf8   : > { %p5989_p3 = pneg %p5988_p1 }
  0xfa   : > { %p5994_p13 = pnand %p5992_p12, %p5989_p3 }
  0xfc   : > { %5997 = shalt.err (!%p5994_p13)
}
  0xfd   : > { %s5998_s20 = scalar_lea.vmem %s493_s19, 16  ;;  %s6005_s1 = scalar_lea.vmem %s493_s19, 32 }
  0xfe   : > { %p5999_p0 = scmp.ne.s32.totalorder %s493_s19, %s5998_s20  ;;  %p6006_p7 = scmp.lt.s32.totalorder %s493_s19, %s493_s19 }
  0xff   : > { %p6007_p9 = scmp.lt.s32.totalorder %s6005_s1, %s5998_s20 }
 0x100   : > { %p6001_p2 = pnand %p5999_p0, %p6449_p8 }
 0x101   : > { %p6008_p4 = por %p6007_p9, %p6006_p7 }
 0x102   : > { %p6002_p5 = pneg %p6001_p2 }
 0x104   : > { %p6009_p10 = pnand %p6008_p4, %p6002_p5 }
 0x106   : > { %6012 = shalt.err (!%p6009_p10)
}
 0x107   : > { %5404 = dma.hbm_to_vmem [thread:$0]  (!%p6433_p6), %s7108_s6, 16, %s493_s19, [#allocation14]  }
 0x108   : > { %s6298_s21 = smov [#allocation18]   ;;  %s6299_s16 = smov [#allocation21]  }
 0x109   : > { %s516_s22 = sshll.u32 %s6298_s21, 4  ;;  %s540_s17 = sshll.u32 %s6299_s16, 4  ;;  %s517_s22 = int_to_ptr.vmem [resolvable:$true] %s516_s22  ;;  %s541_s17 = int_to_ptr.vmem [resolvable:$true] %s540_s17 }
 0x10a   : > { %s6013_s26 = scalar_lea.hbm %s7110_s8, 256 }
 0x10b   : > { %p6014_p11 = scmp.ne.s32.totalorder %s7110_s8, %s6013_s26  ;;  %p6020_p12 = scmp.lt.u32.totalorder %s6013_s26, %s7110_s8 }
 0x10d   : > { %p6016_p1 = pnand %p6014_p11, %p6449_p8 }
 0x10f   : > { %p6017_p3 = pneg %p6016_p1 }
 0x111   : > { %p6022_p13 = pnand %p6020_p12, %p6017_p3 }
 0x113   : > { %6025 = shalt.err (!%p6022_p13)
}
 0x114   : > { %s6026_s19 = scalar_lea.vmem %s517_s22, 256  ;;  %p6034_p7 = scmp.lt.s32.totalorder %s517_s22, %s517_s22 }
 0x115   : > { %p6027_p0 = scmp.ne.s32.totalorder %s517_s22, %s6026_s19  ;;  %p6035_p9 = scmp.lt.s32.totalorder %s6026_s19, %s6026_s19 }
 0x117   : > { %p6029_p2 = pnand %p6027_p0, %p6449_p8  ;;  %p6036_p4 = por %p6035_p9, %p6034_p7 }
 0x119   : > { %p6030_p5 = pneg %p6029_p2 }
 0x11b   : > { %p6037_p10 = pnand %p6036_p4, %p6030_p5 }
 0x11d   : > { %6040 = shalt.err (!%p6037_p10)
}
 0x11e   : > { %5410 = dma.hbm_to_vmem [thread:$0]  (!%p6433_p6), %s7110_s8, 256, %s517_s22, [#allocation17]  }
 0x11f   : > { %s6041_s16 = scalar_lea.hbm %s7112_s10, 16 }
 0x120   : > { %p6042_p11 = scmp.ne.s32.totalorder %s7112_s10, %s6041_s16  ;;  %p6048_p12 = scmp.lt.u32.totalorder %s6041_s16, %s7112_s10 }
 0x122   : > { %p6044_p1 = pnand %p6042_p11, %p6449_p8 }
 0x124   : > { %p6045_p3 = pneg %p6044_p1 }
 0x126   : > { %p6050_p13 = pnand %p6048_p12, %p6045_p3 }
 0x128   : > { %6053 = shalt.err (!%p6050_p13)
}
 0x129   : > { %s6054_s18 = scalar_lea.vmem %s541_s17, 16  ;;  %s6061_s22 = scalar_lea.vmem %s541_s17, 32 }
 0x12a   : > { %p6055_p0 = scmp.ne.s32.totalorder %s541_s17, %s6054_s18  ;;  %p6062_p7 = scmp.lt.s32.totalorder %s541_s17, %s541_s17 }
 0x12b   : > { %p6063_p9 = scmp.lt.s32.totalorder %s6061_s22, %s6054_s18 }
 0x12c   : > { %p6057_p2 = pnand %p6055_p0, %p6449_p8 }
 0x12d   : > { %p6064_p4 = por %p6063_p9, %p6062_p7 }
 0x12e   : > { %p6058_p5 = pneg %p6057_p2 }
 0x130   : > { %p6065_p10 = pnand %p6064_p4, %p6058_p5 }
 0x132   : > { %6068 = shalt.err (!%p6065_p10)
}
 0x133   : > { %5416 = dma.hbm_to_vmem [thread:$0]  (!%p6433_p6), %s7112_s10, 16, %s541_s17, [#allocation20]  }
 0x134   : > { %s6300_s19 = smov [#allocation24]   ;;  %s6301_s28 = smov [#allocation27]  }
 0x135   : > { %s562_s1 = sshll.u32 %s6300_s19, 4  ;;  %s586_s25 = sshll.u32 %s6301_s28, 4  ;;  %s563_s1 = int_to_ptr.vmem [resolvable:$true] %s562_s1  ;;  %s587_s25 = int_to_ptr.vmem [resolvable:$true] %s586_s25 }
 0x136   : > { %s6069_s23 = scalar_lea.hbm %s7114_s12, 16 }
 0x137   : > { %p6070_p11 = scmp.ne.s32.totalorder %s7114_s12, %s6069_s23  ;;  %p6076_p12 = scmp.lt.u32.totalorder %s6069_s23, %s7114_s12 }
 0x139   : > { %p6072_p1 = pnand %p6070_p11, %p6449_p8 }
 0x13b   : > { %p6073_p3 = pneg %p6072_p1 }
 0x13d   : > { %p6078_p13 = pnand %p6076_p12, %p6073_p3 }
 0x13f   : > { %6081 = shalt.err (!%p6078_p13)
}
 0x140   : > { %s6082_s17 = scalar_lea.vmem %s563_s1, 16  ;;  %s6089_s22 = scalar_lea.vmem %s563_s1, 32 }
 0x141   : > { %p6083_p0 = scmp.ne.s32.totalorder %s563_s1, %s6082_s17  ;;  %p6090_p7 = scmp.lt.s32.totalorder %s563_s1, %s563_s1 }
 0x142   : > { %p6091_p9 = scmp.lt.s32.totalorder %s6089_s22, %s6082_s17 }
 0x143   : > { %p6085_p2 = pnand %p6083_p0, %p6449_p8 }
 0x144   : > { %p6092_p4 = por %p6091_p9, %p6090_p7 }
 0x145   : > { %p6086_p5 = pneg %p6085_p2 }
 0x147   : > { %p6093_p10 = pnand %p6092_p4, %p6086_p5 }
 0x149   : > { %6096 = shalt.err (!%p6093_p10)
}
 0x14a   : > { %5422 = dma.hbm_to_vmem [thread:$0]  (!%p6433_p6), %s7114_s12, 16, %s563_s1, [#allocation23]  }
 0x14b   : > { %s6097_s21 = scalar_lea.hbm %s7116_s14, 16 }
 0x14c   : > { %p6098_p11 = scmp.ne.s32.totalorder %s7116_s14, %s6097_s21  ;;  %p6104_p12 = scmp.lt.u32.totalorder %s6097_s21, %s7116_s14 }
 0x14e   : > { %p6100_p1 = pnand %p6098_p11, %p6449_p8 }
 0x150   : > { %p6101_p3 = pneg %p6100_p1 }
 0x152   : > { %p6106_p13 = pnand %p6104_p12, %p6101_p3 }
 0x154   : > { %6109 = shalt.err (!%p6106_p13)
}
 0x155   : > { %s6110_s30 = scalar_lea.vmem %s587_s25, 16  ;;  %s6117_s1 = scalar_lea.vmem %s587_s25, 32 }
 0x156   : > { %p6111_p0 = scmp.ne.s32.totalorder %s587_s25, %s6110_s30  ;;  %p6118_p7 = scmp.lt.s32.totalorder %s587_s25, %s587_s25 }
 0x157   : > { %p6119_p9 = scmp.lt.s32.totalorder %s6117_s1, %s6110_s30 }
 0x158   : > { %p6113_p2 = pnand %p6111_p0, %p6449_p8 }
 0x159   : > { %p6120_p4 = por %p6119_p9, %p6118_p7 }
 0x15a   : > { %p6114_p5 = pneg %p6113_p2 }
 0x15c   : > { %p6121_p10 = pnand %p6120_p4, %p6114_p5 }
 0x15e   : > { %6124 = shalt.err (!%p6121_p10)
}
 0x15f   : > { %s7151_s22 = sld [smem:[#allocation43_spill]]  ;;  %s7152_s27 = sld [smem:[#allocation42_spill]] }
 0x160   : > { %s7153_s29 = sld [smem:[#allocation41_spill]]  ;;  %s7154_s20 = sld [smem:[#allocation44_spill]] }
 0x161   : > { %5428 = dma.hbm_to_vmem [thread:$0]  (!%p6433_p6), %s7116_s14, 16, %s587_s25, [#allocation26]  }
 0x162   : > { %s4627_s19 = sadd.s32 4294967294, %s6281_s24   ;;  %s6722_s0 = sadd.s32 1, %s6281_s24  }
 0x163   : > { %s47_s21 = ssub.s32 %s6281_s24, %s6722_s0  ;;  %p58_p1 = scmp.eq.s32.totalorder %s6281_s24, 0 }
 0x164   : > { %p48_p11 = scmp.eq.s32.totalorder %s47_s21, 0  ;;  %p387_p5 = scmp.eq.s32.totalorder %s4627_s19, 1 }
 0x165   : > { %s50_s28 = sadd.s32 1, %s7151_s22  ;;  %p57_p8 = scmp.ne.s32.totalorder %s7151_s22, %s7152_s27 }
 0x166   : > { %p63_p3 = scmp.ne.s32.totalorder %s7152_s27, %s7153_s29  ;;  %p381_p12 = scmp.eq.s32.totalorder %s7154_s20, 1 }
 0x167   : > { %s6734_s16 = scalar_select %p48_p11, %s7151_s22, %s50_s28  }
 0x168   : > { %p59_p13 = por %p58_p1, %p57_p8  ;;  %p7155_p0 = scmp.eq.s32.totalorder %s7154_s20, 0 }
 0x169   : > { %p6742_p6 = por %p381_p12, %p57_p8  ;;  %p5454_p7 = scmp.lt.s32.totalorder %s6281_s24, 2 }
 0x16a   : > { %p6738_p2 = por %p7155_p0, %p63_p3  ;;  %s597_s15 = sand.u32 1, %s7151_s22  }
 0x16b   : > { %s7157_s25 = scalar_select %p6742_p6, 1, 0 }
 0x16c   : > { %p6748_p9 = por %p387_p5, %p63_p3  ;;  %s4644_s30 = sshll.u32 %s597_s15, 2 }
 0x16d   : > { %s4645_s1 = sshll.u32 %s6281_s24, 6  ;;  %s7159_s27 = sld [smem:[#allocation46_spill]] }
 0x16e   : > { %s7158_s26 = scalar_select %p6748_p9, 1, 0 }
 0x16f   : > { %s601_s20 = scalar_lea.vmem [#allocation4], %s4644_s30  ;;  %p6758_p4 = pnand %p5454_p7, %p59_p13 }
 0x170   : > { %s608_s28 = sshll.u32 %s601_s20, 4  ;;  %s598_s22 = scalar_lea.sflag [#allocation5], %s597_s15  ;;  %s6762_s28 = int_to_ptr.vmem [resolvable:$true] %s608_s28 }
 0x171   : > { %p6127_p8 = pneg %p6758_p4 }
 0x173   : > { %s6756_s29 = scalar_lea.hbm %s7159_s27, %s4645_s1  ;;  %s6130_s18 = scalar_lea.hbm %s7159_s27, 128 }
 0x174   : > { %s6125_s21 = scalar_lea.hbm %s6756_s29, 64  ;;  %p6131_p3 = scmp.lt.u32.totalorder %s6756_s29, %s7159_s27 }
 0x175   : > { %p6126_p10 = scmp.ne.s32.totalorder %s6756_s29, %s6125_s21  ;;  %p6132_p12 = scmp.lt.u32.totalorder %s6130_s18, %s6125_s21 }
 0x176   : > { %p6134_p0 = scmp.lt.u32.totalorder %s6125_s21, %s6756_s29 }
 0x177   : > { %p6128_p11 = pnand %p6127_p8, %p6126_p10  ;;  %p6133_p13 = por %p6132_p12, %p6131_p3 }
 0x179   : > { %p6129_p1 = pneg %p6128_p11  ;;  %p6135_p5 = por %p6134_p0, %p6133_p13 }
 0x17b   : > { %p6136_p7 = pnand %p6135_p5, %p6129_p1 }
 0x17d   : > { %6139 = shalt.err (!%p6136_p7)
}
 0x17e   : > { %s6140_s15 = scalar_lea.vmem %s6762_s28, 64  ;;  %s6302_s1 = smov [#allocation4]  }
 0x17f   : > { %p6141_p10 = scmp.ne.s32.totalorder %s6762_s28, %s6140_s15  ;;  %s6145_s30 = sshll.u32 %s6302_s1, 4  ;;  %s6146_s30 = int_to_ptr.vmem [resolvable:$false] %s6145_s30 }
 0x180   : > { %s6147_s17 = scalar_lea.vmem %s6146_s30, 128  ;;  %p6148_p6 = scmp.lt.s32.totalorder %s6762_s28, %s6146_s30 }
 0x181   : > { %p6143_p11 = pnand %p6141_p10, %p6127_p8  ;;  %p6149_p3 = scmp.lt.s32.totalorder %s6147_s17, %s6140_s15 }
 0x183   : > { %p6144_p9 = pneg %p6143_p11  ;;  %p6150_p12 = por %p6149_p3, %p6148_p6 }
 0x185   : > { %p6151_p13 = pnand %p6150_p12, %p6144_p9 }
 0x187   : > { %6154 = shalt.err (!%p6151_p13)
}
 0x188   : > { %5432 = dma.hbm_to_vmem [thread:$0]  (!%p6758_p4), %s6756_s29, 64, %s6762_s28, %s598_s22  }
 0x189   : > { %s7161_s21 = sld [smem:[#allocation45_spill]] }
 0x18f   : > { %p7162_p1 = scmp.ne.s32.totalorder %s7161_s21, 0 }
 0x190   : > { %s7163_s18 = sld [smem:[#allocation42_spill]] (!%p7162_p1) }
 0x191   : > { %617 = sbr.rel (%p7162_p1) target bundleno = 3315 (0xcf3), region = 80 }
 0x196   : > { %s6792_s20 = sand.u32 (!%p7162_p1), 1, %s7163_s18  }
 0x197   : > { %s4647_s1 = sshll.u32 (!%p7162_p1), %s6792_s20, 2  ;;  %s620_s15 = scalar_lea.sflag (!%p7162_p1), [#allocation5], %s6792_s20 }
 0x198   : > { %s6798_s30 = scalar_lea.vmem [#allocation4], %s4647_s1 }
 0x199   : > { %6228 = dma.done.wait (%p6738_p2), %s620_s15, 64  }
 0x19a   : > { %6230 = vsyncadd (%p6738_p2), %s620_s15, 4294967232  ;;  %s7164_s29 = sld [smem:[#allocation44_spill]] }
 0x1a0   : > { %p7165_p6 = scmp.eq.s32.totalorder %s7164_s29, 0 }
 0x1a2   : > { %6232 = dma.done.wait (%p7165_p6), [#allocation8], 3120   ;;  %p7166_p9 = pmov %p7165_p6 }
 0x1a3   : > { %p7167_p4 = pmov %p7165_p6 }
 0x1a4   : > { %6234 = vsyncadd (%p7166_p9), [#allocation8], 4294964176 }
 0x1a5   : > { %6236 = dma.done.wait (%p7167_p4), [#allocation11], 1040   ;;  %p7168_p8 = pmov %p7167_p4 }
 0x1a6   : > { %p7169_p0 = pmov %p7167_p4 }
 0x1a7   : > { %6238 = vsyncadd (%p7168_p8), [#allocation11], 4294966256 }
 0x1a8   : > { %6240 = dma.done.wait (%p7169_p0), [#allocation14], 32   ;;  %p7170_p5 = pmov %p7169_p0 }
 0x1a9   : > { %p7171_p2 = pmov %p7169_p0 }
 0x1aa   : > { %6242 = vsyncadd (%p7170_p5), [#allocation14], 4294967264 }
 0x1ab   : > { %6244 = dma.done.wait (%p7171_p2), [#allocation17], 16640   ;;  %p7172_p7 = pmov %p7169_p0 }
 0x1ac   : > { %p7173_p10 = pmov %p7169_p0 }
 0x1ad   : > { %6246 = vsyncadd (%p7172_p7), [#allocation17], 4294950656 }
 0x1ae   : > { %6248 = dma.done.wait (%p7173_p10), [#allocation20], 16400   ;;  %p7174_p11 = pmov %p7169_p0 }
 0x1af   : > { %p7175_p3 = pmov %p7169_p0 }
 0x1b0   : > { %6250 = vsyncadd (%p7174_p11), [#allocation20], 4294950896 }
 0x1b1   : > { %6252 = dma.done.wait (%p7175_p3), [#allocation23], 32   ;;  %p7176_p12 = pmov %p7169_p0 }
 0x1b2   : > { %p7177_p13 = pmov %p7169_p0 }
 0x1b3   : > { %6254 = vsyncadd (%p7176_p12), [#allocation23], 4294967264 }
 0x1b4   : > { %6256 = dma.done.wait (%p7177_p13), [#allocation26], 1040   ;;  %p7178_p1 = pmov %p7169_p0 }
 0x1b5   : > { %v6303_v0 = vmov 0   ;;  %v5527_v1 = vld [vmem:[#allocation7 + $0x4] ss:$12 sps:$4 sm:$0xff]   ;;  %v5529_v2 = vld [vmem:[#allocation7] ss:$12 sps:$4 sm:$0xff]   ;;  %v6304_v18 = vmov 0.0   ;;  %v769_v19 = vlaneseq }
 0x1b6   : > { %6258 = vsyncadd (%p7178_p1), [#allocation26], 4294966256  ;;  %944 = vmatprep.mubr.bf16.mxu0 %v6303_v0  ;;  %912 = vmatprep.subr.bf16.mxu0 %v5527_v1  ;;  %v5530_v3 = vld [vmem:[#allocation7 + $0x1c] ss:$12 sps:$4 sm:$0xff]   ;;  %v5532_v4 = vld [vmem:[#allocation7 + $0x18] ss:$12 sps:$4 sm:$0xff]  }
 0x1b7   : > { %913 = vmatpush1.bf16.msra.mxu0 %v5529_v2  ;;  %v5533_v5 = vld [vmem:[#allocation7 + $0x34] ss:$12 sps:$4 sm:$0xff]   ;;  %v5535_v6 = vld [vmem:[#allocation7 + $0x30] ss:$12 sps:$4 sm:$0xff]   ;;  %v5536_v7 = vld [vmem:[#allocation7 + $0x4c] ss:$12 sps:$4 sm:$0xff]   ;;  %5216 = vmatprep.subr.bf16.mxu1 %v6304_v18 }
 0x1b8   : > { %914 = vmatprep.subr.bf16.mxu0 %v5530_v3  ;;  %v5538_v8 = vld [vmem:[#allocation7 + $0x48] ss:$12 sps:$4 sm:$0xff]   ;;  %v5539_v9 = vld [vmem:[#allocation7 + $0x64] ss:$12 sps:$4 sm:$0xff]   ;;  %v5541_v10 = vld [vmem:[#allocation7 + $0x60] ss:$12 sps:$4 sm:$0xff]  }
 0x1b9   : > { %v5542_v11 = vld [vmem:[#allocation7 + $0x7c] ss:$12 sps:$4 sm:$0xff]   ;;  %v5544_v12 = vld [vmem:[#allocation7 + $0x78] ss:$12 sps:$4 sm:$0xff]   ;;  %v5545_v13 = vld [vmem:[#allocation7 + $0x94] ss:$12 sps:$4 sm:$0xff]  }
 0x1ba   : > { %v5547_v14 = vld [vmem:[#allocation7 + $0x90] ss:$12 sps:$4 sm:$0xff]   ;;  %v5548_v15 = vld [vmem:[#allocation7 + $0xac] ss:$12 sps:$4 sm:$0xff]   ;;  %v5550_v16 = vld [vmem:[#allocation7 + $0xa8] ss:$12 sps:$4 sm:$0xff]  }
 0x1bb   : > { %915 = vmatpush1.bf16.msra.mxu0 %v5532_v4  ;;  %v6834_v17 = vld [vmem:[%s6798_s30] sm:$0xf]  ;;  %vm6305_vm0 = vmmov 0   ;;  %v6843_v20 = vshrl.u32 %v769_v19, 7  ;;  %v6848_v22 = vld [vmem:[#allocation9] sm:$0x7] }
 0x1bc   : > { %916 = vmatprep.subr.bf16.mxu0 %v5533_v5  ;;  %5232 = vmatprep.mubr.msk.bf16.mxu1 %vm6305_vm0, %v6304_v18  ;;  %vm1011_vm1 = vcmask 261120   ;;  %s6306_s23 = smov 64   ;;  %s6307_s28 = smov 96   ;;  %v5557_v42 = vld [vmem:[#allocation7 + $0x8] ss:$12 sps:$4 sm:$0xff]   ;;  %vm1059_vm2 = vcmask 64512  }
 0x1bd   : > { %v6846_v21 = vsub.s32 0, %v6843_v20  ;;  %v6851_v23 = vsub.s32 1, %v6843_v20  ;;  %s6308_s19 = smov 32   ;;  %5217 = vmatpush3.bf16.msra.mxu1 %v5557_v42  ;;  %v5558_v43 = vld [vmem:[#allocation7 + $0x20] ss:$12 sps:$4 sm:$0xff]   ;;  %v6896_v2 = vsub.s32 2, %v6843_v20 }
 0x1be   : > { %5218 = vmatprep.subr.bf16.mxu1 %v6304_v18  ;;  %v5559_v44 = vld [vmem:[#allocation7 + $0x38] ss:$12 sps:$4 sm:$0xff]   ;;  %v5560_v45 = vld [vmem:[#allocation7 + $0x50] ss:$12 sps:$4 sm:$0xff]   ;;  %v5561_v46 = vld [vmem:[#allocation7 + $0x68] ss:$12 sps:$4 sm:$0xff]  }
 0x1bf   : > { %917 = vmatpush1.bf16.msra.mxu0 %v5535_v6  ;;  %v772_v24 = vrot.slane %v6848_v22, %v6846_v21  ;;  %v776_v25 = vrot.slane %v6848_v22, %v6851_v23  ;;  %v5562_v47 = vld [vmem:[#allocation7 + $0x80] ss:$12 sps:$4 sm:$0xff]   ;;  %v5563_v48 = vld [vmem:[#allocation7 + $0x98] ss:$12 sps:$4 sm:$0xff]   ;;  %v5564_v49 = vld [vmem:[#allocation7 + $0xb0] ss:$12 sps:$4 sm:$0xff]   ;;  %v780_v3 = vrot.slane %v6848_v22, %v6896_v2 }
 0x1c0   : > { %918 = vmatprep.subr.bf16.mxu0 %v5536_v7  ;;  %vm1075_vm3 = vcmask 1043456   ;;  %vm1120_vm4 = vcmask 257024   ;;  %vm1252_vm5 = vcmask 519424   ;;  %vm1384_vm6 = vcmask 781824   ;;  %s725_s22 = scalar_lea.vmem [#allocation28], %s4647_s1  ;;  %s4988_s17 = sshll.u32 %s7164_s29, 6 }
 0x1c1   : > { %5219 = vmatpush3.bf16.msra.mxu1 %v5558_v43  ;;  %vm1516_vm7 = vcmask 1044224   ;;  %s7179_s15 = sld [smem:[#allocation50_spill]]  ;;  %p7180_p9 = scmp.ne.s32.totalorder %s7157_s25, 0 }
 0x1c2   : > { %5220 = vmatprep.subr.bf16.mxu1 %v6304_v18  ;;  %s6309_s2 = smov [#allocation28]  }
 0x1c3   : > { %919 = vmatpush1.bf16.msra.mxu0 %v5538_v8  ;;  %s6159_s3 = sshll.u32 %s6309_s2, 4  ;;  %s6160_s3 = int_to_ptr.vmem [resolvable:$false] %s6159_s3 }
 0x1c4   : > { %920 = vmatprep.subr.bf16.mxu0 %v5539_v9  ;;  %s6161_s1 = scalar_lea.vmem %s6160_s3, 128 }
 0x1c5   : > { %5221 = vmatpush3.bf16.msra.mxu1 %v5559_v44 }
 0x1c6   : > { %5222 = vmatprep.subr.bf16.mxu1 %v6304_v18 }
 0x1c7   : > { %921 = vmatpush1.bf16.msra.mxu0 %v5541_v10 }
 0x1c8   : > { %922 = vmatprep.subr.bf16.mxu0 %v5542_v11 }
 0x1c9   : > { %5223 = vmatpush3.bf16.msra.mxu1 %v5560_v45 }
 0x1ca   : > { %5224 = vmatprep.subr.bf16.mxu1 %v6304_v18 }
 0x1cb   : > { %923 = vmatpush1.bf16.msra.mxu0 %v5544_v12 }
 0x1cc   : > { %924 = vmatprep.subr.bf16.mxu0 %v5545_v13 }
 0x1cd   : > { %5225 = vmatpush3.bf16.msra.mxu1 %v5561_v46 }
 0x1ce   : > { %5226 = vmatprep.subr.bf16.mxu1 %v6304_v18 }
 0x1cf   : > { %925 = vmatpush1.bf16.msra.mxu0 %v5547_v14 }
 0x1d0   : > { %926 = vmatprep.subr.bf16.mxu0 %v5548_v15 }
 0x1d1   : > { %5227 = vmatpush3.bf16.msra.mxu1 %v5562_v47 }
 0x1d2   : > { %5228 = vmatprep.subr.bf16.mxu1 %v6304_v18 }
 0x1d3   : > { %927 = vmatpush1.bf16.msra.mxu0 %v5550_v16 }
 0x1d4   : > { %5236 = vmatprep.subr.bf16.mxu0 %v6304_v18 }
 0x1d5   : > { %5229 = vmatpush3.bf16.msra.mxu1 %v5563_v48 }
 0x1d6   : > { %945 = vmatmul.mubr.bf16.vlgmr.msra.gmra.mrb[0].mxu0 %v6834_v17  ;;  %5230 = vmatprep.subr.bf16.mxu1 %v6304_v18 }
 0x1d7   : > { %5238 = vmatprep.mubr.msk.bf16.mxu0 %vm6305_vm0, %v6304_v18 }
 0x1d9   : > { %5231 = vmatpush3.bf16.msra.mxu1 %v5564_v49 }
 0x1da   : > { %5242 = vmatprep.subr.bf16.mxu1 %v6304_v18 }
 0x1dc   : > { %5233 = vmatmul.mubr.bf16.vlgmr.msra.gmra.mrb[0].mxu1 %v6834_v17 }
 0x1dd   : > { %5244 = vmatprep.mubr.msk.bf16.mxu1 %vm6305_vm0, %v6304_v18 }
 0x2a9   : > { %v946_v26 = vpop.f32.mrb[0].mxu0 }
 0x2aa   : > { %v947_v27 = vadd.f32 %v946_v26, %v772_v24  ;;  %v948_v28 = vpop.f32.mrb[1].mxu0 }
 0x2ab   : > { %v949_v29 = vadd.f32 %v948_v28, %v776_v25  ;;  %v950_v30 = vpop.f32.mrb[2].mxu0 }
 0x2ac   : > { %v951_v31 = vpop.f32.mrb[3].mxu0 }
 0x2ad   : > { %v4992_v32 = vpack.c.bf16 %v949_v29, %v947_v27 }
 0x2af   : > { %1006 = vst [vmem:[#allocation2] sm:$0xff] %v4992_v32  ;;  %v987_v4 = vpop.f32.mrb[0].mxu1 }
 0x2b0   : > { %v988_v5 = vadd.f32 %v987_v4, %v780_v3  ;;  %v5234_v6 = vpop.f32.mrb[1].mxu1 }
 0x2b1   : > { %v990_v7 = vpop.f32.mrb[2].mxu1 }
 0x2b2   : > { %v4993_v8 = vpack.c.bf16 %v988_v5, %v988_v5  ;;  %v5235_v9 = vpop.f32.mrb[3].mxu1 }
 0x2b4   : > { %1007 = vst [vmem:[#allocation2 + $0x8] sm:$0xf] %v4993_v8 }
 0x2b6   : > { %v1009_v33 = vld [vmem:[#allocation2 + $0x4] sm:$0xf]  ;;  %v5553_v37 = vld [vmem:[#allocation2] ss:$0 sps:$4 sm:$0xff]  }
 0x2b7   : > { %v5551_v34 = vld [vmem:[#allocation2 + $0x4] ss:$0 sps:$4 sm:$0xff]   ;;  %v1016_v35 = vsel %vm1011_vm1, %v1009_v33, 0  ;;  %v5554_v38 = vld [vmem:[#allocation2] ss:$0 sps:$4 sm:$0xff]  }
 0x2b8   : > { %v5552_v36 = vld [vmem:[#allocation2 + $0x4] ss:$0 sps:$4 sm:$0xff]   ;;  %5237 = vmatpush3.bf16.xpose.msra.mxu0 %v1016_v35  ;;  %1265 = vrot.lane.b32.xlu1 %v5551_v34, %s6306_s23  ;;  %v1008_v39 = vld [vmem:[#allocation2] sm:$0xf] }
 0x2b9   : > { %1133 = vrot.lane.b32.xlu0 %v5552_v36, %s6307_s28  ;;  %5248 = vmatprep.subr.bf16.mxu0 %v6304_v18  ;;  %v5555_v40 = vld [vmem:[#allocation2] ss:$0 sps:$4 sm:$0xff]   ;;  %v5556_v41 = vld [vmem:[#allocation2 + $0x4] ss:$0 sps:$4 sm:$0xff]  }
 0x2bb   : > { %v1010_v16 = vld [vmem:[#allocation2 + $0x8] sm:$0xf] }
 0x2bc   : > { %1260 = vrot.lane.b32.xlu1 %v5553_v37, %s6306_s23  ;;  %v1077_v17 = vsel %vm1075_vm3, %v1010_v16, 0 }
 0x2bd   : > { %1128 = vrot.lane.b32.xlu0 %v5554_v38, %s6307_s28  ;;  %5243 = vmatpush3.bf16.msra.mxu1 %v1077_v17 }
 0x2be   : > { %5254 = vmatprep.subr.bf16.mxu1 %v6304_v18 }
 0x2bf   : > { %5239 = vmatmul.mubr.msk.bf16.vlgmr.msra.gmra.mrb[4].mxu0 %vm1011_vm1, %v1008_v39  ;;  %v5565_v39 = vld [vmem:[#allocation2 + $0x8] ss:$0 sps:$4 sm:$0xff]  }
 0x2c0   : > { %1392 = vrot.lane.b32.xlu1 %v5555_v40, %s6308_s19  ;;  %5250 = vmatprep.mubr.msk.bf16.mxu0 %vm6305_vm0, %v6304_v18 }
 0x2c1   : > { %1397 = vrot.lane.b32.xlu0 %v5556_v41, %s6308_s19 }
 0x32a   : > { %v1266_v52 = vpop.permute.xlu1 %1265 }
 0x32b   : > { %v1134_v50 = vpop.permute.xlu0 %1133  ;;  %v1271_v54 = vsel %vm1011_vm1, %v1266_v52, 0 }
 0x32c   : > { %v1139_v51 = vsel %vm1011_vm1, %v1134_v50, 0 }
 0x32d   : > { %5249 = vmatpush3.bf16.xpose.msra.mxu0 %v1139_v51 }
 0x32e   : > { %5260 = vmatprep.subr.bf16.mxu0 %v6304_v18  ;;  %v1261_v56 = vpop.permute.xlu1 %1260 }
 0x32f   : > { %v1129_v53 = vpop.permute.xlu0 %1128 }
 0x332   : > { %v1393_v58 = vpop.permute.xlu1 %1392 }
 0x333   : > { %v1398_v55 = vpop.permute.xlu0 %1397 }
 0x334   : > { %5251 = vmatmul.mubr.msk.bf16.vlgmr.msra.gmra.mrb[8].mxu0 %vm1011_vm1, %v1129_v53  ;;  %v1403_v57 = vsel %vm1011_vm1, %v1398_v55, 0  ;;  %v5566_v55 = vld [vmem:[#allocation2 + $0x8] ss:$0 sps:$4 sm:$0xff]  }
 0x335   : > { %5261 = vmatpush3.bf16.xpose.msra.mxu0 %v1271_v54  ;;  %5262 = vmatprep.mubr.msk.bf16.mxu0 %vm6305_vm0, %v6304_v18 }
 0x336   : > { %5272 = vmatprep.subr.bf16.mxu0 %v6304_v18 }
 0x33c   : > { %5263 = vmatmul.mubr.msk.bf16.vlgmr.msra.gmra.mrb[12].mxu0 %vm1011_vm1, %v1261_v56 }
 0x33d   : > { %5273 = vmatpush3.bf16.xpose.msra.mxu0 %v1403_v57  ;;  %5274 = vmatprep.mubr.msk.bf16.mxu0 %vm6305_vm0, %v6304_v18 }
 0x33e   : > { %5284 = vmatprep.subr.bf16.mxu0 %v6304_v18 }
 0x344   : > { %5275 = vmatmul.mubr.msk.bf16.vlgmr.msra.gmra.mrb[16].mxu0 %vm1011_vm1, %v1393_v58 }
 0x345   : > { %5300 = vmatprep.mubr.msk.bf16.mxu0 %vm6305_vm0, %v6304_v18 }
 0x392   : > { %v1052_v59 = vpop.f32.mrb[4].mxu0 }
 0x393   : > { %v1058_v60 = vmul.f32 0.17677669, %v1052_v59  ;;  %v5240_v61 = vpop.f32.mrb[5].mxu0 }
 0x394   : > { %v1055_v62 = vpop.f32.mrb[6].mxu0 }
 0x395   : > { %v5241_v63 = vpop.f32.mrb[7].mxu0  ;;  %v1060_v1 = vsel %vm1059_vm2, %v1058_v60, -inf }
 0x396   : > { %1061 = vmax.xlane.f32.xlu0 %v1060_v1 }
 0x407   : > { %v1175_v10 = vpop.f32.mrb[8].mxu0 }
 0x408   : > { %v1181_v11 = vmul.f32 0.17677669, %v1175_v10  ;;  %v5252_v12 = vpop.f32.mrb[9].mxu0 }
 0x409   : > { %v1178_v13 = vpop.f32.mrb[10].mxu0 }
 0x40a   : > { %v5253_v14 = vpop.f32.mrb[11].mxu0  ;;  %v1182_v15 = vsel %vm1059_vm2, %v1181_v11, -inf }
 0x40b   : > { %1183 = vmax.xlane.f32.xlu1 %v1182_v15 }
 0x40f   : > { %v1307_v19 = vpop.f32.mrb[12].mxu0 }
 0x410   : > { %v1313_v22 = vmul.f32 0.17677669, %v1307_v19  ;;  %v5264_v24 = vpop.f32.mrb[13].mxu0 }
 0x411   : > { %v1310_v25 = vpop.f32.mrb[14].mxu0 }
 0x412   : > { %v5265_v26 = vpop.f32.mrb[15].mxu0  ;;  %v1314_v27 = vsel %vm1059_vm2, %v1313_v22, -inf }
 0x413   : > { %1315 = vmax.xlane.f32.xlu0 %v1314_v27  ;;  %v5568_v26 = vld [vmem:[#allocation10] sm:$0xff]   ;;  %v5569_v27 = vld [vmem:[#allocation10 + $0x8] sm:$0xff]  }
 0x414   : > { %5285 = vmatpush3.bf16.msra.mxu0 %v5568_v26 }
 0x415   : > { %5286 = vmatprep.subr.bf16.mxu0 %v6304_v18 }
 0x417   : > { %v1439_v28 = vpop.f32.mrb[16].mxu0 }
 0x418   : > { %v1445_v29 = vmul.f32 0.17677669, %v1439_v28  ;;  %v5276_v30 = vpop.f32.mrb[17].mxu0  ;;  %5287 = vmatpush3.bf16.msra.mxu0 %v5569_v27  ;;  %v5570_v28 = vld [vmem:[#allocation10 + $0x10] sm:$0xff]  }
 0x419   : > { %v1442_v31 = vpop.f32.mrb[18].mxu0  ;;  %5288 = vmatprep.subr.bf16.mxu0 %v6304_v18  ;;  %v5572_v30 = vld [vmem:[#allocation10 + $0x20] sm:$0xff]  }
 0x41a   : > { %v5277_v32 = vpop.f32.mrb[19].mxu0  ;;  %v1446_v33 = vsel %vm1059_vm2, %v1445_v29, -inf }
 0x41b   : > { %1447 = vmax.xlane.f32.xlu0 %v1446_v33 }
 0x41c   : > { %5289 = vmatpush3.bf16.msra.mxu0 %v5570_v28 }
 0x41d   : > { %5290 = vmatprep.subr.bf16.mxu0 %v6304_v18 }
 0x423   : > { %v1062_v34 = vpop.xlane.xlu0 %1061 }
 0x424   : > { %v1063_v35 = vsub.f32 %v1058_v60, %v1062_v34  ;;  %v5567_v60 = vld [vmem:[#allocation2 + $0x8] ss:$0 sps:$4 sm:$0xff]  }
 0x425   : > { %v5573_v34 = vld [vmem:[#allocation10 + $0x28] sm:$0xff]  }
 0x426   : > { %v1064_v36 = vmul.f32 1.442695, %v1063_v35 }
 0x428   : > { %5712 = vpow2.f32 %v1064_v36 }
 0x432   : > { %v5713_v37 = vpop.eup %5712 }
 0x433   : > { %v1066_v38 = vsel %vm1059_vm2, %v5713_v37, 0.0 }
 0x434   : > { %1067 = vadd.xlane.f32.xlu1 %v1066_v38 }
 0x445   : > { %1197 = vrot.lane.b32.xlu1 %v5565_v39, %s6307_s28  ;;  %v5575_v39 = vld [vmem:[#allocation10 + $0x38] sm:$0xff]  }
 0x498   : > { %v1184_v40 = vpop.xlane.xlu1 %1183 }
 0x499   : > { %v1185_v41 = vsub.f32 %v1181_v11, %v1184_v40 }
 0x49b   : > { %v1186_v42 = vmul.f32 1.442695, %v1185_v41 }
 0x49d   : > { %5714 = vpow2.f32 %v1186_v42 }
 0x4a0   : > { %v1316_v43 = vpop.xlane.xlu0 %1315 }
 0x4a1   : > { %v1317_v44 = vsub.f32 %v1313_v22, %v1316_v43 }
 0x4a3   : > { %v1318_v45 = vmul.f32 1.442695, %v1317_v44 }
 0x4a5   : > { %5716 = vpow2.f32 %v1318_v45 }
 0x4a7   : > { %v5715_v46 = vpop.eup %5714 }
 0x4a8   : > { %v1448_v47 = vpop.xlane.xlu0 %1447  ;;  %v1188_v48 = vsel %vm1059_vm2, %v5715_v46, 0.0 }
 0x4a9   : > { %v1449_v49 = vsub.f32 %v1445_v29, %v1448_v47  ;;  %1189 = vadd.xlane.f32.xlu0 %v1188_v48  ;;  %v5571_v29 = vld [vmem:[#allocation10 + $0x18] sm:$0xff]  }
 0x4aa   : > { %5291 = vmatpush3.bf16.msra.mxu0 %v5571_v29 }
 0x4ab   : > { %v1450_v50 = vmul.f32 1.442695, %v1449_v49  ;;  %5292 = vmatprep.subr.bf16.mxu0 %v6304_v18 }
 0x4ad   : > { %5718 = vpow2.f32 %v1450_v50 }
 0x4ae   : > { %5293 = vmatpush3.bf16.msra.mxu0 %v5572_v30 }
 0x4af   : > { %v5717_v51 = vpop.eup %5716  ;;  %5294 = vmatprep.subr.bf16.mxu0 %v6304_v18 }
 0x4b0   : > { %v1320_v52 = vsel %vm1059_vm2, %v5717_v51, 0.0 }
 0x4b1   : > { %1321 = vadd.xlane.f32.xlu1 %v1320_v52 }
 0x4b2   : > { %5295 = vmatpush3.bf16.msra.mxu0 %v5573_v34  ;;  %v1710_v34 = vld [vmem:[#allocation16 + $0x188] sm:$0xff] }
 0x4b3   : > { %5296 = vmatprep.subr.bf16.mxu0 %v6304_v18 }
 0x4b7   : > { %v5719_v53 = vpop.eup %5718 }
 0x4b8   : > { %v1452_v54 = vsel %vm1059_vm2, %v5719_v53, 0.0 }
 0x4b9   : > { %1453 = vadd.xlane.f32.xlu0 %v1452_v54 }
 0x4c1   : > { %v1068_v56 = vpop.xlane.xlu1 %1067 }
 0x4c2   : > { %5720 = vrcp.f32 %v1068_v56  ;;  %1461 = vrot.lane.b32.xlu1 %v5566_v55, %s6308_s19  ;;  %v4717_v56 = vld [vmem:[#allocation12] ss:$0 sm:$0xff] }
 0x4c5   : > { %v1198_v58 = vpop.permute.xlu1 %1197 }
 0x4c6   : > { %v1203_v62 = vsel %vm1075_vm3, %v1198_v58, 0 }
 0x4cc   : > { %v5721_v57 = vpop.eup %5720 }
 0x4cd   : > { %v1070_v59 = vmul.f32 %v5721_v57, %v5713_v37  ;;  %v5574_v37 = vld [vmem:[#allocation10 + $0x30] sm:$0xff]  }
 0x4ce   : > { %5297 = vmatpush3.bf16.msra.mxu0 %v5574_v37 }
 0x4cf   : > { %1329 = vrot.lane.b32.xlu0 %v5567_v60, %s6306_s23  ;;  %v1071_v61 = vpack.c.bf16 %v1070_v59, %v1070_v59  ;;  %5298 = vmatprep.subr.bf16.mxu0 %v6304_v18 }
 0x4d1   : > { %5245 = vmatmul.mubr.msk.bf16.vlgmr.msra.gmra.mrb[4].mxu1 %vm1059_vm2, %v1071_v61 }
 0x4d2   : > { %5255 = vmatpush3.bf16.msra.mxu1 %v1203_v62  ;;  %5256 = vmatprep.mubr.msk.bf16.mxu1 %vm6305_vm0, %v6304_v18  ;;  %v1661_v62 = vld [vmem:[#allocation16] sm:$0xff] }
 0x4d3   : > { %5266 = vmatprep.subr.bf16.mxu1 %v6304_v18  ;;  %5299 = vmatpush3.bf16.msra.mxu0 %v5575_v39 }
 0x536   : > { %v1190_v63 = vpop.xlane.xlu0 %1189 }
 0x537   : > { %5722 = vrcp.f32 %v1190_v63  ;;  %v1669_v63 = vld [vmem:[#allocation16 + $0x40] sm:$0xff] }
 0x53e   : > { %v1322_v1 = vpop.xlane.xlu1 %1321 }
 0x53f   : > { %5724 = vrcp.f32 %v1322_v1  ;;  %v1662_v1 = vld [vmem:[#allocation16 + $0x8] sm:$0xff] }
 0x541   : > { %v5723_v3 = vpop.eup %5722 }
 0x542   : > { %v1192_v4 = vmul.f32 %v5723_v3, %v5715_v46  ;;  %v1462_v11 = vpop.permute.xlu1 %1461  ;;  %v4720_v3 = vcombine.low %v1661_v62, %v1669_v63 }
 0x543   : > { %v1467_v13 = vsel %vm1075_vm3, %v1462_v11, 0  ;;  %v1678_v11 = vld [vmem:[#allocation16 + $0x88] sm:$0xff] }
 0x544   : > { %v1193_v5 = vpack.c.bf16 %v1192_v4, %v1192_v4  ;;  %v4721_v4 = vcombine.high %v1661_v62, %v1669_v63 }
 0x546   : > { %5257 = vmatmul.mubr.msk.bf16.vlgmr.msra.gmra.mrb[8].mxu1 %vm1059_vm2, %v1193_v5  ;;  %v1454_v6 = vpop.xlane.xlu0 %1453  ;;  %v1670_v5 = vld [vmem:[#allocation16 + $0x48] sm:$0xff] }
 0x547   : > { %5726 = vrcp.f32 %v1454_v6  ;;  %5268 = vmatprep.mubr.msk.bf16.mxu1 %vm6305_vm0, %v6304_v18  ;;  %v1677_v6 = vld [vmem:[#allocation16 + $0x80] sm:$0xff] }
 0x549   : > { %v5725_v7 = vpop.eup %5724 }
 0x54a   : > { %v1324_v8 = vmul.f32 %v5725_v7, %v5717_v51  ;;  %v1330_v9 = vpop.permute.xlu0 %1329  ;;  %v1685_v7 = vld [vmem:[#allocation16 + $0xc0] sm:$0xff] }
 0x54b   : > { %v1335_v10 = vsel %vm1075_vm3, %v1330_v9, 0  ;;  %v4723_v9 = vcombine.high %v1662_v1, %v1670_v5 }
 0x54c   : > { %5267 = vmatpush3.bf16.msra.mxu1 %v1335_v10  ;;  %v1325_v12 = vpack.c.bf16 %v1324_v8, %v1324_v8  ;;  %v4722_v8 = vcombine.low %v1662_v1, %v1670_v5  ;;  %v4737_v10 = vcombine.high %v1677_v6, %v1685_v7  ;;  %v1773_v1 = vld [vmem:[#allocation16 + $0x380] sm:$0xff] }
 0x54d   : > { %5278 = vmatprep.subr.bf16.mxu1 %v6304_v18  ;;  %2554 = vmatprep.subr.bf16.mxu0 %v4723_v9 }
 0x54f   : > { %5269 = vmatmul.mubr.msk.bf16.vlgmr.msra.gmra.mrb[12].mxu1 %vm1059_vm2, %v1325_v12  ;;  %v1686_v12 = vld [vmem:[#allocation16 + $0xc8] sm:$0xff] }
 0x550   : > { %5279 = vmatpush3.bf16.msra.mxu1 %v1467_v13  ;;  %5280 = vmatprep.mubr.msk.bf16.mxu1 %vm6305_vm0, %v6304_v18  ;;  %v1693_v13 = vld [vmem:[#allocation16 + $0x100] sm:$0xff] }
 0x551   : > { %v5727_v14 = vpop.eup %5726  ;;  %2513 = vmatprep.subr.bf16.mxu1 %v4721_v4  ;;  %v1774_v4 = vld [vmem:[#allocation16 + $0x388] sm:$0xff] }
 0x552   : > { %v1456_v15 = vmul.f32 %v5727_v14, %v5719_v53  ;;  %v5732_v53 = vld [vmem:[%s6798_s30] sm:$0xf]  ;;  %v4739_v14 = vcombine.high %v1678_v11, %v1686_v12  ;;  %s7033_s30 = scalar_lea.hbm %s7179_s15, %s4988_s17 }
 0x553   : > { %v734_v54 = vunpack.c.l.bf16 %v5732_v53 }
 0x554   : > { %v1457_v16 = vpack.c.bf16 %v1456_v15, %v1456_v15  ;;  %v1701_v15 = vld [vmem:[#allocation16 + $0x140] sm:$0xff] }
 0x555   : > { %v4752_v26 = vcombine.low %v1693_v13, %v1701_v15 }
 0x557   : > { %5281 = vmatmul.mubr.msk.bf16.vlgmr.msra.gmra.mrb[16].mxu1 %vm1059_vm2, %v1457_v16  ;;  %v1694_v16 = vld [vmem:[#allocation16 + $0x108] sm:$0xff] }
 0x558   : > { %2545 = vmatprep.mubr.bf16.mxu1 %v6303_v0  ;;  %2514 = vmatpush1.bf16.msra.mxu1 %v4720_v3  ;;  %v1781_v3 = vld [vmem:[#allocation16 + $0x3c0] sm:$0xff] }
 0x559   : > { %2515 = vmatprep.subr.bf16.mxu1 %v4737_v10  ;;  %v4833_v5 = vcombine.high %v1773_v1, %v1781_v3  ;;  %v1663_v10 = vld [vmem:[#allocation16 + $0x10] sm:$0xff] }
 0x5a4   : > { %v1113_v17 = vpop.f32.mrb[4].mxu1 }
 0x5a5   : > { %v1119_v19 = vpack.c.bf16 %v1113_v17, %v1113_v17  ;;  %v5246_v22 = vpop.f32.mrb[5].mxu1  ;;  %v1702_v17 = vld [vmem:[#allocation16 + $0x148] sm:$0xff] }
 0x5a6   : > { %v1116_v24 = vpop.f32.mrb[6].mxu1  ;;  %v4738_v22 = vcombine.low %v1678_v11, %v1686_v12  ;;  %v4754_v27 = vcombine.low %v1694_v16, %v1702_v17  ;;  %v1671_v11 = vld [vmem:[#allocation16 + $0x50] sm:$0xff]  ;;  %v1664_v12 = vld [vmem:[#allocation16 + $0x18] sm:$0xff] }
 0x5a7   : > { %1121 = vst.msk [vmem:[#allocation3] sm:$0xf] %vm1120_vm4, %v1119_v19  ;;  %v5247_v25 = vpop.f32.mrb[7].mxu1  ;;  %v4736_v19 = vcombine.low %v1677_v6, %v1685_v7  ;;  %v4753_v24 = vcombine.high %v1693_v13, %v1701_v15  ;;  %v1782_v6 = vld [vmem:[#allocation16 + $0x3c8] sm:$0xff]  ;;  %v4832_v7 = vcombine.low %v1773_v1, %v1781_v3  ;;  %v4724_v13 = vcombine.low %v1663_v10, %v1671_v11  ;;  %v1672_v15 = vld [vmem:[#allocation16 + $0x58] sm:$0xff] }
 0x5a8   : > { %v4755_v25 = vcombine.high %v1694_v16, %v1702_v17  ;;  %v4835_v9 = vcombine.high %v1774_v4, %v1782_v6  ;;  %v4726_v16 = vcombine.low %v1664_v12, %v1672_v15  ;;  %v4727_v17 = vcombine.high %v1664_v12, %v1672_v15  ;;  %v1744_v1 = vld [vmem:[#allocation16 + $0x298] sm:$0xff] }
 0x5a9   : > { %2516 = vmatpush1.bf16.msra.mxu1 %v4736_v19  ;;  %v1752_v3 = vld [vmem:[#allocation16 + $0x2d8] sm:$0xff] }
 0x5aa   : > { %2517 = vmatprep.subr.bf16.mxu1 %v4753_v24 }
 0x5ad   : > { %2518 = vmatpush1.bf16.msra.mxu1 %v4752_v26  ;;  %v4718_v26 = vld [vmem:[#allocation13] ss:$0 sm:$0xff] }
 0x619   : > { %v1239_v31 = vpop.f32.mrb[8].mxu1 }
 0x61a   : > { %v4994_v32 = vpack.c.bf16 %v1239_v31, %v1239_v31  ;;  %v5258_v33 = vpop.f32.mrb[9].mxu1 }
 0x61b   : > { %v1242_v35 = vpop.f32.mrb[10].mxu1  ;;  %v1717_v33 = vld [vmem:[#allocation16 + $0x1c0] sm:$0xff] }
 0x61c   : > { %1249 = vrot.lane.b32.xlu1 %v4994_v32, %s6308_s19  ;;  %v5259_v36 = vpop.f32.mrb[11].mxu1  ;;  %v1709_v32 = vld [vmem:[#allocation16 + $0x180] sm:$0xff] }
 0x61d   : > { %v4769_v35 = vcombine.high %v1709_v32, %v1717_v33  ;;  %v1718_v36 = vld [vmem:[#allocation16 + $0x1c8] sm:$0xff]  ;;  %v4768_v37 = vcombine.low %v1709_v32, %v1717_v33  ;;  %v1687_v32 = vld [vmem:[#allocation16 + $0xd0] sm:$0xff]  ;;  %v1680_v33 = vld [vmem:[#allocation16 + $0x98] sm:$0xff] }
 0x61e   : > { %v4771_v39 = vcombine.high %v1710_v34, %v1718_v36 }
 0x61f   : > { %2519 = vmatprep.subr.bf16.mxu1 %v4769_v35 }
 0x620   : > { %2520 = vmatpush1.bf16.msra.mxu1 %v4768_v37 }
 0x622   : > { %v1371_v38 = vpop.f32.mrb[12].mxu1 }
 0x623   : > { %v4995_v40 = vpack.c.bf16 %v1371_v38, %v1371_v38  ;;  %v5270_v41 = vpop.f32.mrb[13].mxu1  ;;  %v4770_v38 = vcombine.low %v1710_v34, %v1718_v36  ;;  %v1688_v34 = vld [vmem:[#allocation16 + $0xd8] sm:$0xff] }
 0x624   : > { %v1374_v42 = vpop.f32.mrb[14].mxu1  ;;  %v1733_v41 = vld [vmem:[#allocation16 + $0x240] sm:$0xff] }
 0x625   : > { %1381 = vrot.lane.b32.xlu0 %v4995_v40, %s6306_s23  ;;  %v5271_v43 = vpop.f32.mrb[15].mxu1  ;;  %v1725_v40 = vld [vmem:[#allocation16 + $0x200] sm:$0xff]  ;;  %v1726_v42 = vld [vmem:[#allocation16 + $0x208] sm:$0xff]  ;;  %s4383_s23 = sshll.u32 %s725_s22, 4  ;;  %s4384_s23 = int_to_ptr.vmem [resolvable:$true] %s4383_s23 }
 0x626   : > { %v4785_v43 = vcombine.high %v1725_v40, %v1733_v41  ;;  %s6155_s19 = scalar_lea.vmem %s4384_s23, 64  ;;  %p6162_p0 = scmp.lt.s32.totalorder %s4384_s23, %s6160_s3 }
 0x627   : > { %p6156_p6 = scmp.ne.s32.totalorder %s4384_s23, %s6155_s19  ;;  %p6163_p5 = scmp.lt.s32.totalorder %s6161_s1, %s6155_s19 }
 0x628   : > { %2521 = vmatprep.subr.bf16.mxu1 %v4785_v43  ;;  %v4742_v43 = vcombine.low %v1680_v33, %v1688_v34 }
 0x629   : > { %p6157_p4 = pnand %p6156_p6, %p7180_p9  ;;  %p6164_p2 = por %p6163_p5, %p6162_p0 }
 0x62a   : > { %v1503_v44 = vpop.f32.mrb[16].mxu1 }
 0x62b   : > { %v4996_v45 = vpack.c.bf16 %v1503_v44, %v1503_v44  ;;  %v5282_v46 = vpop.f32.mrb[17].mxu1  ;;  %v1734_v44 = vld [vmem:[#allocation16 + $0x248] sm:$0xff]  ;;  %p6158_p8 = pneg %p6157_p4 }
 0x62c   : > { %v1506_v47 = vpop.f32.mrb[18].mxu1  ;;  %v4786_v46 = vcombine.low %v1726_v42, %v1734_v44 }
 0x62d   : > { %1513 = vrot.lane.b32.xlu1 %v4996_v45, %s6307_s28  ;;  %v5283_v48 = vpop.f32.mrb[19].mxu1  ;;  %v4784_v45 = vcombine.low %v1725_v40, %v1733_v41  ;;  %v4787_v47 = vcombine.high %v1726_v42, %v1734_v44  ;;  %v1703_v40 = vld [vmem:[#allocation16 + $0x150] sm:$0xff]  ;;  %v1696_v41 = vld [vmem:[#allocation16 + $0x118] sm:$0xff]  ;;  %s4366_s28 = scalar_lea.sflag [#allocation6], %s6792_s20  ;;  %p6165_p7 = pnand %p6164_p2, %p6158_p8 }
 0x62e   : > { %v1741_v48 = vld [vmem:[#allocation16 + $0x280] sm:$0xff]  ;;  %v1704_v42 = vld [vmem:[#allocation16 + $0x158] sm:$0xff] }
 0x62f   : > { %2522 = vmatpush1.bf16.msra.mxu1 %v4784_v45  ;;  %v4759_v45 = vcombine.high %v1696_v41, %v1704_v42 }
 0x68e   : > { %v1250_v49 = vpop.permute.xlu1 %1249 }
 0x68f   : > { %1253 = vst.msk [vmem:[#allocation3] sm:$0xf] %vm1252_vm5, %v1250_v49  ;;  %v1749_v49 = vld [vmem:[#allocation16 + $0x2c0] sm:$0xff] }
 0x690   : > { %v4800_v53 = vcombine.low %v1741_v48, %v1749_v49 }
 0x697   : > { %v1382_v50 = vpop.permute.xlu0 %1381 }
 0x698   : > { %1385 = vst.msk [vmem:[#allocation3] sm:$0xf] %vm1384_vm6, %v1382_v50  ;;  %v1742_v50 = vld [vmem:[#allocation16 + $0x288] sm:$0xff] }
 0x69f   : > { %v1514_v51 = vpop.permute.xlu1 %1513 }
 0x6a0   : > { %1517 = vst.msk [vmem:[#allocation3] sm:$0xf] %vm1516_vm7, %v1514_v51  ;;  %v4801_v51 = vcombine.high %v1741_v48, %v1749_v49  ;;  %v1712_v48 = vld [vmem:[#allocation16 + $0x198] sm:$0xff] }
 0x6a1   : > { %v1720_v49 = vld [vmem:[#allocation16 + $0x1d8] sm:$0xff] }
 0x6a2   : > { %2523 = vmatprep.subr.bf16.mxu1 %v4801_v51  ;;  %v4758_v51 = vcombine.low %v1696_v41, %v1704_v42  ;;  %v1682_v41 = vld [vmem:[#allocation16 + $0xa8] sm:$0xff] }
 0x6a3   : > { %2524 = vmatpush1.bf16.msra.mxu1 %v4800_v53  ;;  %v4775_v53 = vcombine.high %v1712_v48, %v1720_v49  ;;  %v1690_v42 = vld [vmem:[#allocation16 + $0xe8] sm:$0xff] }
 0x6a7   : > { %v1518_v52 = vld [vmem:[#allocation3] sm:$0xf] }
 0x6a8   : > { %5301 = vmatmul.mubr.bf16.vlgmr.msra.gmra.mrb[20].mxu0 %v1518_v52  ;;  %v1750_v52 = vld [vmem:[#allocation16 + $0x2c8] sm:$0xff] }
 0x6a9   : > { %2586 = vmatprep.mubr.bf16.mxu0 %v6303_v0  ;;  %2555 = vmatpush1.bf16.msra.mxu0 %v4722_v8  ;;  %v4834_v8 = vcombine.low %v1774_v4, %v1782_v6 }
 0x6aa   : > { %2556 = vmatprep.subr.bf16.mxu0 %v4739_v14  ;;  %v4725_v14 = vcombine.high %v1663_v10, %v1671_v11  ;;  %v1760_v10 = vld [vmem:[#allocation16 + $0x318] sm:$0xff] }
 0x6ab   : > { %v1768_v11 = vld [vmem:[#allocation16 + $0x358] sm:$0xff] }
 0x6ac   : > { %v4823_v15 = vcombine.high %v1760_v10, %v1768_v11 }
 0x6ad   : > { %2557 = vmatpush1.bf16.msra.mxu0 %v4738_v22 }
 0x6ae   : > { %2558 = vmatprep.subr.bf16.mxu0 %v4755_v25 }
 0x6b1   : > { %2559 = vmatpush1.bf16.msra.mxu0 %v4754_v27 }
 0x6b2   : > { %2560 = vmatprep.subr.bf16.mxu0 %v4771_v39  ;;  %v1695_v39 = vld [vmem:[#allocation16 + $0x110] sm:$0xff] }
 0x6b3   : > { %v4757_v44 = vcombine.high %v1695_v39, %v1703_v40 }
 0x6b5   : > { %2561 = vmatpush1.bf16.msra.mxu0 %v4770_v38  ;;  %v4743_v38 = vcombine.high %v1680_v33, %v1688_v34 }
 0x6b6   : > { %2562 = vmatprep.subr.bf16.mxu0 %v4787_v47  ;;  %v1719_v47 = vld [vmem:[#allocation16 + $0x1d0] sm:$0xff] }
 0x6b9   : > { %2563 = vmatpush1.bf16.msra.mxu0 %v4786_v46  ;;  %v1711_v46 = vld [vmem:[#allocation16 + $0x190] sm:$0xff] }
 0x77b   : > { %v1617_v55 = vpop.f32.mrb[20].mxu0 }
 0x77c   : > { %v1623_v57 = vadd.f32 %v1617_v55, %v734_v54  ;;  %v5302_v58 = vpop.f32.mrb[21].mxu0  ;;  %v4802_v54 = vcombine.low %v1742_v50, %v1750_v52  ;;  %v4803_v55 = vcombine.high %v1742_v50, %v1750_v52  ;;  %v4756_v50 = vcombine.low %v1695_v39, %v1703_v40  ;;  %v1681_v39 = vld [vmem:[#allocation16 + $0xa0] sm:$0xff] }
 0x77d   : > { %v1620_v59 = vpop.f32.mrb[22].mxu0  ;;  %v1758_v58 = vld [vmem:[#allocation16 + $0x308] sm:$0xff]  ;;  %v4773_v52 = vcombine.high %v1711_v46, %v1719_v47  ;;  %v1689_v40 = vld [vmem:[#allocation16 + $0xe0] sm:$0xff] }
 0x77e   : > { %v5303_v60 = vpop.f32.mrb[23].mxu0  ;;  %v1631_v61 = vadd.f32 %v4717_v56, %v1623_v57  ;;  %2564 = vmatprep.subr.bf16.mxu0 %v4803_v55  ;;  %v1757_v56 = vld [vmem:[#allocation16 + $0x300] sm:$0xff]  ;;  %v1735_v55 = vld [vmem:[#allocation16 + $0x250] sm:$0xff] }
 0x77f   : > { %v1765_v57 = vld [vmem:[#allocation16 + $0x340] sm:$0xff]  ;;  %2565 = vmatpush1.bf16.msra.mxu0 %v4802_v54  ;;  %v1766_v60 = vld [vmem:[#allocation16 + $0x348] sm:$0xff]  ;;  %v1727_v54 = vld [vmem:[#allocation16 + $0x210] sm:$0xff] }
 0x780   : > { %1632 = vadd.xlane.f32.xlu0 %v1631_v61  ;;  %v4817_v59 = vcombine.high %v1757_v56, %v1765_v57  ;;  %v4818_v62 = vcombine.low %v1758_v58, %v1766_v60  ;;  %v4819_v63 = vcombine.high %v1758_v58, %v1766_v60  ;;  %v4772_v58 = vcombine.low %v1711_v46, %v1719_v47  ;;  %v1697_v46 = vld [vmem:[#allocation16 + $0x120] sm:$0xff] }
 0x781   : > { %v4789_v60 = vcombine.high %v1727_v54, %v1735_v55  ;;  %v4788_v4 = vcombine.low %v1727_v54, %v1735_v55  ;;  %v1705_v47 = vld [vmem:[#allocation16 + $0x160] sm:$0xff] }
 0x782   : > { %2525 = vmatprep.subr.bf16.mxu1 %v4817_v59  ;;  %2566 = vmatprep.subr.bf16.mxu0 %v4819_v63  ;;  %v4774_v59 = vcombine.low %v1712_v48, %v1720_v49  ;;  %v1751_v63 = vld [vmem:[#allocation16 + $0x2d0] sm:$0xff]  ;;  %v1698_v48 = vld [vmem:[#allocation16 + $0x128] sm:$0xff]  ;;  %v1713_v54 = vld [vmem:[#allocation16 + $0x1a0] sm:$0xff] }
 0x783   : > { %2567 = vmatpush1.bf16.msra.mxu0 %v4818_v62  ;;  %v1743_v62 = vld [vmem:[#allocation16 + $0x290] sm:$0xff]  ;;  %v1706_v49 = vld [vmem:[#allocation16 + $0x168] sm:$0xff]  ;;  %v1721_v55 = vld [vmem:[#allocation16 + $0x1e0] sm:$0xff] }
 0x784   : > { %2568 = vmatprep.subr.bf16.mxu0 %v4835_v9  ;;  %v4805_v6 = vcombine.high %v1743_v62, %v1751_v63  ;;  %v1767_v9 = vld [vmem:[#allocation16 + $0x350] sm:$0xff]  ;;  %v4804_v12 = vcombine.low %v1743_v62, %v1751_v63  ;;  %v1729_v62 = vld [vmem:[#allocation16 + $0x220] sm:$0xff] }
 0x785   : > { %v1737_v63 = vld [vmem:[#allocation16 + $0x260] sm:$0xff] }
 0x787   : > { %2569 = vmatpush1.bf16.msra.mxu0 %v4834_v8  ;;  %v1759_v8 = vld [vmem:[#allocation16 + $0x310] sm:$0xff] }
 0x788   : > { %2636 = vmatprep.subr.bf16.mxu0 %v4727_v17  ;;  %v1783_v17 = vld [vmem:[#allocation16 + $0x3d0] sm:$0xff] }
 0x80d   : > { %v1633_v28 = vpop.xlane.xlu0 %1632 }
 0x80e   : > { %v1635_v29 = vmul.f32 0.0078125, %v1633_v28  ;;  %v4719_v28 = vld [vmem:[#allocation15] ss:$0 sm:$0xff] }
 0x810   : > { %v6940_v30 = vsub.f32 %v1631_v61, %v1635_v29  ;;  %v4816_v61 = vcombine.low %v1757_v56, %v1765_v57  ;;  %v1728_v56 = vld [vmem:[#allocation16 + $0x218] sm:$0xff] }
 0x811   : > { %v1736_v57 = vld [vmem:[#allocation16 + $0x258] sm:$0xff] }
 0x812   : > { %v1637_v31 = vmul.f32 %v6940_v30, %v6940_v30  ;;  %2526 = vmatpush1.bf16.msra.mxu1 %v4816_v61  ;;  %v4791_v61 = vcombine.high %v1728_v56, %v1736_v57 }
 0x813   : > { %2527 = vmatprep.subr.bf16.mxu1 %v4833_v5  ;;  %v4790_v5 = vcombine.low %v1728_v56, %v1736_v57  ;;  %v1714_v56 = vld [vmem:[#allocation16 + $0x1a8] sm:$0xff] }
 0x814   : > { %1638 = vadd.xlane.f32.xlu1 %v1637_v31  ;;  %v1679_v31 = vld [vmem:[#allocation16 + $0x90] sm:$0xff]  ;;  %v1722_v57 = vld [vmem:[#allocation16 + $0x1e8] sm:$0xff] }
 0x815   : > { %v4741_v37 = vcombine.high %v1679_v31, %v1687_v32 }
 0x816   : > { %2528 = vmatpush1.bf16.msra.mxu1 %v4832_v7  ;;  %v4807_v7 = vcombine.high %v1744_v1, %v1752_v3 }
 0x817   : > { %2595 = vmatprep.subr.bf16.mxu1 %v4725_v14  ;;  %v4821_v14 = vcombine.high %v1759_v8, %v1767_v9 }
 0x8a1   : > { %v1639_v19 = vpop.xlane.xlu1 %1638 }
 0x8a2   : > { %v1640_v22 = vmul.f32 0.0078125, %v1639_v19  ;;  %v1776_v19 = vld [vmem:[#allocation16 + $0x398] sm:$0xff] }
 0x8a4   : > { %v1641_v24 = vadd.f32 1e-05, %v1640_v22  ;;  %v1784_v22 = vld [vmem:[#allocation16 + $0x3d8] sm:$0xff] }
 0x8a5   : > { %v4838_v34 = vcombine.low %v1776_v19, %v1784_v22 }
 0x8a6   : > { %5728 = vrsqrt.f32 %v1641_v24  ;;  %v4820_v24 = vcombine.low %v1759_v8, %v1767_v9  ;;  %v1745_v8 = vld [vmem:[#allocation16 + $0x2a0] sm:$0xff] }
 0x8a7   : > { %v1753_v9 = vld [vmem:[#allocation16 + $0x2e0] sm:$0xff] }
 0x8b0   : > { %v5729_v25 = vpop.eup %5728 }
 0x8b1   : > { %v1643_v27 = vmul.f32 %v5729_v25, %v6940_v30  ;;  %v4740_v30 = vcombine.low %v1679_v31, %v1687_v32  ;;  %v4822_v25 = vcombine.low %v1760_v10, %v1768_v11  ;;  %v1666_v31 = vld [vmem:[#allocation16 + $0x28] sm:$0xff] }
 0x8b2   : > { %v1674_v32 = vld [vmem:[#allocation16 + $0x68] sm:$0xff] }
 0x8b3   : > { %v1651_v29 = vmul.f32 %v4718_v26, %v1643_v27  ;;  %v4839_v27 = vcombine.high %v1776_v19, %v1784_v22  ;;  %v1746_v10 = vld [vmem:[#allocation16 + $0x2a8] sm:$0xff] }
 0x8b4   : > { %v1754_v11 = vld [vmem:[#allocation16 + $0x2e8] sm:$0xff] }
 0x8b5   : > { %v6945_v35 = vadd.f32 %v4719_v28, %v1651_v29  ;;  %v1665_v28 = vld [vmem:[#allocation16 + $0x20] sm:$0xff]  ;;  %v1762_v19 = vld [vmem:[#allocation16 + $0x328] sm:$0xff] }
 0x8b6   : > { %v1673_v29 = vld [vmem:[#allocation16 + $0x60] sm:$0xff]  ;;  %v1770_v22 = vld [vmem:[#allocation16 + $0x368] sm:$0xff] }
 0x8b7   : > { %v6949_v36 = vpack.c.bf16 %v6945_v35, %v6945_v35 }
 0x8b9   : > { %2546 = vmatmul.mubr.bf16.vlgmr.msra.gmra.mrb[20].mxu1 %v6949_v36  ;;  %2587 = vmatmul.mubr.bf16.vlgmr.msra.gmra.mrb[24].mxu0 %v6949_v36 }
 0x8ba   : > { %2596 = vmatpush1.bf16.msra.mxu1 %v4724_v13  ;;  %2637 = vmatpush1.bf16.msra.mxu0 %v4726_v16  ;;  %v4806_v13 = vcombine.low %v1744_v1, %v1752_v3  ;;  %v1775_v16 = vld [vmem:[#allocation16 + $0x390] sm:$0xff]  ;;  %v1730_v1 = vld [vmem:[#allocation16 + $0x228] sm:$0xff] }
 0x8bb   : > { %2597 = vmatprep.subr.bf16.mxu1 %v4741_v37  ;;  %2638 = vmatprep.subr.bf16.mxu0 %v4743_v38  ;;  %v4837_v26 = vcombine.high %v1775_v16, %v1783_v17  ;;  %v4836_v33 = vcombine.low %v1775_v16, %v1783_v17  ;;  %v4729_v37 = vcombine.high %v1665_v28, %v1673_v29  ;;  %v1738_v3 = vld [vmem:[#allocation16 + $0x268] sm:$0xff]  ;;  %v1761_v16 = vld [vmem:[#allocation16 + $0x320] sm:$0xff] }
 0x8bc   : > { %2627 = vmatprep.mubr.bf16.mxu1 %v6303_v0  ;;  %2668 = vmatprep.mubr.bf16.mxu0 %v6303_v0  ;;  %v4731_v38 = vcombine.high %v1666_v31, %v1674_v32  ;;  %v1769_v17 = vld [vmem:[#allocation16 + $0x360] sm:$0xff] }
 0x8be   : > { %2598 = vmatpush1.bf16.msra.mxu1 %v4740_v30  ;;  %2639 = vmatpush1.bf16.msra.mxu0 %v4742_v43  ;;  %v4728_v30 = vcombine.low %v1665_v28, %v1673_v29  ;;  %v4730_v43 = vcombine.low %v1666_v31, %v1674_v32  ;;  %v1777_v28 = vld [vmem:[#allocation16 + $0x3a0] sm:$0xff]  ;;  %v1778_v31 = vld [vmem:[#allocation16 + $0x3a8] sm:$0xff] }
 0x8bf   : > { %2599 = vmatprep.subr.bf16.mxu1 %v4757_v44  ;;  %2640 = vmatprep.subr.bf16.mxu0 %v4759_v45  ;;  %v4745_v44 = vcombine.high %v1681_v39, %v1689_v40  ;;  %v4747_v45 = vcombine.high %v1682_v41, %v1690_v42  ;;  %v1785_v29 = vld [vmem:[#allocation16 + $0x3e0] sm:$0xff]  ;;  %v1786_v32 = vld [vmem:[#allocation16 + $0x3e8] sm:$0xff] }
 0x8c2   : > { %2600 = vmatpush1.bf16.msra.mxu1 %v4756_v50  ;;  %2641 = vmatpush1.bf16.msra.mxu0 %v4758_v51  ;;  %v4744_v50 = vcombine.low %v1681_v39, %v1689_v40  ;;  %v4746_v51 = vcombine.low %v1682_v41, %v1690_v42  ;;  %v1667_v39 = vld [vmem:[#allocation16 + $0x30] sm:$0xff]  ;;  %v1668_v41 = vld [vmem:[#allocation16 + $0x38] sm:$0xff] }
 0x8c3   : > { %2601 = vmatprep.subr.bf16.mxu1 %v4773_v52  ;;  %2642 = vmatprep.subr.bf16.mxu0 %v4775_v53  ;;  %v4761_v52 = vcombine.high %v1697_v46, %v1705_v47  ;;  %v4763_v53 = vcombine.high %v1698_v48, %v1706_v49  ;;  %v1675_v40 = vld [vmem:[#allocation16 + $0x70] sm:$0xff]  ;;  %v1676_v42 = vld [vmem:[#allocation16 + $0x78] sm:$0xff] }
 0x8c6   : > { %2602 = vmatpush1.bf16.msra.mxu1 %v4772_v58  ;;  %2643 = vmatpush1.bf16.msra.mxu0 %v4774_v59  ;;  %v4760_v58 = vcombine.low %v1697_v46, %v1705_v47  ;;  %v4762_v59 = vcombine.low %v1698_v48, %v1706_v49  ;;  %v1683_v46 = vld [vmem:[#allocation16 + $0xb0] sm:$0xff]  ;;  %v1684_v48 = vld [vmem:[#allocation16 + $0xb8] sm:$0xff] }
 0x8c7   : > { %2603 = vmatprep.subr.bf16.mxu1 %v4789_v60  ;;  %2644 = vmatprep.subr.bf16.mxu0 %v4791_v61  ;;  %v4777_v60 = vcombine.high %v1713_v54, %v1721_v55  ;;  %v4779_v61 = vcombine.high %v1714_v56, %v1722_v57  ;;  %v1691_v47 = vld [vmem:[#allocation16 + $0xf0] sm:$0xff]  ;;  %v1692_v49 = vld [vmem:[#allocation16 + $0xf8] sm:$0xff] }
 0x8ca   : > { %2604 = vmatpush1.bf16.msra.mxu1 %v4788_v4  ;;  %2645 = vmatpush1.bf16.msra.mxu0 %v4790_v5  ;;  %v4776_v4 = vcombine.low %v1713_v54, %v1721_v55  ;;  %v4778_v5 = vcombine.low %v1714_v56, %v1722_v57  ;;  %v1699_v54 = vld [vmem:[#allocation16 + $0x130] sm:$0xff]  ;;  %v1700_v56 = vld [vmem:[#allocation16 + $0x138] sm:$0xff] }
 0x8cb   : > { %2605 = vmatprep.subr.bf16.mxu1 %v4805_v6  ;;  %2646 = vmatprep.subr.bf16.mxu0 %v4807_v7  ;;  %v4793_v6 = vcombine.high %v1729_v62, %v1737_v63  ;;  %v4795_v7 = vcombine.high %v1730_v1, %v1738_v3  ;;  %v1707_v55 = vld [vmem:[#allocation16 + $0x170] sm:$0xff]  ;;  %v1708_v57 = vld [vmem:[#allocation16 + $0x178] sm:$0xff] }
 0x8ce   : > { %2606 = vmatpush1.bf16.msra.mxu1 %v4804_v12  ;;  %2647 = vmatpush1.bf16.msra.mxu0 %v4806_v13  ;;  %v4792_v12 = vcombine.low %v1729_v62, %v1737_v63  ;;  %v4794_v13 = vcombine.low %v1730_v1, %v1738_v3  ;;  %v1715_v62 = vld [vmem:[#allocation16 + $0x1b0] sm:$0xff]  ;;  %v1716_v1 = vld [vmem:[#allocation16 + $0x1b8] sm:$0xff] }
 0x8cf   : > { %2607 = vmatprep.subr.bf16.mxu1 %v4821_v14  ;;  %2648 = vmatprep.subr.bf16.mxu0 %v4823_v15  ;;  %v4809_v14 = vcombine.high %v1745_v8, %v1753_v9  ;;  %v4811_v15 = vcombine.high %v1746_v10, %v1754_v11  ;;  %v1723_v63 = vld [vmem:[#allocation16 + $0x1f0] sm:$0xff]  ;;  %v1724_v3 = vld [vmem:[#allocation16 + $0x1f8] sm:$0xff] }
 0x8d2   : > { %2608 = vmatpush1.bf16.msra.mxu1 %v4820_v24  ;;  %2649 = vmatpush1.bf16.msra.mxu0 %v4822_v25  ;;  %v4808_v24 = vcombine.low %v1745_v8, %v1753_v9  ;;  %v4810_v25 = vcombine.low %v1746_v10, %v1754_v11  ;;  %v1731_v8 = vld [vmem:[#allocation16 + $0x230] sm:$0xff]  ;;  %v1732_v10 = vld [vmem:[#allocation16 + $0x238] sm:$0xff] }
 0x8d3   : > { %2609 = vmatprep.subr.bf16.mxu1 %v4837_v26  ;;  %2650 = vmatprep.subr.bf16.mxu0 %v4839_v27  ;;  %v4825_v26 = vcombine.high %v1761_v16, %v1769_v17  ;;  %v4827_v27 = vcombine.high %v1762_v19, %v1770_v22  ;;  %v1739_v9 = vld [vmem:[#allocation16 + $0x270] sm:$0xff]  ;;  %v1740_v11 = vld [vmem:[#allocation16 + $0x278] sm:$0xff] }
 0x8d6   : > { %2610 = vmatpush1.bf16.msra.mxu1 %v4836_v33  ;;  %2651 = vmatpush1.bf16.msra.mxu0 %v4838_v34  ;;  %v4824_v33 = vcombine.low %v1761_v16, %v1769_v17  ;;  %v4826_v34 = vcombine.low %v1762_v19, %v1770_v22  ;;  %v1755_v16 = vld [vmem:[#allocation16 + $0x2f0] sm:$0xff]  ;;  %v1748_v17 = vld [vmem:[#allocation16 + $0x2b8] sm:$0xff]  ;;  %v4796_v22 = vcombine.low %v1731_v8, %v1739_v9 }
 0x8d7   : > { %2677 = vmatprep.subr.bf16.mxu1 %v4729_v37  ;;  %2718 = vmatprep.subr.bf16.mxu0 %v4731_v38  ;;  %v4841_v37 = vcombine.high %v1777_v28, %v1785_v29  ;;  %v4843_v38 = vcombine.high %v1778_v31, %v1786_v32  ;;  %v1756_v19 = vld [vmem:[#allocation16 + $0x2f8] sm:$0xff] }
 0x8d9   : > { %2628 = vmatmul.mubr.bf16.vlgmr.msra.gmra.mrb[24].mxu1 %v6949_v36  ;;  %2669 = vmatmul.mubr.bf16.vlgmr.msra.gmra.mrb[28].mxu0 %v6949_v36 }
 0x8da   : > { %2678 = vmatpush1.bf16.msra.mxu1 %v4728_v30  ;;  %2719 = vmatpush1.bf16.msra.mxu0 %v4730_v43  ;;  %v4840_v30 = vcombine.low %v1777_v28, %v1785_v29  ;;  %v4842_v43 = vcombine.low %v1778_v31, %v1786_v32  ;;  %v1771_v28 = vld [vmem:[#allocation16 + $0x370] sm:$0xff]  ;;  %v1764_v29 = vld [vmem:[#allocation16 + $0x338] sm:$0xff] }
 0x8db   : > { %2679 = vmatprep.subr.bf16.mxu1 %v4745_v44  ;;  %2720 = vmatprep.subr.bf16.mxu0 %v4747_v45  ;;  %v4733_v44 = vcombine.high %v1667_v39, %v1675_v40  ;;  %v4735_v45 = vcombine.high %v1668_v41, %v1676_v42  ;;  %v1772_v31 = vld [vmem:[#allocation16 + $0x378] sm:$0xff] }
 0x8dc   : > { %2709 = vmatprep.mubr.bf16.mxu1 %v6303_v0  ;;  %2750 = vmatprep.mubr.bf16.mxu0 %v6303_v0 }
 0x8de   : > { %2680 = vmatpush1.bf16.msra.mxu1 %v4744_v50  ;;  %2721 = vmatpush1.bf16.msra.mxu0 %v4746_v51  ;;  %v4732_v50 = vcombine.low %v1667_v39, %v1675_v40  ;;  %v4734_v51 = vcombine.low %v1668_v41, %v1676_v42  ;;  %v1787_v39 = vld [vmem:[#allocation16 + $0x3f0] sm:$0xff]  ;;  %v1780_v40 = vld [vmem:[#allocation16 + $0x3b8] sm:$0xff] }
 0x8df   : > { %2681 = vmatprep.subr.bf16.mxu1 %v4761_v52  ;;  %2722 = vmatprep.subr.bf16.mxu0 %v4763_v53  ;;  %v4749_v52 = vcombine.high %v1683_v46, %v1691_v47  ;;  %v4751_v53 = vcombine.high %v1684_v48, %v1692_v49  ;;  %v1788_v41 = vld [vmem:[#allocation16 + $0x3f8] sm:$0xff] }
 0x8e2   : > { %2682 = vmatpush1.bf16.msra.mxu1 %v4760_v58  ;;  %2723 = vmatpush1.bf16.msra.mxu0 %v4762_v59  ;;  %v4748_v58 = vcombine.low %v1683_v46, %v1691_v47  ;;  %v4750_v59 = vcombine.low %v1684_v48, %v1692_v49  ;;  %v4846_v46 = vcombine.low %v1780_v40, %v1788_v41  ;;  %v5576_v47 = vld [vmem:[#allocation19 + $0x40] sm:$0xff]  }
 0x8e3   : > { %2683 = vmatprep.subr.bf16.mxu1 %v4777_v60  ;;  %2724 = vmatprep.subr.bf16.mxu0 %v4779_v61  ;;  %v4765_v60 = vcombine.high %v1699_v54, %v1707_v55  ;;  %v4767_v61 = vcombine.high %v1700_v56, %v1708_v57  ;;  %v5577_v48 = vld [vmem:[#allocation19 + $0xc0] sm:$0xff]  }
 0x8e4   : > { %v5578_v49 = vld [vmem:[#allocation19] sm:$0xff]  }
 0x8e6   : > { %2684 = vmatpush1.bf16.msra.mxu1 %v4776_v4  ;;  %2725 = vmatpush1.bf16.msra.mxu0 %v4778_v5  ;;  %v4764_v4 = vcombine.low %v1699_v54, %v1707_v55  ;;  %v4766_v5 = vcombine.low %v1700_v56, %v1708_v57  ;;  %v5583_v54 = vld [vmem:[#allocation19 + $0x88] sm:$0xff]   ;;  %v5584_v55 = vld [vmem:[#allocation19 + $0x50] sm:$0xff]  }
 0x8e7   : > { %2685 = vmatprep.subr.bf16.mxu1 %v4793_v6  ;;  %2726 = vmatprep.subr.bf16.mxu0 %v4795_v7  ;;  %v4781_v6 = vcombine.high %v1715_v62, %v1723_v63  ;;  %v4783_v7 = vcombine.high %v1716_v1, %v1724_v3  ;;  %v5585_v56 = vld [vmem:[#allocation19 + $0xd0] sm:$0xff]  }
 0x8e8   : > { %v5586_v57 = vld [vmem:[#allocation19 + $0x10] sm:$0xff]  }
 0x8ea   : > { %2686 = vmatpush1.bf16.msra.mxu1 %v4792_v12  ;;  %2727 = vmatpush1.bf16.msra.mxu0 %v4794_v13  ;;  %v4780_v12 = vcombine.low %v1715_v62, %v1723_v63  ;;  %v4782_v13 = vcombine.low %v1716_v1, %v1724_v3  ;;  %v5592_v62 = vld [vmem:[#allocation19 + $0x60] sm:$0xff]  }
 0x8eb   : > { %2687 = vmatprep.subr.bf16.mxu1 %v4809_v14  ;;  %2728 = vmatprep.subr.bf16.mxu0 %v4811_v15  ;;  %v4797_v14 = vcombine.high %v1731_v8, %v1739_v9  ;;  %v1747_v15 = vld [vmem:[#allocation16 + $0x2b0] sm:$0xff]  ;;  %v5600_v8 = vld [vmem:[#allocation19 + $0x70] sm:$0xff]  }
 0x8ec   : > { %v4812_v32 = vcombine.low %v1747_v15, %v1755_v16  ;;  %v5593_v63 = vld [vmem:[#allocation19 + $0xe0] sm:$0xff]   ;;  %v5601_v9 = vld [vmem:[#allocation19 + $0xf0] sm:$0xff]  }
 0x8ed   : > { %v5594_v1 = vld [vmem:[#allocation19 + $0x20] sm:$0xff]  }
 0x8ee   : > { %2688 = vmatpush1.bf16.msra.mxu1 %v4808_v24  ;;  %2729 = vmatpush1.bf16.msra.mxu0 %v4810_v25  ;;  %v4798_v24 = vcombine.low %v1732_v10, %v1740_v11  ;;  %v4813_v25 = vcombine.high %v1747_v15, %v1755_v16  ;;  %v5595_v3 = vld [vmem:[#allocation19 + $0xa0] sm:$0xff]  }
 0x8ef   : > { %2689 = vmatprep.subr.bf16.mxu1 %v4825_v26  ;;  %2730 = vmatprep.subr.bf16.mxu0 %v4827_v27  ;;  %v4815_v26 = vcombine.high %v1748_v17, %v1756_v19  ;;  %v1763_v27 = vld [vmem:[#allocation16 + $0x330] sm:$0xff] }
 0x8f0   : > { %v4828_v42 = vcombine.low %v1763_v27, %v1771_v28  ;;  %v5608_v15 = vld [vmem:[#allocation19 + $0x140] sm:$0xff]  }
 0x8f1   : > { %v5609_v16 = vld [vmem:[#allocation19 + $0x1c0] sm:$0xff]  }
 0x8f2   : > { %2690 = vmatpush1.bf16.msra.mxu1 %v4824_v33  ;;  %2731 = vmatpush1.bf16.msra.mxu0 %v4826_v34  ;;  %v4814_v33 = vcombine.low %v1748_v17, %v1756_v19  ;;  %v4829_v34 = vcombine.high %v1763_v27, %v1771_v28  ;;  %v6965_v17 = vld [vmem:[#allocation18] sm:$0xff]  ;;  %v1807_v19 = vsub.s32 3, %v6843_v20 }
 0x8f3   : > { %2691 = vmatprep.subr.bf16.mxu1 %v4841_v37  ;;  %2732 = vmatprep.subr.bf16.mxu0 %v4843_v38  ;;  %v4831_v37 = vcombine.high %v1764_v29, %v1772_v31  ;;  %v1779_v38 = vld [vmem:[#allocation16 + $0x3b0] sm:$0xff] }
 0x8f6   : > { %2692 = vmatpush1.bf16.msra.mxu1 %v4840_v30  ;;  %2733 = vmatpush1.bf16.msra.mxu0 %v4842_v43  ;;  %v4830_v30 = vcombine.low %v1764_v29, %v1772_v31  ;;  %v4845_v43 = vcombine.high %v1779_v38, %v1787_v39 }
 0x8f7   : > { %2759 = vmatprep.subr.bf16.mxu1 %v4733_v44  ;;  %2800 = vmatprep.subr.bf16.mxu0 %v4735_v45  ;;  %v4847_v44 = vcombine.high %v1780_v40, %v1788_v41  ;;  %v4844_v45 = vcombine.low %v1779_v38, %v1787_v39 }
 0x8f9   : > { %2710 = vmatmul.mubr.bf16.vlgmr.msra.gmra.mrb[28].mxu1 %v6949_v36  ;;  %2751 = vmatmul.mubr.bf16.vlgmr.msra.gmra.mrb[32].mxu0 %v6949_v36 }
 0x8fa   : > { %2760 = vmatpush1.bf16.msra.mxu1 %v4732_v50  ;;  %2801 = vmatpush1.bf16.msra.mxu0 %v4734_v51  ;;  %v5579_v50 = vld [vmem:[#allocation19 + $0x80] sm:$0xff]   ;;  %v5580_v51 = vld [vmem:[#allocation19 + $0x48] sm:$0xff]  }
 0x8fb   : > { %2761 = vmatprep.subr.bf16.mxu1 %v4749_v52  ;;  %2802 = vmatprep.subr.bf16.mxu0 %v4751_v53  ;;  %v5581_v52 = vld [vmem:[#allocation19 + $0xc8] sm:$0xff]  }
 0x8fc   : > { %2791 = vmatprep.mubr.bf16.mxu1 %v6303_v0  ;;  %2832 = vmatprep.mubr.bf16.mxu0 %v6303_v0  ;;  %v4799_v0 = vcombine.high %v1732_v10, %v1740_v11  ;;  %v5582_v53 = vld [vmem:[#allocation19 + $0x8] sm:$0xff]   ;;  %v5602_v10 = vld [vmem:[#allocation19 + $0x30] sm:$0xff]  }
 0x8fd   : > { %v5603_v11 = vld [vmem:[#allocation19 + $0xb0] sm:$0xff]  }
 0x8fe   : > { %2762 = vmatpush1.bf16.msra.mxu1 %v4748_v58  ;;  %2803 = vmatpush1.bf16.msra.mxu0 %v4750_v59  ;;  %v5587_v58 = vld [vmem:[#allocation19 + $0x90] sm:$0xff]   ;;  %v5588_v59 = vld [vmem:[#allocation19 + $0x58] sm:$0xff]  }
 0x8ff   : > { %2763 = vmatprep.subr.bf16.mxu1 %v4765_v60  ;;  %2804 = vmatprep.subr.bf16.mxu0 %v4767_v61  ;;  %v5589_v60 = vld [vmem:[#allocation19 + $0xd8] sm:$0xff]  }
 0x900   : > { %v5590_v61 = vld [vmem:[#allocation19 + $0x18] sm:$0xff]  }
 0x902   : > { %2764 = vmatpush1.bf16.msra.mxu1 %v4764_v4  ;;  %2805 = vmatpush1.bf16.msra.mxu0 %v4766_v5  ;;  %v5596_v4 = vld [vmem:[#allocation19 + $0x68] sm:$0xff]  }
 0x903   : > { %2765 = vmatprep.subr.bf16.mxu1 %v4781_v6  ;;  %2806 = vmatprep.subr.bf16.mxu0 %v4783_v7  ;;  %v5597_v5 = vld [vmem:[#allocation19 + $0xe8] sm:$0xff]  }
 0x904   : > { %v5598_v6 = vld [vmem:[#allocation19 + $0x28] sm:$0xff]  }
 0x905   : > { %v5599_v7 = vld [vmem:[#allocation19 + $0xa8] sm:$0xff]  }
 0x906   : > { %2766 = vmatpush1.bf16.msra.mxu1 %v4780_v12  ;;  %2807 = vmatpush1.bf16.msra.mxu0 %v4782_v13  ;;  %v5604_v12 = vld [vmem:[#allocation19 + $0x78] sm:$0xff]  }
 0x907   : > { %2767 = vmatprep.subr.bf16.mxu1 %v4797_v14  ;;  %2808 = vmatprep.subr.bf16.mxu0 %v4799_v0  ;;  %v5605_v13 = vld [vmem:[#allocation19 + $0xf8] sm:$0xff]  }
 0x908   : > { %v5606_v14 = vld [vmem:[#allocation19 + $0x38] sm:$0xff]  }
 0x909   : > { %v5607_v0 = vld [vmem:[#allocation19 + $0xb8] sm:$0xff]  }
 0x90a   : > { %2768 = vmatpush1.bf16.msra.mxu1 %v4796_v22  ;;  %2809 = vmatpush1.bf16.msra.mxu0 %v4798_v24  ;;  %v1796_v22 = vrot.slane %v6965_v17, %v6846_v21  ;;  %v1804_v24 = vrot.slane %v6965_v17, %v6896_v2 }
 0x90b   : > { %2769 = vmatprep.subr.bf16.mxu1 %v4813_v25  ;;  %2810 = vmatprep.subr.bf16.mxu0 %v4815_v26  ;;  %v1800_v25 = vrot.slane %v6965_v17, %v6851_v23  ;;  %v1808_v26 = vrot.slane %v6965_v17, %v1807_v19 }
 0x90e   : > { %2770 = vmatpush1.bf16.msra.mxu1 %v4812_v32  ;;  %2811 = vmatpush1.bf16.msra.mxu0 %v4814_v33 }
 0x90f   : > { %2771 = vmatprep.subr.bf16.mxu1 %v4829_v34  ;;  %2812 = vmatprep.subr.bf16.mxu0 %v4831_v37 }
 0x912   : > { %2772 = vmatpush1.bf16.msra.mxu1 %v4828_v42  ;;  %2813 = vmatpush1.bf16.msra.mxu0 %v4830_v30 }
 0x913   : > { %2773 = vmatprep.subr.bf16.mxu1 %v4845_v43  ;;  %2814 = vmatprep.subr.bf16.mxu0 %v4847_v44 }
 0x916   : > { %2774 = vmatpush1.bf16.msra.mxu1 %v4844_v45  ;;  %2815 = vmatpush1.bf16.msra.mxu0 %v4846_v46 }
 0x917   : > { %5031 = vmatprep.subr.bf16.mxu1 %v5576_v47  ;;  %5053 = vmatprep.subr.bf16.mxu0 %v5577_v48  ;;  %v5610_v47 = vld [vmem:[#allocation19 + $0x100] sm:$0xff]  }
 0x918   : > { %v5611_v48 = vld [vmem:[#allocation19 + $0x180] sm:$0xff]  }
 0x919   : > { %2792 = vmatmul.mubr.bf16.vlgmr.msra.gmra.mrb[32].mxu1 %v6949_v36  ;;  %2833 = vmatmul.mubr.bf16.vlgmr.msra.gmra.mrb[36].mxu0 %v6949_v36  ;;  %v5591_v36 = vld [vmem:[#allocation19 + $0x98] sm:$0xff]  }
 0x91a   : > { %5032 = vmatpush3.bf16.msra.mxu1 %v5578_v49  ;;  %5054 = vmatpush3.bf16.msra.mxu0 %v5579_v50 }
 0x91b   : > { %5033 = vmatprep.subr.bf16.mxu1 %v5580_v51  ;;  %5055 = vmatprep.subr.bf16.mxu0 %v5581_v52  ;;  %v5612_v51 = vld [vmem:[#allocation19 + $0x148] sm:$0xff]  }
 0x91c   : > { %v5613_v52 = vld [vmem:[#allocation19 + $0x1c8] sm:$0xff]  }
 0x91e   : > { %5034 = vmatpush3.bf16.msra.mxu1 %v5582_v53  ;;  %5056 = vmatpush3.bf16.msra.mxu0 %v5583_v54  ;;  %v5614_v53 = vld [vmem:[#allocation19 + $0x108] sm:$0xff]  }
 0x91f   : > { %5035 = vmatprep.subr.bf16.mxu1 %v5584_v55  ;;  %5057 = vmatprep.subr.bf16.mxu0 %v5585_v56  ;;  %v5615_v54 = vld [vmem:[#allocation19 + $0x188] sm:$0xff]   ;;  %v5616_v55 = vld [vmem:[#allocation19 + $0x150] sm:$0xff]  }
 0x920   : > { %v5617_v56 = vld [vmem:[#allocation19 + $0x1d0] sm:$0xff]  }
 0x922   : > { %5036 = vmatpush3.bf16.msra.mxu1 %v5586_v57  ;;  %5058 = vmatpush3.bf16.msra.mxu0 %v5587_v58  ;;  %v5618_v57 = vld [vmem:[#allocation19 + $0x110] sm:$0xff]  }
 0x923   : > { %5037 = vmatprep.subr.bf16.mxu1 %v5588_v59  ;;  %5059 = vmatprep.subr.bf16.mxu0 %v5589_v60  ;;  %v5619_v58 = vld [vmem:[#allocation19 + $0x190] sm:$0xff]   ;;  %v5620_v59 = vld [vmem:[#allocation19 + $0x158] sm:$0xff]  }
 0x924   : > { %v5621_v60 = vld [vmem:[#allocation19 + $0x1d8] sm:$0xff]  }
 0x926   : > { %5038 = vmatpush3.bf16.msra.mxu1 %v5590_v61  ;;  %5060 = vmatpush3.bf16.msra.mxu0 %v5591_v36  ;;  %v5622_v61 = vld [vmem:[#allocation19 + $0x118] sm:$0xff]  }
 0x927   : > { %5039 = vmatprep.subr.bf16.mxu1 %v5592_v62  ;;  %5061 = vmatprep.subr.bf16.mxu0 %v5593_v63  ;;  %v5623_v36 = vld [vmem:[#allocation19 + $0x198] sm:$0xff]   ;;  %v5624_v62 = vld [vmem:[#allocation19 + $0x160] sm:$0xff]  }
 0x928   : > { %v5625_v63 = vld [vmem:[#allocation19 + $0x1e0] sm:$0xff]  }
 0x92a   : > { %5040 = vmatpush3.bf16.msra.mxu1 %v5594_v1  ;;  %5062 = vmatpush3.bf16.msra.mxu0 %v5595_v3  ;;  %v5626_v1 = vld [vmem:[#allocation19 + $0x120] sm:$0xff]  }
 0x92b   : > { %5041 = vmatprep.subr.bf16.mxu1 %v5596_v4  ;;  %5063 = vmatprep.subr.bf16.mxu0 %v5597_v5  ;;  %v5627_v3 = vld [vmem:[#allocation19 + $0x1a0] sm:$0xff]   ;;  %v5628_v4 = vld [vmem:[#allocation19 + $0x168] sm:$0xff]  }
 0x92c   : > { %v5629_v5 = vld [vmem:[#allocation19 + $0x1e8] sm:$0xff]  }
 0x92e   : > { %5042 = vmatpush3.bf16.msra.mxu1 %v5598_v6  ;;  %5064 = vmatpush3.bf16.msra.mxu0 %v5599_v7  ;;  %v1811_v6 = vsub.s32 4, %v6843_v20  ;;  %v1819_v7 = vsub.s32 6, %v6843_v20 }
 0x92f   : > { %5043 = vmatprep.subr.bf16.mxu1 %v5600_v8  ;;  %5065 = vmatprep.subr.bf16.mxu0 %v5601_v9  ;;  %v5630_v8 = vld [vmem:[#allocation19 + $0x128] sm:$0xff]  }
 0x930   : > { %v5631_v9 = vld [vmem:[#allocation19 + $0x1a8] sm:$0xff]  }
 0x932   : > { %5044 = vmatpush3.bf16.msra.mxu1 %v5602_v10  ;;  %5066 = vmatpush3.bf16.msra.mxu0 %v5603_v11  ;;  %v1815_v10 = vsub.s32 5, %v6843_v20  ;;  %v1823_v11 = vsub.s32 7, %v6843_v20  ;;  %v5702_v20 = vld [vmem:[#allocation19 + $0x338] sm:$0xff]  }
 0x933   : > { %5045 = vmatprep.subr.bf16.mxu1 %v5604_v12  ;;  %5067 = vmatprep.subr.bf16.mxu0 %v5605_v13  ;;  %v5632_v12 = vld [vmem:[#allocation19 + $0x170] sm:$0xff]  }
 0x934   : > { %v5633_v13 = vld [vmem:[#allocation19 + $0x1f0] sm:$0xff]  }
 0x936   : > { %5046 = vmatpush3.bf16.msra.mxu1 %v5606_v14  ;;  %5068 = vmatpush3.bf16.msra.mxu0 %v5607_v0  ;;  %v1812_v14 = vrot.slane %v6965_v17, %v1811_v6  ;;  %v1820_v0 = vrot.slane %v6965_v17, %v1819_v7 }
 0x937   : > { %5075 = vmatprep.subr.bf16.mxu1 %v5608_v15  ;;  %5097 = vmatprep.subr.bf16.mxu0 %v5609_v16  ;;  %v1816_v15 = vrot.slane %v6965_v17, %v1815_v10  ;;  %v1824_v16 = vrot.slane %v6965_v17, %v1823_v11  ;;  %v5639_v17 = vld [vmem:[#allocation19 + $0x1b8] sm:$0xff]  }
 0x98c   : > { %v2547_v27 = vpop.f32.mrb[20].mxu1  ;;  %v2588_v28 = vpop.f32.mrb[24].mxu0 }
 0x98d   : > { %v2548_v29 = vadd.f32 %v2547_v27, %v1796_v22  ;;  %v2589_v31 = vadd.f32 %v2588_v28, %v1804_v24  ;;  %v2549_v32 = vpop.f32.mrb[21].mxu1  ;;  %v2590_v33 = vpop.f32.mrb[25].mxu0  ;;  %v5634_v22 = vld [vmem:[#allocation19 + $0x130] sm:$0xff]  }
 0x98e   : > { %v2550_v34 = vadd.f32 %v2549_v32, %v1800_v25  ;;  %v2591_v37 = vadd.f32 %v2590_v33, %v1808_v26  ;;  %v2551_v38 = vpop.f32.mrb[22].mxu1  ;;  %v2592_v39 = vpop.f32.mrb[26].mxu0  ;;  %v5635_v24 = vld [vmem:[#allocation19 + $0x1b0] sm:$0xff]   ;;  %v5636_v25 = vld [vmem:[#allocation19 + $0x178] sm:$0xff]  }
 0x98f   : > { %v2841_v40 = vmax.f32 %v2548_v29, 0.0  ;;  %v2843_v41 = vmax.f32 %v2589_v31, 0.0  ;;  %v2552_v42 = vpop.f32.mrb[23].mxu1  ;;  %v2593_v30 = vpop.f32.mrb[27].mxu0  ;;  %v5637_v26 = vld [vmem:[#allocation19 + $0x1f8] sm:$0xff]  }
 0x990   : > { %v2842_v43 = vmax.f32 %v2550_v34, 0.0  ;;  %v2844_v44 = vmax.f32 %v2591_v37, 0.0 }
 0x991   : > { %v2857_v49 = vpack.c.bf16 %v2841_v40, %v2841_v40  ;;  %v2859_v50 = vpack.c.bf16 %v2843_v41, %v2843_v41  ;;  %v5638_v40 = vld [vmem:[#allocation19 + $0x138] sm:$0xff]  }
 0x992   : > { %v2858_v45 = vpack.c.bf16 %v2842_v43, %v2842_v43  ;;  %v2860_v46 = vpack.c.bf16 %v2844_v44, %v2844_v44  ;;  %v5640_v44 = vld [vmem:[#allocation19 + $0x240] sm:$0xff]  }
 0x994   : > { %3936 = vmatprep.mubr.bf16.mxu1 %v2858_v45  ;;  %3976 = vmatprep.mubr.bf16.mxu0 %v2860_v46  ;;  %v5641_v45 = vld [vmem:[#allocation19 + $0x2c0] sm:$0xff]  }
 0x995   : > { %3937 = vmatmul.mubr.bf16.vlgmr.msra.gmra.mrb[36].mxu1 %v2857_v49  ;;  %3977 = vmatmul.mubr.bf16.vlgmr.msra.gmra.mrb[40].mxu0 %v2859_v50  ;;  %v5642_v50 = vld [vmem:[#allocation19 + $0x200] sm:$0xff]  }
 0x996   : > { %5076 = vmatpush3.bf16.msra.mxu1 %v5610_v47  ;;  %5098 = vmatpush3.bf16.msra.mxu0 %v5611_v48 }
 0x997   : > { %5077 = vmatprep.subr.bf16.mxu1 %v5612_v51  ;;  %5099 = vmatprep.subr.bf16.mxu0 %v5613_v52  ;;  %v5643_v51 = vld [vmem:[#allocation19 + $0x280] sm:$0xff]  }
 0x99a   : > { %5078 = vmatpush3.bf16.msra.mxu1 %v5614_v53  ;;  %5100 = vmatpush3.bf16.msra.mxu0 %v5615_v54  ;;  %v5644_v54 = vld [vmem:[#allocation19 + $0x248] sm:$0xff]  }
 0x99b   : > { %5079 = vmatprep.subr.bf16.mxu1 %v5616_v55  ;;  %5101 = vmatprep.subr.bf16.mxu0 %v5617_v56  ;;  %v5645_v55 = vld [vmem:[#allocation19 + $0x2c8] sm:$0xff]  }
 0x99c   : > { %v5646_v56 = vld [vmem:[#allocation19 + $0x208] sm:$0xff]  }
 0x99e   : > { %5080 = vmatpush3.bf16.msra.mxu1 %v5618_v57  ;;  %5102 = vmatpush3.bf16.msra.mxu0 %v5619_v58  ;;  %v5647_v57 = vld [vmem:[#allocation19 + $0x288] sm:$0xff]   ;;  %v5648_v58 = vld [vmem:[#allocation19 + $0x250] sm:$0xff]  }
 0x99f   : > { %5081 = vmatprep.subr.bf16.mxu1 %v5620_v59  ;;  %5103 = vmatprep.subr.bf16.mxu0 %v5621_v60  ;;  %v5649_v59 = vld [vmem:[#allocation19 + $0x2d0] sm:$0xff]  }
 0x9a0   : > { %v5650_v60 = vld [vmem:[#allocation19 + $0x210] sm:$0xff]  }
 0x9a2   : > { %5082 = vmatpush3.bf16.msra.mxu1 %v5622_v61  ;;  %5104 = vmatpush3.bf16.msra.mxu0 %v5623_v36  ;;  %v5651_v61 = vld [vmem:[#allocation19 + $0x290] sm:$0xff]   ;;  %v5652_v36 = vld [vmem:[#allocation19 + $0x258] sm:$0xff]  }
 0x9a3   : > { %5083 = vmatprep.subr.bf16.mxu1 %v5624_v62  ;;  %5105 = vmatprep.subr.bf16.mxu0 %v5625_v63  ;;  %v5653_v62 = vld [vmem:[#allocation19 + $0x2d8] sm:$0xff]  }
 0x9a4   : > { %v5654_v63 = vld [vmem:[#allocation19 + $0x218] sm:$0xff]  }
 0x9a6   : > { %5084 = vmatpush3.bf16.msra.mxu1 %v5626_v1  ;;  %5106 = vmatpush3.bf16.msra.mxu0 %v5627_v3  ;;  %v5655_v1 = vld [vmem:[#allocation19 + $0x298] sm:$0xff]   ;;  %v5656_v3 = vld [vmem:[#allocation19 + $0x260] sm:$0xff]  }
 0x9a7   : > { %5085 = vmatprep.subr.bf16.mxu1 %v5628_v4  ;;  %5107 = vmatprep.subr.bf16.mxu0 %v5629_v5  ;;  %v5657_v4 = vld [vmem:[#allocation19 + $0x2e0] sm:$0xff]  }
 0x9a8   : > { %v5658_v5 = vld [vmem:[#allocation19 + $0x220] sm:$0xff]  }
 0x9aa   : > { %5086 = vmatpush3.bf16.msra.mxu1 %v5630_v8  ;;  %5108 = vmatpush3.bf16.msra.mxu0 %v5631_v9  ;;  %v5659_v8 = vld [vmem:[#allocation19 + $0x2a0] sm:$0xff]   ;;  %v5660_v9 = vld [vmem:[#allocation19 + $0x268] sm:$0xff]  }
 0x9ab   : > { %5087 = vmatprep.subr.bf16.mxu1 %v5632_v12  ;;  %5109 = vmatprep.subr.bf16.mxu0 %v5633_v13  ;;  %v5661_v12 = vld [vmem:[#allocation19 + $0x2e8] sm:$0xff]  }
 0x9ac   : > { %v2629_v27 = vpop.f32.mrb[24].mxu1  ;;  %v2670_v28 = vpop.f32.mrb[28].mxu0  ;;  %v5662_v13 = vld [vmem:[#allocation19 + $0x228] sm:$0xff]  }
 0x9ad   : > { %v2630_v29 = vadd.f32 %v2629_v27, %v1812_v14  ;;  %v2671_v31 = vadd.f32 %v2670_v28, %v1820_v0  ;;  %v2631_v32 = vpop.f32.mrb[25].mxu1  ;;  %v2672_v33 = vpop.f32.mrb[29].mxu0  ;;  %v5663_v14 = vld [vmem:[#allocation19 + $0x2a8] sm:$0xff]   ;;  %v6993_v0 = vld [vmem:[#allocation18 + $0x8] sm:$0xff]  ;;  %v5666_v27 = vld [vmem:[#allocation19 + $0x230] sm:$0xff]  }
 0x9ae   : > { %v2632_v34 = vadd.f32 %v2631_v32, %v1816_v15  ;;  %v2673_v37 = vadd.f32 %v2672_v33, %v1824_v16  ;;  %v2633_v38 = vpop.f32.mrb[26].mxu1  ;;  %v2674_v39 = vpop.f32.mrb[30].mxu0  ;;  %5088 = vmatpush3.bf16.msra.mxu1 %v5634_v22  ;;  %5110 = vmatpush3.bf16.msra.mxu0 %v5635_v24  ;;  %v5664_v15 = vld [vmem:[#allocation19 + $0x270] sm:$0xff]   ;;  %v1828_v22 = vrot.slane %v6993_v0, %v6846_v21 }
 0x9af   : > { %v2845_v41 = vmax.f32 %v2630_v29, 0.0  ;;  %v2847_v42 = vmax.f32 %v2671_v31, 0.0  ;;  %v2634_v30 = vpop.f32.mrb[27].mxu1  ;;  %v2675_v43 = vpop.f32.mrb[31].mxu0  ;;  %5089 = vmatprep.subr.bf16.mxu1 %v5636_v25  ;;  %5111 = vmatprep.subr.bf16.mxu0 %v5637_v26  ;;  %v5665_v16 = vld [vmem:[#allocation19 + $0x2f0] sm:$0xff]   ;;  %v1836_v24 = vrot.slane %v6993_v0, %v6896_v2  ;;  %v1832_v25 = vrot.slane %v6993_v0, %v6851_v23  ;;  %v5668_v29 = vld [vmem:[#allocation19 + $0x278] sm:$0xff]  }
 0x9b0   : > { %v2846_v46 = vmax.f32 %v2632_v34, 0.0  ;;  %v2848_v47 = vmax.f32 %v2673_v37, 0.0  ;;  %v1840_v26 = vrot.slane %v6993_v0, %v1807_v19  ;;  %v5667_v28 = vld [vmem:[#allocation19 + $0x2b0] sm:$0xff]   ;;  %v5669_v31 = vld [vmem:[#allocation19 + $0x2f8] sm:$0xff]  }
 0x9b1   : > { %v2861_v52 = vpack.c.bf16 %v2845_v41, %v2845_v41  ;;  %v2863_v53 = vpack.c.bf16 %v2847_v42, %v2847_v42  ;;  %v5671_v19 = vld [vmem:[#allocation19 + $0x2b8] sm:$0xff]  }
 0x9b2   : > { %v2862_v48 = vpack.c.bf16 %v2846_v46, %v2846_v46  ;;  %v2864_v49 = vpack.c.bf16 %v2848_v47, %v2848_v47  ;;  %5090 = vmatpush3.bf16.msra.mxu1 %v5638_v40  ;;  %5112 = vmatpush3.bf16.msra.mxu0 %v5639_v17  ;;  %v5670_v17 = vld [vmem:[#allocation19 + $0x238] sm:$0xff]  }
 0x9b3   : > { %5119 = vmatprep.subr.bf16.mxu1 %v5640_v44  ;;  %5141 = vmatprep.subr.bf16.mxu0 %v5641_v45  ;;  %v5672_v44 = vld [vmem:[#allocation19 + $0x340] sm:$0xff]  }
 0x9b4   : > { %4016 = vmatprep.mubr.bf16.mxu1 %v2862_v48  ;;  %4056 = vmatprep.mubr.bf16.mxu0 %v2864_v49  ;;  %v5673_v45 = vld [vmem:[#allocation19 + $0x3c0] sm:$0xff]  }
 0x9b5   : > { %4017 = vmatmul.mubr.bf16.vlgmr.msra.gmra.mrb[40].mxu1 %v2861_v52  ;;  %4057 = vmatmul.mubr.bf16.vlgmr.msra.gmra.mrb[44].mxu0 %v2863_v53 }
 0x9b6   : > { %5120 = vmatpush3.bf16.msra.mxu1 %v5642_v50  ;;  %5142 = vmatpush3.bf16.msra.mxu0 %v5643_v51  ;;  %v5674_v50 = vld [vmem:[#allocation19 + $0x300] sm:$0xff]  }
 0x9b7   : > { %5121 = vmatprep.subr.bf16.mxu1 %v5644_v54  ;;  %5143 = vmatprep.subr.bf16.mxu0 %v5645_v55  ;;  %v5675_v51 = vld [vmem:[#allocation19 + $0x380] sm:$0xff]   ;;  %v5676_v54 = vld [vmem:[#allocation19 + $0x348] sm:$0xff]  }
 0x9b8   : > { %v5677_v55 = vld [vmem:[#allocation19 + $0x3c8] sm:$0xff]  }
 0x9ba   : > { %5122 = vmatpush3.bf16.msra.mxu1 %v5646_v56  ;;  %5144 = vmatpush3.bf16.msra.mxu0 %v5647_v57  ;;  %v5678_v56 = vld [vmem:[#allocation19 + $0x308] sm:$0xff]  }
 0x9bb   : > { %5123 = vmatprep.subr.bf16.mxu1 %v5648_v58  ;;  %5145 = vmatprep.subr.bf16.mxu0 %v5649_v59  ;;  %v5679_v57 = vld [vmem:[#allocation19 + $0x388] sm:$0xff]   ;;  %v5680_v58 = vld [vmem:[#allocation19 + $0x350] sm:$0xff]  }
 0x9bc   : > { %v5681_v59 = vld [vmem:[#allocation19 + $0x3d0] sm:$0xff]  }
 0x9be   : > { %5124 = vmatpush3.bf16.msra.mxu1 %v5650_v60  ;;  %5146 = vmatpush3.bf16.msra.mxu0 %v5651_v61  ;;  %v5682_v60 = vld [vmem:[#allocation19 + $0x310] sm:$0xff]  }
 0x9bf   : > { %5125 = vmatprep.subr.bf16.mxu1 %v5652_v36  ;;  %5147 = vmatprep.subr.bf16.mxu0 %v5653_v62  ;;  %v5683_v61 = vld [vmem:[#allocation19 + $0x390] sm:$0xff]   ;;  %v5684_v36 = vld [vmem:[#allocation19 + $0x358] sm:$0xff]  }
 0x9c0   : > { %v5685_v62 = vld [vmem:[#allocation19 + $0x3d8] sm:$0xff]  }
 0x9c2   : > { %5126 = vmatpush3.bf16.msra.mxu1 %v5654_v63  ;;  %5148 = vmatpush3.bf16.msra.mxu0 %v5655_v1  ;;  %v5686_v63 = vld [vmem:[#allocation19 + $0x318] sm:$0xff]  }
 0x9c3   : > { %5127 = vmatprep.subr.bf16.mxu1 %v5656_v3  ;;  %5149 = vmatprep.subr.bf16.mxu0 %v5657_v4  ;;  %v5687_v1 = vld [vmem:[#allocation19 + $0x398] sm:$0xff]   ;;  %v5688_v3 = vld [vmem:[#allocation19 + $0x360] sm:$0xff]  }
 0x9c4   : > { %v5689_v4 = vld [vmem:[#allocation19 + $0x3e0] sm:$0xff]  }
 0x9c6   : > { %5128 = vmatpush3.bf16.msra.mxu1 %v5658_v5  ;;  %5150 = vmatpush3.bf16.msra.mxu0 %v5659_v8  ;;  %v5690_v5 = vld [vmem:[#allocation19 + $0x320] sm:$0xff]  }
 0x9c7   : > { %5129 = vmatprep.subr.bf16.mxu1 %v5660_v9  ;;  %5151 = vmatprep.subr.bf16.mxu0 %v5661_v12  ;;  %v5691_v8 = vld [vmem:[#allocation19 + $0x3a0] sm:$0xff]   ;;  %v5692_v9 = vld [vmem:[#allocation19 + $0x368] sm:$0xff]  }
 0x9c8   : > { %v5693_v12 = vld [vmem:[#allocation19 + $0x3e8] sm:$0xff]  }
 0x9ca   : > { %5130 = vmatpush3.bf16.msra.mxu1 %v5662_v13  ;;  %5152 = vmatpush3.bf16.msra.mxu0 %v5663_v14  ;;  %v5694_v13 = vld [vmem:[#allocation19 + $0x328] sm:$0xff]  }
 0x9cb   : > { %5131 = vmatprep.subr.bf16.mxu1 %v5664_v15  ;;  %5153 = vmatprep.subr.bf16.mxu0 %v5665_v16  ;;  %v5695_v14 = vld [vmem:[#allocation19 + $0x3a8] sm:$0xff]   ;;  %v5696_v15 = vld [vmem:[#allocation19 + $0x370] sm:$0xff]  }
 0x9cc   : > { %v2711_v32 = vpop.f32.mrb[28].mxu1  ;;  %v2752_v21 = vpop.f32.mrb[32].mxu0  ;;  %v5697_v16 = vld [vmem:[#allocation19 + $0x3f0] sm:$0xff]  }
 0x9cd   : > { %v2712_v33 = vadd.f32 %v2711_v32, %v1828_v22  ;;  %v2753_v34 = vadd.f32 %v2752_v21, %v1836_v24  ;;  %v2713_v2 = vpop.f32.mrb[29].mxu1  ;;  %v2754_v37 = vpop.f32.mrb[33].mxu0  ;;  %v1844_v22 = vrot.slane %v6993_v0, %v1811_v6  ;;  %v1852_v24 = vrot.slane %v6993_v0, %v1819_v7  ;;  %v5701_v6 = vld [vmem:[#allocation19 + $0x3f8] sm:$0xff]  }
 0x9ce   : > { %v2714_v38 = vadd.f32 %v2713_v2, %v1832_v25  ;;  %v2755_v39 = vadd.f32 %v2754_v37, %v1840_v26  ;;  %v2715_v40 = vpop.f32.mrb[30].mxu1  ;;  %v2756_v23 = vpop.f32.mrb[34].mxu0  ;;  %5132 = vmatpush3.bf16.msra.mxu1 %v5666_v27  ;;  %5154 = vmatpush3.bf16.msra.mxu0 %v5667_v28  ;;  %v1848_v25 = vrot.slane %v6993_v0, %v1815_v10  ;;  %v5698_v27 = vld [vmem:[#allocation19 + $0x330] sm:$0xff]  }
 0x9cf   : > { %v2849_v41 = vmax.f32 %v2712_v33, 0.0  ;;  %v2851_v42 = vmax.f32 %v2753_v34, 0.0  ;;  %v2716_v30 = vpop.f32.mrb[31].mxu1  ;;  %v2757_v43 = vpop.f32.mrb[35].mxu0  ;;  %5133 = vmatprep.subr.bf16.mxu1 %v5668_v29  ;;  %5155 = vmatprep.subr.bf16.mxu0 %v5669_v31  ;;  %v1856_v26 = vrot.slane %v6993_v0, %v1823_v11  ;;  %v5699_v28 = vld [vmem:[#allocation19 + $0x3b0] sm:$0xff]   ;;  %v5700_v29 = vld [vmem:[#allocation19 + $0x378] sm:$0xff]  }
 0x9d0   : > { %v2850_v46 = vmax.f32 %v2714_v38, 0.0  ;;  %v2852_v47 = vmax.f32 %v2755_v39, 0.0  ;;  %v5703_v11 = vld [vmem:[#allocation19 + $0x3b8] sm:$0xff]  }
 0x9d1   : > { %v2865_v52 = vpack.c.bf16 %v2849_v41, %v2849_v41  ;;  %v2867_v53 = vpack.c.bf16 %v2851_v42, %v2851_v42 }
 0x9d2   : > { %v2866_v48 = vpack.c.bf16 %v2850_v46, %v2850_v46  ;;  %v2868_v49 = vpack.c.bf16 %v2852_v47, %v2852_v47  ;;  %5134 = vmatpush3.bf16.msra.mxu1 %v5670_v17  ;;  %5156 = vmatpush3.bf16.msra.mxu0 %v5671_v19  ;;  %v4848_v46 = vld [vmem:[#allocation21] ss:$0 sm:$0xff] }
 0x9d3   : > { %5163 = vmatprep.subr.bf16.mxu1 %v5672_v44  ;;  %5185 = vmatprep.subr.bf16.mxu0 %v5673_v45 }
 0x9d4   : > { %4096 = vmatprep.mubr.bf16.mxu1 %v2866_v48  ;;  %4136 = vmatprep.mubr.bf16.mxu0 %v2868_v49 }
 0x9d5   : > { %4097 = vmatmul.mubr.bf16.vlgmr.msra.gmra.mrb[44].mxu1 %v2865_v52  ;;  %4137 = vmatmul.mubr.bf16.vlgmr.msra.gmra.mrb[48].mxu0 %v2867_v53 }
 0x9d6   : > { %5164 = vmatpush3.bf16.msra.mxu1 %v5674_v50  ;;  %5186 = vmatpush3.bf16.msra.mxu0 %v5675_v51 }
 0x9d7   : > { %5165 = vmatprep.subr.bf16.mxu1 %v5676_v54  ;;  %5187 = vmatprep.subr.bf16.mxu0 %v5677_v55 }
 0x9da   : > { %5166 = vmatpush3.bf16.msra.mxu1 %v5678_v56  ;;  %5188 = vmatpush3.bf16.msra.mxu0 %v5679_v57 }
 0x9db   : > { %5167 = vmatprep.subr.bf16.mxu1 %v5680_v58  ;;  %5189 = vmatprep.subr.bf16.mxu0 %v5681_v59 }
 0x9de   : > { %5168 = vmatpush3.bf16.msra.mxu1 %v5682_v60  ;;  %5190 = vmatpush3.bf16.msra.mxu0 %v5683_v61 }
 0x9df   : > { %5169 = vmatprep.subr.bf16.mxu1 %v5684_v36  ;;  %5191 = vmatprep.subr.bf16.mxu0 %v5685_v62 }
 0x9e2   : > { %5170 = vmatpush3.bf16.msra.mxu1 %v5686_v63  ;;  %5192 = vmatpush3.bf16.msra.mxu0 %v5687_v1 }
 0x9e3   : > { %5171 = vmatprep.subr.bf16.mxu1 %v5688_v3  ;;  %5193 = vmatprep.subr.bf16.mxu0 %v5689_v4 }
 0x9e6   : > { %5172 = vmatpush3.bf16.msra.mxu1 %v5690_v5  ;;  %5194 = vmatpush3.bf16.msra.mxu0 %v5691_v8 }
 0x9e7   : > { %5173 = vmatprep.subr.bf16.mxu1 %v5692_v9  ;;  %5195 = vmatprep.subr.bf16.mxu0 %v5693_v12 }
 0x9ea   : > { %5174 = vmatpush3.bf16.msra.mxu1 %v5694_v13  ;;  %5196 = vmatpush3.bf16.msra.mxu0 %v5695_v14 }
 0x9eb   : > { %5175 = vmatprep.subr.bf16.mxu1 %v5696_v15  ;;  %5197 = vmatprep.subr.bf16.mxu0 %v5697_v16 }
 0x9ec   : > { %v2793_v31 = vpop.f32.mrb[32].mxu1  ;;  %v2834_v32 = vpop.f32.mrb[36].mxu0 }
 0x9ed   : > { %v2794_v21 = vadd.f32 %v2793_v31, %v1844_v22  ;;  %v2835_v7 = vadd.f32 %v2834_v32, %v1852_v24  ;;  %v2795_v33 = vpop.f32.mrb[33].mxu1  ;;  %v2836_v34 = vpop.f32.mrb[37].mxu0 }
 0x9ee   : > { %v2796_v2 = vadd.f32 %v2795_v33, %v1848_v25  ;;  %v2837_v37 = vadd.f32 %v2836_v34, %v1856_v26  ;;  %v2797_v38 = vpop.f32.mrb[34].mxu1  ;;  %v2838_v10 = vpop.f32.mrb[38].mxu0  ;;  %5176 = vmatpush3.bf16.msra.mxu1 %v5698_v27  ;;  %5198 = vmatpush3.bf16.msra.mxu0 %v5699_v28 }
 0x9ef   : > { %v2853_v0 = vmax.f32 %v2794_v21, 0.0  ;;  %v2855_v39 = vmax.f32 %v2835_v7, 0.0  ;;  %v2798_v40 = vpop.f32.mrb[35].mxu1  ;;  %v2839_v23 = vpop.f32.mrb[39].mxu0  ;;  %5177 = vmatprep.subr.bf16.mxu1 %v5700_v29  ;;  %5199 = vmatprep.subr.bf16.mxu0 %v5701_v6 }
 0x9f0   : > { %v2854_v17 = vmax.f32 %v2796_v2, 0.0  ;;  %v2856_v19 = vmax.f32 %v2837_v37, 0.0  ;;  %v5705_v23 = vld [vmem:[#allocation25 + $0x8] sm:$0xff]  }
 0x9f1   : > { %v2869_v30 = vpack.c.bf16 %v2853_v0, %v2853_v0  ;;  %v2871_v43 = vpack.c.bf16 %v2855_v39, %v2855_v39 }
 0x9f2   : > { %v2870_v41 = vpack.c.bf16 %v2854_v17, %v2854_v17  ;;  %v2872_v42 = vpack.c.bf16 %v2856_v19, %v2856_v19  ;;  %5178 = vmatpush3.bf16.msra.mxu1 %v5702_v20  ;;  %5200 = vmatpush3.bf16.msra.mxu0 %v5703_v11  ;;  %v5704_v20 = vld [vmem:[#allocation25] sm:$0xff]   ;;  %v5706_v17 = vld [vmem:[#allocation25 + $0x10] sm:$0xff]   ;;  %v5707_v19 = vld [vmem:[#allocation25 + $0x18] sm:$0xff]  }
 0x9f3   : > { %5304 = vmatprep.subr.bf16.mxu1 %v6304_v18 }
 0x9f4   : > { %4176 = vmatprep.mubr.bf16.mxu1 %v2870_v41  ;;  %4216 = vmatprep.mubr.bf16.mxu0 %v2872_v42  ;;  %v5709_v41 = vld [vmem:[#allocation25 + $0x28] sm:$0xff]   ;;  %v5710_v42 = vld [vmem:[#allocation25 + $0x30] sm:$0xff]  }
 0x9f5   : > { %4177 = vmatmul.mubr.bf16.vlgmr.msra.gmra.mrb[48].mxu1 %v2869_v30  ;;  %4217 = vmatmul.mubr.bf16.vlgmr.msra.gmra.mrb[52].mxu0 %v2871_v43  ;;  %v5711_v30 = vld [vmem:[#allocation25 + $0x38] sm:$0xff]  }
 0x9f6   : > { %5320 = vmatprep.mubr.msk.bf16.mxu1 %vm6305_vm0, %v6304_v18  ;;  %5305 = vmatpush3.bf16.msra.mxu1 %v5704_v20 }
 0x9f7   : > { %5306 = vmatprep.subr.bf16.mxu1 %v6304_v18 }
 0x9fa   : > { %5307 = vmatpush3.bf16.msra.mxu1 %v5705_v23 }
 0x9fb   : > { %5308 = vmatprep.subr.bf16.mxu1 %v6304_v18 }
 0x9fe   : > { %5309 = vmatpush3.bf16.msra.mxu1 %v5706_v17 }
 0x9ff   : > { %5310 = vmatprep.subr.bf16.mxu1 %v6304_v18 }
 0xa02   : > { %5311 = vmatpush3.bf16.msra.mxu1 %v5707_v19 }
 0xa03   : > { %5312 = vmatprep.subr.bf16.mxu1 %v6304_v18 }
 0xa68   : > { %v5047_v44 = vpop.f32.mrb[36].mxu1  ;;  %v5069_v45 = vpop.f32.mrb[40].mxu0 }
 0xa69   : > { %v5048_v47 = vpop.f32.mrb[37].mxu1  ;;  %v5070_v48 = vpop.f32.mrb[41].mxu0 }
 0xa6a   : > { %v5049_v49 = vadd.f32 %v5048_v47, %v5047_v44  ;;  %v5071_v50 = vadd.f32 %v5070_v48, %v5069_v45  ;;  %v5050_v51 = vpop.f32.mrb[38].mxu1  ;;  %v5072_v52 = vpop.f32.mrb[42].mxu0  ;;  %v4977_v47 = vld [vmem:[#allocation22] ss:$0 sm:$0xff] }
 0xa6b   : > { %v5051_v53 = vpop.f32.mrb[39].mxu1  ;;  %v5073_v54 = vpop.f32.mrb[43].mxu0 }
 0xa6c   : > { %v3939_v55 = vadd.f32 %v5049_v49, %v4848_v46  ;;  %v4978_v49 = vld [vmem:[#allocation24] ss:$0 sm:$0xff] }
 0xa6e   : > { %v3979_v56 = vadd.f32 %v5071_v50, %v3939_v55 }
 0xa88   : > { %v5091_v57 = vpop.f32.mrb[40].mxu1  ;;  %v5113_v58 = vpop.f32.mrb[44].mxu0 }
 0xa89   : > { %v5092_v59 = vpop.f32.mrb[41].mxu1  ;;  %v5114_v60 = vpop.f32.mrb[45].mxu0 }
 0xa8a   : > { %v5093_v61 = vadd.f32 %v5092_v59, %v5091_v57  ;;  %v5115_v36 = vadd.f32 %v5114_v60, %v5113_v58  ;;  %v5094_v62 = vpop.f32.mrb[42].mxu1  ;;  %v5116_v63 = vpop.f32.mrb[46].mxu0 }
 0xa8b   : > { %v5095_v1 = vpop.f32.mrb[43].mxu1  ;;  %v5117_v3 = vpop.f32.mrb[47].mxu0 }
 0xa8c   : > { %v4019_v4 = vadd.f32 %v5093_v61, %v3979_v56 }
 0xa8e   : > { %v4059_v5 = vadd.f32 %v5115_v36, %v4019_v4 }
 0xaa8   : > { %v5135_v8 = vpop.f32.mrb[44].mxu1  ;;  %v5157_v9 = vpop.f32.mrb[48].mxu0 }
 0xaa9   : > { %v5136_v12 = vpop.f32.mrb[45].mxu1  ;;  %v5158_v13 = vpop.f32.mrb[49].mxu0 }
 0xaaa   : > { %v5137_v14 = vadd.f32 %v5136_v12, %v5135_v8  ;;  %v5159_v15 = vadd.f32 %v5158_v13, %v5157_v9  ;;  %v5138_v16 = vpop.f32.mrb[46].mxu1  ;;  %v5160_v22 = vpop.f32.mrb[50].mxu0 }
 0xaab   : > { %v5139_v24 = vpop.f32.mrb[47].mxu1  ;;  %v5161_v25 = vpop.f32.mrb[51].mxu0 }
 0xaac   : > { %v4099_v26 = vadd.f32 %v5137_v14, %v4059_v5 }
 0xaae   : > { %v4139_v27 = vadd.f32 %v5159_v15, %v4099_v26 }
 0xac8   : > { %v5179_v28 = vpop.f32.mrb[48].mxu1  ;;  %v5201_v29 = vpop.f32.mrb[52].mxu0 }
 0xac9   : > { %v5180_v6 = vpop.f32.mrb[49].mxu1  ;;  %v5202_v31 = vpop.f32.mrb[53].mxu0 }
 0xaca   : > { %v5181_v32 = vadd.f32 %v5180_v6, %v5179_v28  ;;  %v5203_v21 = vadd.f32 %v5202_v31, %v5201_v29  ;;  %v5182_v7 = vpop.f32.mrb[50].mxu1  ;;  %v5204_v33 = vpop.f32.mrb[54].mxu0 }
 0xacb   : > { %v5183_v34 = vpop.f32.mrb[51].mxu1  ;;  %v5205_v2 = vpop.f32.mrb[55].mxu0 }
 0xacc   : > { %v4179_v37 = vadd.f32 %v5181_v32, %v4139_v27 }
 0xace   : > { %v4219_v38 = vadd.f32 %v5203_v21, %v4179_v37 }
 0xad0   : > { %v4224_v10 = vadd.f32 %v4219_v38, %v6945_v35  ;;  %v5708_v35 = vld [vmem:[#allocation25 + $0x20] sm:$0xff]  }
 0xad1   : > { %5313 = vmatpush3.bf16.msra.mxu1 %v5708_v35 }
 0xad2   : > { %4225 = vadd.xlane.f32.xlu0 %v4224_v10  ;;  %5314 = vmatprep.subr.bf16.mxu1 %v6304_v18 }
 0xad5   : > { %5315 = vmatpush3.bf16.msra.mxu1 %v5709_v41 }
 0xad6   : > { %5316 = vmatprep.subr.bf16.mxu1 %v6304_v18 }
 0xad9   : > { %5317 = vmatpush3.bf16.msra.mxu1 %v5710_v42 }
 0xada   : > { %5318 = vmatprep.subr.bf16.mxu1 %v6304_v18 }
 0xadd   : > { %5319 = vmatpush3.bf16.msra.mxu1 %v5711_v30 }
 0xb5f   : > { %v4226_v11 = vpop.xlane.xlu0 %4225 }
 0xb60   : > { %v4227_v0 = vmul.f32 0.0078125, %v4226_v11 }
 0xb62   : > { %v4228_v39 = vsub.f32 %v4224_v10, %v4227_v0 }
 0xb64   : > { %v4229_v40 = vmul.f32 %v4228_v39, %v4228_v39 }
 0xb66   : > { %4230 = vadd.xlane.f32.xlu0 %v4229_v40 }
 0xbf3   : > { %v4231_v43 = vpop.xlane.xlu0 %4230 }
 0xbf4   : > { %v4232_v44 = vmul.f32 0.0078125, %v4231_v43 }
 0xbf6   : > { %v4233_v45 = vadd.f32 1e-05, %v4232_v44 }
 0xbf8   : > { %5730 = vrsqrt.f32 %v4233_v45 }
 0xc02   : > { %v5731_v46 = vpop.eup %5730 }
 0xc03   : > { %v4235_v48 = vmul.f32 %v5731_v46, %v4228_v39 }
 0xc05   : > { %v4243_v50 = vmul.f32 %v4977_v47, %v4235_v48 }
 0xc07   : > { %v4251_v51 = vadd.f32 %v4978_v49, %v4243_v50 }
 0xc09   : > { %v4252_v52 = vpack.c.bf16 %v4251_v51, %v4251_v51 }
 0xc0b   : > { %v4272_v53 = vshrl.u32 %v4252_v52, 16  ;;  %4253 = vst [vmem:[%s725_s22] sm:$0xf] %v4252_v52 }
 0xc0d   : > { %v4274_v18 = vrot.slane %v4272_v53, 3 }
 0xc0f   : > { %5321 = vmatmul.mubr.bf16.vlgmr.msra.gmra.mrb[52].mxu1 %v4274_v18 }
 0xc10   : > { %6168 = shalt.err (!%p6165_p7)
}
 0xc11   : > { %s6169_s22 = scalar_lea.hbm %s7033_s30, 64  ;;  %s6173_s2 = scalar_lea.hbm %s7179_s15, 128 }
 0xc12   : > { %p6170_p10 = scmp.ne.s32.totalorder %s7033_s30, %s6169_s22  ;;  %p6174_p12 = scmp.lt.u32.totalorder %s7033_s30, %s7179_s15 }
 0xc13   : > { %p6175_p13 = scmp.lt.u32.totalorder %s6173_s2, %s6169_s22  ;;  %p6177_p6 = scmp.lt.u32.totalorder %s6169_s22, %s7033_s30 }
 0xc14   : > { %p6171_p11 = pnand %p6170_p10, %p7180_p9 }
 0xc15   : > { %p6176_p1 = por %p6175_p13, %p6174_p12 }
 0xc16   : > { %p6172_p3 = pneg %p6171_p11 }
 0xc17   : > { %p6178_p4 = por %p6177_p6, %p6176_p1 }
 0xc19   : > { %p6179_p8 = pnand %p6178_p4, %p6172_p3 }
 0xc1b   : > { %6182 = shalt.err (!%p6179_p8)
}
 0xc1c   : > { %5382 = dma.vmem_to_hbm [thread:$0]  (%p7180_p9), %s4384_s23, 64, %s7033_s30, %s4366_s28   ;;  %v4270_v54 = vld [vmem:[#allocation27] sm:$0x1] }
 0xc1d   : > { %s4989_s19 = sshll.u32 %s7164_s29, 4  ;;  %s731_s1 = scalar_lea.vmem [#allocation29], %s6792_s20 }
 0xc1e   : > { %s4396_s17 = sshll.u32 %s731_s1, 4  ;;  %s7181_s2 = sld [smem:[#allocation51_spill]]  ;;  %s7060_s17 = int_to_ptr.vmem [resolvable:$true] %s4396_s17 }
 0xc1f   : > { %s4371_s30 = scalar_lea.sflag [#allocation30], %s6792_s20  ;;  %s6183_s29 = scalar_lea.vmem %s7060_s17, 16 }
 0xc20   : > { %p6184_p0 = scmp.ne.s32.totalorder %s7060_s17, %s6183_s29  ;;  %s6310_s23 = smov [#allocation29]  }
 0xc21   : > { %s6187_s28 = sshll.u32 %s6310_s23, 4  ;;  %s6188_s28 = int_to_ptr.vmem [resolvable:$false] %s6187_s28 }
 0xc22   : > { %p6185_p5 = pnand %p6184_p0, %p7180_p9  ;;  %s6189_s3 = scalar_lea.vmem %s6188_s28, 32 }
 0xc23   : > { %p6190_p7 = scmp.lt.s32.totalorder %s7060_s17, %s6188_s28  ;;  %p6191_p10 = scmp.lt.s32.totalorder %s6189_s3, %s6183_s29 }
 0xc24   : > { %s7058_s18 = scalar_lea.hbm %s7181_s2, %s4989_s19  ;;  %p6186_p2 = pneg %p6185_p5 }
 0xc25   : > { %p6192_p11 = por %p6191_p10, %p6190_p7 }
 0xc27   : > { %p6193_p3 = pnand %p6192_p11, %p6186_p2 }
 0xce2   : > { %v4358_v55 = vpop.f32.mrb[52].mxu1 }
 0xce3   : > { %v4359_v56 = vadd.f32 %v4358_v55, %v4270_v54  ;;  %v5322_v57 = vpop.f32.mrb[53].mxu1 }
 0xce4   : > { %v4361_v58 = vpop.f32.mrb[54].mxu1 }
 0xce5   : > { %4364 = vst [vmem:[%s731_s1] sm:$0x1] %v4359_v56  ;;  %v5323_v59 = vpop.f32.mrb[55].mxu1 }
 0xce6   : > { %6196 = shalt.err (!%p6193_p3)
}
 0xce7   : > { %s6197_s20 = scalar_lea.hbm %s7058_s18, 16  ;;  %s6201_s21 = scalar_lea.hbm %s7181_s2, 32 }
 0xce8   : > { %p6198_p12 = scmp.ne.s32.totalorder %s7058_s18, %s6197_s20  ;;  %p6202_p6 = scmp.lt.u32.totalorder %s7058_s18, %s7181_s2 }
 0xce9   : > { %p6203_p4 = scmp.lt.u32.totalorder %s6201_s21, %s6197_s20  ;;  %p6205_p0 = scmp.lt.u32.totalorder %s6197_s20, %s7058_s18 }
 0xcea   : > { %p6199_p13 = pnand %p6198_p12, %p7180_p9 }
 0xceb   : > { %p6204_p8 = por %p6203_p4, %p6202_p6 }
 0xcec   : > { %p6200_p1 = pneg %p6199_p13 }
 0xced   : > { %p6206_p5 = por %p6205_p0, %p6204_p8 }
 0xcef   : > { %p6207_p2 = pnand %p6206_p5, %p6200_p1 }
 0xcf1   : > { %6210 = shalt.err (!%p6207_p2)
}
 0xcf2   : > { %5383 = dma.vmem_to_hbm [thread:$0]  (%p7180_p9), %s7060_s17, 16, %s7058_s18, %s4371_s30  }
 0xcf3 PF: > { %s7182_s29 = sld [smem:[#allocation41_spill]]  ;;  %p7183_p7 = scmp.ne.s32.totalorder %s7158_s26, 0 }
 0xcf4   : > { %p7184_p10 = scmp.ge.s32.totalorder %s6281_s24, 2 }
 0xcf6   : > { %p5434_p11 = pnand %p7184_p10, %p7183_p7 }
 0xcf9   : > { %s4408_s28 = sand.u32 1, %s7182_s29  }
 0xcfa   : > { %s4409_s3 = scalar_lea.sflag [#allocation6], %s4408_s28 }
 0xcfb   : > { %6260 = dma.done.wait (!%p5434_p11), %s4409_s3, 64  }
 0xcfc   : > { %6262 = vsyncadd (!%p5434_p11), %s4409_s3, 4294967232  ;;  %s4418_s20 = scalar_lea.sflag [#allocation30], %s4408_s28 }
 0xcfd   : > { %6264 = dma.done.wait (!%p5434_p11), %s4418_s20, 16  }
 0xcfe   : > { %6266 = vsyncadd (!%p5434_p11), %s4418_s20, 4294967280  ;;  %s7185_s21 = sld [smem:[#allocation42_spill]]  ;;  %s7186_s22 = sld [smem:[#allocation43_spill]] }
 0xcff   : > { %p40_p9 = scmp.ge.s32.totalorder %s6722_s0, 4   ;;  %s7187_s23 = smov %s6734_s16 }
 0xd00   : > { %s7188_s24 = smov %s6722_s0 }
 0xd01   :  { %42 = sbr.rel (!%p40_p9) target bundleno = 21 (0x15), region = 198 }
 0xd08   :  { %4422 = vsyncpa [#allocation5], 1 }
 0xd09   :  { %4424 = vsyncpa [#allocation5 + $0x1], 1 }
 0xd0a   :  { %4425 = vsyncpa [#allocation8], 1 }
 0xd0b   :  { %4426 = vsyncpa [#allocation11], 1 }
 0xd0c   :  { %4427 = vsyncpa [#allocation14], 1 }
 0xd0d   :  { %4428 = vsyncpa [#allocation17], 1 }
 0xd0e   :  { %4429 = vsyncpa [#allocation20], 1 }
 0xd0f   :  { %4430 = vsyncpa [#allocation23], 1 }
 0xd10   :  { %4431 = vsyncpa [#allocation26], 1 }
 0xd11   :  { %4432 = vsyncpa [#allocation6], 1 }
 0xd12   :  { %4434 = vsyncpa [#allocation6 + $0x1], 1 }
 0xd13   :  { %4435 = vsyncpa [#allocation30], 1 }
 0xd14   :  { %4437 = vsyncpa [#allocation30 + $0x1], 1 }

</bundles_post_ra>
